<compile_context>
chip_gen: v6e
topology: v6e:2x2x1
jax: 0.10.0
libtpu: 0.0.40
codegen_flags: <defaults>
</compile_context>

<pallas_src>
import jax
import jax.numpy as jnp
from jax.experimental import pallas as pl
from jax.experimental.pallas import tpu as pltpu

IBITS = 8
FBITS = 8

_SCALE = float(2.0 ** FBITS)            # 256
_INV_SCALE = float(2.0 ** (-FBITS))     # 1/256 (exact power-of-two scaling)
_QMAX = float(2.0 ** (IBITS + FBITS - 1) - 1.0)   # 32767  -> fits int16 exactly
_QMIN = float(-(2.0 ** (IBITS + FBITS - 1)))      # -32768


def _fpquant(x):
    """Fixed-point fake quantization (real-valued result on the Q8.8 grid)."""
    return jnp.clip(jnp.round(x * _SCALE), _QMIN, _QMAX) * _INV_SCALE


def _quant_to_i16(x):
    """Fake-quantize and return the Q8.8 integer representation (value*256)."""
    return jnp.clip(jnp.round(x * _SCALE), _QMIN, _QMAX).astype(jnp.int16)


# ----------------------------------------------------------------------------
# Pallas kernels
# ----------------------------------------------------------------------------
def _conv_pool_kernel(p_ref, w_ref, b_ref, o_ref):
    """Fused conv(matmul over im2col patches) + bias + ReLU + fake-quant + 2x2
    max-pool for ONE image.

    p_ref: [HW, K]  int16 Q8.8 integers; rows ordered in pool groups of 4
           (ho, wo, di, dj), K order (ki, kj, cin).
    w_ref: [K, C]   f32, fake-quantized weights with the 2^-8 activation scale
           already folded in.
    b_ref: [1, C]   f32, fake-quantized bias.
    o_ref: [HW//4, C] int16 Q8.8 integers (pooled output, raster (ho, wo) order).
    """
    x = p_ref[...].astype(jnp.float32)                      # scale folded into w
    y = jnp.dot(x, w_ref[...], preferred_element_type=jnp.float32)
    y = jnp.maximum(y + b_ref[...], 0.0)                    # bias + ReLU
    q = jnp.clip(jnp.round(y * _SCALE), _QMIN, _QMAX)       # fake-quant (as ints)
    hw, c = y.shape
    q = q.reshape(hw // 4, 4, c)                            # pool groups of 4
    q = jnp.maximum(jnp.maximum(q[:, 0, :], q[:, 1, :]),
                    jnp.maximum(q[:, 2, :], q[:, 3, :]))    # fused 2x2 max-pool
    o_ref[...] = q.astype(jnp.int16)


def _fc_fused_kernel(x_ref, w1_ref, b1_ref, w2_ref, b2_ref, o_ref):
    """fc1 (+ReLU + fake-quant) and fc2 (+fake-quant) fused; weights resident.

    x_ref: [TB, 1568] int16 Q8.8 integers (2^-8 scale folded into w1).
    """
    x = x_ref[...].astype(jnp.float32)
    h = jnp.dot(x, w1_ref[...], preferred_element_type=jnp.float32) + b1_ref[...]
    h = _fpquant(jnp.maximum(h, 0.0))
    y = jnp.dot(h, w2_ref[...], preferred_element_type=jnp.float32) + b2_ref[...]
    o_ref[...] = _fpquant(y).astype(o_ref.dtype)


# ----------------------------------------------------------------------------
# Wrappers around pallas_call
# ----------------------------------------------------------------------------
def conv_relu_quant_pool(p, w_q, b_q):
    """p: [N, HW, K] int16 -> pooled activations [N, HW//4, Cout] int16.

    Grid is one step per image (N >= 2 keeps both v7x TensorCores busy);
    weights/bias are resident via constant index_map.  All block dims equal
    the full array dims, so no padding / slicing is needed around the call.
    """
    N, HW, K = p.shape
    Cout = w_q.shape[1]
    return pl.pallas_call(
        _conv_pool_kernel,
        out_shape=jax.ShapeDtypeStruct((N, HW // 4, Cout), jnp.int16),
        grid=(N,),
        in_specs=[
            pl.BlockSpec((None, HW, K), lambda i: (i, 0, 0)),   # per-image patches
            pl.BlockSpec((K, Cout), lambda i: (0, 0)),          # resident weight
            pl.BlockSpec((1, Cout), lambda i: (0, 0)),          # resident bias
        ],
        out_specs=pl.BlockSpec((None, HW // 4, Cout), lambda i: (i, 0, 0)),
        compiler_params=pltpu.CompilerParams(dimension_semantics=("parallel",)),
    )(p, w_q, b_q)


def fc_fused(feat, w1_q, b1_q, w2_q, b2_q):
    """feat: [N, 1568] int16 Q8.8 ints -> logits [N, 10] f32."""
    N, K1 = feat.shape
    H = w1_q.shape[1]
    Nout = w2_q.shape[1]
    # Whole (small) batch per step; only tile/pad for very large ragged batches.
    # TODO(synk): at batch <= TB this is a 1-step grid (one idle TC on v7x).
    TB = N if N <= 512 else 512
    pad = (-N) % TB
    if pad:
        feat = jnp.pad(feat, ((0, pad), (0, 0)))
    M = N + pad
    out = pl.pallas_call(
        _fc_fused_kernel,
        out_shape=jax.ShapeDtypeStruct((M, Nout), jnp.float32),
        grid=(M // TB,),
        in_specs=[
            pl.BlockSpec((TB, K1), lambda i: (i, 0)),
            pl.BlockSpec((K1, H), lambda i: (0, 0)),
            pl.BlockSpec((1, H), lambda i: (0, 0)),
            pl.BlockSpec((H, Nout), lambda i: (0, 0)),
            pl.BlockSpec((1, Nout), lambda i: (0, 0)),
        ],
        out_specs=pl.BlockSpec((TB, Nout), lambda i: (i, 0)),
        compiler_params=pltpu.CompilerParams(dimension_semantics=("parallel",)),
    )(feat, w1_q, b1_q, w2_q, b2_q)
    return out[:N] if pad else out


# ----------------------------------------------------------------------------
# Glue (im2col in pool-group row order) — plain JAX, fuses in XLA
# ----------------------------------------------------------------------------
def _im2col_3x3_pad1_pool_grouped(x):
    """x: [N, H, W, C] (int16 Q8.8 ints) -> patches [N, H*W, 9*C].

    K order is (ki, kj, c).  Rows are ordered (ho, wo, di, dj) so that every
    consecutive group of 4 rows is one 2x2 max-pool window of the conv output;
    the conv kernel pools in its epilogue without any HBM round trip.
    """
    N, H, W, C = x.shape
    xp = jnp.pad(x, ((0, 0), (1, 1), (1, 1), (0, 0)))
    cols = [xp[:, i:i + H, j:j + W, :] for i in range(3) for j in range(3)]
    p = jnp.concatenate(cols, axis=-1)                      # [N, H, W, 9C]
    p = p.reshape(N, H // 2, 2, W // 2, 2, 9 * C)
    p = jnp.transpose(p, (0, 1, 3, 2, 4, 5))                # (n, ho, wo, di, dj, k)
    return p.reshape(N, H * W, 9 * C)


# ----------------------------------------------------------------------------
# Parameters (PyTorch layout) and one-time kernel-ready preparation
# ----------------------------------------------------------------------------
def init_params(key):
    def uni(k, shape, fan_in):
        bound = 1.0 / jnp.sqrt(jnp.float32(fan_in))
        return jax.random.uniform(k, shape, jnp.float32, -bound, bound)

    ks = jax.random.split(key, 8)
    return {
        "conv1_w": uni(ks[0], (16, 1, 3, 3), 1 * 9),
        "conv1_b": uni(ks[1], (16,), 1 * 9),
        "conv2_w": uni(ks[2], (32, 16, 3, 3), 16 * 9),
        "conv2_b": uni(ks[3], (32,), 16 * 9),
        "fc1_w": uni(ks[4], (128, 32 * 7 * 7), 32 * 7 * 7),
        "fc1_b": uni(ks[5], (128,), 32 * 7 * 7),
        "fc2_w": uni(ks[6], (10, 128), 128),
        "fc2_b": uni(ks[7], (10,), 128),
    }


def prepare_params(params):
    """Fake-quantize / transpose weights once; fold the Q8.8 activation scale
    (2^-8, exact) into every weight that consumes int16 integer activations."""
    def conv_w(w):  # [Cout, Cin, 3, 3] -> [9*Cin, Cout], K order (ki, kj, cin)
        cout, cin = w.shape[0], w.shape[1]
        w2 = jnp.transpose(w, (2, 3, 1, 0)).reshape(9 * cin, cout)
        return _fpquant(w2) * _INV_SCALE

    def vec_b(b):   # [C] -> [1, C]
        return _fpquant(b).reshape(1, b.shape[0])

    # fc1 weight columns are in PyTorch's NCHW flatten order (c, h, w); permute
    # to the NHWC flatten order (h, w, c) used by the kernel-side activations.
    fc1_w = params["fc1_w"].reshape(128, 32, 7, 7)
    fc1_w = jnp.transpose(fc1_w, (0, 2, 3, 1)).reshape(128, 32 * 7 * 7).T  # [1568,128]
    fc2_w = params["fc2_w"].T                                              # [128,10]
    return {
        "conv1_w": conv_w(params["conv1_w"]), "conv1_b": vec_b(params["conv1_b"]),
        "conv2_w": conv_w(params["conv2_w"]), "conv2_b": vec_b(params["conv2_b"]),
        "fc1_w": _fpquant(fc1_w) * _INV_SCALE, "fc1_b": vec_b(params["fc1_b"]),
        "fc2_w": _fpquant(fc2_w),              "fc2_b": vec_b(params["fc2_b"]),
    }


# ----------------------------------------------------------------------------
# Model forward
# ----------------------------------------------------------------------------
def quantized_cnn_forward(prepared, x_nchw):
    # x: [N, 1, 28, 28] (NCHW, like PyTorch).  Single boundary transpose to
    # NHWC; all inter-kernel activations are int16 Q8.8 integers with only the
    # real channel counts (no lane padding), rows in raster (h, w) order.
    N = x_nchw.shape[0]
    x = jnp.transpose(x_nchw, (0, 2, 3, 1)).astype(jnp.float32)    # [N,28,28,1]
    x = _quant_to_i16(x)                                            # input fake-quant

    # conv1 + ReLU + quant + 2x2 pool (fused)
    p1 = _im2col_3x3_pad1_pool_grouped(x)                           # [N,784,9] i16
    y1 = conv_relu_quant_pool(p1, prepared["conv1_w"], prepared["conv1_b"])  # [N,196,16]

    # conv2 + ReLU + quant + 2x2 pool (fused)
    p2 = _im2col_3x3_pad1_pool_grouped(y1.reshape(N, 14, 14, 16))   # [N,196,144] i16
    y2 = conv_relu_quant_pool(p2, prepared["conv2_w"], prepared["conv2_b"])  # [N,49,32]

    # fc1 + ReLU + quant + fc2 + quant (fused); NHWC flatten matches permuted fc1_w
    feat = y2.reshape(N, 32 * 7 * 7)                                # [N,1568] i16
    return fc_fused(feat, prepared["fc1_w"], prepared["fc1_b"],
                    prepared["fc2_w"], prepared["fc2_b"])           # [N,10] f32


if __name__ == "__main__":
    key = jax.random.PRNGKey(0)
    k_param, k_x = jax.random.split(key)
    params = init_params(k_param)
    prepared = prepare_params(params)
    # Input must be 1x28x28 for the 32*7*7 flatten in the reference module.
    x = jax.random.normal(k_x, (2, 1, 28, 28), dtype=jnp.float32)

    logits = jax.jit(quantized_cnn_forward)(prepared, x)
    jax.block_until_ready(logits)
    assert logits.shape == (2, 10), logits.shape
    print("KERNEL_OK")
</pallas_src>

<mosaic_0001>
module attributes {stable_mosaic.version = 11 : i64} {
  func.func @_conv_pool_kernel(%arg0: i32, %arg1: memref<1x784x9xi16, #tpu.memory_space<vmem>>, %arg2: memref<9x16xf32, #tpu.memory_space<vmem>>, %arg3: memref<1x16xf32, #tpu.memory_space<vmem>>, %arg4: memref<1x196x16xi16, #tpu.memory_space<vmem>>) attributes {dimension_semantics = [#tpu.dimension_semantics<parallel>], iteration_bounds = array<i64: 2>, scalar_prefetch = 0 : i64, scratch_operands = 0 : i64, tpu.core_type = #tpu.core_type<tc>, window_params = [{transform_indices = @transform_0, window_bounds = array<i64: 1, 784, 9>}, {pipeline_mode = #tpu.pipeline_mode<synchronous>, transform_indices = @transform_1, window_bounds = array<i64: 9, 16>}, {pipeline_mode = #tpu.pipeline_mode<synchronous>, transform_indices = @transform_2, window_bounds = array<i64: 1, 16>}, {transform_indices = @transform_3, window_bounds = array<i64: 1, 196, 16>}]} {
    %c0 = arith.constant 0 : index
    %c0_0 = arith.constant 0 : index
    %c0_1 = arith.constant 0 : index
    %0 = vector.load %arg1[%c0, %c0_0, %c0_1] : memref<1x784x9xi16, #tpu.memory_space<vmem>>, vector<1x784x9xi16>
    %1 = vector.shape_cast %0 : vector<1x784x9xi16> to vector<784x9xi16>
    %2 = arith.sitofp %1 : vector<784x9xi16> to vector<784x9xf32>
    %c0_2 = arith.constant 0 : index
    %c0_3 = arith.constant 0 : index
    %3 = vector.load %arg2[%c0_2, %c0_3] : memref<9x16xf32, #tpu.memory_space<vmem>>, vector<9x16xf32>
    %cst = arith.constant dense<0.000000e+00> : vector<784x16xf32>
    %4 = tpu.matmul %2, %3, %cst {dimension_numbers = #tpu.dot_dimension_numbers<[1], [0], [0], [1], [0, 0, 1, 1], [], []>} : vector<784x9xf32>, vector<9x16xf32>, vector<784x16xf32> -> vector<784x16xf32>
    %c0_4 = arith.constant 0 : index
    %c0_5 = arith.constant 0 : index
    %5 = vector.load %arg3[%c0_4, %c0_5] : memref<1x16xf32, #tpu.memory_space<vmem>>, vector<1x16xf32>
    %6 = vector.broadcast %5 : vector<1x16xf32> to vector<784x16xf32>
    %7 = arith.addf %4, %6 : vector<784x16xf32>
    %cst_6 = arith.constant 0.000000e+00 : f32
    %8 = vector.broadcast %cst_6 : f32 to vector<784x16xf32>
    %9 = arith.maximumf %7, %8 : vector<784x16xf32>
    %cst_7 = arith.constant 2.560000e+02 : f32
    %10 = vector.broadcast %cst_7 : f32 to vector<784x16xf32>
    %11 = arith.mulf %9, %10 : vector<784x16xf32>
    %12 = math.roundeven %11 : vector<784x16xf32>
    %cst_8 = arith.constant -3.276800e+04 : f32
    %cst_9 = arith.constant 3.276700e+04 : f32
    %13 = vector.broadcast %cst_8 : f32 to vector<784x16xf32>
    %14 = arith.maximumf %13, %12 : vector<784x16xf32>
    %15 = vector.broadcast %cst_9 : f32 to vector<784x16xf32>
    %16 = arith.minimumf %15, %14 : vector<784x16xf32>
    %17 = vector.shape_cast %16 : vector<784x16xf32> to vector<196x4x16xf32>
    %18 = vector.extract_strided_slice %17 {offsets = [0, 0, 0], sizes = [196, 1, 16], strides = [1, 1, 1]} : vector<196x4x16xf32> to vector<196x1x16xf32>
    %19 = vector.shape_cast %18 : vector<196x1x16xf32> to vector<196x16xf32>
    %20 = vector.extract_strided_slice %17 {offsets = [0, 1, 0], sizes = [196, 1, 16], strides = [1, 1, 1]} : vector<196x4x16xf32> to vector<196x1x16xf32>
    %21 = vector.shape_cast %20 : vector<196x1x16xf32> to vector<196x16xf32>
    %22 = arith.maximumf %19, %21 : vector<196x16xf32>
    %23 = vector.extract_strided_slice %17 {offsets = [0, 2, 0], sizes = [196, 1, 16], strides = [1, 1, 1]} : vector<196x4x16xf32> to vector<196x1x16xf32>
    %24 = vector.shape_cast %23 : vector<196x1x16xf32> to vector<196x16xf32>
    %25 = vector.extract_strided_slice %17 {offsets = [0, 3, 0], sizes = [196, 1, 16], strides = [1, 1, 1]} : vector<196x4x16xf32> to vector<196x1x16xf32>
    %26 = vector.shape_cast %25 : vector<196x1x16xf32> to vector<196x16xf32>
    %27 = arith.maximumf %24, %26 : vector<196x16xf32>
    %28 = arith.maximumf %22, %27 : vector<196x16xf32>
    %29 = arith.fptosi %28 : vector<196x16xf32> to vector<196x16xi16>
    %c0_10 = arith.constant 0 : index
    %c0_11 = arith.constant 0 : index
    %c0_12 = arith.constant 0 : index
    %30 = vector.load %arg4[%c0_10, %c0_11, %c0_12] : memref<1x196x16xi16, #tpu.memory_space<vmem>>, vector<1x196x16xi16>
    %31 = vector.shape_cast %30 : vector<1x196x16xi16> to vector<196x16xi16>
    %32 = vector.shape_cast %29 : vector<196x16xi16> to vector<1x196x16xi16>
    tpu.vector_store %arg4[%c0_10, %c0_11, %c0_12], %32 {strides = array<i32>} : memref<1x196x16xi16, #tpu.memory_space<vmem>>, vector<1x196x16xi16>,
    return
  }
  func.func @transform_0(%arg0: i32) -> (i32, i32, i32) {
    %c0_i32 = arith.constant 0 : i32
    %c0_i32_0 = arith.constant 0 : i32
    %c0_i32_1 = arith.constant 0 : i32
    return %arg0, %c0_i32, %c0_i32_0 : i32, i32, i32
  }
  func.func @transform_1(%arg0: i32) -> (i32, i32) {
    %c0_i32 = arith.constant 0 : i32
    %c0_i32_0 = arith.constant 0 : i32
    %c0_i32_1 = arith.constant 0 : i32
    return %c0_i32, %c0_i32_0 : i32, i32
  }
  func.func @transform_2(%arg0: i32) -> (i32, i32) {
    %c0_i32 = arith.constant 0 : i32
    %c0_i32_0 = arith.constant 0 : i32
    %c0_i32_1 = arith.constant 0 : i32
    return %c0_i32, %c0_i32_0 : i32, i32
  }
  func.func @transform_3(%arg0: i32) -> (i32, i32, i32) {
    %c0_i32 = arith.constant 0 : i32
    %c0_i32_0 = arith.constant 0 : i32
    %c0_i32_1 = arith.constant 0 : i32
    return %arg0, %c0_i32, %c0_i32_0 : i32, i32, i32
  }
}

module attributes {stable_mosaic.version = 11 : i64} {
  func.func @_conv_pool_kernel(%arg0: i32, %arg1: memref<1x196x144xi16, #tpu.memory_space<vmem>>, %arg2: memref<144x32xf32, #tpu.memory_space<vmem>>, %arg3: memref<1x32xf32, #tpu.memory_space<vmem>>, %arg4: memref<1x49x32xi16, #tpu.memory_space<vmem>>) attributes {dimension_semantics = [#tpu.dimension_semantics<parallel>], iteration_bounds = array<i64: 2>, scalar_prefetch = 0 : i64, scratch_operands = 0 : i64, tpu.core_type = #tpu.core_type<tc>, window_params = [{transform_indices = @transform_0, window_bounds = array<i64: 1, 196, 144>}, {pipeline_mode = #tpu.pipeline_mode<synchronous>, transform_indices = @transform_1, window_bounds = array<i64: 144, 32>}, {pipeline_mode = #tpu.pipeline_mode<synchronous>, transform_indices = @transform_2, window_bounds = array<i64: 1, 32>}, {transform_indices = @transform_3, window_bounds = array<i64: 1, 49, 32>}]} {
    %c0 = arith.constant 0 : index
    %c0_0 = arith.constant 0 : index
    %c0_1 = arith.constant 0 : index
    %0 = vector.load %arg1[%c0, %c0_0, %c0_1] : memref<1x196x144xi16, #tpu.memory_space<vmem>>, vector<1x196x144xi16>
    %1 = vector.shape_cast %0 : vector<1x196x144xi16> to vector<196x144xi16>
    %2 = arith.sitofp %1 : vector<196x144xi16> to vector<196x144xf32>
    %c0_2 = arith.constant 0 : index
    %c0_3 = arith.constant 0 : index
    %3 = vector.load %arg2[%c0_2, %c0_3] : memref<144x32xf32, #tpu.memory_space<vmem>>, vector<144x32xf32>
    %cst = arith.constant dense<0.000000e+00> : vector<196x32xf32>
    %4 = tpu.matmul %2, %3, %cst {dimension_numbers = #tpu.dot_dimension_numbers<[1], [0], [0], [1], [0, 0, 1, 1], [], []>} : vector<196x144xf32>, vector<144x32xf32>, vector<196x32xf32> -> vector<196x32xf32>
    %c0_4 = arith.constant 0 : index
    %c0_5 = arith.constant 0 : index
    %5 = vector.load %arg3[%c0_4, %c0_5] : memref<1x32xf32, #tpu.memory_space<vmem>>, vector<1x32xf32>
    %6 = vector.broadcast %5 : vector<1x32xf32> to vector<196x32xf32>
    %7 = arith.addf %4, %6 : vector<196x32xf32>
    %cst_6 = arith.constant 0.000000e+00 : f32
    %8 = vector.broadcast %cst_6 : f32 to vector<196x32xf32>
    %9 = arith.maximumf %7, %8 : vector<196x32xf32>
    %cst_7 = arith.constant 2.560000e+02 : f32
    %10 = vector.broadcast %cst_7 : f32 to vector<196x32xf32>
    %11 = arith.mulf %9, %10 : vector<196x32xf32>
    %12 = math.roundeven %11 : vector<196x32xf32>
    %cst_8 = arith.constant -3.276800e+04 : f32
    %cst_9 = arith.constant 3.276700e+04 : f32
    %13 = vector.broadcast %cst_8 : f32 to vector<196x32xf32>
    %14 = arith.maximumf %13, %12 : vector<196x32xf32>
    %15 = vector.broadcast %cst_9 : f32 to vector<196x32xf32>
    %16 = arith.minimumf %15, %14 : vector<196x32xf32>
    %17 = vector.shape_cast %16 : vector<196x32xf32> to vector<49x4x32xf32>
    %18 = vector.extract_strided_slice %17 {offsets = [0, 0, 0], sizes = [49, 1, 32], strides = [1, 1, 1]} : vector<49x4x32xf32> to vector<49x1x32xf32>
    %19 = vector.shape_cast %18 : vector<49x1x32xf32> to vector<49x32xf32>
    %20 = vector.extract_strided_slice %17 {offsets = [0, 1, 0], sizes = [49, 1, 32], strides = [1, 1, 1]} : vector<49x4x32xf32> to vector<49x1x32xf32>
    %21 = vector.shape_cast %20 : vector<49x1x32xf32> to vector<49x32xf32>
    %22 = arith.maximumf %19, %21 : vector<49x32xf32>
    %23 = vector.extract_strided_slice %17 {offsets = [0, 2, 0], sizes = [49, 1, 32], strides = [1, 1, 1]} : vector<49x4x32xf32> to vector<49x1x32xf32>
    %24 = vector.shape_cast %23 : vector<49x1x32xf32> to vector<49x32xf32>
    %25 = vector.extract_strided_slice %17 {offsets = [0, 3, 0], sizes = [49, 1, 32], strides = [1, 1, 1]} : vector<49x4x32xf32> to vector<49x1x32xf32>
    %26 = vector.shape_cast %25 : vector<49x1x32xf32> to vector<49x32xf32>
    %27 = arith.maximumf %24, %26 : vector<49x32xf32>
    %28 = arith.maximumf %22, %27 : vector<49x32xf32>
    %29 = arith.fptosi %28 : vector<49x32xf32> to vector<49x32xi16>
    %c0_10 = arith.constant 0 : index
    %c0_11 = arith.constant 0 : index
    %c0_12 = arith.constant 0 : index
    %30 = vector.load %arg4[%c0_10, %c0_11, %c0_12] : memref<1x49x32xi16, #tpu.memory_space<vmem>>, vector<1x49x32xi16>
    %31 = vector.shape_cast %30 : vector<1x49x32xi16> to vector<49x32xi16>
    %32 = vector.shape_cast %29 : vector<49x32xi16> to vector<1x49x32xi16>
    tpu.vector_store %arg4[%c0_10, %c0_11, %c0_12], %32 {strides = array<i32>} : memref<1x49x32xi16, #tpu.memory_space<vmem>>, vector<1x49x32xi16>,
    return
  }
  func.func @transform_0(%arg0: i32) -> (i32, i32, i32) {
    %c0_i32 = arith.constant 0 : i32
    %c0_i32_0 = arith.constant 0 : i32
    %c0_i32_1 = arith.constant 0 : i32
    return %arg0, %c0_i32, %c0_i32_0 : i32, i32, i32
  }
  func.func @transform_1(%arg0: i32) -> (i32, i32) {
    %c0_i32 = arith.constant 0 : i32
    %c0_i32_0 = arith.constant 0 : i32
    %c0_i32_1 = arith.constant 0 : i32
    return %c0_i32, %c0_i32_0 : i32, i32
  }
  func.func @transform_2(%arg0: i32) -> (i32, i32) {
    %c0_i32 = arith.constant 0 : i32
    %c0_i32_0 = arith.constant 0 : i32
    %c0_i32_1 = arith.constant 0 : i32
    return %c0_i32, %c0_i32_0 : i32, i32
  }
  func.func @transform_3(%arg0: i32) -> (i32, i32, i32) {
    %c0_i32 = arith.constant 0 : i32
    %c0_i32_0 = arith.constant 0 : i32
    %c0_i32_1 = arith.constant 0 : i32
    return %arg0, %c0_i32, %c0_i32_0 : i32, i32, i32
  }
}

module attributes {stable_mosaic.version = 11 : i64} {
  func.func @_fc_fused_kernel(%arg0: i32, %arg1: memref<2x1568xi16, #tpu.memory_space<vmem>>, %arg2: memref<1568x128xf32, #tpu.memory_space<vmem>>, %arg3: memref<1x128xf32, #tpu.memory_space<vmem>>, %arg4: memref<128x10xf32, #tpu.memory_space<vmem>>, %arg5: memref<1x10xf32, #tpu.memory_space<vmem>>, %arg6: memref<2x10xf32, #tpu.memory_space<vmem>>) attributes {dimension_semantics = [#tpu.dimension_semantics<parallel>], iteration_bounds = array<i64: 1>, scalar_prefetch = 0 : i64, scratch_operands = 0 : i64, tpu.core_type = #tpu.core_type<tc>, window_params = [{transform_indices = @transform_0, window_bounds = array<i64: 2, 1568>}, {pipeline_mode = #tpu.pipeline_mode<synchronous>, transform_indices = @transform_1, window_bounds = array<i64: 1568, 128>}, {pipeline_mode = #tpu.pipeline_mode<synchronous>, transform_indices = @transform_2, window_bounds = array<i64: 1, 128>}, {pipeline_mode = #tpu.pipeline_mode<synchronous>, transform_indices = @transform_3, window_bounds = array<i64: 128, 10>}, {pipeline_mode = #tpu.pipeline_mode<synchronous>, transform_indices = @transform_4, window_bounds = array<i64: 1, 10>}, {transform_indices = @transform_5, window_bounds = array<i64: 2, 10>}]} {
    %c0 = arith.constant 0 : index
    %c0_0 = arith.constant 0 : index
    %0 = vector.load %arg1[%c0, %c0_0] : memref<2x1568xi16, #tpu.memory_space<vmem>>, vector<2x1568xi16>
    %1 = arith.sitofp %0 : vector<2x1568xi16> to vector<2x1568xf32>
    %c0_1 = arith.constant 0 : index
    %c0_2 = arith.constant 0 : index
    %2 = vector.load %arg2[%c0_1, %c0_2] : memref<1568x128xf32, #tpu.memory_space<vmem>>, vector<1568x128xf32>
    %cst = arith.constant dense<0.000000e+00> : vector<2x128xf32>
    %3 = tpu.matmul %1, %2, %cst {dimension_numbers = #tpu.dot_dimension_numbers<[1], [0], [0], [1], [0, 0, 1, 1], [], []>} : vector<2x1568xf32>, vector<1568x128xf32>, vector<2x128xf32> -> vector<2x128xf32>
    %c0_3 = arith.constant 0 : index
    %c0_4 = arith.constant 0 : index
    %4 = vector.load %arg3[%c0_3, %c0_4] : memref<1x128xf32, #tpu.memory_space<vmem>>, vector<1x128xf32>
    %5 = vector.broadcast %4 : vector<1x128xf32> to vector<2x128xf32>
    %6 = arith.addf %3, %5 : vector<2x128xf32>
    %cst_5 = arith.constant 0.000000e+00 : f32
    %7 = vector.broadcast %cst_5 : f32 to vector<2x128xf32>
    %8 = arith.maximumf %6, %7 : vector<2x128xf32>
    %cst_6 = arith.constant 2.560000e+02 : f32
    %9 = vector.broadcast %cst_6 : f32 to vector<2x128xf32>
    %10 = arith.mulf %8, %9 : vector<2x128xf32>
    %11 = math.roundeven %10 : vector<2x128xf32>
    %cst_7 = arith.constant -3.276800e+04 : f32
    %cst_8 = arith.constant 3.276700e+04 : f32
    %12 = vector.broadcast %cst_7 : f32 to vector<2x128xf32>
    %13 = arith.maximumf %12, %11 : vector<2x128xf32>
    %14 = vector.broadcast %cst_8 : f32 to vector<2x128xf32>
    %15 = arith.minimumf %14, %13 : vector<2x128xf32>
    %cst_9 = arith.constant 3.906250e-03 : f32
    %16 = vector.broadcast %cst_9 : f32 to vector<2x128xf32>
    %17 = arith.mulf %15, %16 : vector<2x128xf32>
    %c0_10 = arith.constant 0 : index
    %c0_11 = arith.constant 0 : index
    %18 = vector.load %arg4[%c0_10, %c0_11] : memref<128x10xf32, #tpu.memory_space<vmem>>, vector<128x10xf32>
    %cst_12 = arith.constant dense<0.000000e+00> : vector<2x10xf32>
    %19 = tpu.matmul %17, %18, %cst_12 {dimension_numbers = #tpu.dot_dimension_numbers<[1], [0], [0], [1], [0, 0, 1, 1], [], []>} : vector<2x128xf32>, vector<128x10xf32>, vector<2x10xf32> -> vector<2x10xf32>
    %c0_13 = arith.constant 0 : index
    %c0_14 = arith.constant 0 : index
    %20 = vector.load %arg5[%c0_13, %c0_14] : memref<1x10xf32, #tpu.memory_space<vmem>>, vector<1x10xf32>
    %21 = vector.broadcast %20 : vector<1x10xf32> to vector<2x10xf32>
    %22 = arith.addf %19, %21 : vector<2x10xf32>
    %cst_15 = arith.constant 2.560000e+02 : f32
    %23 = vector.broadcast %cst_15 : f32 to vector<2x10xf32>
    %24 = arith.mulf %22, %23 : vector<2x10xf32>
    %25 = math.roundeven %24 : vector<2x10xf32>
    %cst_16 = arith.constant -3.276800e+04 : f32
    %cst_17 = arith.constant 3.276700e+04 : f32
    %26 = vector.broadcast %cst_16 : f32 to vector<2x10xf32>
    %27 = arith.maximumf %26, %25 : vector<2x10xf32>
    %28 = vector.broadcast %cst_17 : f32 to vector<2x10xf32>
    %29 = arith.minimumf %28, %27 : vector<2x10xf32>
    %cst_18 = arith.constant 3.906250e-03 : f32
    %30 = vector.broadcast %cst_18 : f32 to vector<2x10xf32>
    %31 = arith.mulf %29, %30 : vector<2x10xf32>
    %c0_19 = arith.constant 0 : index
    %c0_20 = arith.constant 0 : index
    %32 = vector.load %arg6[%c0_19, %c0_20] : memref<2x10xf32, #tpu.memory_space<vmem>>, vector<2x10xf32>
    tpu.vector_store %arg6[%c0_19, %c0_20], %31 {strides = array<i32>} : memref<2x10xf32, #tpu.memory_space<vmem>>, vector<2x10xf32>,
    return
  }
  func.func @transform_0(%arg0: i32) -> (i32, i32) {
    %c0_i32 = arith.constant 0 : i32
    %c0_i32_0 = arith.constant 0 : i32
    return %arg0, %c0_i32 : i32, i32
  }
  func.func @transform_1(%arg0: i32) -> (i32, i32) {
    %c0_i32 = arith.constant 0 : i32
    %c0_i32_0 = arith.constant 0 : i32
    %c0_i32_1 = arith.constant 0 : i32
    return %c0_i32, %c0_i32_0 : i32, i32
  }
  func.func @transform_2(%arg0: i32) -> (i32, i32) {
    %c0_i32 = arith.constant 0 : i32
    %c0_i32_0 = arith.constant 0 : i32
    %c0_i32_1 = arith.constant 0 : i32
    return %c0_i32, %c0_i32_0 : i32, i32
  }
  func.func @transform_3(%arg0: i32) -> (i32, i32) {
    %c0_i32 = arith.constant 0 : i32
    %c0_i32_0 = arith.constant 0 : i32
    %c0_i32_1 = arith.constant 0 : i32
    return %c0_i32, %c0_i32_0 : i32, i32
  }
  func.func @transform_4(%arg0: i32) -> (i32, i32) {
    %c0_i32 = arith.constant 0 : i32
    %c0_i32_0 = arith.constant 0 : i32
    %c0_i32_1 = arith.constant 0 : i32
    return %c0_i32, %c0_i32_0 : i32, i32
  }
  func.func @transform_5(%arg0: i32) -> (i32, i32) {
    %c0_i32 = arith.constant 0 : i32
    %c0_i32_0 = arith.constant 0 : i32
    return %arg0, %c0_i32 : i32, i32
  }
}

</mosaic_0001>

<bundles_post_ra>
// kernel: quantized_cnn_forward.4
= control target key start
LH: loop header
LB: loop body
LE: loop exit
PB: predicated region body
PF: predicated region fallthrough
CT: control target
= control target key end

     0   :  { %s2195_s12 = smov 0   ;;  %s2725_s0 = inlined_call_operand.vmem [shape: s16[2,196,144], index: 0, kind: input, shape index: {}]   ;;  %s2726_s1 = inlined_call_operand.vmem [shape: f32[144,32], index: 1, kind: input, shape index: {}]   ;;  %s2727_s2 = inlined_call_operand.vmem [shape: f32[1,32], index: 2, kind: input, shape index: {}]   ;;  %s2728_s3 = inlined_call_operand.vmem [shape: s16[2,49,32], index: 3, kind: output, shape index: {}]  }
   0x1 LB: > { %s1637_s13 = sadd.s32 4294967295, %s2172_s12   ;;  %p1641_p0 = scmp.ge.s32.totalorder %s2172_s12, 1  ;;  %s2172_s12 = sphi %s2195_s12, %s13_s12  }
   0x2   : > { %p137_p1 = scmp.lt.s32.totalorder %s2172_s12, 3 }
   0x4   : > { %p138_p2 = pnand %p1641_p0, %p137_p1 }
   0x5   : > { %p161_p3 = scmp.lt.s32.totalorder (!%p138_p2), %s1637_s13, 1 }
   0x6   : > { %141 = sbr.rel (%p138_p2) target bundleno = 483 (0x1e3), region = 32 }
   0xb   : > { %v311_v0 = vld [vmem:[%s2726_s1 + $0x78] sm:$0xff]  ;;  %v2174_v1 = vmov 0.0   ;;  %v310_v2 = vld [vmem:[%s2726_s1 + $0x70] sm:$0xff]  ;;  %v309_v3 = vld [vmem:[%s2726_s1 + $0x68] sm:$0xff]  ;;  %s2768_s13 = smov (!%p161_p3, %s1637_s13), 1  ;;  %vm321_vm0 = vcmask 130048  }
   0xc   : > { %397 = vmatprep.subr.mxu0 %v2174_v1  ;;  %1820 = vmatprep.subr.mxu1 %v2174_v1  ;;  %v308_v4 = vld [vmem:[%s2726_s1 + $0x60] sm:$0xff]  ;;  %v307_v5 = vld [vmem:[%s2726_s1 + $0x58] sm:$0xff]  ;;  %v306_v6 = vld [vmem:[%s2726_s1 + $0x50] sm:$0xff]  ;;  %s1856_s9 = smul.u32 200, %s2768_s13  ;;  %vm1472_vm7 = vcmask 1041409   ;;  %vm1475_vm8 = vcmask 1042434  }
   0xd   : > { %398 = vmatpush1.msra.mxu0 %v311_v0  ;;  %1838 = vmatpush1.msra.mxu1 %v311_v0  ;;  %v305_v7 = vld [vmem:[%s2726_s1 + $0x48] sm:$0xff]  ;;  %v304_v8 = vld [vmem:[%s2726_s1 + $0x40] sm:$0xff]  ;;  %v303_v9 = vld [vmem:[%s2726_s1 + $0x38] sm:$0xff]  ;;  %vm1478_vm9 = vcmask 1043459   ;;  %vm1481_vm11 = vcmask 1044484   ;;  %vm1484_vm13 = vcmask 1045509  }
   0xe   : > { %399 = vmatprep.subr.mxu0 %v2174_v1  ;;  %1821 = vmatprep.subr.mxu1 %v2174_v1  ;;  %v302_v10 = vld [vmem:[%s2726_s1 + $0x30] sm:$0xff]  ;;  %v301_v11 = vld [vmem:[%s2726_s1 + $0x28] sm:$0xff]  ;;  %v300_v12 = vld [vmem:[%s2726_s1 + $0x20] sm:$0xff]  ;;  %s2276_s18 = scalar_lea.vmem %s2725_s0, %s1856_s9  ;;  %vm1487_vm15 = vcmask 1046534   ;;  %s1857_s4 = smul.u32 28, %s2768_s13 }
   0xf   : > { %400 = vmatpush1.msra.mxu0 %v310_v2  ;;  %1839 = vmatpush1.msra.mxu1 %v310_v2  ;;  %v299_v13 = vld [vmem:[%s2726_s1 + $0x18] sm:$0xff]  ;;  %v298_v14 = vld [vmem:[%s2726_s1 + $0x10] sm:$0xff]  ;;  %v171_v15 = vld [vmem:[%s2276_s18] sm:$0xff] }
  0x10   : > { %401 = vmatprep.subr.mxu0 %v2174_v1  ;;  %1822 = vmatprep.subr.mxu1 %v2174_v1  ;;  %v184_v16 = vld [vmem:[%s2276_s18 + $0x68] sm:$0xff]  ;;  %v185_v19 = vld [vmem:[%s2276_s18 + $0x70] sm:$0xff]  ;;  %v296_v20 = vld [vmem:[%s2726_s1] sm:$0xff]  ;;  %v197_v21 = vunpack.c.h.b16 %v171_v15  ;;  %v196_v23 = vunpack.c.l.b16 %v171_v15  ;;  %s2489_s6 = scalar_lea.vmem %s2728_s3, %s1857_s4 }
  0x11   : > { %402 = vmatpush1.msra.mxu0 %v309_v3  ;;  %1840 = vmatpush1.msra.mxu1 %v309_v3  ;;  %v297_v17 = vld [vmem:[%s2726_s1 + $0x8] sm:$0xff]  ;;  %v223_v22 = vunpack.c.h.b16 %v184_v16  ;;  %v222_v24 = vunpack.c.l.b16 %v184_v16  ;;  %v225_v27 = vunpack.c.h.b16 %v185_v19  ;;  %v173_v28 = vld [vmem:[%s2276_s18 + $0x10] sm:$0xff]  ;;  %v186_v29 = vld [vmem:[%s2276_s18 + $0x78] sm:$0xff]  ;;  %v224_v36 = vunpack.c.l.b16 %v185_v19 }
  0x12   : > { %403 = vmatprep.subr.mxu0 %v2174_v1  ;;  %1823 = vmatprep.subr.mxu1 %v2174_v1  ;;  %v172_v18 = vld [vmem:[%s2276_s18 + $0x8] sm:$0xff]  ;;  %v312_v30 = vld [vmem:[%s2726_s1 + $0x80] sm:$0xff]  ;;  %v247_v31 = vcvt.s32.f32 %v197_v21  ;;  %v246_v33 = vcvt.s32.f32 %v196_v23  ;;  %v201_v39 = vunpack.c.h.b16 %v173_v28  ;;  %v227_v40 = vunpack.c.h.b16 %v186_v29  ;;  %v174_v41 = vld [vmem:[%s2276_s18 + $0x18] sm:$0xff] }
  0x13   : > { %404 = vmatpush1.msra.mxu0 %v308_v4  ;;  %1841 = vmatpush1.msra.mxu1 %v308_v4  ;;  %v313_v25 = vld [vmem:[%s2726_s1 + $0x88] sm:$0xff]  ;;  %v199_v26 = vunpack.c.h.b16 %v172_v18  ;;  %v273_v32 = vcvt.s32.f32 %v223_v22  ;;  %v272_v34 = vcvt.s32.f32 %v222_v24  ;;  %v198_v35 = vunpack.c.l.b16 %v172_v18  ;;  %v187_v42 = vld [vmem:[%s2276_s18 + $0x80] sm:$0xff]  ;;  %v189_v62 = vld [vmem:[%s2276_s18 + $0x90] sm:$0xff] }
  0x14   : > { %405 = vmatprep.subr.mxu0 %v2174_v1  ;;  %1824 = vmatprep.subr.mxu1 %v2174_v1  ;;  %v275_v38 = vcvt.s32.f32 %v225_v27  ;;  %v274_v44 = vcvt.s32.f32 %v224_v36  ;;  %v200_v45 = vunpack.c.l.b16 %v173_v28  ;;  %v226_v46 = vunpack.c.l.b16 %v186_v29  ;;  %v175_v51 = vld [vmem:[%s2276_s18 + $0x20] sm:$0xff]  ;;  %v188_v52 = vld [vmem:[%s2276_s18 + $0x88] sm:$0xff] }
  0x15   : > { %406 = vmatpush1.msra.mxu0 %v307_v5  ;;  %1842 = vmatpush1.msra.mxu1 %v307_v5  ;;  %v249_v37 = vcvt.s32.f32 %v199_v26  ;;  %v248_v43 = vcvt.s32.f32 %v198_v35  ;;  %v251_v47 = vcvt.s32.f32 %v201_v39  ;;  %v277_v48 = vcvt.s32.f32 %v227_v40  ;;  %v176_v61 = vld [vmem:[%s2276_s18 + $0x28] sm:$0xff]  ;;  %v191_v18 = vld [vmem:[%s2276_s18 + $0xa0] sm:$0xff] }
  0x16   : > { %407 = vmatprep.subr.mxu0 %v2174_v1  ;;  %1825 = vmatprep.subr.mxu1 %v2174_v1  ;;  %v203_v49 = vunpack.c.h.b16 %v174_v41  ;;  %v229_v50 = vunpack.c.h.b16 %v187_v42  ;;  %v250_v53 = vcvt.s32.f32 %v200_v45  ;;  %v276_v54 = vcvt.s32.f32 %v226_v46  ;;  %v179_v27 = vld [vmem:[%s2276_s18 + $0x40] sm:$0xff]  ;;  %v192_v28 = vld [vmem:[%s2276_s18 + $0xa8] sm:$0xff] }
  0x17   : > { %408 = vmatpush1.msra.mxu0 %v306_v6  ;;  %1843 = vmatpush1.msra.mxu1 %v306_v6  ;;  %v202_v55 = vunpack.c.l.b16 %v174_v41  ;;  %v228_v56 = vunpack.c.l.b16 %v187_v42  ;;  %v205_v59 = vunpack.c.h.b16 %v175_v51  ;;  %v231_v60 = vunpack.c.h.b16 %v188_v52 }
  0x18   : > { %409 = vmatprep.subr.mxu0 %v2174_v1  ;;  %1826 = vmatprep.subr.mxu1 %v2174_v1  ;;  %v253_v57 = vcvt.s32.f32 %v203_v49  ;;  %v279_v58 = vcvt.s32.f32 %v229_v50  ;;  %v230_v2 = vunpack.c.l.b16 %v188_v52  ;;  %v207_v5 = vunpack.c.h.b16 %v176_v61 }
  0x19   : > { %410 = vmatpush1.msra.mxu0 %v305_v7  ;;  %1844 = vmatpush1.msra.mxu1 %v305_v7  ;;  %v252_v63 = vcvt.s32.f32 %v202_v55  ;;  %v278_v0 = vcvt.s32.f32 %v228_v56  ;;  %v255_v3 = vcvt.s32.f32 %v205_v59  ;;  %v281_v4 = vcvt.s32.f32 %v231_v60  ;;  %v177_v7 = vld [vmem:[%s2276_s18 + $0x30] sm:$0xff] }
  0x1a   : > { %411 = vmatprep.subr.mxu0 %v2174_v1  ;;  %1827 = vmatprep.subr.mxu1 %v2174_v1  ;;  %v233_v6 = vunpack.c.h.b16 %v189_v62  ;;  %v209_v15 = vunpack.c.h.b16 %v177_v7  ;;  %v208_v21 = vunpack.c.l.b16 %v177_v7  ;;  %v237_v26 = vunpack.c.h.b16 %v191_v18 }
  0x1b   : > { %412 = vmatpush1.msra.mxu0 %v304_v8  ;;  %1845 = vmatpush1.msra.mxu1 %v304_v8  ;;  %v190_v8 = vld [vmem:[%s2276_s18 + $0x98] sm:$0xff]  ;;  %v213_v35 = vunpack.c.h.b16 %v179_v27  ;;  %v239_v36 = vunpack.c.h.b16 %v192_v28  ;;  %v212_v41 = vunpack.c.l.b16 %v179_v27  ;;  %v238_v42 = vunpack.c.l.b16 %v192_v28 }
  0x1c   : > { %413 = vmatprep.subr.mxu0 %v2174_v1  ;;  %1828 = vmatprep.subr.mxu1 %v2174_v1  ;;  %v235_v16 = vunpack.c.h.b16 %v190_v8  ;;  %v234_v22 = vunpack.c.l.b16 %v190_v8  ;;  %v259_v23 = vcvt.s32.f32 %v209_v15  ;;  %v258_v29 = vcvt.s32.f32 %v208_v21 }
  0x1d   : > { %414 = vmatpush1.msra.mxu0 %v303_v9  ;;  %1846 = vmatpush1.msra.mxu1 %v303_v9  ;;  %v262_v49 = vcvt.s32.f32 %v212_v41  ;;  %v288_v50 = vcvt.s32.f32 %v238_v42 }
  0x1e   : > { %415 = vmatprep.subr.mxu0 %v2174_v1  ;;  %1829 = vmatprep.subr.mxu1 %v2174_v1  ;;  %v285_v24 = vcvt.s32.f32 %v235_v16  ;;  %v2358_v16 = vld [vmem:[%s2727_s2] ss:$0 sm:$0xff] }
  0x1f   : > { %416 = vmatpush1.msra.mxu0 %v302_v10  ;;  %1847 = vmatpush1.msra.mxu1 %v302_v10  ;;  %v280_v10 = vcvt.s32.f32 %v230_v2 }
  0x20   : > { %417 = vmatprep.subr.mxu0 %v2174_v1  ;;  %1830 = vmatprep.subr.mxu1 %v2174_v1 }
  0x21   : > { %418 = vmatpush1.msra.mxu0 %v301_v11  ;;  %1848 = vmatpush1.msra.mxu1 %v301_v11  ;;  %v206_v11 = vunpack.c.l.b16 %v176_v61 }
  0x22   : > { %419 = vmatprep.subr.mxu0 %v2174_v1  ;;  %1831 = vmatprep.subr.mxu1 %v2174_v1 }
  0x23   : > { %420 = vmatpush1.msra.mxu0 %v300_v12  ;;  %1849 = vmatpush1.msra.mxu1 %v300_v12  ;;  %v232_v12 = vunpack.c.l.b16 %v189_v62  ;;  %v256_v19 = vcvt.s32.f32 %v206_v11 }
  0x24   : > { %421 = vmatprep.subr.mxu0 %v2174_v1  ;;  %1832 = vmatprep.subr.mxu1 %v2174_v1 }
  0x25   : > { %422 = vmatpush1.msra.mxu0 %v299_v13  ;;  %1850 = vmatpush1.msra.mxu1 %v299_v13  ;;  %v257_v13 = vcvt.s32.f32 %v207_v5 }
  0x26   : > { %423 = vmatprep.subr.mxu0 %v2174_v1  ;;  %1833 = vmatprep.subr.mxu1 %v2174_v1 }
  0x27   : > { %424 = vmatpush1.msra.mxu0 %v298_v14  ;;  %1851 = vmatpush1.msra.mxu1 %v298_v14  ;;  %v283_v14 = vcvt.s32.f32 %v233_v6 }
  0x28   : > { %425 = vmatprep.subr.mxu0 %v2174_v1  ;;  %1834 = vmatprep.subr.mxu1 %v2174_v1 }
  0x29   : > { %426 = vmatpush1.msra.mxu0 %v297_v17  ;;  %1852 = vmatpush1.msra.mxu1 %v297_v17  ;;  %v178_v17 = vld [vmem:[%s2276_s18 + $0x38] sm:$0xff] }
  0x2a   : > { %427 = vmatprep.subr.mxu0 %v2174_v1  ;;  %1835 = vmatprep.subr.mxu1 %v2174_v1 }
  0x2b   : > { %428 = vmatpush1.msra.mxu0 %v296_v20  ;;  %1853 = vmatpush1.msra.mxu1 %v296_v20  ;;  %v282_v20 = vcvt.s32.f32 %v232_v12 }
  0x2c   : > { %457 = vmatprep.subr.mxu0 %v2174_v1  ;;  %1836 = vmatprep.subr.mxu1 %v2174_v1 }
  0x2d   : > { %458 = vmatpush2.msra.mxu0 %v313_v25  ;;  %1854 = vmatpush2.msra.mxu1 %v313_v25  ;;  %v211_v25 = vunpack.c.h.b16 %v178_v17 }
  0x2e   : > { %459 = vmatprep.subr.mxu0 %v2174_v1  ;;  %1837 = vmatprep.subr.mxu1 %v2174_v1  ;;  %v204_v1 = vunpack.c.l.b16 %v175_v51 }
  0x2f   : > { %460 = vmatpush2.msra.mxu0 %v312_v30  ;;  %1855 = vmatpush2.msra.mxu1 %v312_v30  ;;  %v284_v30 = vcvt.s32.f32 %v234_v22 }
  0x30   : > { %1645 = vmatprep.mubr.msk.f32.mxu0 %vm321_vm0, %v247_v31  ;;  %1658 = vmatprep.mubr.msk.f32.mxu1 %vm321_vm0, %v273_v32  ;;  %v254_v9 = vcvt.s32.f32 %v204_v1  ;;  %v210_v31 = vunpack.c.l.b16 %v178_v17  ;;  %v236_v32 = vunpack.c.l.b16 %v191_v18 }
  0x31   : > { %462 = vmatmul.mubr.f32.vlgmr.msra.gmra.mxu0 %v246_v33  ;;  %527 = vmatmul.mubr.f32.vlgmr.msra.gmra.mxu1 %v272_v34  ;;  %v261_v33 = vcvt.s32.f32 %v211_v25  ;;  %v287_v34 = vcvt.s32.f32 %v237_v26 }
  0x32   : > { %1646 = vmatprep.mubr.msk.f32.mxu0 %vm321_vm0, %v249_v37  ;;  %1659 = vmatprep.mubr.msk.f32.mxu1 %vm321_vm0, %v275_v38  ;;  %v180_v37 = vld [vmem:[%s2276_s18 + $0x48] sm:$0xff]  ;;  %v193_v38 = vld [vmem:[%s2276_s18 + $0xb0] sm:$0xff]  ;;  %v260_v39 = vcvt.s32.f32 %v210_v31  ;;  %v286_v40 = vcvt.s32.f32 %v236_v32 }
  0x33   : > { %v215_v45 = vunpack.c.h.b16 %v180_v37  ;;  %v241_v46 = vunpack.c.h.b16 %v193_v38  ;;  %v214_v51 = vunpack.c.l.b16 %v180_v37  ;;  %v240_v52 = vunpack.c.l.b16 %v193_v38 }
  0x35   : > { %467 = vmatmul.mubr.f32.gmra.mxu0 %v248_v43  ;;  %532 = vmatmul.mubr.f32.gmra.mxu1 %v274_v44  ;;  %v263_v43 = vcvt.s32.f32 %v213_v35  ;;  %v289_v44 = vcvt.s32.f32 %v239_v36  ;;  %v264_v59 = vcvt.s32.f32 %v214_v51  ;;  %v290_v60 = vcvt.s32.f32 %v240_v52 }
  0x36   : > { %1647 = vmatprep.mubr.msk.f32.mxu0 %vm321_vm0, %v251_v47  ;;  %1660 = vmatprep.mubr.msk.f32.mxu1 %vm321_vm0, %v277_v48  ;;  %v181_v47 = vld [vmem:[%s2276_s18 + $0x50] sm:$0xff]  ;;  %v194_v48 = vld [vmem:[%s2276_s18 + $0xb8] sm:$0xff] }
  0x37   : > { %v217_v55 = vunpack.c.h.b16 %v181_v47  ;;  %v243_v56 = vunpack.c.h.b16 %v194_v48  ;;  %v216_v61 = vunpack.c.l.b16 %v181_v47  ;;  %v242_v62 = vunpack.c.l.b16 %v194_v48 }
  0x39   : > { %472 = vmatmul.mubr.f32.gmra.mxu0 %v250_v53  ;;  %537 = vmatmul.mubr.f32.gmra.mxu1 %v276_v54  ;;  %v265_v53 = vcvt.s32.f32 %v215_v45  ;;  %v291_v54 = vcvt.s32.f32 %v241_v46  ;;  %v292_v5 = vcvt.s32.f32 %v242_v62 }
  0x3a   : > { %1648 = vmatprep.mubr.msk.f32.mxu0 %vm321_vm0, %v253_v57  ;;  %1661 = vmatprep.mubr.msk.f32.mxu1 %vm321_vm0, %v279_v58  ;;  %v182_v57 = vld [vmem:[%s2276_s18 + $0x58] sm:$0xff]  ;;  %v195_v58 = vld [vmem:[%s2276_s18 + $0xc0] sm:$0x33] }
  0x3b   : > { %v219_v1 = vunpack.c.h.b16 %v182_v57  ;;  %v245_v2 = vunpack.c.h.b16 %v195_v58  ;;  %v218_v6 = vunpack.c.l.b16 %v182_v57  ;;  %v244_v7 = vunpack.c.l.b16 %v195_v58 }
  0x3d   : > { %477 = vmatmul.mubr.f32.gmra.mxu0 %v252_v63  ;;  %542 = vmatmul.mubr.f32.gmra.mxu1 %v278_v0  ;;  %v267_v63 = vcvt.s32.f32 %v217_v55  ;;  %v293_v0 = vcvt.s32.f32 %v243_v56  ;;  %v269_v8 = vcvt.s32.f32 %v219_v1  ;;  %v268_v11 = vcvt.s32.f32 %v218_v6 }
  0x3e   : > { %1649 = vmatprep.mubr.msk.f32.mxu0 %vm321_vm0, %v255_v3  ;;  %1662 = vmatprep.mubr.msk.f32.mxu1 %vm321_vm0, %v281_v4  ;;  %v183_v3 = vld [vmem:[%s2276_s18 + $0x60] sm:$0xff]  ;;  %v266_v4 = vcvt.s32.f32 %v216_v61 }
  0x3f   : > { %v220_v12 = vunpack.c.l.b16 %v183_v3 }
  0x41   : > { %482 = vmatmul.mubr.f32.gmra.mxu0 %v254_v9  ;;  %547 = vmatmul.mubr.f32.gmra.mxu1 %v280_v10  ;;  %v221_v9 = vunpack.c.h.b16 %v183_v3  ;;  %v295_v10 = vcvt.s32.f32 %v245_v2  ;;  %v270_v15 = vcvt.s32.f32 %v220_v12 }
  0x42   : > { %1650 = vmatprep.mubr.msk.f32.mxu0 %vm321_vm0, %v257_v13  ;;  %1663 = vmatprep.mubr.msk.f32.mxu1 %vm321_vm0, %v283_v14  ;;  %v294_v13 = vcvt.s32.f32 %v244_v7 }
  0x43   : > { %v271_v14 = vcvt.s32.f32 %v221_v9 }
  0x45   : > { %487 = vmatmul.mubr.f32.gmra.mxu0 %v256_v19  ;;  %552 = vmatmul.mubr.f32.gmra.mxu1 %v282_v20 }
  0x46   : > { %1651 = vmatprep.mubr.msk.f32.mxu0 %vm321_vm0, %v259_v23  ;;  %1664 = vmatprep.mubr.msk.f32.mxu1 %vm321_vm0, %v285_v24 }
  0x49   : > { %492 = vmatmul.mubr.f32.gmra.mxu0 %v258_v29  ;;  %557 = vmatmul.mubr.f32.gmra.mxu1 %v284_v30 }
  0x4a   : > { %1652 = vmatprep.mubr.msk.f32.mxu0 %vm321_vm0, %v261_v33  ;;  %1665 = vmatprep.mubr.msk.f32.mxu1 %vm321_vm0, %v287_v34 }
  0x4d   : > { %497 = vmatmul.mubr.f32.gmra.mxu0 %v260_v39  ;;  %562 = vmatmul.mubr.f32.gmra.mxu1 %v286_v40 }
  0x4e   : > { %1653 = vmatprep.mubr.msk.f32.mxu0 %vm321_vm0, %v263_v43  ;;  %1666 = vmatprep.mubr.msk.f32.mxu1 %vm321_vm0, %v289_v44 }
  0x51   : > { %502 = vmatmul.mubr.f32.gmra.mxu0 %v262_v49  ;;  %567 = vmatmul.mubr.f32.gmra.mxu1 %v288_v50 }
  0x52   : > { %1654 = vmatprep.mubr.msk.f32.mxu0 %vm321_vm0, %v265_v53  ;;  %1667 = vmatprep.mubr.msk.f32.mxu1 %vm321_vm0, %v291_v54 }
  0x55   : > { %507 = vmatmul.mubr.f32.gmra.mxu0 %v264_v59  ;;  %572 = vmatmul.mubr.f32.gmra.mxu1 %v290_v60 }
  0x56   : > { %1655 = vmatprep.mubr.msk.f32.mxu0 %vm321_vm0, %v267_v63  ;;  %1668 = vmatprep.mubr.msk.f32.mxu1 %vm321_vm0, %v293_v0 }
  0x59   : > { %512 = vmatmul.mubr.f32.gmra.mxu0 %v266_v4  ;;  %577 = vmatmul.mubr.f32.gmra.mxu1 %v292_v5 }
  0x5a   : > { %1656 = vmatprep.mubr.msk.f32.mxu0 %vm321_vm0, %v269_v8  ;;  %1669 = vmatprep.mubr.msk.f32.mxu1 %vm321_vm0, %v295_v10 }
  0x5d   : > { %517 = vmatmul.mubr.f32.gmra.mxu0 %v268_v11  ;;  %582 = vmatmul.mubr.f32.gmra.mxu1 %v294_v13 }
  0x5e   : > { %1657 = vmatprep.mubr.msk.f32.mxu0 %vm321_vm0, %v271_v14  ;;  %vm1490_vm0 = vcmask 1047559  }
  0x61   : > { %522 = vmatmul.mubr.f32.gmra.mxu0 %v270_v15 }
  0xf1   : > { %v463_v17 = vpop.f32.mrf.mxu0  ;;  %v528_v18 = vpop.f32.mrf.mxu1 }
  0xf2   : > { %v464_v19 = vadd.f32 %v2358_v16, %v463_v17  ;;  %v529_v20 = vadd.f32 %v2358_v16, %v528_v18 }
  0xf3   : > { %v465_v21 = vpop.f32.mrf.mxu0  ;;  %v530_v22 = vpop.f32.mrf.mxu1 }
  0xf4   : > { %v587_v23 = vmax.f32 %v464_v19, 0.0  ;;  %v600_v24 = vmax.f32 %v529_v20, 0.0 }
  0xf5   : > { %v468_v25 = vpop.f32.mrf.mxu0  ;;  %v533_v26 = vpop.f32.mrf.mxu1 }
  0xf6   : > { %v612_v27 = vmul.f32 256.0, %v587_v23  ;;  %v625_v28 = vmul.f32 256.0, %v600_v24  ;;  %v469_v29 = vadd.f32 %v2358_v16, %v468_v25  ;;  %v534_v30 = vadd.f32 %v2358_v16, %v533_v26 }
  0xf7   : > { %v470_v31 = vpop.f32.mrf.mxu0  ;;  %v535_v32 = vpop.f32.mrf.mxu1 }
  0xf8   : > { %v1860_v33 = vcvt.f32.s32 %v612_v27  ;;  %v1964_v34 = vcvt.f32.s32 %v625_v28  ;;  %v588_v35 = vmax.f32 %v469_v29, 0.0  ;;  %v601_v36 = vmax.f32 %v534_v30, 0.0 }
  0xf9   : > { %v473_v37 = vpop.f32.mrf.mxu0  ;;  %v2364_v38 = vpop.f32.mrf.mxu1  ;;  %v1858_v39 = vand.u32 2147483647, %v612_v27  ;;  %v1962_v41 = vand.u32 2147483647, %v625_v28  ;;  %v1967_v44 = vand.u32 2147483648, %v625_v28  ;;  %v1863_v50 = vand.u32 2147483648, %v612_v27 }
  0xfa   : > { %v1861_v40 = vcvt.s32.f32 %v1860_v33  ;;  %v474_v42 = vadd.f32 %v2358_v16, %v473_v37  ;;  %v1965_v43 = vcvt.s32.f32 %v1964_v34  ;;  %v613_v45 = vmul.f32 256.0, %v588_v35 }
  0xfb   : > { %v626_v46 = vmul.f32 256.0, %v601_v36  ;;  %v475_v47 = vpop.f32.mrf.mxu0  ;;  %v540_v48 = vpop.f32.mrf.mxu1  ;;  %vm1859_vm1 = vcmp.lt.f32.partialorder %v1858_v39, 8388608.0  ;;  %vm2371_vm2 = vcmp.lt.f32.partialorder %v1962_v41, 8388608.0 }
  0xfc   : > { %v1862_v49 = vand.u32 2147483647, %v1861_v40  ;;  %v1966_v51 = vand.u32 2147483647, %v1965_v43  ;;  %v1868_v52 = vcvt.f32.s32 %v613_v45  ;;  %v589_v53 = vmax.f32 %v474_v42, 0.0 }
  0xfd   : > { %v2367_v54 = vpop.f32.mrf.mxu0  ;;  %v2369_v55 = vpop.f32.mrf.mxu1  ;;  %v1972_v58 = vcvt.f32.s32 %v626_v46  ;;  %v1866_v60 = vand.u32 2147483647, %v613_v45  ;;  %v1970_v62 = vand.u32 2147483647, %v626_v46  ;;  %v1871_v2 = vand.u32 2147483648, %v613_v45 }
  0xfe   : > { %v1864_v56 = vor.u32 %v1863_v50, %v1862_v49  ;;  %v1968_v59 = vor.u32 %v1967_v44, %v1966_v51  ;;  %v1869_v61 = vcvt.s32.f32 %v1868_v52  ;;  %v1975_v4 = vand.u32 2147483648, %v626_v46 }
  0xff   : > { %v480_v63 = vpop.f32.mrf.mxu0  ;;  %v545_v0 = vpop.f32.mrf.mxu1  ;;  %v1973_v3 = vcvt.s32.f32 %v1972_v58  ;;  %v2377_v8 = vmul.f32 256.0, %v589_v53  ;;  %vm2383_vm3 = vcmp.lt.f32.partialorder %v1970_v62, 8388608.0  ;;  %vm1867_vm4 = vcmp.lt.f32.partialorder %v1866_v60, 8388608.0 }
 0x100   : > { %v1865_v1 = vsel %vm1859_vm1, %v1864_v56, %v612_v27  ;;  %v1969_v6 = vsel %vm2371_vm2, %v1968_v59, %v625_v28  ;;  %v1870_v7 = vand.u32 2147483647, %v1869_v61  ;;  %vm1569_vm2 = vcmask 257024  }
 0x101   : > { %v662_v5 = vmax.f32 %v1865_v1, -32768.0  ;;  %v2379_v9 = vpop.f32.mrf.mxu0  ;;  %v2381_v10 = vpop.f32.mrf.mxu1  ;;  %v675_v11 = vmax.f32 %v1969_v6, -32768.0  ;;  %v1974_v12 = vand.u32 2147483647, %v1973_v3  ;;  %v1876_v24 = vcvt.f32.s32 %v2377_v8 }
 0x102   : > { %v1872_v14 = vor.u32 %v1871_v2, %v1870_v7  ;;  %v539_v1 = vadd.f32 %v2358_v16, %v2364_v38 }
 0x103   : > { %v687_v13 = vmin.f32 %v662_v5, 32767.0  ;;  %v485_v17 = vpop.f32.mrf.mxu0  ;;  %v550_v18 = vpop.f32.mrf.mxu1  ;;  %v700_v19 = vmin.f32 %v675_v11, 32767.0  ;;  %v1976_v20 = vor.u32 %v1975_v4, %v1974_v12  ;;  %v1877_v43 = vcvt.s32.f32 %v1876_v24 }
 0x104   : > { %v1873_v23 = vsel %vm1867_vm4, %v1872_v14, %v613_v45  ;;  %v602_v38 = vmax.f32 %v539_v1, 0.0 }
 0x105   : > { %v737_v21 = vcombine.high %v687_v13, %v687_v13  ;;  %v1670_v22 = vrot.slane %v687_v13, 9  ;;  %v2388_v25 = vpop.f32.mrf.mxu0  ;;  %v2390_v26 = vpop.f32.mrf.mxu1  ;;  %v750_v27 = vcombine.high %v700_v19, %v700_v19  ;;  %v1696_v28 = vrot.slane %v700_v19, 9 }
 0x106   : > { %v663_v29 = vmax.f32 %v1873_v23, -32768.0  ;;  %v1977_v30 = vsel %vm2383_vm3, %v1976_v20, %v626_v46  ;;  %v1878_v12 = vand.u32 2147483647, %v1877_v43 }
 0x107   : > { %v1671_v31 = vrot.slane %v737_v21, 9  ;;  %v932_v32 = vmax.f32 %v687_v13, %v1670_v22  ;;  %v676_v33 = vmax.f32 %v1977_v30, -32768.0  ;;  %v490_v34 = vpop.f32.mrf.mxu0  ;;  %v555_v35 = vpop.f32.mrf.mxu1  ;;  %v1697_v36 = vrot.slane %v750_v27, 9 }
 0x108   : > { %v958_v37 = vmax.f32 %v700_v19, %v1696_v28  ;;  %v688_v39 = vmin.f32 %v663_v29, 32767.0  ;;  %v1874_v29 = vand.u32 2147483647, %v2377_v8 }
 0x109   : > { %v933_v40 = vmax.f32 %v737_v21, %v1671_v31  ;;  %v1719_v41 = vrot.slane %v932_v32, 10  ;;  %v701_v42 = vmin.f32 %v676_v33, 32767.0  ;;  %v2394_v44 = vpop.f32.mrf.mxu0  ;;  %v2396_v45 = vpop.f32.mrf.mxu1  ;;  %v959_v47 = vmax.f32 %v750_v27, %v1697_v36 }
 0x10a   : > { %v1745_v48 = vrot.slane %v958_v37, 10  ;;  %v738_v49 = vcombine.high %v688_v39, %v688_v39  ;;  %v1672_v46 = vrot.slane %v688_v39, 9  ;;  %v1879_v21 = vand.u32 2147483648, %v2377_v8 }
 0x10b   : > { %v1720_v50 = vrot.slane %v933_v40, 10  ;;  %v1177_v51 = vmax.f32 %v932_v32, %v1719_v41  ;;  %v751_v52 = vcombine.high %v701_v42, %v701_v42  ;;  %v1698_v53 = vrot.slane %v701_v42, 9  ;;  %v495_v56 = vpop.f32.mrf.mxu0  ;;  %v560_v57 = vpop.f32.mrf.mxu1 }
 0x10c   : > { %v1746_v58 = vrot.slane %v959_v47, 10  ;;  %v1203_v59 = vmax.f32 %v958_v37, %v1745_v48  ;;  %v1673_v60 = vrot.slane %v738_v49, 9  ;;  %v934_v61 = vmax.f32 %v688_v39, %v1672_v46 }
 0x10d   : > { %v1178_v62 = vmax.f32 %v933_v40, %v1720_v50  ;;  %v1226_v63 = vmax.f32 %v1177_v51, -32768.0  ;;  %v1699_v0 = vrot.slane %v751_v52, 9  ;;  %v2400_v2 = vpop.f32.mrf.mxu0  ;;  %v2402_v3 = vpop.f32.mrf.mxu1  ;;  %v960_v6 = vmax.f32 %v701_v42, %v1698_v53 }
 0x10e   : > { %v935_v4 = vmax.f32 %v738_v49, %v1673_v60  ;;  %v1721_v5 = vrot.slane %v934_v61, 10  ;;  %v1252_v11 = vmax.f32 %v1203_v59, -32768.0  ;;  %v1204_v15 = vmax.f32 %v959_v47, %v1746_v58 }
 0x10f   : > { %v1227_v7 = vmax.f32 %v1178_v62, -32768.0  ;;  %v500_v13 = vpop.f32.mrf.mxu0  ;;  %v565_v14 = vpop.f32.mrf.mxu1  ;;  %v1275_v19 = vmin.f32 %v1226_v63, 32767.0  ;;  %v961_v20 = vmax.f32 %v751_v52, %v1699_v0  ;;  %v1747_v28 = vrot.slane %v960_v6, 10 }
 0x110   : > { %v1722_v17 = vrot.slane %v935_v4, 10  ;;  %v1179_v18 = vmax.f32 %v934_v61, %v1721_v5  ;;  %v1301_v30 = vmin.f32 %v1252_v11, 32767.0  ;;  %v1880_v32 = vor.u32 %v1879_v21, %v1878_v12 }
 0x111   : > { %v2405_v22 = vpop.f32.mrf.mxu0  ;;  %v2407_v23 = vpop.f32.mrf.mxu1  ;;  %v1276_v24 = vmin.f32 %v1227_v7, 32767.0  ;;  %v1253_v35 = vmax.f32 %v1204_v15, -32768.0  ;;  %v2058_v37 = vtrunc.f32 %v1275_v19  ;;  %v1748_v39 = vrot.slane %v961_v20, 10 }
 0x112   : > { %v1180_v27 = vmax.f32 %v935_v4, %v1722_v17  ;;  %v1228_v31 = vmax.f32 %v1179_v18, -32768.0  ;;  %v627_v40 = vmul.f32 256.0, %v602_v38  ;;  %v1205_v47 = vmax.f32 %v960_v6, %v1747_v28 }
 0x113   : > { %v505_v33 = vpop.f32.mrf.mxu0  ;;  %v570_v34 = vpop.f32.mrf.mxu1  ;;  %v2060_v43 = vtrunc.f32 %v1276_v24  ;;  %vm1875_vm5 = vcmp.lt.f32.partialorder %v1874_v29, 8388608.0  ;;  %v2110_v48 = vtrunc.f32 %v1301_v30  ;;  %v1302_v53 = vmin.f32 %v1253_v35, 32767.0 }
 0x114   : > { %v1229_v36 = vmax.f32 %v1180_v27, -32768.0  ;;  %v1277_v49 = vmin.f32 %v1228_v31, 32767.0  ;;  %v1881_v46 = vsel %vm1875_vm5, %v1880_v32, %v2377_v8  ;;  %v1978_v50 = vand.u32 2147483647, %v627_v40 }
 0x115   : > { %v2410_v41 = vpop.f32.mrf.mxu0  ;;  %v2412_v42 = vpop.f32.mrf.mxu1  ;;  %v2415_v57 = vcvt.f32.s32 %v2058_v37  ;;  %v1206_v58 = vmax.f32 %v961_v20, %v1748_v39  ;;  %v664_v59 = vmax.f32 %v1881_v46, -32768.0  ;;  %v2061_v61 = vcvt.f32.s32 %v2060_v43 }
 0x116   : > { %v1278_v56 = vmin.f32 %v1229_v36, 32767.0  ;;  %v1254_v62 = vmax.f32 %v1205_v47, -32768.0  ;;  %v1980_v63 = vcvt.f32.s32 %v627_v40  ;;  %v479_v0 = vadd.f32 %v2358_v16, %v2367_v54 }
 0x117   : > { %v510_v51 = vpop.f32.mrf.mxu0  ;;  %v575_v52 = vpop.f32.mrf.mxu1  ;;  %v2421_v1 = vcvt.f32.s32 %v2110_v48  ;;  %v2062_v8 = vtrunc.f32 %v1277_v49  ;;  %v689_v4 = vmin.f32 %v664_v59, 32767.0  ;;  %vm2423_vm6 = vcmp.lt.f32.partialorder %v1978_v50, 8388608.0 }
 0x118   : > { %v2112_v7 = vtrunc.f32 %v1302_v53  ;;  %v2064_v11 = vtrunc.f32 %v1278_v56  ;;  %v1981_v12 = vcvt.s32.f32 %v1980_v63  ;;  %v1983_v13 = vand.u32 2147483648, %v627_v40 }
 0x119   : > { %v2417_v60 = vpop.f32.mrf.mxu0  ;;  %v1768_v14 = vunpack.i.l.s16 %v2415_v57  ;;  %v1255_v15 = vmax.f32 %v1206_v58, -32768.0  ;;  %v739_v17 = vcombine.high %v689_v4, %v689_v4  ;;  %v1674_v18 = vrot.slane %v689_v4, 9  ;;  %v2428_v54 = vpop.f32.mrf.mxu1 }
 0x11a   : > { %v1769_v19 = vunpack.i.l.s16 %v2061_v61  ;;  %v2430_v20 = vmin.f32 %v1254_v62, 32767.0  ;;  %v1982_v21 = vand.u32 2147483647, %v1981_v12  ;;  %v590_v38 = vmax.f32 %v479_v0, 0.0 }
 0x11b   : > { %v515_v6 = vpop.f32.mrf.mxu0  ;;  %v2063_v24 = vcvt.f32.s32 %v2062_v8  ;;  %v1675_v27 = vrot.slane %v739_v17, 9  ;;  %v936_v28 = vmax.f32 %v689_v4, %v1674_v18  ;;  %v544_v29 = vadd.f32 %v2358_v16, %v2369_v55  ;;  %v580_v30 = vpop.f32.mrf.mxu1 }
 0x11c   : > { %v2065_v31 = vcvt.f32.s32 %v2064_v11  ;;  %v1984_v32 = vor.u32 %v1983_v13, %v1982_v21  ;;  %v615_v33 = vmul.f32 256.0, %v590_v38  ;;  %v484_v34 = vadd.f32 %v2358_v16, %v2379_v9 }
 0x11d   : > { %v2436_v35 = vcvt.f32.s32 %v2112_v7  ;;  %v937_v36 = vmax.f32 %v739_v17, %v1675_v27  ;;  %v1723_v37 = vrot.slane %v936_v28, 10  ;;  %v603_v39 = vmax.f32 %v544_v29, 0.0  ;;  %v2442_v57 = vpop.f32.mrf.mxu0 }
 0x11e   : > { %v1471_v43 = vrot.slane %v1769_v19, 7  ;;  %v2438_v47 = vmin.f32 %v1255_v15, 32767.0  ;;  %v1985_v48 = vsel %vm2423_vm6, %v1984_v32, %v627_v40  ;;  %v1884_v55 = vcvt.f32.s32 %v615_v33 }
 0x11f   : > { %v1724_v49 = vrot.slane %v937_v36, 10  ;;  %v1181_v46 = vmax.f32 %v936_v28, %v1723_v37  ;;  %v677_v50 = vmax.f32 %v1985_v48, -32768.0  ;;  %v628_v51 = vmul.f32 256.0, %v603_v39  ;;  %v520_v4 = vpop.f32.mrf.mxu0 }
 0x120   : > { %v1770_v52 = vunpack.i.l.s16 %v2063_v24  ;;  %v1771_v53 = vunpack.i.l.s16 %v2065_v31  ;;  %v1885_v9 = vcvt.s32.f32 %v1884_v55  ;;  %v591_v56 = vmax.f32 %v484_v34, 0.0  ;;  %v2451_v34 = vpop.f32.mrf.mxu1 }
 0x121   : > { %v1182_v58 = vmax.f32 %v937_v36, %v1724_v49  ;;  %v1230_v59 = vmax.f32 %v1181_v46, -32768.0  ;;  %v702_v61 = vmin.f32 %v677_v50, 32767.0  ;;  %v1882_v62 = vand.u32 2147483647, %v615_v33  ;;  %v2445_v29 = vpop.f32.mrf.mxu0 }
 0x122   : > { %v1886_v63 = vand.u32 2147483647, %v1885_v9  ;;  %v1887_v0 = vand.u32 2147483648, %v615_v33  ;;  %v1988_v8 = vcvt.f32.s32 %v628_v51  ;;  %v616_v40 = vmul.f32 256.0, %v591_v56  ;;  %v585_v50 = vpop.f32.mrf.mxu1 }
 0x123   : > { %v1473_v5 = vsel %vm1472_vm7, %v1471_v43, %v1768_v14  ;;  %v1231_v6 = vmax.f32 %v1182_v58, -32768.0  ;;  %v1279_v7 = vmin.f32 %v1230_v59, 32767.0  ;;  %v1986_v11 = vand.u32 2147483647, %v628_v51  ;;  %v525_v48 = vpop.f32.mrf.mxu0 }
 0x124   : > { %v1474_v12 = vrot.slane %v1770_v52, 6  ;;  %v1888_v13 = vor.u32 %v1887_v0, %v1886_v63  ;;  %v1989_v15 = vcvt.s32.f32 %v1988_v8  ;;  %v1991_v17 = vand.u32 2147483648, %v628_v51 }
 0x125   : > { %v1280_v18 = vmin.f32 %v1231_v6, 32767.0  ;;  %v2066_v19 = vtrunc.f32 %v1279_v7  ;;  %v752_v21 = vcombine.high %v702_v61, %v702_v61  ;;  %vm1883_vm10 = vcmp.lt.f32.partialorder %v1882_v62, 8388608.0 }
 0x126   : > { %v1477_v38 = vrot.slane %v1771_v53, 5  ;;  %v1889_v24 = vsel %vm1883_vm10, %v1888_v13, %v615_v33  ;;  %v1990_v27 = vand.u32 2147483647, %v1989_v15  ;;  %v1892_v28 = vcvt.f32.s32 %v616_v40 }
 0x127   : > { %v2067_v30 = vcvt.f32.s32 %v2066_v19  ;;  %v2068_v14 = vtrunc.f32 %v1280_v18  ;;  %v1700_v31 = vrot.slane %v702_v61, 9  ;;  %vm2447_vm12 = vcmp.lt.f32.partialorder %v1986_v11, 8388608.0 }
 0x128   : > { %v1476_v36 = vsel %vm1475_vm8, %v1474_v12, %v1473_v5  ;;  %v665_v37 = vmax.f32 %v1889_v24, -32768.0  ;;  %v1992_v39 = vor.u32 %v1991_v17, %v1990_v27  ;;  %v1893_v43 = vcvt.s32.f32 %v1892_v28 }
 0x129   : > { %v1772_v33 = vunpack.i.l.s16 %v2067_v30  ;;  %v1701_v55 = vrot.slane %v752_v21, 9  ;;  %v1890_v49 = vand.u32 2147483647, %v616_v40  ;;  %v549_v46 = vadd.f32 %v2358_v16, %v2381_v10 }
 0x12a   : > { %v690_v52 = vmin.f32 %v665_v37, 32767.0  ;;  %v1993_v53 = vsel %vm2447_vm12, %v1992_v39, %v628_v51  ;;  %v1894_v9 = vand.u32 2147483647, %v1893_v43  ;;  %v1895_v56 = vand.u32 2147483648, %v616_v40 }
 0x12b   : > { %v1479_v58 = vsel %vm1478_vm9, %v1477_v38, %v1476_v36  ;;  %v2114_v59 = vtrunc.f32 %v2430_v20  ;;  %v2069_v62 = vcvt.f32.s32 %v2068_v14  ;;  %v962_v63 = vmax.f32 %v702_v61, %v1700_v31 }
 0x12c   : > { %v740_v0 = vcombine.high %v690_v52, %v690_v52  ;;  %v1676_v8 = vrot.slane %v690_v52, 9  ;;  %v678_v4 = vmax.f32 %v1993_v53, -32768.0  ;;  %v1896_v5 = vor.u32 %v1895_v56, %v1894_v9 }
 0x12d   : > { %v1480_v6 = vrot.slane %v1772_v33, 4  ;;  %v963_v10 = vmax.f32 %v752_v21, %v1701_v55  ;;  %vm1891_vm14 = vcmp.lt.f32.partialorder %v1890_v49, 8388608.0  ;;  %v604_v7 = vmax.f32 %v549_v46, 0.0 }
 0x12e   : > { %v1677_v11 = vrot.slane %v740_v0, 9  ;;  %v938_v12 = vmax.f32 %v690_v52, %v1676_v8  ;;  %v703_v51 = vmin.f32 %v678_v4, 32767.0  ;;  %v1897_v13 = vsel %vm1891_vm14, %v1896_v5, %v616_v40 }
 0x12f   : > { %v2116_v15 = vtrunc.f32 %v2438_v47  ;;  %v1773_v17 = vunpack.i.l.s16 %v2069_v62  ;;  %v1749_v18 = vrot.slane %v962_v63, 10  ;;  %v666_v19 = vmax.f32 %v1897_v13, -32768.0 }
 0x130   : > { %v939_v38 = vmax.f32 %v740_v0, %v1677_v11  ;;  %v1725_v61 = vrot.slane %v938_v12, 10  ;;  %v753_v24 = vcombine.high %v703_v51, %v703_v51  ;;  %v1702_v27 = vrot.slane %v703_v51, 9 }
 0x131   : > { %v1482_v28 = vsel %vm1481_vm11, %v1480_v6, %v1479_v58  ;;  %v1750_v30 = vrot.slane %v963_v10, 10  ;;  %v691_v14 = vmin.f32 %v666_v19, 32767.0  ;;  %v2462_v21 = vmul.f32 256.0, %v604_v7 }
 0x132   : > { %v1726_v31 = vrot.slane %v939_v38, 10  ;;  %v1183_v32 = vmax.f32 %v938_v12, %v1725_v61  ;;  %v1703_v36 = vrot.slane %v753_v24, 9  ;;  %v964_v37 = vmax.f32 %v703_v51, %v1702_v27 }
 0x133   : > { %v1483_v40 = vrot.slane %v1773_v17, 3  ;;  %v741_v39 = vcombine.high %v691_v14, %v691_v14  ;;  %v1678_v43 = vrot.slane %v691_v14, 9  ;;  %v1994_v48 = vand.u32 2147483647, %v2462_v21 }
 0x134   : > { %v1184_v33 = vmax.f32 %v939_v38, %v1726_v31  ;;  %v1232_v55 = vmax.f32 %v1183_v32, -32768.0  ;;  %v965_v49 = vmax.f32 %v753_v24, %v1703_v36  ;;  %v1751_v46 = vrot.slane %v964_v37, 10 }
 0x135   : > { %v2465_v50 = vmax.f32 %v962_v63, %v1749_v18  ;;  %v2467_v52 = vmax.f32 %v963_v10, %v1750_v30  ;;  %v1679_v53 = vrot.slane %v741_v39, 9  ;;  %v940_v9 = vmax.f32 %v691_v14, %v1678_v43 }
 0x136   : > { %v1233_v56 = vmax.f32 %v1184_v33, -32768.0  ;;  %v1281_v58 = vmin.f32 %v1232_v55, 32767.0  ;;  %v1752_v62 = vrot.slane %v965_v49, 10  ;;  %v1209_v0 = vmax.f32 %v964_v37, %v1751_v46 }
 0x137   : > { %v1485_v8 = vsel %vm1484_vm13, %v1483_v40, %v1482_v28  ;;  %v941_v4 = vmax.f32 %v741_v39, %v1679_v53  ;;  %v1727_v5 = vrot.slane %v940_v9, 10  ;;  %vm2470_vm1 = vcmp.lt.f32.partialorder %v1994_v48, 8388608.0 }
 0x138   : > { %v1282_v63 = vmin.f32 %v1233_v56, 32767.0  ;;  %v2070_v7 = vtrunc.f32 %v1281_v58  ;;  %v1210_v10 = vmax.f32 %v965_v49, %v1752_v62  ;;  %v1258_v11 = vmax.f32 %v1209_v0, -32768.0 }
 0x139   : > { %v1728_v12 = vrot.slane %v941_v4, 10  ;;  %v1185_v51 = vmax.f32 %v940_v9, %v1727_v5  ;;  %v1996_v13 = vcvt.f32.s32 %v2462_v21  ;;  %v1999_v17 = vand.u32 2147483648, %v2462_v21 }
 0x13a   : > { %v2071_v18 = vcvt.f32.s32 %v2070_v7  ;;  %v2072_v19 = vtrunc.f32 %v1282_v63  ;;  %v1259_v38 = vmax.f32 %v1210_v10, -32768.0  ;;  %v1307_v61 = vmin.f32 %v1258_v11, 32767.0 }
 0x13b   : > { %v1186_v24 = vmax.f32 %v941_v4, %v1728_v12  ;;  %v1234_v27 = vmax.f32 %v1185_v51, -32768.0  ;;  %v1997_v28 = vcvt.s32.f32 %v1996_v13  ;;  %v489_v30 = vadd.f32 %v2358_v16, %v2388_v25 }
 0x13c   : > { %v2073_v14 = vcvt.f32.s32 %v2072_v19  ;;  %v1774_v31 = vunpack.i.l.s16 %v2071_v18  ;;  %v1308_v32 = vmin.f32 %v1259_v38, 32767.0  ;;  %v2122_v36 = vtrunc.f32 %v1307_v61 }
 0x13d   : > { %v1235_v37 = vmax.f32 %v1186_v24, -32768.0  ;;  %v1283_v40 = vmin.f32 %v1234_v27, 32767.0  ;;  %v1998_v39 = vand.u32 2147483647, %v1997_v28  ;;  %v592_v43 = vmax.f32 %v489_v30, 0.0 }
 0x13e   : > { %v1775_v48 = vunpack.i.l.s16 %v2073_v14  ;;  %v1486_v33 = vrot.slane %v1774_v31, 2  ;;  %v2123_v55 = vcvt.f32.s32 %v2122_v36  ;;  %v2124_v49 = vtrunc.f32 %v1308_v32 }
 0x13f   : > { %v1284_v46 = vmin.f32 %v1235_v37, 32767.0  ;;  %v2074_v53 = vtrunc.f32 %v1283_v40  ;;  %v2000_v9 = vor.u32 %v1999_v17, %v1998_v39  ;;  %v617_v56 = vmul.f32 256.0, %v592_v43 }
 0x140   : > { %v1256_v58 = vmax.f32 %v2465_v50, -32768.0  ;;  %v1488_v25 = vsel %vm1487_vm15, %v1486_v33, %v1485_v8  ;;  %v1489_v62 = vrot.slane %v1775_v48, 1  ;;  %v2125_v0 = vcvt.f32.s32 %v2124_v49 }
 0x141   : > { %v2481_v4 = vcvt.f32.s32 %v2074_v53  ;;  %v2076_v5 = vtrunc.f32 %v1284_v46  ;;  %v2001_v63 = vsel %vm2470_vm1, %v2000_v9, %v2462_v21  ;;  %v1898_v7 = vand.u32 2147483647, %v617_v56 }
 0x142   : > { %v1491_v10 = vsel %vm1490_vm0, %v1489_v62, %v1488_v25  ;;  %v1801_v11 = vunpack.i.l.s16 %v2125_v0  ;;  %v679_v8 = vmax.f32 %v2001_v63, -32768.0  ;;  %v1900_v12 = vcvt.f32.s32 %v617_v56 }
 0x143   : > { %v1562_v51 = vpack.c.b16 %v1491_v10, %v1491_v10  ;;  %v1800_v13 = vunpack.i.l.s16 %v2123_v55  ;;  %v2077_v17 = vcvt.f32.s32 %v2076_v5  ;;  %v1776_v18 = vunpack.i.l.s16 %v2481_v4 }
 0x144   : > { %v1534_v19 = vrot.slane %v1801_v11, 7  ;;  %v704_v6 = vmin.f32 %v679_v8, 32767.0  ;;  %vm2493_vm3 = vcmp.lt.f32.partialorder %v1898_v7, 8388608.0  ;;  %v1901_v38 = vcvt.s32.f32 %v1900_v12 }
 0x145   : > { %1570 = vst.msk [vmem:[%s2489_s6] sm:$0xf] %vm1569_vm2, %v1562_v51  ;;  %v1777_v61 = vunpack.i.l.s16 %v2077_v17  ;;  %v554_v24 = vadd.f32 %v2358_v16, %v2390_v26  ;;  %v494_v27 = vadd.f32 %v2358_v16, %v2394_v44  ;;  %v559_v28 = vadd.f32 %v2358_v16, %v2396_v45 }
 0x146   : > { %v754_v30 = vcombine.high %v704_v6, %v704_v6  ;;  %v1704_v14 = vrot.slane %v704_v6, 9  ;;  %v1902_v31 = vand.u32 2147483647, %v1901_v38  ;;  %v1903_v32 = vand.u32 2147483648, %v617_v56 }
 0x147   : > { %v2506_v36 = vsel %vm1472_vm7, %v1534_v19, %v1800_v13  ;;  %v605_v37 = vmax.f32 %v554_v24, 0.0  ;;  %v593_v40 = vmax.f32 %v494_v27, 0.0  ;;  %v606_v39 = vmax.f32 %v559_v28, 0.0 }
 0x148   : > { %v1705_v43 = vrot.slane %v754_v30, 9  ;;  %v966_v48 = vmax.f32 %v704_v6, %v1704_v14  ;;  %v1904_v33 = vor.u32 %v1903_v32, %v1902_v31  ;;  %v499_v26 = vadd.f32 %v2358_v16, %v2400_v2 }
 0x149   : > { %v2510_v44 = vrot.slane %v1777_v61, 7  ;;  %v630_v55 = vmul.f32 256.0, %v605_v37  ;;  %v618_v45 = vmul.f32 256.0, %v593_v40  ;;  %v2512_v49 = vmul.f32 256.0, %v606_v39 }
 0x14a   : > { %v967_v46 = vmax.f32 %v754_v30, %v1705_v43  ;;  %v1753_v53 = vrot.slane %v966_v48, 10  ;;  %v1905_v9 = vsel %vm2493_vm3, %v1904_v33, %v617_v56  ;;  %v594_v25 = vmax.f32 %v499_v26, 0.0 }
 0x14b   : > { %v667_v62 = vmax.f32 %v1905_v9, -32768.0  ;;  %v2002_v0 = vand.u32 2147483647, %v630_v55  ;;  %v2004_v5 = vcvt.f32.s32 %v630_v55  ;;  %v2007_v63 = vand.u32 2147483648, %v630_v55 }
 0x14c   : > { %v1754_v7 = vrot.slane %v967_v46, 10  ;;  %v1211_v10 = vmax.f32 %v966_v48, %v1753_v53  ;;  %v1906_v11 = vand.u32 2147483647, %v618_v45  ;;  %v1908_v16 = vcvt.f32.s32 %v618_v45 }
 0x14d   : > { %v692_v2 = vmin.f32 %v667_v62, 32767.0  ;;  %vm2516_vm4 = vcmp.lt.f32.partialorder %v2002_v0, 8388608.0  ;;  %v2005_v12 = vcvt.s32.f32 %v2004_v5  ;;  %v1911_v51 = vand.u32 2147483648, %v618_v45 }
 0x14e   : > { %v1212_v13 = vmax.f32 %v967_v46, %v1754_v7  ;;  %v1260_v17 = vmax.f32 %v1211_v10, -32768.0  ;;  %vm2520_vm5 = vcmp.lt.f32.partialorder %v1906_v11, 8388608.0  ;;  %v1909_v19 = vcvt.s32.f32 %v1908_v16 }
 0x14f   : > { %v742_v6 = vcombine.high %v692_v2, %v692_v2  ;;  %v1680_v21 = vrot.slane %v692_v2, 9  ;;  %v2006_v38 = vand.u32 2147483647, %v2005_v12  ;;  %v2010_v61 = vand.u32 2147483647, %v2512_v49 }
 0x150   : > { %v1261_v24 = vmax.f32 %v1212_v13, -32768.0  ;;  %v1309_v27 = vmin.f32 %v1260_v17, 32767.0  ;;  %v1910_v28 = vand.u32 2147483647, %v1909_v19  ;;  %v2012_v30 = vcvt.f32.s32 %v2512_v49 }
 0x151   : > { %v1681_v14 = vrot.slane %v742_v6, 9  ;;  %v942_v31 = vmax.f32 %v692_v2, %v1680_v21  ;;  %v2008_v32 = vor.u32 %v2007_v63, %v2006_v38  ;;  %vm2526_vm6 = vcmp.lt.f32.partialorder %v2010_v61, 8388608.0 }
 0x152   : > { %v1310_v40 = vmin.f32 %v1261_v24, 32767.0  ;;  %v2126_v39 = vtrunc.f32 %v1309_v27  ;;  %v1912_v43 = vor.u32 %v1911_v51, %v1910_v28  ;;  %v2013_v48 = vcvt.s32.f32 %v2012_v30 }
 0x153   : > { %v943_v33 = vmax.f32 %v742_v6, %v1681_v14  ;;  %v1729_v26 = vrot.slane %v942_v31, 10  ;;  %v2009_v46 = vsel %vm2516_vm4, %v2008_v32, %v630_v55  ;;  %v2015_v53 = vand.u32 2147483648, %v2512_v49 }
 0x154   : > { %v2127_v9 = vcvt.f32.s32 %v2126_v39  ;;  %v2128_v62 = vtrunc.f32 %v1310_v40  ;;  %v680_v0 = vmax.f32 %v2009_v46, -32768.0  ;;  %v1913_v5 = vsel %vm2520_vm5, %v1912_v43, %v618_v45 }
 0x155   : > { %v1730_v63 = vrot.slane %v943_v33, 10  ;;  %v1187_v7 = vmax.f32 %v942_v31, %v1729_v26  ;;  %v668_v10 = vmax.f32 %v1913_v5, -32768.0  ;;  %v2014_v11 = vand.u32 2147483647, %v2013_v48 }
 0x156   : > { %v2129_v16 = vcvt.f32.s32 %v2128_v62  ;;  %v1802_v2 = vunpack.i.l.s16 %v2127_v9  ;;  %v705_v12 = vmin.f32 %v680_v0, 32767.0  ;;  %v2535_v51 = vmul.f32 256.0, %v594_v25 }
 0x157   : > { %v1188_v13 = vmax.f32 %v943_v33, %v1730_v63  ;;  %v1236_v8 = vmax.f32 %v1187_v7, -32768.0  ;;  %v693_v55 = vmin.f32 %v668_v10, 32767.0  ;;  %v2016_v17 = vor.u32 %v2015_v53, %v2014_v11 }
 0x158   : > { %v1803_v19 = vunpack.i.l.s16 %v2129_v16  ;;  %v1536_v6 = vrot.slane %v1802_v2, 6  ;;  %v755_v21 = vcombine.high %v705_v12, %v705_v12  ;;  %v1706_v38 = vrot.slane %v705_v12, 9 }
 0x159   : > { %v1237_v61 = vmax.f32 %v1188_v13, -32768.0  ;;  %v1285_v56 = vmin.f32 %v1236_v8, 32767.0  ;;  %v743_v45 = vcombine.high %v693_v55, %v693_v55  ;;  %v1682_v24 = vrot.slane %v693_v55, 9 }
 0x15a   : > { %v1537_v27 = vsel %vm1475_vm8, %v1536_v6, %v2506_v36  ;;  %v1538_v28 = vrot.slane %v1803_v19, 5  ;;  %v1707_v30 = vrot.slane %v755_v21, 9  ;;  %v968_v14 = vmax.f32 %v705_v12, %v1706_v38 }
 0x15b   : > { %v1286_v25 = vmin.f32 %v1237_v61, 32767.0  ;;  %v2078_v31 = vtrunc.f32 %v1285_v56  ;;  %v1683_v32 = vrot.slane %v743_v45, 9  ;;  %v944_v40 = vmax.f32 %v693_v55, %v1682_v24 }
 0x15c   : > { %v2540_v39 = vsel %vm1478_vm9, %v1538_v28, %v1537_v27  ;;  %v969_v43 = vmax.f32 %v755_v21, %v1707_v30  ;;  %v1755_v48 = vrot.slane %v968_v14, 10  ;;  %v2017_v33 = vsel %vm2526_vm6, %v2016_v17, %v2512_v49 }
 0x15d   : > { %v2079_v26 = vcvt.f32.s32 %v2078_v31  ;;  %v2080_v46 = vtrunc.f32 %v1286_v25  ;;  %v945_v53 = vmax.f32 %v743_v45, %v1683_v32  ;;  %v1731_v36 = vrot.slane %v944_v40, 10 }
 0x15e   : > { %v1493_v9 = vsel %vm1472_vm7, %v2510_v44, %v1776_v18  ;;  %v1756_v62 = vrot.slane %v969_v43, 10  ;;  %v1213_v0 = vmax.f32 %v968_v14, %v1755_v48  ;;  %v681_v5 = vmax.f32 %v2017_v33, -32768.0 }
 0x15f   : > { %v2081_v63 = vcvt.f32.s32 %v2080_v46  ;;  %v1778_v7 = vunpack.i.l.s16 %v2079_v26  ;;  %v1732_v10 = vrot.slane %v945_v53, 10  ;;  %v1189_v11 = vmax.f32 %v944_v40, %v1731_v36 }
 0x160   : > { %v1214_v16 = vmax.f32 %v969_v43, %v1756_v62  ;;  %v1262_v2 = vmax.f32 %v1213_v0, -32768.0  ;;  %v706_v37 = vmin.f32 %v681_v5, 32767.0  ;;  %v1914_v49 = vand.u32 2147483647, %v2535_v51 }
 0x161   : > { %v1779_v12 = vunpack.i.l.s16 %v2081_v63  ;;  %v1494_v13 = vrot.slane %v1778_v7, 6  ;;  %v1190_v8 = vmax.f32 %v945_v53, %v1732_v10  ;;  %v1238_v55 = vmax.f32 %v1189_v11, -32768.0  ;;  %v2561_v7 = vld [vmem:[%s2727_s2] ss:$0 sm:$0xff] }
 0x162   : > { %v1263_v4 = vmax.f32 %v1214_v16, -32768.0  ;;  %v1311_v17 = vmin.f32 %v1262_v2, 32767.0  ;;  %v756_v19 = vcombine.high %v706_v37, %v706_v37  ;;  %v1708_v18 = vrot.slane %v706_v37, 9 }
 0x163   : > { %v1495_v44 = vsel %vm1475_vm8, %v1494_v13, %v1493_v9  ;;  %v1496_v6 = vrot.slane %v1779_v12, 5  ;;  %v1239_v21 = vmax.f32 %v1190_v8, -32768.0  ;;  %v1287_v38 = vmin.f32 %v1238_v55, 32767.0 }
 0x164   : > { %v1312_v61 = vmin.f32 %v1263_v4, 32767.0  ;;  %v2130_v56 = vtrunc.f32 %v1311_v17  ;;  %v1709_v45 = vrot.slane %v756_v19, 9  ;;  %v970_v24 = vmax.f32 %v706_v37, %v1708_v18 }
 0x165   : > { %vm2551_vm10 = vcmp.lt.f32.partialorder %v1914_v49, 8388608.0  ;;  %v1497_v28 = vsel %vm1478_vm9, %v1496_v6, %v1495_v44  ;;  %v1288_v30 = vmin.f32 %v1239_v21, 32767.0  ;;  %v2082_v14 = vtrunc.f32 %v1287_v38 }
 0x166   : > { %v1916_v25 = vcvt.f32.s32 %v2535_v51  ;;  %v2131_v31 = vcvt.f32.s32 %v2130_v56  ;;  %v2132_v32 = vtrunc.f32 %v1312_v61  ;;  %v971_v40 = vmax.f32 %v756_v19, %v1709_v45 }
 0x167   : > { %v1757_v43 = vrot.slane %v970_v24, 10  ;;  %v2083_v48 = vcvt.f32.s32 %v2082_v14  ;;  %v2084_v33 = vtrunc.f32 %v1288_v30  ;;  %v1919_v46 = vand.u32 2147483648, %v2535_v51 }
 0x168   : > { %v1917_v26 = vcvt.s32.f32 %v1916_v25  ;;  %v2133_v53 = vcvt.f32.s32 %v2132_v32  ;;  %v1804_v36 = vunpack.i.l.s16 %v2131_v31  ;;  %v1758_v9 = vrot.slane %v971_v40, 10 }
 0x169   : > { %v1215_v62 = vmax.f32 %v970_v24, %v1757_v43  ;;  %v2085_v0 = vcvt.f32.s32 %v2084_v33  ;;  %v1780_v5 = vunpack.i.l.s16 %v2083_v48  ;;  %v564_v10 = vadd.f32 %v2561_v7, %v2402_v3 }
 0x16a   : > { %v1918_v63 = vand.u32 2147483647, %v1917_v26  ;;  %v1805_v11 = vunpack.i.l.s16 %v2133_v53  ;;  %v1540_v16 = vrot.slane %v1804_v36, 4  ;;  %v1216_v2 = vmax.f32 %v971_v40, %v1758_v9 }
 0x16b   : > { %v1264_v37 = vmax.f32 %v1215_v62, -32768.0  ;;  %v1781_v49 = vunpack.i.l.s16 %v2085_v0  ;;  %v1498_v12 = vrot.slane %v1780_v5, 4  ;;  %v607_v8 = vmax.f32 %v564_v10, 0.0 }
 0x16c   : > { %v1920_v13 = vor.u32 %v1919_v46, %v1918_v63  ;;  %v1541_v55 = vsel %vm1481_vm11, %v1540_v16, %v2540_v39  ;;  %v1542_v4 = vrot.slane %v1805_v11, 3  ;;  %v1265_v17 = vmax.f32 %v1216_v2, -32768.0 }
 0x16d   : > { %v1313_v19 = vmin.f32 %v1264_v37, 32767.0  ;;  %v1499_v18 = vsel %vm1481_vm11, %v1498_v12, %v1497_v28  ;;  %v1500_v44 = vrot.slane %v1781_v49, 3  ;;  %v632_v6 = vmul.f32 256.0, %v607_v8 }
 0x16e   : > { %v1921_v3 = vsel %vm2551_vm10, %v1920_v13, %v2535_v51  ;;  %v1543_v21 = vsel %vm1484_vm13, %v1542_v4, %v1541_v55  ;;  %v1314_v38 = vmin.f32 %v1265_v17, 32767.0  ;;  %v504_v31 = vadd.f32 %v2561_v7, %v2405_v22 }
 0x16f   : > { %v2134_v61 = vtrunc.f32 %v1313_v19  ;;  %v669_v56 = vmax.f32 %v1921_v3, -32768.0  ;;  %v2573_v45 = vsel %vm1484_vm13, %v1500_v44, %v1499_v18  ;;  %v2018_v39 = vand.u32 2147483647, %v632_v6 }
 0x170   : > { %v2020_v24 = vcvt.f32.s32 %v632_v6  ;;  %v2023_v30 = vand.u32 2147483648, %v632_v6  ;;  %v2136_v25 = vtrunc.f32 %v1314_v38  ;;  %v569_v32 = vadd.f32 %v2561_v7, %v2407_v23 }
 0x171   : > { %v2135_v14 = vcvt.f32.s32 %v2134_v61  ;;  %v694_v28 = vmin.f32 %v669_v56, 32767.0  ;;  %vm2577_vm12 = vcmp.lt.f32.partialorder %v2018_v39, 8388608.0  ;;  %v509_v40 = vadd.f32 %v2561_v7, %v2410_v41 }
 0x172   : > { %v2021_v27 = vcvt.s32.f32 %v2020_v24  ;;  %v2137_v43 = vcvt.f32.s32 %v2136_v25  ;;  %v595_v53 = vmax.f32 %v504_v31, 0.0  ;;  %v608_v36 = vmax.f32 %v569_v32, 0.0 }
 0x173   : > { %v1806_v48 = vunpack.i.l.s16 %v2135_v14  ;;  %v744_v33 = vcombine.high %v694_v28, %v694_v28  ;;  %v1684_v26 = vrot.slane %v694_v28, 9  ;;  %v596_v9 = vmax.f32 %v509_v40, 0.0 }
 0x174   : > { %v2022_v46 = vand.u32 2147483647, %v2021_v27  ;;  %v1807_v22 = vunpack.i.l.s16 %v2137_v43  ;;  %v1257_v63 = vmax.f32 %v2467_v52, -32768.0  ;;  %v620_v11 = vmul.f32 256.0, %v595_v53 }
 0x175   : > { %v1544_v62 = vrot.slane %v1806_v48, 2  ;;  %v1685_v0 = vrot.slane %v744_v33, 9  ;;  %v946_v5 = vmax.f32 %v694_v28, %v1684_v26  ;;  %v2586_v23 = vmul.f32 256.0, %v608_v36 }
 0x176   : > { %v2024_v10 = vor.u32 %v2023_v30, %v2022_v46  ;;  %v1546_v16 = vrot.slane %v1807_v22, 1  ;;  %v1922_v12 = vand.u32 2147483647, %v620_v11  ;;  %v1924_v13 = vcvt.f32.s32 %v620_v11 }
 0x177   : > { %v1545_v41 = vsel %vm1487_vm15, %v1544_v62, %v1543_v21  ;;  %v947_v2 = vmax.f32 %v744_v33, %v1685_v0  ;;  %v1733_v37 = vrot.slane %v946_v5, 10  ;;  %v2591_v8 = vmul.f32 256.0, %v596_v9 }
 0x178   : > { %v2025_v49 = vsel %vm2577_vm12, %v2024_v10, %v632_v6  ;;  %v1547_v55 = vsel %vm1490_vm0, %v1546_v16, %v1545_v41  ;;  %v1925_v44 = vcvt.s32.f32 %v1924_v13  ;;  %v1927_v3 = vand.u32 2147483648, %v620_v11 }
 0x179   : > { %v1734_v4 = vrot.slane %v947_v2, 10  ;;  %v1191_v17 = vmax.f32 %v946_v5, %v1733_v37  ;;  %v682_v19 = vmax.f32 %v2025_v49, -32768.0  ;;  %v1566_v18 = vpack.c.b16 %v1547_v55, %v1547_v55 }
 0x17a   : > { %v2026_v21 = vand.u32 2147483647, %v2586_v23  ;;  %v2028_v6 = vcvt.f32.s32 %v2586_v23  ;;  %vm2598_vm14 = vcmp.lt.f32.partialorder %v1922_v12, 8388608.0  ;;  %v1926_v24 = vand.u32 2147483647, %v1925_v44 }
 0x17b   : > { %v1192_v38 = vmax.f32 %v947_v2, %v1734_v4  ;;  %v1240_v61 = vmax.f32 %v1191_v17, -32768.0  ;;  %v707_v56 = vmin.f32 %v682_v19, 32767.0  ;;  %1574 = vst.msk [vmem:[%s2489_s6 + $0x10] sm:$0xf] %vm1569_vm2, %v1566_v18  ;;  %v2031_v40 = vand.u32 2147483648, %v2586_v23 }
 0x17c   : > { %vm2602_vm1 = vcmp.lt.f32.partialorder %v2026_v21, 8388608.0  ;;  %v1930_v14 = vand.u32 2147483647, %v2591_v8  ;;  %v1928_v27 = vor.u32 %v1927_v3, %v1926_v24  ;;  %v2029_v32 = vcvt.s32.f32 %v2028_v6 }
 0x17d   : > { %v1241_v25 = vmax.f32 %v1192_v38, -32768.0  ;;  %v1289_v28 = vmin.f32 %v1240_v61, 32767.0  ;;  %v757_v31 = vcombine.high %v707_v56, %v707_v56  ;;  %v1710_v51 = vrot.slane %v707_v56, 9 }
 0x17e   : > { %v1932_v43 = vcvt.f32.s32 %v2591_v8  ;;  %v1929_v53 = vsel %vm2598_vm14, %v1928_v27, %v620_v11  ;;  %v2030_v36 = vand.u32 2147483647, %v2029_v32  ;;  %vm2611_vm3 = vcmp.lt.f32.partialorder %v1930_v14, 8388608.0 }
 0x17f   : > { %v1290_v48 = vmin.f32 %v1241_v25, 32767.0  ;;  %v2086_v33 = vtrunc.f32 %v1289_v28  ;;  %v1711_v26 = vrot.slane %v757_v31, 9  ;;  %v972_v46 = vmax.f32 %v707_v56, %v1710_v51 }
 0x180   : > { %v1933_v22 = vcvt.s32.f32 %v1932_v43  ;;  %v670_v41 = vmax.f32 %v1929_v53, -32768.0  ;;  %v2032_v16 = vor.u32 %v2031_v40, %v2030_v36  ;;  %v1935_v37 = vand.u32 2147483648, %v2591_v8 }
 0x181   : > { %v2087_v62 = vcvt.f32.s32 %v2086_v33  ;;  %v2088_v0 = vtrunc.f32 %v1290_v48  ;;  %v973_v5 = vmax.f32 %v757_v31, %v1711_v26  ;;  %v1759_v10 = vrot.slane %v972_v46, 10 }
 0x182   : > { %v1934_v2 = vand.u32 2147483647, %v1933_v22  ;;  %v695_v11 = vmin.f32 %v670_v41, 32767.0  ;;  %v2033_v4 = vsel %vm2602_vm1, %v2032_v16, %v2586_v23  ;;  %v574_v19 = vadd.f32 %v2561_v7, %v2412_v42 }
 0x183   : > { %v2089_v49 = vcvt.f32.s32 %v2088_v0  ;;  %v1782_v12 = vunpack.i.l.s16 %v2087_v62  ;;  %v1760_v13 = vrot.slane %v973_v5, 10  ;;  %v1217_v55 = vmax.f32 %v972_v46, %v1759_v10 }
 0x184   : > { %v1936_v17 = vor.u32 %v1935_v37, %v1934_v2  ;;  %v745_v38 = vcombine.high %v695_v11, %v695_v11  ;;  %v1686_v61 = vrot.slane %v695_v11, 9  ;;  %v683_v56 = vmax.f32 %v2033_v4, -32768.0 }
 0x185   : > { %v1783_v18 = vunpack.i.l.s16 %v2089_v49  ;;  %v1502_v44 = vrot.slane %v1782_v12, 2  ;;  %v1218_v3 = vmax.f32 %v973_v5, %v1760_v13  ;;  %v1266_v21 = vmax.f32 %v1217_v55, -32768.0 }
 0x186   : > { %v1937_v6 = vsel %vm2611_vm3, %v1936_v17, %v2591_v8  ;;  %v1687_v14 = vrot.slane %v745_v38, 9  ;;  %v948_v25 = vmax.f32 %v695_v11, %v1686_v61  ;;  %v708_v42 = vmin.f32 %v683_v56, 32767.0 }
 0x187   : > { %v1503_v39 = vsel %vm1487_vm15, %v1502_v44, %v2573_v45  ;;  %v1504_v24 = vrot.slane %v1783_v18, 1  ;;  %v1267_v23 = vmax.f32 %v1218_v3, -32768.0  ;;  %v1315_v30 = vmin.f32 %v1266_v21, 32767.0 }
 0x188   : > { %v671_v28 = vmax.f32 %v1937_v6, -32768.0  ;;  %v609_v32 = vmax.f32 %v574_v19, 0.0  ;;  %v949_v43 = vmax.f32 %v745_v38, %v1687_v14  ;;  %v1735_v48 = vrot.slane %v948_v25, 10 }
 0x189   : > { %v1505_v31 = vsel %vm1490_vm0, %v1504_v24, %v1503_v39  ;;  %v1316_v51 = vmin.f32 %v1267_v23, 32767.0  ;;  %v2138_v27 = vtrunc.f32 %v1315_v30  ;;  %v758_v8 = vcombine.high %v708_v42, %v708_v42 }
 0x18a   : > { %v1563_v40 = vpack.c.b16 %v1505_v31, %v1505_v31  ;;  %v2629_v45 = vmin.f32 %v1256_v58, 32767.0  ;;  %v1712_v26 = vrot.slane %v708_v42, 9  ;;  %v696_v46 = vmin.f32 %v671_v28, 32767.0 }
 0x18b   : > { %v2140_v33 = vtrunc.f32 %v1316_v51  ;;  %v2633_v53 = vmin.f32 %v1257_v63, 32767.0  ;;  %v1736_v36 = vrot.slane %v949_v43, 10  ;;  %v1193_v9 = vmax.f32 %v948_v25, %v1735_v48 }
 0x18c   : > { %1571 = vst.msk [vmem:[%s2489_s6 + $0x4] sm:$0xf] %vm1569_vm2, %v1563_v40  ;;  %v1713_v22 = vrot.slane %v758_v8, 9  ;;  %v2637_v62 = vcvt.f32.s32 %v2138_v27  ;;  %v974_v0 = vmax.f32 %v708_v42, %v1712_v26  ;;  %v746_v5 = vcombine.high %v696_v46, %v696_v46 }
 0x18d   : > { %v634_v10 = vmul.f32 256.0, %v609_v32  ;;  %v1194_v50 = vmax.f32 %v949_v43, %v1736_v36  ;;  %v1242_v58 = vmax.f32 %v1193_v9, -32768.0  ;;  %v1688_v16 = vrot.slane %v696_v46, 9 }
 0x18e   : > { %v975_v41 = vmax.f32 %v758_v8, %v1713_v22  ;;  %v2141_v2 = vcvt.f32.s32 %v2140_v33  ;;  %v1761_v37 = vrot.slane %v974_v0, 10  ;;  %v1689_v49 = vrot.slane %v746_v5, 9 }
 0x18f   : > { %v2034_v52 = vand.u32 2147483647, %v634_v10  ;;  %v1243_v63 = vmax.f32 %v1194_v50, -32768.0  ;;  %v1291_v12 = vmin.f32 %v1242_v58, 32767.0  ;;  %v950_v55 = vmax.f32 %v696_v46, %v1688_v16 }
 0x190   : > { %v1762_v13 = vrot.slane %v975_v41, 10  ;;  %v1808_v11 = vunpack.i.l.s16 %v2637_v62  ;;  %v1219_v4 = vmax.f32 %v974_v0, %v1761_v37  ;;  %v951_v17 = vmax.f32 %v746_v5, %v1689_v49 }
 0x191   : > { %v2036_v19 = vcvt.f32.s32 %v634_v10  ;;  %v1292_v18 = vmin.f32 %v1243_v63, 32767.0  ;;  %v2090_v44 = vtrunc.f32 %v1291_v12  ;;  %v1737_v21 = vrot.slane %v950_v55, 10 }
 0x192   : > { %v1220_v3 = vmax.f32 %v975_v41, %v1762_v13  ;;  %v1809_v38 = vunpack.i.l.s16 %v2141_v2  ;;  %v1268_v61 = vmax.f32 %v1219_v4, -32768.0  ;;  %v1738_v56 = vrot.slane %v951_v17, 10 }
 0x193   : > { %v2037_v6 = vcvt.s32.f32 %v2036_v19  ;;  %v2092_v39 = vtrunc.f32 %v1292_v18  ;;  %v1195_v23 = vmax.f32 %v950_v55, %v1737_v21  ;;  %vm2640_vm4 = vcmp.lt.f32.partialorder %v2034_v52, 8388608.0 }
 0x194   : > { %v1269_v24 = vmax.f32 %v1220_v3, -32768.0  ;;  %v1317_v14 = vmin.f32 %v1268_v61, 32767.0  ;;  %v1196_v25 = vmax.f32 %v951_v17, %v1738_v56  ;;  %v2039_v28 = vand.u32 2147483648, %v634_v10 }
 0x195   : > { %v2038_v42 = vand.u32 2147483647, %v2037_v6  ;;  %v2091_v31 = vcvt.f32.s32 %v2090_v44  ;;  %v2093_v51 = vcvt.f32.s32 %v2092_v39  ;;  %v1244_v32 = vmax.f32 %v1195_v23, -32768.0 }
 0x196   : > { %v1318_v27 = vmin.f32 %v1269_v24, 32767.0  ;;  %v2142_v40 = vtrunc.f32 %v1317_v14  ;;  %v1245_v43 = vmax.f32 %v1196_v25, -32768.0  ;;  %v514_v8 = vadd.f32 %v2561_v7, %v2417_v60 }
 0x197   : > { %v2040_v48 = vor.u32 %v2039_v28, %v2038_v42  ;;  %v1785_v33 = vunpack.i.l.s16 %v2093_v51  ;;  %v1293_v46 = vmin.f32 %v1244_v32, 32767.0  ;;  %v579_v36 = vadd.f32 %v2561_v7, %v2428_v54 }
 0x198   : > { %v2144_v26 = vtrunc.f32 %v1318_v27  ;;  %v2143_v9 = vcvt.f32.s32 %v2142_v40  ;;  %v1294_v22 = vmin.f32 %v1245_v43, 32767.0  ;;  %v597_v0 = vmax.f32 %v514_v8, 0.0 }
 0x199   : > { %v2041_v62 = vsel %vm2640_vm4, %v2040_v48, %v634_v10  ;;  %v1548_v5 = vrot.slane %v1809_v38, 7  ;;  %v2094_v58 = vtrunc.f32 %v1293_v46  ;;  %v1506_v16 = vrot.slane %v1785_v33, 7 }
 0x19a   : > { %v2145_v50 = vcvt.f32.s32 %v2144_v26  ;;  %v684_v41 = vmax.f32 %v2041_v62, -32768.0  ;;  %v1810_v2 = vunpack.i.l.s16 %v2143_v9  ;;  %v2096_v37 = vtrunc.f32 %v1294_v22 }
 0x19b   : > { %v622_v60 = vmul.f32 256.0, %v597_v0  ;;  %v1784_v49 = vunpack.i.l.s16 %v2091_v31  ;;  %v2095_v63 = vcvt.f32.s32 %v2094_v58  ;;  %v610_v4 = vmax.f32 %v579_v36, 0.0 }
 0x19c   : > { %v1811_v52 = vunpack.i.l.s16 %v2145_v50  ;;  %v709_v12 = vmin.f32 %v684_v41, 32767.0  ;;  %v1550_v13 = vrot.slane %v1810_v2, 6  ;;  %v2097_v54 = vcvt.f32.s32 %v2096_v37 }
 0x19d   : > { %v1940_v55 = vcvt.f32.s32 %v622_v60  ;;  %v1549_v17 = vsel %vm1472_vm7, %v1548_v5, %v1808_v11  ;;  %v1938_v18 = vand.u32 2147483647, %v622_v60  ;;  %v2118_v44 = vtrunc.f32 %v2629_v45 }
 0x19e   : > { %v759_v10 = vcombine.high %v709_v12, %v709_v12  ;;  %v1714_v19 = vrot.slane %v709_v12, 9  ;;  %v1507_v3 = vsel %vm1472_vm7, %v1506_v16, %v1784_v49  ;;  %v1786_v21 = vunpack.i.l.s16 %v2095_v63 }
 0x19f   : > { %v1941_v38 = vcvt.s32.f32 %v1940_v55  ;;  %v1552_v61 = vrot.slane %v1811_v52, 5  ;;  %v1787_v56 = vunpack.i.l.s16 %v2097_v54  ;;  %v1551_v24 = vsel %vm1475_vm8, %v1550_v13, %v1549_v17 }
 0x1a0   : > { %v1715_v6 = vrot.slane %v759_v10, 9  ;;  %v976_v39 = vmax.f32 %v709_v12, %v1714_v19  ;;  %v1943_v30 = vand.u32 2147483648, %v622_v60  ;;  %v635_v14 = vmul.f32 256.0, %v610_v4 }
 0x1a1   : > { %v1942_v23 = vand.u32 2147483647, %v1941_v38  ;;  %vm2654_vm5 = vcmp.lt.f32.partialorder %v1938_v18, 8388608.0  ;;  %v519_v28 = vadd.f32 %v2561_v7, %v2442_v57  ;;  %v1508_v31 = vrot.slane %v1786_v21, 6 }
 0x1a2   : > { %v977_v25 = vmax.f32 %v759_v10, %v1715_v6  ;;  %v1763_v11 = vrot.slane %v976_v39, 10  ;;  %v2042_v27 = vand.u32 2147483647, %v635_v14  ;;  %v2044_v32 = vcvt.f32.s32 %v635_v14 }
 0x1a3   : > { %v1944_v51 = vor.u32 %v1943_v30, %v1942_v23  ;;  %v1510_v40 = vrot.slane %v1787_v56, 5  ;;  %v598_v8 = vmax.f32 %v519_v28, 0.0  ;;  %v2047_v46 = vand.u32 2147483648, %v635_v14 }
 0x1a4   : > { %v1764_v43 = vrot.slane %v977_v25, 10  ;;  %v1221_v48 = vmax.f32 %v976_v39, %v1763_v11  ;;  %v2045_v26 = vcvt.s32.f32 %v2044_v32  ;;  %v524_v36 = vadd.f32 %v2561_v7, %v2445_v29 }
 0x1a5   : > { %v1945_v33 = vsel %vm2654_vm5, %v1944_v51, %v622_v60  ;;  %v623_v57 = vmul.f32 256.0, %v598_v8  ;;  %v1509_v0 = vsel %vm1475_vm8, %v1508_v31, %v1507_v3  ;;  %vm2665_vm6 = vcmp.lt.f32.partialorder %v2042_v27, 8388608.0 }
 0x1a6   : > { %v1222_v9 = vmax.f32 %v977_v25, %v1764_v43  ;;  %v1270_v22 = vmax.f32 %v1221_v48, -32768.0  ;;  %v672_v62 = vmax.f32 %v1945_v33, -32768.0  ;;  %v2046_v50 = vand.u32 2147483647, %v2045_v26 }
 0x1a7   : > { %v599_v58 = vmax.f32 %v524_v36, 0.0  ;;  %v1948_v37 = vcvt.f32.s32 %v623_v57  ;;  %v1553_v60 = vsel %vm1478_vm9, %v1552_v61, %v1551_v24  ;;  %v1946_v29 = vand.u32 2147483647, %v623_v57 }
 0x1a8   : > { %v1271_v41 = vmax.f32 %v1222_v9, -32768.0  ;;  %v1319_v16 = vmin.f32 %v1270_v22, 32767.0  ;;  %v697_v2 = vmin.f32 %v672_v62, 32767.0  ;;  %v2048_v49 = vor.u32 %v2047_v46, %v2046_v50 }
 0x1a9   : > { %v624_v52 = vmul.f32 256.0, %v599_v58  ;;  %v2671_v55 = vsel %vm1478_vm9, %v1510_v40, %v1509_v0  ;;  %v1949_v17 = vcvt.s32.f32 %v1948_v37  ;;  %v1951_v10 = vand.u32 2147483648, %v623_v57 }
 0x1aa   : > { %v1320_v63 = vmin.f32 %v1271_v41, 32767.0  ;;  %v2146_v12 = vtrunc.f32 %v1319_v16  ;;  %v747_v13 = vcombine.high %v697_v2, %v697_v2  ;;  %v1690_v54 = vrot.slane %v697_v2, 9 }
 0x1ab   : > { %v2049_v4 = vsel %vm2665_vm6, %v2048_v49, %v635_v14  ;;  %vm2675_vm10 = vcmp.lt.f32.partialorder %v1946_v29, 8388608.0  ;;  %v1950_v56 = vand.u32 2147483647, %v1949_v17  ;;  %v1956_v6 = vcvt.f32.s32 %v624_v52 }
 0x1ac   : > { %v2147_v19 = vcvt.f32.s32 %v2146_v12  ;;  %v2148_v18 = vtrunc.f32 %v1320_v63  ;;  %v1691_v3 = vrot.slane %v747_v13, 9  ;;  %v952_v21 = vmax.f32 %v697_v2, %v1690_v54 }
 0x1ad   : > { %v685_v38 = vmax.f32 %v2049_v4, -32768.0  ;;  %v1952_v11 = vor.u32 %v1951_v10, %v1950_v56  ;;  %v1954_v14 = vand.u32 2147483647, %v624_v52  ;;  %v1957_v42 = vcvt.s32.f32 %v1956_v6 }
 0x1ae   : > { %v2149_v39 = vcvt.f32.s32 %v2148_v18  ;;  %v1812_v24 = vunpack.i.l.s16 %v2147_v19  ;;  %v953_v23 = vmax.f32 %v747_v13, %v1691_v3  ;;  %v1739_v30 = vrot.slane %v952_v21, 10 }
 0x1af   : > { %v710_v25 = vmin.f32 %v685_v38, 32767.0  ;;  %v1959_v27 = vand.u32 2147483648, %v624_v52  ;;  %v1953_v43 = vsel %vm2675_vm10, %v1952_v11, %v623_v57  ;;  %v1958_v48 = vand.u32 2147483647, %v1957_v42 }
 0x1b0   : > { %v1554_v28 = vrot.slane %v1812_v24, 4  ;;  %v1740_v31 = vrot.slane %v953_v23, 10  ;;  %v1197_v51 = vmax.f32 %v952_v21, %v1739_v30  ;;  %v1813_v8 = vunpack.i.l.s16 %v2149_v39 }
 0x1b1   : > { %v760_v32 = vcombine.high %v710_v25, %v710_v25  ;;  %v1716_v40 = vrot.slane %v710_v25, 9  ;;  %v584_v46 = vadd.f32 %v2561_v7, %v2451_v34  ;;  %v673_v22 = vmax.f32 %v1953_v43, -32768.0 }
 0x1b2   : > { %v1198_v33 = vmax.f32 %v953_v23, %v1740_v31  ;;  %v1246_v26 = vmax.f32 %v1197_v51, -32768.0  ;;  %v1960_v62 = vor.u32 %v1959_v27, %v1958_v48  ;;  %v1555_v0 = vsel %vm1481_vm11, %v1554_v28, %v1553_v60 }
 0x1b3   : > { %v1717_v36 = vrot.slane %v760_v32, 9  ;;  %v978_v9 = vmax.f32 %v710_v25, %v1716_v40  ;;  %vm1955_vm12 = vcmp.lt.f32.partialorder %v1954_v14, 8388608.0  ;;  %v698_v16 = vmin.f32 %v673_v22, 32767.0 }
 0x1b4   : > { %v1247_v5 = vmax.f32 %v1198_v33, -32768.0  ;;  %v1295_v50 = vmin.f32 %v1246_v26, 32767.0  ;;  %v1961_v57 = vsel %vm1955_vm12, %v1960_v62, %v624_v52  ;;  %v1556_v2 = vrot.slane %v1813_v8, 3 }
 0x1b5   : > { %v979_v58 = vmax.f32 %v760_v32, %v1717_v36  ;;  %v1765_v41 = vrot.slane %v978_v9, 10  ;;  %v674_v29 = vmax.f32 %v1961_v57, -32768.0  ;;  %v748_v34 = vcombine.high %v698_v16, %v698_v16 }
 0x1b6   : > { %v1296_v37 = vmin.f32 %v1247_v5, 32767.0  ;;  %v2098_v49 = vtrunc.f32 %v1295_v50  ;;  %v1692_v7 = vrot.slane %v698_v16, 9  ;;  %v611_v17 = vmax.f32 %v584_v46, 0.0 }
 0x1b7   : > { %v1766_v63 = vrot.slane %v979_v58, 10  ;;  %v1223_v12 = vmax.f32 %v978_v9, %v1765_v41  ;;  %v699_v4 = vmin.f32 %v674_v29, 32767.0  ;;  %v1693_v19 = vrot.slane %v748_v34, 9 }
 0x1b8   : > { %v2099_v13 = vcvt.f32.s32 %v2098_v49  ;;  %v2100_v54 = vtrunc.f32 %v1296_v37  ;;  %v954_v18 = vmax.f32 %v698_v16, %v1692_v7  ;;  %v1557_v24 = vsel %vm1484_vm13, %v1556_v2, %v1555_v0 }
 0x1b9   : > { %v1224_v60 = vmax.f32 %v979_v58, %v1766_v63  ;;  %v1272_v10 = vmax.f32 %v1223_v12, -32768.0  ;;  %v749_v38 = vcombine.high %v699_v4, %v699_v4  ;;  %v1694_v52 = vrot.slane %v699_v4, 9 }
 0x1ba   : > { %v2101_v3 = vcvt.f32.s32 %v2100_v54  ;;  %v1788_v21 = vunpack.i.l.s16 %v2099_v13  ;;  %v955_v6 = vmax.f32 %v748_v34, %v1693_v19  ;;  %v1741_v39 = vrot.slane %v954_v18, 10 }
 0x1bb   : > { %v1273_v61 = vmax.f32 %v1224_v60, -32768.0  ;;  %v1321_v56 = vmin.f32 %v1272_v10, 32767.0  ;;  %v1695_v30 = vrot.slane %v749_v38, 9  ;;  %v956_v25 = vmax.f32 %v699_v4, %v1694_v52 }
 0x1bc   : > { %v1512_v23 = vrot.slane %v1788_v21, 4  ;;  %v1742_v42 = vrot.slane %v955_v6, 10  ;;  %v1199_v28 = vmax.f32 %v954_v18, %v1741_v39  ;;  %v1789_v31 = vunpack.i.l.s16 %v2101_v3 }
 0x1bd   : > { %v1322_v11 = vmin.f32 %v1273_v61, 32767.0  ;;  %v2150_v14 = vtrunc.f32 %v1321_v56  ;;  %v957_v51 = vmax.f32 %v749_v38, %v1695_v30  ;;  %v1743_v27 = vrot.slane %v956_v25, 10 }
 0x1be   : > { %v636_v32 = vmul.f32 256.0, %v611_v17  ;;  %v1200_v48 = vmax.f32 %v955_v6, %v1742_v42  ;;  %v1248_v8 = vmax.f32 %v1199_v28, -32768.0  ;;  %v1513_v33 = vsel %vm1481_vm11, %v1512_v23, %v2671_v55 }
 0x1bf   : > { %v2151_v40 = vcvt.f32.s32 %v2150_v14  ;;  %v2152_v43 = vtrunc.f32 %v1322_v11  ;;  %v1744_v26 = vrot.slane %v957_v51, 10  ;;  %v1201_v46 = vmax.f32 %v956_v25, %v1743_v27 }
 0x1c0   : > { %v2050_v36 = vand.u32 2147483647, %v636_v32  ;;  %v1249_v62 = vmax.f32 %v1200_v48, -32768.0  ;;  %v1297_v0 = vmin.f32 %v1248_v8, 32767.0  ;;  %v1514_v5 = vrot.slane %v1789_v31, 3 }
 0x1c1   : > { %v2153_v9 = vcvt.f32.s32 %v2152_v43  ;;  %v1814_v22 = vunpack.i.l.s16 %v2151_v40  ;;  %v1202_v50 = vmax.f32 %v957_v51, %v1744_v26  ;;  %v1250_v58 = vmax.f32 %v1201_v46, -32768.0 }
 0x1c2   : > { %v2052_v41 = vcvt.f32.s32 %v636_v32  ;;  %v1298_v2 = vmin.f32 %v1249_v62, 32767.0  ;;  %v2102_v37 = vtrunc.f32 %v1297_v0  ;;  %v2055_v12 = vand.u32 2147483648, %v636_v32 }
 0x1c3   : > { %v1815_v16 = vunpack.i.l.s16 %v2153_v9  ;;  %v1558_v57 = vrot.slane %v1814_v22, 2  ;;  %v1251_v49 = vmax.f32 %v1202_v50, -32768.0  ;;  %v1299_v29 = vmin.f32 %v1250_v58, 32767.0 }
 0x1c4   : > { %v2053_v63 = vcvt.s32.f32 %v2052_v41  ;;  %v2103_v7 = vcvt.f32.s32 %v2102_v37  ;;  %v2104_v13 = vtrunc.f32 %v1298_v2  ;;  %v2120_v54 = vtrunc.f32 %v2633_v53 }
 0x1c5   : > { %v1559_v55 = vsel %vm1487_vm15, %v1558_v57, %v1557_v24  ;;  %v1560_v34 = vrot.slane %v1815_v16, 1  ;;  %v1300_v4 = vmin.f32 %v1251_v49, 32767.0  ;;  %v2106_v17 = vtrunc.f32 %v1299_v29 }
 0x1c6   : > { %v2054_v60 = vand.u32 2147483647, %v2053_v63  ;;  %v2105_v19 = vcvt.f32.s32 %v2104_v13  ;;  %v1790_v18 = vunpack.i.l.s16 %v2103_v7  ;;  %vm2690_vm14 = vcmp.lt.f32.partialorder %v2050_v36, 8388608.0  ;;  %v1579_v63 = vld [vmem:[%s2489_s6 + $0x18] sm:$0x1] }
 0x1c7   : > { %v1561_v10 = vsel %vm1490_vm0, %v1560_v34, %v1559_v55  ;;  %v1515_v21 = vsel %vm1484_vm13, %v1514_v5, %v1513_v33  ;;  %v2108_v52 = vtrunc.f32 %v1300_v4  ;;  %v1794_v56 = vunpack.i.l.s16 %v2421_v1 }
 0x1c8   : > { %v1567_v38 = vpack.c.b16 %v1561_v10, %v1561_v10  ;;  %v2056_v61 = vor.u32 %v2055_v12, %v2054_v60  ;;  %v2115_v53 = vcvt.f32.s32 %v2114_v59  ;;  %v1791_v6 = vunpack.i.l.s16 %v2105_v19 }
 0x1c9   : > { %v1516_v39 = vrot.slane %v1790_v18, 2  ;;  %v2117_v24 = vcvt.f32.s32 %v2116_v15  ;;  %v2107_v23 = vcvt.f32.s32 %v2106_v17  ;;  %v2109_v30 = vcvt.f32.s32 %v2108_v52 }
 0x1ca   : > { %1575 = vst.msk [vmem:[%s2489_s6 + $0x14] sm:$0xf] %vm1569_vm2, %v1567_v38  ;;  %v2057_v25 = vsel %vm2690_vm14, %v2056_v61, %v636_v32  ;;  %v2119_v11 = vcvt.f32.s32 %v2118_v44  ;;  %v1518_v14 = vrot.slane %v1791_v6, 1  ;;  %v1795_v59 = vunpack.i.l.s16 %v2436_v35 }
 0x1cb   : > { %v1517_v1 = vsel %vm1487_vm15, %v1516_v39, %v1515_v21  ;;  %v686_v20 = vmax.f32 %v2057_v25, -32768.0  ;;  %v2121_v42 = vcvt.f32.s32 %v2120_v54  ;;  %v1793_v47 = vunpack.i.l.s16 %v2109_v30 }
 0x1cc   : > { %v1796_v15 = vunpack.i.l.s16 %v2115_v53  ;;  %v1519_v28 = vsel %vm1490_vm0, %v1518_v14, %v1517_v1  ;;  %v1797_v51 = vunpack.i.l.s16 %v2117_v24  ;;  %v1792_v40 = vunpack.i.l.s16 %v2107_v23 }
 0x1cd   : > { %v711_v31 = vmin.f32 %v686_v20, 32767.0  ;;  %v1564_v27 = vpack.c.b16 %v1519_v28, %v1519_v28  ;;  %v1520_v32 = vrot.slane %v1793_v47, 7  ;;  %v1522_v43 = vrot.slane %v1794_v56, 6 }
 0x1ce   : > { %v1798_v45 = vunpack.i.l.s16 %v2119_v11  ;;  %v1524_v48 = vrot.slane %v1795_v59, 5  ;;  %v1799_v8 = vunpack.i.l.s16 %v2121_v42  ;;  %v1526_v35 = vrot.slane %v1796_v15, 4 }
 0x1cf   : > { %v1718_v44 = vrot.slane %v711_v31, 9  ;;  %1572 = vst.msk [vmem:[%s2489_s6 + $0x8] sm:$0xf] %vm1569_vm2, %v1564_v27  ;;  %v1521_v33 = vsel %vm1472_vm7, %v1520_v32, %v1792_v40  ;;  %v1528_v36 = vrot.slane %v1797_v51, 3  ;;  %vm1576_vm7 = vcmask 253952  }
 0x1d0   : > { %v1523_v26 = vsel %vm1475_vm8, %v1522_v43, %v1521_v33  ;;  %v1530_v22 = vrot.slane %v1798_v45, 2  ;;  %v1532_v5 = vrot.slane %v1799_v8, 1  ;;  %vm1577_vm8 = vsmask.f32 256 }
 0x1d1   : > { %v980_v46 = vmax.f32 %v711_v31, %v1718_v44  ;;  %v1525_v9 = vsel %vm1478_vm9, %v1524_v48, %v1523_v26  ;;  %vm1578_vm9 = vmand %vm1576_vm7, %vm1577_vm8 }
 0x1d2   : > { %v1527_v62 = vsel %vm1481_vm11, %v1526_v35, %v1525_v9 }
 0x1d3   : > { %v1767_v0 = vrot.slane %v980_v46, 10  ;;  %v1529_v50 = vsel %vm1484_vm13, %v1528_v36, %v1527_v62 }
 0x1d4   : > { %v1531_v58 = vsel %vm1487_vm15, %v1530_v22, %v1529_v50 }
 0x1d5   : > { %v1225_v41 = vmax.f32 %v980_v46, %v1767_v0  ;;  %v1533_v16 = vsel %vm1490_vm0, %v1532_v5, %v1531_v58 }
 0x1d6   : > { %v1565_v57 = vpack.c.b16 %v1533_v16, %v1533_v16 }
 0x1d7   : > { %v1274_v2 = vmax.f32 %v1225_v41, -32768.0 }
 0x1d8   : > { %1573 = vst.msk [vmem:[%s2489_s6 + $0xc] sm:$0xf] %vm1569_vm2, %v1565_v57 }
 0x1d9   : > { %v1323_v37 = vmin.f32 %v1274_v2, 32767.0 }
 0x1db   : > { %v2154_v49 = vtrunc.f32 %v1323_v37 }
 0x1dd   : > { %v2155_v29 = vcvt.f32.s32 %v2154_v49 }
 0x1df   : > { %v1817_v12 = vpack.c.b16 %v2155_v29, %v2155_v29 }
 0x1e1   : > { %v1580_v55 = vsel %vm1578_vm9, %v1817_v12, %v1579_v63 }
 0x1e2   : > { %1581 = vst [vmem:[%s2489_s6 + $0x18] sm:$0x1] %v1580_v55 }
 0x1e3 PF: > { %s13_s12 = sadd.s32 1, %s2172_s12  }
 0x1e4   : > { %p10_p4 = scmp.ge.s32.totalorder %s13_s12, 4  }
 0x1e6   :  { %12 = sbr.rel (!%p10_p4) target bundleno = 1 (0x1), region = 62 }

// kernel: quantized_cnn_forward.3
= control target key start
LH: loop header
LB: loop body
LE: loop exit
PB: predicated region body
PF: predicated region fallthrough
CT: control target
= control target key end

     0   :  { %s7728_s12 = smov 0   ;;  %s9254_s0 = inlined_call_operand.vmem [shape: s16[2,784,9], index: 0, kind: input, shape index: {}]   ;;  %s9255_s1 = inlined_call_operand.vmem [shape: f32[9,16], index: 1, kind: input, shape index: {}]   ;;  %s9256_s2 = inlined_call_operand.vmem [shape: f32[1,16], index: 2, kind: input, shape index: {}]   ;;  %s9257_s3 = inlined_call_operand.vmem [shape: s16[2,196,16], index: 3, kind: output, shape index: {}]  }
   0x1 LB: > { %s5312_s13 = sadd.s32 4294967295, %s7706_s12   ;;  %p5316_p0 = scmp.ge.s32.totalorder %s7706_s12, 1  ;;  %s7706_s12 = sphi %s7728_s12, %s13_s12  }
   0x2   : > { %p137_p1 = scmp.lt.s32.totalorder %s7706_s12, 3 }
   0x4   : > { %p138_p2 = pnand %p5316_p0, %p137_p1 }
   0x5   : > { %p161_p3 = scmp.lt.s32.totalorder (!%p138_p2), %s5312_s13, 1 }
   0x6   : > { %141 = sbr.rel (%p138_p2) target bundleno = 1109 (0x455), region = 32 }
   0xb   : > { %v466_v0 = vld [vmem:[%s9255_s1 + $0x8] sm:$0x1]  ;;  %vm769_vm0 = vcmask 1040384   ;;  %v465_v1 = vld [vmem:[%s9255_s1] sm:$0xff]  ;;  %s9421_s13 = smov (!%p161_p3, %s5312_s13), 1  ;;  %vm474_vm1 = vcmask 72704  }
   0xc   : > { %6353 = vmatprep.subr.msk.mxu0 %vm769_vm0, %v466_v0  ;;  %6504 = vmatprep.subr.msk.mxu1 %vm769_vm0, %v466_v0  ;;  %s6508_s18 = smul.u32 392, %s9421_s13  ;;  %vm4857_vm5 = vcmask 1041409   ;;  %vm4860_vm6 = vcmask 1042434   ;;  %vm4863_vm9 = vcmask 1043459   ;;  %vm4866_vm13 = vcmask 1044484  }
   0xd   : > { %6354 = vmatpush3.msk.msra.mxu0 %vm769_vm0, %v466_v0  ;;  %6506 = vmatpush3.msk.msra.mxu1 %vm769_vm0, %v466_v0  ;;  %vm4869_vm15 = vcmask 1045509   ;;  %vm4872_vm0 = vcmask 1046534   ;;  %s6509_s24 = smul.u32 100, %s9421_s13 }
   0xe   : > { %6355 = vmatprep.subr.mxu0 %v465_v1  ;;  %6505 = vmatprep.subr.mxu1 %v465_v1  ;;  %s7748_s21 = scalar_lea.vmem %s9254_s0, %s6508_s18 }
   0xf   : > { %6356 = vmatpush3.msra.mxu0 %v465_v1  ;;  %6507 = vmatpush3.msra.mxu1 %v465_v1  ;;  %v6010_v2 = vld [vmem:[%s7748_s21] sm:$0xff]   ;;  %v6229_v3 = vld [vmem:[%s7748_s21 + $0xc8] sm:$0xff]   ;;  %v6230_v9 = vld [vmem:[%s7748_s21 + $0xd0] sm:$0xff]   ;;  %s8014_s27 = scalar_lea.vmem %s9257_s3, %s6509_s24 }
  0x10   : > { %v6205_v4 = vld [vmem:[%s7748_s21 + $0x8] sm:$0xff]   ;;  %v6011_v5 = vunpack.c.l.b16 %v6010_v2  ;;  %v6012_v6 = vunpack.c.h.b16 %v6010_v2  ;;  %v6111_v7 = vunpack.c.l.b16 %v6229_v3  ;;  %v6112_v8 = vunpack.c.h.b16 %v6229_v3  ;;  %v6206_v14 = vld [vmem:[%s7748_s21 + $0x10] sm:$0xff]   ;;  %v6231_v15 = vld [vmem:[%s7748_s21 + $0xd8] sm:$0xff]  }
  0x11   : > { %v6015_v10 = vunpack.c.l.b16 %v6205_v4  ;;  %v6115_v11 = vunpack.c.l.b16 %v6230_v9  ;;  %v6016_v12 = vunpack.c.h.b16 %v6205_v4  ;;  %v6116_v13 = vunpack.c.h.b16 %v6230_v9  ;;  %v6207_v22 = vld [vmem:[%s7748_s21 + $0x18] sm:$0xff]   ;;  %v6232_v23 = vld [vmem:[%s7748_s21 + $0xe0] sm:$0xff]   ;;  %v6233_v35 = vld [vmem:[%s7748_s21 + $0xe8] sm:$0xff]  }
  0x12   : > { %v367_v16 = vcvt.s32.f32 %v6011_v5  ;;  %v368_v17 = vcvt.s32.f32 %v6012_v6  ;;  %v417_v18 = vcvt.s32.f32 %v6111_v7  ;;  %v418_v19 = vcvt.s32.f32 %v6112_v8  ;;  %v6208_v34 = vld [vmem:[%s7748_s21 + $0x20] sm:$0xff]   ;;  %v6209_v44 = vld [vmem:[%s7748_s21 + $0x28] sm:$0xff]   ;;  %v6234_v45 = vld [vmem:[%s7748_s21 + $0xf0] sm:$0xff]  }
  0x13   : > { %v369_v20 = vcvt.s32.f32 %v6015_v10  ;;  %v419_v21 = vcvt.s32.f32 %v6115_v11  ;;  %v6019_v24 = vunpack.c.l.b16 %v6206_v14  ;;  %v6119_v25 = vunpack.c.l.b16 %v6231_v15  ;;  %v6210_v54 = vld [vmem:[%s7748_s21 + $0x30] sm:$0xff]   ;;  %v6235_v55 = vld [vmem:[%s7748_s21 + $0xf8] sm:$0xff]   ;;  %v6236_v1 = vld [vmem:[%s7748_s21 + $0x100] sm:$0xff]  }
  0x14   : > { %6357 = vmatprep.mubr.msk.f32.mxu0 %vm474_vm1, %v367_v16  ;;  %6432 = vmatprep.mubr.msk.f32.mxu1 %vm474_vm1, %v417_v18  ;;  %v370_v26 = vcvt.s32.f32 %v6016_v12  ;;  %v420_v27 = vcvt.s32.f32 %v6116_v13  ;;  %v6020_v28 = vunpack.c.h.b16 %v6206_v14  ;;  %v6120_v29 = vunpack.c.h.b16 %v6231_v15  ;;  %v6211_v0 = vld [vmem:[%s7748_s21 + $0x38] sm:$0xff]   ;;  %v6212_v10 = vld [vmem:[%s7748_s21 + $0x40] sm:$0xff]   ;;  %v6237_v11 = vld [vmem:[%s7748_s21 + $0x108] sm:$0xff]  }
  0x15   : > { %6358 = vmatmul.mubr.msk.f32.vlgmr.msra.gmra.mxu0 %vm474_vm1, %v368_v17  ;;  %6433 = vmatmul.mubr.msk.f32.vlgmr.msra.gmra.mxu1 %vm474_vm1, %v418_v19  ;;  %v371_v30 = vcvt.s32.f32 %v6019_v24  ;;  %v421_v31 = vcvt.s32.f32 %v6119_v25  ;;  %v6023_v32 = vunpack.c.l.b16 %v6207_v22  ;;  %v6123_v33 = vunpack.c.l.b16 %v6232_v23 }
  0x16   : > { %6360 = vmatprep.mubr.msk.f32.mxu0 %vm474_vm1, %v369_v20  ;;  %6435 = vmatprep.mubr.msk.f32.mxu1 %vm474_vm1, %v419_v21  ;;  %v372_v36 = vcvt.s32.f32 %v6020_v28  ;;  %v422_v37 = vcvt.s32.f32 %v6120_v29  ;;  %v6024_v38 = vunpack.c.h.b16 %v6207_v22  ;;  %v6124_v39 = vunpack.c.h.b16 %v6232_v23  ;;  %v6213_v20 = vld [vmem:[%s7748_s21 + $0x48] sm:$0xff]   ;;  %v6238_v21 = vld [vmem:[%s7748_s21 + $0x110] sm:$0xff]  }
  0x17   : > { %v373_v40 = vcvt.s32.f32 %v6023_v32  ;;  %v423_v41 = vcvt.s32.f32 %v6123_v33  ;;  %v6027_v42 = vunpack.c.l.b16 %v6208_v34  ;;  %v6127_v43 = vunpack.c.l.b16 %v6233_v35 }
  0x18   : > { %v374_v46 = vcvt.s32.f32 %v6024_v38  ;;  %v424_v47 = vcvt.s32.f32 %v6124_v39  ;;  %v6028_v48 = vunpack.c.h.b16 %v6208_v34  ;;  %v6128_v49 = vunpack.c.h.b16 %v6233_v35 }
  0x19   : > { %6361 = vmatmul.mubr.msk.f32.gmra.mxu0 %vm474_vm1, %v370_v26  ;;  %6436 = vmatmul.mubr.msk.f32.gmra.mxu1 %vm474_vm1, %v420_v27  ;;  %v375_v50 = vcvt.s32.f32 %v6027_v42  ;;  %v425_v51 = vcvt.s32.f32 %v6127_v43  ;;  %v6031_v52 = vunpack.c.l.b16 %v6209_v44  ;;  %v6131_v53 = vunpack.c.l.b16 %v6234_v45 }
  0x1a   : > { %6363 = vmatprep.mubr.msk.f32.mxu0 %vm474_vm1, %v371_v30  ;;  %6438 = vmatprep.mubr.msk.f32.mxu1 %vm474_vm1, %v421_v31  ;;  %v376_v56 = vcvt.s32.f32 %v6028_v48  ;;  %v426_v57 = vcvt.s32.f32 %v6128_v49  ;;  %v6032_v58 = vunpack.c.h.b16 %v6209_v44  ;;  %v6132_v59 = vunpack.c.h.b16 %v6234_v45  ;;  %v6214_v30 = vld [vmem:[%s7748_s21 + $0x50] sm:$0xff]   ;;  %v6239_v31 = vld [vmem:[%s7748_s21 + $0x118] sm:$0xff]  }
  0x1b   : > { %v377_v60 = vcvt.s32.f32 %v6031_v52  ;;  %v427_v61 = vcvt.s32.f32 %v6131_v53  ;;  %v6035_v62 = vunpack.c.l.b16 %v6210_v54  ;;  %v6135_v63 = vunpack.c.l.b16 %v6235_v55 }
  0x1c   : > { %v378_v2 = vcvt.s32.f32 %v6032_v58  ;;  %v428_v3 = vcvt.s32.f32 %v6132_v59  ;;  %v6036_v4 = vunpack.c.h.b16 %v6210_v54  ;;  %v6136_v5 = vunpack.c.h.b16 %v6235_v55 }
  0x1d   : > { %6364 = vmatmul.mubr.msk.f32.gmra.mxu0 %vm474_vm1, %v372_v36  ;;  %6439 = vmatmul.mubr.msk.f32.gmra.mxu1 %vm474_vm1, %v422_v37  ;;  %v379_v6 = vcvt.s32.f32 %v6035_v62  ;;  %v429_v7 = vcvt.s32.f32 %v6135_v63  ;;  %v6039_v8 = vunpack.c.l.b16 %v6211_v0  ;;  %v6139_v9 = vunpack.c.l.b16 %v6236_v1 }
  0x1e   : > { %6366 = vmatprep.mubr.msk.f32.mxu0 %vm474_vm1, %v373_v40  ;;  %6441 = vmatprep.mubr.msk.f32.mxu1 %vm474_vm1, %v423_v41  ;;  %v380_v12 = vcvt.s32.f32 %v6036_v4  ;;  %v430_v13 = vcvt.s32.f32 %v6136_v5  ;;  %v6040_v14 = vunpack.c.h.b16 %v6211_v0  ;;  %v6140_v15 = vunpack.c.h.b16 %v6236_v1  ;;  %v6215_v40 = vld [vmem:[%s7748_s21 + $0x58] sm:$0xff]   ;;  %v6240_v41 = vld [vmem:[%s7748_s21 + $0x120] sm:$0xff]  }
  0x1f   : > { %v381_v16 = vcvt.s32.f32 %v6039_v8  ;;  %v431_v17 = vcvt.s32.f32 %v6139_v9  ;;  %v6043_v18 = vunpack.c.l.b16 %v6212_v10  ;;  %v6143_v19 = vunpack.c.l.b16 %v6237_v11 }
  0x20   : > { %v382_v22 = vcvt.s32.f32 %v6040_v14  ;;  %v432_v23 = vcvt.s32.f32 %v6140_v15  ;;  %v6044_v24 = vunpack.c.h.b16 %v6212_v10  ;;  %v6144_v25 = vunpack.c.h.b16 %v6237_v11 }
  0x21   : > { %6367 = vmatmul.mubr.msk.f32.gmra.mxu0 %vm474_vm1, %v374_v46  ;;  %6442 = vmatmul.mubr.msk.f32.gmra.mxu1 %vm474_vm1, %v424_v47  ;;  %v383_v26 = vcvt.s32.f32 %v6043_v18  ;;  %v433_v27 = vcvt.s32.f32 %v6143_v19  ;;  %v6047_v28 = vunpack.c.l.b16 %v6213_v20  ;;  %v6147_v29 = vunpack.c.l.b16 %v6238_v21 }
  0x22   : > { %6369 = vmatprep.mubr.msk.f32.mxu0 %vm474_vm1, %v375_v50  ;;  %6444 = vmatprep.mubr.msk.f32.mxu1 %vm474_vm1, %v425_v51  ;;  %v384_v32 = vcvt.s32.f32 %v6044_v24  ;;  %v434_v33 = vcvt.s32.f32 %v6144_v25  ;;  %v6048_v34 = vunpack.c.h.b16 %v6213_v20  ;;  %v6148_v35 = vunpack.c.h.b16 %v6238_v21  ;;  %v6216_v50 = vld [vmem:[%s7748_s21 + $0x60] sm:$0xff]   ;;  %v6241_v51 = vld [vmem:[%s7748_s21 + $0x128] sm:$0xff]  }
  0x23   : > { %v385_v36 = vcvt.s32.f32 %v6047_v28  ;;  %v435_v37 = vcvt.s32.f32 %v6147_v29  ;;  %v6051_v38 = vunpack.c.l.b16 %v6214_v30  ;;  %v6151_v39 = vunpack.c.l.b16 %v6239_v31 }
  0x24   : > { %v386_v42 = vcvt.s32.f32 %v6048_v34  ;;  %v436_v43 = vcvt.s32.f32 %v6148_v35  ;;  %v6052_v44 = vunpack.c.h.b16 %v6214_v30  ;;  %v6152_v45 = vunpack.c.h.b16 %v6239_v31 }
  0x25   : > { %6370 = vmatmul.mubr.msk.f32.gmra.mxu0 %vm474_vm1, %v376_v56  ;;  %6445 = vmatmul.mubr.msk.f32.gmra.mxu1 %vm474_vm1, %v426_v57  ;;  %v387_v46 = vcvt.s32.f32 %v6051_v38  ;;  %v437_v47 = vcvt.s32.f32 %v6151_v39  ;;  %v6055_v48 = vunpack.c.l.b16 %v6215_v40  ;;  %v6155_v49 = vunpack.c.l.b16 %v6240_v41 }
  0x26   : > { %6372 = vmatprep.mubr.msk.f32.mxu0 %vm474_vm1, %v377_v60  ;;  %6447 = vmatprep.mubr.msk.f32.mxu1 %vm474_vm1, %v427_v61  ;;  %v388_v52 = vcvt.s32.f32 %v6052_v44  ;;  %v438_v53 = vcvt.s32.f32 %v6152_v45  ;;  %v6056_v54 = vunpack.c.h.b16 %v6215_v40  ;;  %v6156_v55 = vunpack.c.h.b16 %v6240_v41  ;;  %v6217_v60 = vld [vmem:[%s7748_s21 + $0x68] sm:$0xff]   ;;  %v6242_v61 = vld [vmem:[%s7748_s21 + $0x130] sm:$0xff]  }
  0x27   : > { %v389_v56 = vcvt.s32.f32 %v6055_v48  ;;  %v439_v57 = vcvt.s32.f32 %v6155_v49  ;;  %v6059_v58 = vunpack.c.l.b16 %v6216_v50  ;;  %v6159_v59 = vunpack.c.l.b16 %v6241_v51 }
  0x28   : > { %v390_v62 = vcvt.s32.f32 %v6056_v54  ;;  %v440_v63 = vcvt.s32.f32 %v6156_v55  ;;  %v6060_v0 = vunpack.c.h.b16 %v6216_v50  ;;  %v6160_v1 = vunpack.c.h.b16 %v6241_v51 }
  0x29   : > { %6373 = vmatmul.mubr.msk.f32.gmra.mxu0 %vm474_vm1, %v378_v2  ;;  %6448 = vmatmul.mubr.msk.f32.gmra.mxu1 %vm474_vm1, %v428_v3  ;;  %v391_v2 = vcvt.s32.f32 %v6059_v58  ;;  %v441_v3 = vcvt.s32.f32 %v6159_v59  ;;  %v6063_v4 = vunpack.c.l.b16 %v6217_v60  ;;  %v6163_v5 = vunpack.c.l.b16 %v6242_v61 }
  0x2a   : > { %6375 = vmatprep.mubr.msk.f32.mxu0 %vm474_vm1, %v379_v6  ;;  %6450 = vmatprep.mubr.msk.f32.mxu1 %vm474_vm1, %v429_v7  ;;  %v6218_v6 = vld [vmem:[%s7748_s21 + $0x70] sm:$0xff]   ;;  %v6243_v7 = vld [vmem:[%s7748_s21 + $0x138] sm:$0xff]   ;;  %v392_v8 = vcvt.s32.f32 %v6060_v0  ;;  %v442_v9 = vcvt.s32.f32 %v6160_v1  ;;  %v6064_v10 = vunpack.c.h.b16 %v6217_v60  ;;  %v6164_v11 = vunpack.c.h.b16 %v6242_v61 }
  0x2b   : > { %v6067_v14 = vunpack.c.l.b16 %v6218_v6  ;;  %v6167_v15 = vunpack.c.l.b16 %v6243_v7  ;;  %v6068_v20 = vunpack.c.h.b16 %v6218_v6  ;;  %v6168_v21 = vunpack.c.h.b16 %v6243_v7 }
  0x2c   : > { %v394_v18 = vcvt.s32.f32 %v6064_v10  ;;  %v444_v19 = vcvt.s32.f32 %v6164_v11 }
  0x2d   : > { %6376 = vmatmul.mubr.msk.f32.gmra.mxu0 %vm474_vm1, %v380_v12  ;;  %6451 = vmatmul.mubr.msk.f32.gmra.mxu1 %vm474_vm1, %v430_v13  ;;  %v393_v12 = vcvt.s32.f32 %v6063_v4  ;;  %v443_v13 = vcvt.s32.f32 %v6163_v5  ;;  %v396_v28 = vcvt.s32.f32 %v6068_v20  ;;  %v446_v29 = vcvt.s32.f32 %v6168_v21 }
  0x2e   : > { %6378 = vmatprep.mubr.msk.f32.mxu0 %vm474_vm1, %v381_v16  ;;  %6453 = vmatprep.mubr.msk.f32.mxu1 %vm474_vm1, %v431_v17  ;;  %v6219_v16 = vld [vmem:[%s7748_s21 + $0x78] sm:$0xff]   ;;  %v6244_v17 = vld [vmem:[%s7748_s21 + $0x140] sm:$0xff]  }
  0x2f   : > { %v6071_v24 = vunpack.c.l.b16 %v6219_v16  ;;  %v6171_v25 = vunpack.c.l.b16 %v6244_v17  ;;  %v6072_v30 = vunpack.c.h.b16 %v6219_v16  ;;  %v6172_v31 = vunpack.c.h.b16 %v6244_v17 }
  0x31   : > { %6379 = vmatmul.mubr.msk.f32.gmra.mxu0 %vm474_vm1, %v382_v22  ;;  %6454 = vmatmul.mubr.msk.f32.gmra.mxu1 %vm474_vm1, %v432_v23  ;;  %v395_v22 = vcvt.s32.f32 %v6067_v14  ;;  %v445_v23 = vcvt.s32.f32 %v6167_v15  ;;  %v398_v38 = vcvt.s32.f32 %v6072_v30  ;;  %v448_v39 = vcvt.s32.f32 %v6172_v31 }
  0x32   : > { %6381 = vmatprep.mubr.msk.f32.mxu0 %vm474_vm1, %v383_v26  ;;  %6456 = vmatprep.mubr.msk.f32.mxu1 %vm474_vm1, %v433_v27  ;;  %v6220_v26 = vld [vmem:[%s7748_s21 + $0x80] sm:$0xff]   ;;  %v6245_v27 = vld [vmem:[%s7748_s21 + $0x148] sm:$0xff]  }
  0x33   : > { %v6075_v34 = vunpack.c.l.b16 %v6220_v26  ;;  %v6175_v35 = vunpack.c.l.b16 %v6245_v27  ;;  %v6076_v40 = vunpack.c.h.b16 %v6220_v26  ;;  %v6176_v41 = vunpack.c.h.b16 %v6245_v27 }
  0x35   : > { %6382 = vmatmul.mubr.msk.f32.gmra.mxu0 %vm474_vm1, %v384_v32  ;;  %6457 = vmatmul.mubr.msk.f32.gmra.mxu1 %vm474_vm1, %v434_v33  ;;  %v397_v32 = vcvt.s32.f32 %v6071_v24  ;;  %v447_v33 = vcvt.s32.f32 %v6171_v25  ;;  %v400_v48 = vcvt.s32.f32 %v6076_v40  ;;  %v450_v49 = vcvt.s32.f32 %v6176_v41 }
  0x36   : > { %6384 = vmatprep.mubr.msk.f32.mxu0 %vm474_vm1, %v385_v36  ;;  %6459 = vmatprep.mubr.msk.f32.mxu1 %vm474_vm1, %v435_v37  ;;  %v6221_v36 = vld [vmem:[%s7748_s21 + $0x88] sm:$0xff]   ;;  %v6246_v37 = vld [vmem:[%s7748_s21 + $0x150] sm:$0xff]  }
  0x37   : > { %v6079_v44 = vunpack.c.l.b16 %v6221_v36  ;;  %v6179_v45 = vunpack.c.l.b16 %v6246_v37  ;;  %v6080_v50 = vunpack.c.h.b16 %v6221_v36  ;;  %v6180_v51 = vunpack.c.h.b16 %v6246_v37 }
  0x39   : > { %6385 = vmatmul.mubr.msk.f32.gmra.mxu0 %vm474_vm1, %v386_v42  ;;  %6460 = vmatmul.mubr.msk.f32.gmra.mxu1 %vm474_vm1, %v436_v43  ;;  %v399_v42 = vcvt.s32.f32 %v6075_v34  ;;  %v449_v43 = vcvt.s32.f32 %v6175_v35  ;;  %v402_v58 = vcvt.s32.f32 %v6080_v50  ;;  %v452_v59 = vcvt.s32.f32 %v6180_v51 }
  0x3a   : > { %6387 = vmatprep.mubr.msk.f32.mxu0 %vm474_vm1, %v387_v46  ;;  %6462 = vmatprep.mubr.msk.f32.mxu1 %vm474_vm1, %v437_v47  ;;  %v6222_v46 = vld [vmem:[%s7748_s21 + $0x90] sm:$0xff]   ;;  %v6247_v47 = vld [vmem:[%s7748_s21 + $0x158] sm:$0xff]  }
  0x3b   : > { %v6083_v54 = vunpack.c.l.b16 %v6222_v46  ;;  %v6183_v55 = vunpack.c.l.b16 %v6247_v47  ;;  %v6084_v60 = vunpack.c.h.b16 %v6222_v46  ;;  %v6184_v61 = vunpack.c.h.b16 %v6247_v47 }
  0x3d   : > { %6388 = vmatmul.mubr.msk.f32.gmra.mxu0 %vm474_vm1, %v388_v52  ;;  %6463 = vmatmul.mubr.msk.f32.gmra.mxu1 %vm474_vm1, %v438_v53  ;;  %v401_v52 = vcvt.s32.f32 %v6079_v44  ;;  %v451_v53 = vcvt.s32.f32 %v6179_v45  ;;  %v404_v4 = vcvt.s32.f32 %v6084_v60  ;;  %v454_v5 = vcvt.s32.f32 %v6184_v61 }
  0x3e   : > { %6390 = vmatprep.mubr.msk.f32.mxu0 %vm474_vm1, %v389_v56  ;;  %6465 = vmatprep.mubr.msk.f32.mxu1 %vm474_vm1, %v439_v57  ;;  %v6223_v56 = vld [vmem:[%s7748_s21 + $0x98] sm:$0xff]   ;;  %v6248_v57 = vld [vmem:[%s7748_s21 + $0x160] sm:$0xff]  }
  0x3f   : > { %v6087_v0 = vunpack.c.l.b16 %v6223_v56  ;;  %v6187_v1 = vunpack.c.l.b16 %v6248_v57  ;;  %v6088_v6 = vunpack.c.h.b16 %v6223_v56  ;;  %v6188_v7 = vunpack.c.h.b16 %v6248_v57 }
  0x41   : > { %6391 = vmatmul.mubr.msk.f32.gmra.mxu0 %vm474_vm1, %v390_v62  ;;  %6466 = vmatmul.mubr.msk.f32.gmra.mxu1 %vm474_vm1, %v440_v63  ;;  %v403_v62 = vcvt.s32.f32 %v6083_v54  ;;  %v453_v63 = vcvt.s32.f32 %v6183_v55  ;;  %v406_v14 = vcvt.s32.f32 %v6088_v6  ;;  %v456_v15 = vcvt.s32.f32 %v6188_v7  ;;  %v7900_v55 = vld [vmem:[%s9256_s2] ss:$0 sm:$0xff] }
  0x42   : > { %6393 = vmatprep.mubr.msk.f32.mxu0 %vm474_vm1, %v391_v2  ;;  %6468 = vmatprep.mubr.msk.f32.mxu1 %vm474_vm1, %v441_v3  ;;  %v6224_v2 = vld [vmem:[%s7748_s21 + $0xa0] sm:$0xff]   ;;  %v6249_v3 = vld [vmem:[%s7748_s21 + $0x168] sm:$0xff]  }
  0x43   : > { %v6091_v10 = vunpack.c.l.b16 %v6224_v2  ;;  %v6191_v11 = vunpack.c.l.b16 %v6249_v3  ;;  %v6092_v16 = vunpack.c.h.b16 %v6224_v2  ;;  %v6192_v17 = vunpack.c.h.b16 %v6249_v3 }
  0x45   : > { %6394 = vmatmul.mubr.msk.f32.gmra.mxu0 %vm474_vm1, %v392_v8  ;;  %6469 = vmatmul.mubr.msk.f32.gmra.mxu1 %vm474_vm1, %v442_v9  ;;  %v405_v8 = vcvt.s32.f32 %v6087_v0  ;;  %v455_v9 = vcvt.s32.f32 %v6187_v1  ;;  %v408_v24 = vcvt.s32.f32 %v6092_v16  ;;  %v458_v25 = vcvt.s32.f32 %v6192_v17 }
  0x46   : > { %6396 = vmatprep.mubr.msk.f32.mxu0 %vm474_vm1, %v393_v12  ;;  %6471 = vmatprep.mubr.msk.f32.mxu1 %vm474_vm1, %v443_v13  ;;  %v6225_v12 = vld [vmem:[%s7748_s21 + $0xa8] sm:$0xff]   ;;  %v6250_v13 = vld [vmem:[%s7748_s21 + $0x170] sm:$0xff]  }
  0x47   : > { %v6095_v20 = vunpack.c.l.b16 %v6225_v12  ;;  %v6195_v21 = vunpack.c.l.b16 %v6250_v13  ;;  %v6096_v26 = vunpack.c.h.b16 %v6225_v12  ;;  %v6196_v27 = vunpack.c.h.b16 %v6250_v13 }
  0x49   : > { %6397 = vmatmul.mubr.msk.f32.gmra.mxu0 %vm474_vm1, %v394_v18  ;;  %6472 = vmatmul.mubr.msk.f32.gmra.mxu1 %vm474_vm1, %v444_v19  ;;  %v407_v18 = vcvt.s32.f32 %v6091_v10  ;;  %v457_v19 = vcvt.s32.f32 %v6191_v11  ;;  %v410_v34 = vcvt.s32.f32 %v6096_v26  ;;  %v460_v35 = vcvt.s32.f32 %v6196_v27 }
  0x4a   : > { %6399 = vmatprep.mubr.msk.f32.mxu0 %vm474_vm1, %v395_v22  ;;  %6474 = vmatprep.mubr.msk.f32.mxu1 %vm474_vm1, %v445_v23  ;;  %v6226_v22 = vld [vmem:[%s7748_s21 + $0xb0] sm:$0xff]   ;;  %v6251_v23 = vld [vmem:[%s7748_s21 + $0x178] sm:$0xff]  }
  0x4b   : > { %v6099_v30 = vunpack.c.l.b16 %v6226_v22  ;;  %v6199_v31 = vunpack.c.l.b16 %v6251_v23  ;;  %v6100_v36 = vunpack.c.h.b16 %v6226_v22  ;;  %v6200_v37 = vunpack.c.h.b16 %v6251_v23 }
  0x4d   : > { %6400 = vmatmul.mubr.msk.f32.gmra.mxu0 %vm474_vm1, %v396_v28  ;;  %6475 = vmatmul.mubr.msk.f32.gmra.mxu1 %vm474_vm1, %v446_v29  ;;  %v409_v28 = vcvt.s32.f32 %v6095_v20  ;;  %v459_v29 = vcvt.s32.f32 %v6195_v21  ;;  %v462_v44 = vcvt.s32.f32 %v6200_v37 }
  0x4e   : > { %6402 = vmatprep.mubr.msk.f32.mxu0 %vm474_vm1, %v397_v32  ;;  %6477 = vmatprep.mubr.msk.f32.mxu1 %vm474_vm1, %v447_v33  ;;  %v6227_v32 = vld [vmem:[%s7748_s21 + $0xb8] sm:$0xff]   ;;  %v6252_v33 = vld [vmem:[%s7748_s21 + $0x180] sm:$0xff]  }
  0x4f   : > { %v6103_v40 = vunpack.c.l.b16 %v6227_v32  ;;  %v6203_v41 = vunpack.c.l.b16 %v6252_v33  ;;  %v6104_v45 = vunpack.c.h.b16 %v6227_v32  ;;  %v6204_v46 = vunpack.c.h.b16 %v6252_v33 }
  0x51   : > { %6403 = vmatmul.mubr.msk.f32.gmra.mxu0 %vm474_vm1, %v398_v38  ;;  %6478 = vmatmul.mubr.msk.f32.gmra.mxu1 %vm474_vm1, %v448_v39  ;;  %v411_v38 = vcvt.s32.f32 %v6099_v30  ;;  %v461_v39 = vcvt.s32.f32 %v6199_v31  ;;  %v413_v47 = vcvt.s32.f32 %v6103_v40  ;;  %v414_v50 = vcvt.s32.f32 %v6104_v45 }
  0x52   : > { %6405 = vmatprep.mubr.msk.f32.mxu0 %vm474_vm1, %v399_v42  ;;  %6480 = vmatprep.mubr.msk.f32.mxu1 %vm474_vm1, %v449_v43  ;;  %v6228_v42 = vld [vmem:[%s7748_s21 + $0xc0] sm:$0xff]   ;;  %v412_v43 = vcvt.s32.f32 %v6100_v36  ;;  %v464_v51 = vcvt.s32.f32 %v6204_v46 }
  0x55   : > { %6406 = vmatmul.mubr.msk.f32.gmra.mxu0 %vm474_vm1, %v400_v48  ;;  %6481 = vmatmul.mubr.msk.f32.gmra.mxu1 %vm474_vm1, %v450_v49  ;;  %v463_v48 = vcvt.s32.f32 %v6203_v41  ;;  %v6107_v49 = vunpack.c.l.b16 %v6228_v42 }
  0x56   : > { %6408 = vmatprep.mubr.msk.f32.mxu0 %vm474_vm1, %v401_v52  ;;  %6483 = vmatprep.mubr.msk.f32.mxu1 %vm474_vm1, %v451_v53  ;;  %v6108_v52 = vunpack.c.h.b16 %v6228_v42 }
  0x57   : > { %v415_v53 = vcvt.s32.f32 %v6107_v49 }
  0x58   : > { %v416_v54 = vcvt.s32.f32 %v6108_v52 }
  0x59   : > { %6409 = vmatmul.mubr.msk.f32.gmra.mxu0 %vm474_vm1, %v402_v58  ;;  %6484 = vmatmul.mubr.msk.f32.gmra.mxu1 %vm474_vm1, %v452_v59 }
  0x5a   : > { %6411 = vmatprep.mubr.msk.f32.mxu0 %vm474_vm1, %v403_v62  ;;  %6486 = vmatprep.mubr.msk.f32.mxu1 %vm474_vm1, %v453_v63 }
  0x5d   : > { %6412 = vmatmul.mubr.msk.f32.gmra.mxu0 %vm474_vm1, %v404_v4  ;;  %6487 = vmatmul.mubr.msk.f32.gmra.mxu1 %vm474_vm1, %v454_v5 }
  0x5e   : > { %6414 = vmatprep.mubr.msk.f32.mxu0 %vm474_vm1, %v405_v8  ;;  %6489 = vmatprep.mubr.msk.f32.mxu1 %vm474_vm1, %v455_v9 }
  0x61   : > { %6415 = vmatmul.mubr.msk.f32.gmra.mxu0 %vm474_vm1, %v406_v14  ;;  %6490 = vmatmul.mubr.msk.f32.gmra.mxu1 %vm474_vm1, %v456_v15 }
  0x62   : > { %6417 = vmatprep.mubr.msk.f32.mxu0 %vm474_vm1, %v407_v18  ;;  %6492 = vmatprep.mubr.msk.f32.mxu1 %vm474_vm1, %v457_v19 }
  0x65   : > { %6418 = vmatmul.mubr.msk.f32.gmra.mxu0 %vm474_vm1, %v408_v24  ;;  %6493 = vmatmul.mubr.msk.f32.gmra.mxu1 %vm474_vm1, %v458_v25 }
  0x66   : > { %6420 = vmatprep.mubr.msk.f32.mxu0 %vm474_vm1, %v409_v28  ;;  %6495 = vmatprep.mubr.msk.f32.mxu1 %vm474_vm1, %v459_v29 }
  0x69   : > { %6421 = vmatmul.mubr.msk.f32.gmra.mxu0 %vm474_vm1, %v410_v34  ;;  %6496 = vmatmul.mubr.msk.f32.gmra.mxu1 %vm474_vm1, %v460_v35 }
  0x6a   : > { %6423 = vmatprep.mubr.msk.f32.mxu0 %vm474_vm1, %v411_v38  ;;  %6498 = vmatprep.mubr.msk.f32.mxu1 %vm474_vm1, %v461_v39 }
  0x6d   : > { %6424 = vmatmul.mubr.msk.f32.gmra.mxu0 %vm474_vm1, %v412_v43  ;;  %6499 = vmatmul.mubr.msk.f32.gmra.mxu1 %vm474_vm1, %v462_v44 }
  0x6e   : > { %6426 = vmatprep.mubr.msk.f32.mxu0 %vm474_vm1, %v413_v47  ;;  %6501 = vmatprep.mubr.msk.f32.mxu1 %vm474_vm1, %v463_v48 }
  0x71   : > { %6427 = vmatmul.mubr.msk.f32.gmra.mxu0 %vm474_vm1, %v414_v50  ;;  %6502 = vmatmul.mubr.msk.f32.gmra.mxu1 %vm474_vm1, %v464_v51 }
  0x72   : > { %6429 = vmatprep.mubr.msk.f32.mxu0 %vm474_vm1, %v415_v53 }
  0x75   : > { %6430 = vmatmul.mubr.msk.f32.gmra.mxu0 %vm474_vm1, %v416_v54  ;;  %vm4875_vm1 = vcmask 1047559  }
  0xd5   : > { %v6359_v56 = vpop.f32.mrf.mxu0  ;;  %v6434_v0 = vpop.f32.mrf.mxu1 }
  0xd6   : > { %v845_v57 = vadd.f32 %v6359_v56, %v7900_v55  ;;  %v1095_v5 = vadd.f32 %v6434_v0, %v7900_v55 }
  0xd7   : > { %v839_v58 = vpop.f32.mrf.mxu0  ;;  %v1089_v16 = vpop.f32.mrf.mxu1 }
  0xd8   : > { %v1329_v59 = vmax.f32 %v845_v57, 0.0  ;;  %v840_v60 = vadd.f32 %v7900_v55, %v839_v58  ;;  %v1379_v13 = vmax.f32 %v1095_v5, 0.0  ;;  %v1090_v28 = vadd.f32 %v7900_v55, %v1089_v16 }
  0xd9   : > { %v6362_v3 = vpop.f32.mrf.mxu0  ;;  %v6437_v24 = vpop.f32.mrf.mxu1 }
  0xda   : > { %v1427_v61 = vmul.f32 256.0, %v1329_v59  ;;  %v1328_v62 = vmax.f32 %v840_v60, 0.0  ;;  %v855_v10 = vadd.f32 %v6362_v3, %v7900_v55  ;;  %v7906_v22 = vmul.f32 256.0, %v1379_v13 }
  0xdb   : > { %v1105_v31 = vadd.f32 %v6437_v24, %v7900_v55  ;;  %v1378_v39 = vmax.f32 %v1090_v28, 0.0  ;;  %v1099_v28 = vpop.f32.mrf.mxu1 }
  0xdc   : > { %v6520_v63 = vcvt.f32.s32 %v1427_v61  ;;  %v1426_v1 = vmul.f32 256.0, %v1328_v62  ;;  %v6518_v4 = vand.u32 2147483647, %v1427_v61  ;;  %v6523_v8 = vand.u32 2147483648, %v1427_v61 }
  0xdd   : > { %v1331_v20 = vmax.f32 %v855_v10, 0.0  ;;  %v6920_v34 = vcvt.f32.s32 %v7906_v22  ;;  %v1381_v43 = vmax.f32 %v1105_v31, 0.0  ;;  %v7914_v51 = vmul.f32 256.0, %v1378_v39 }
  0xde   : > { %v6521_v2 = vcvt.s32.f32 %v6520_v63  ;;  %v6512_v6 = vcvt.f32.s32 %v1426_v1  ;;  %v6510_v12 = vand.u32 2147483647, %v1426_v1  ;;  %vm6519_vm2 = vcmp.lt.f32.partialorder %v6518_v4, 8388608.0 }
  0xdf   : > { %v6515_v15 = vand.u32 2147483648, %v1426_v1  ;;  %v7909_v29 = vmul.f32 256.0, %v1331_v20  ;;  %v6921_v46 = vcvt.s32.f32 %v6920_v34  ;;  %v7916_v56 = vmul.f32 256.0, %v1381_v43 }
  0xe0   : > { %v6522_v7 = vand.u32 2147483647, %v6521_v2  ;;  %v6513_v9 = vcvt.s32.f32 %v6512_v6  ;;  %vm6511_vm3 = vcmp.lt.f32.partialorder %v6510_v12, 8388608.0  ;;  %v6923_v60 = vand.u32 2147483648, %v7906_v22 }
  0xe1   : > { %v6536_v40 = vcvt.f32.s32 %v7909_v29  ;;  %v6922_v59 = vand.u32 2147483647, %v6921_v46  ;;  %v6912_v2 = vcvt.f32.s32 %v7914_v51  ;;  %v6936_v6 = vcvt.f32.s32 %v7916_v56 }
  0xe2   : > { %v6524_v11 = vor.u32 %v6523_v8, %v6522_v7  ;;  %v6514_v14 = vand.u32 2147483647, %v6513_v9  ;;  %v6539_v9 = vand.u32 2147483648, %v7909_v29  ;;  %v6534_v13 = vand.u32 2147483647, %v7909_v29 }
  0xe3   : > { %v6537_v52 = vcvt.s32.f32 %v6536_v40  ;;  %v6924_v8 = vor.u32 %v6923_v60, %v6922_v59  ;;  %v6934_v24 = vand.u32 2147483647, %v7916_v56 }
  0xe4   : > { %v6525_v17 = vsel %vm6519_vm2, %v6524_v11, %v1427_v61  ;;  %v6516_v19 = vor.u32 %v6515_v15, %v6514_v14  ;;  %v6918_v61 = vand.u32 2147483647, %v7906_v22  ;;  %v7928_v15 = vcvt.s32.f32 %v6912_v2 }
  0xe5   : > { %v1623_v18 = vmax.f32 %v6525_v17, -32768.0  ;;  %v6538_v3 = vand.u32 2147483647, %v6537_v52  ;;  %vm6535_vm7 = vcmp.lt.f32.partialorder %v6534_v13, 8388608.0  ;;  %vm7941_vm8 = vcmp.lt.f32.partialorder %v6934_v24, 8388608.0 }
  0xe6   : > { %v6517_v23 = vsel %vm6511_vm3, %v6516_v19, %v1426_v1  ;;  %vm7923_vm4 = vcmp.lt.f32.partialorder %v6918_v61, 8388608.0  ;;  %v849_v19 = vpop.f32.mrf.mxu0  ;;  %v6914_v31 = vand.u32 2147483647, %v7928_v15  ;;  %vm5230_vm2 = vcmask 125952  }
  0xe7   : > { %v1721_v21 = vmin.f32 %v1623_v18, 32767.0  ;;  %v1622_v25 = vmax.f32 %v6517_v23, -32768.0  ;;  %v6540_v16 = vor.u32 %v6539_v9, %v6538_v3  ;;  %v6937_v18 = vcvt.s32.f32 %v6936_v6 }
  0xe8   : > { %v6910_v23 = vand.u32 2147483647, %v7914_v51  ;;  %v850_v40 = vadd.f32 %v7900_v55, %v849_v19 }
  0xe9   : > { %v1917_v26 = vcombine.high %v1721_v21, %v1721_v21  ;;  %v5421_v27 = vrot.slane %v1721_v21, 9  ;;  %v1720_v30 = vmin.f32 %v1622_v25, 32767.0 }
  0xea   : > { %v1330_v46 = vmax.f32 %v850_v40, 0.0 }
  0xeb   : > { %v5422_v32 = vrot.slane %v1917_v26, 9  ;;  %v2702_v33 = vmax.f32 %v1721_v21, %v5421_v27  ;;  %v1916_v35 = vcombine.high %v1720_v30, %v1720_v30  ;;  %v5419_v36 = vrot.slane %v1720_v30, 9 }
  0xec   : > { %v6925_v21 = vsel %vm7923_vm4, %v6924_v8, %v7906_v22  ;;  %v6939_v27 = vand.u32 2147483648, %v7916_v56  ;;  %v1428_v59 = vmul.f32 256.0, %v1330_v46 }
  0xed   : > { %v2703_v37 = vmax.f32 %v1917_v26, %v5422_v32  ;;  %v5617_v38 = vrot.slane %v2702_v33, 10  ;;  %v5420_v41 = vrot.slane %v1916_v35, 9  ;;  %v2700_v42 = vmax.f32 %v1720_v30, %v5419_v36 }
  0xee   : > { %v6915_v32 = vand.u32 2147483648, %v7914_v51  ;;  %v7939_v34 = vmax.f32 %v6925_v21, -32768.0  ;;  %v6938_v36 = vand.u32 2147483647, %v6937_v18  ;;  %v6526_v2 = vand.u32 2147483647, %v1428_v59 }
  0xef   : > { %v5618_v44 = vrot.slane %v2703_v37, 10  ;;  %v3682_v45 = vmax.f32 %v2702_v33, %v5617_v38  ;;  %v2701_v47 = vmax.f32 %v1916_v35, %v5420_v41  ;;  %v5615_v48 = vrot.slane %v2700_v42, 10 }
  0xf0   : > { %v6541_v33 = vsel %vm6535_vm7, %v6540_v16, %v7909_v29  ;;  %v1100_v41 = vadd.f32 %v7900_v55, %v1099_v28  ;;  %v6528_v3 = vcvt.f32.s32 %v1428_v59  ;;  %vm7956_vm10 = vcmp.lt.f32.partialorder %v6526_v2, 8388608.0 }
  0xf1   : > { %v3683_v49 = vmax.f32 %v2703_v37, %v5618_v44  ;;  %v3878_v50 = vmax.f32 %v3682_v45, -32768.0  ;;  %v5616_v53 = vrot.slane %v2701_v47, 10  ;;  %v3680_v54 = vmax.f32 %v2700_v42, %v5615_v48  ;;  %v6365_v37 = vpop.f32.mrf.mxu0 }
  0xf2   : > { %v1625_v35 = vmax.f32 %v6541_v33, -32768.0  ;;  %v6940_v45 = vor.u32 %v6939_v27, %v6938_v36  ;;  %v865_v48 = vadd.f32 %v6365_v37, %v7900_v55  ;;  %v6529_v10 = vcvt.s32.f32 %v6528_v3 }
  0xf3   : > { %v3879_v57 = vmax.f32 %v3683_v49, -32768.0  ;;  %v4074_v58 = vmin.f32 %v3878_v50, 32767.0  ;;  %v3681_v62 = vmax.f32 %v2701_v47, %v5616_v53  ;;  %v3876_v63 = vmax.f32 %v3680_v54, -32768.0  ;;  %v6440_v49 = vpop.f32.mrf.mxu1 }
  0xf4   : > { %v1723_v44 = vmin.f32 %v1625_v35, 32767.0  ;;  %v1380_v47 = vmax.f32 %v1100_v41, 0.0  ;;  %v6941_v54 = vsel %vm7941_vm8, %v6940_v45, %v7916_v56  ;;  %v6530_v19 = vand.u32 2147483647, %v6529_v10 }
  0xf5   : > { %v4075_v0 = vmin.f32 %v3879_v57, 32767.0  ;;  %v7298_v1 = vtrunc.f32 %v4074_v58  ;;  %v3877_v4 = vmax.f32 %v3681_v62, -32768.0  ;;  %v4072_v5 = vmin.f32 %v3876_v63, 32767.0 }
  0xf6   : > { %v1919_v52 = vcombine.high %v1723_v44, %v1723_v44  ;;  %v5425_v53 = vrot.slane %v1723_v44, 9  ;;  %v1675_v58 = vmax.f32 %v6941_v54, -32768.0  ;;  %v1478_v60 = vmul.f32 256.0, %v1380_v47 }
  0xf7   : > { %v7300_v7 = vtrunc.f32 %v4075_v0  ;;  %v4073_v11 = vmin.f32 %v3877_v4, 32767.0  ;;  %v7294_v12 = vtrunc.f32 %v4072_v5  ;;  %v7299_v14 = vcvt.f32.s32 %v7298_v1 }
  0xf8   : > { %v5426_v62 = vrot.slane %v1919_v52, 9  ;;  %v2706_v63 = vmax.f32 %v1723_v44, %v5425_v53  ;;  %v7954_v0 = vadd.f32 %v6440_v49, %v7900_v55  ;;  %v1773_v1 = vmin.f32 %v1675_v58, 32767.0 }
  0xf9   : > { %v7296_v17 = vtrunc.f32 %v4073_v11  ;;  %v7301_v20 = vcvt.f32.s32 %v7300_v7  ;;  %v7295_v25 = vcvt.f32.s32 %v7294_v12  ;;  %v5813_v30 = vunpack.i.l.s16 %v7299_v14 }
  0xfa   : > { %v1333_v4 = vmax.f32 %v865_v48, 0.0  ;;  %v2707_v5 = vmax.f32 %v1919_v52, %v5426_v62  ;;  %v5621_v6 = vrot.slane %v2706_v63, 10  ;;  %v6531_v7 = vand.u32 2147483648, %v1428_v59 }
  0xfb   : > { %v7297_v26 = vcvt.f32.s32 %v7296_v17  ;;  %v5814_v38 = vunpack.i.l.s16 %v7301_v20  ;;  %v5811_v42 = vunpack.i.l.s16 %v7295_v25  ;;  %v4859_v29 = vrot.slane %v5813_v30, 6 }
  0xfc   : > { %v6928_v56 = vcvt.f32.s32 %v1478_v60  ;;  %v1969_v8 = vcombine.high %v1773_v1, %v1773_v1  ;;  %v5525_v9 = vrot.slane %v1773_v1, 9  ;;  %v6926_v11 = vand.u32 2147483647, %v1478_v60 }
  0xfd   : > { %v5812_v22 = vunpack.i.l.s16 %v7297_v26  ;;  %v4862_v57 = vrot.slane %v5814_v38, 5  ;;  %v5622_v12 = vrot.slane %v2707_v5, 10  ;;  %v3686_v13 = vmax.f32 %v2706_v63, %v5621_v6 }
  0xfe   : > { %v6929_v16 = vcvt.s32.f32 %v6928_v56  ;;  %v5526_v17 = vrot.slane %v1969_v8, 9  ;;  %v2806_v18 = vmax.f32 %v1773_v1, %v5525_v9  ;;  %v6931_v20 = vand.u32 2147483648, %v1478_v60 }
  0xff   : > { %v4856_v43 = vrot.slane %v5812_v22, 7  ;;  %v3687_v21 = vmax.f32 %v2707_v5, %v5622_v12  ;;  %v3882_v24 = vmax.f32 %v3686_v13, -32768.0  ;;  %v7960_v26 = vmul.f32 256.0, %v1333_v4 }
 0x100   : > { %v6930_v25 = vand.u32 2147483647, %v6929_v16  ;;  %v2807_v27 = vmax.f32 %v1969_v8, %v5526_v17  ;;  %v5721_v28 = vrot.slane %v2806_v18, 10  ;;  %v6532_v30 = vor.u32 %v6531_v7, %v6530_v19 }
 0x101   : > { %v4858_v50 = vsel %vm4857_vm5, %v4856_v43, %v5811_v42  ;;  %vm7962_vm11 = vcmp.lt.f32.partialorder %v6926_v11, 8388608.0  ;;  %v3883_v22 = vmax.f32 %v3687_v21, -32768.0  ;;  %v4078_v35 = vmin.f32 %v3882_v24, 32767.0 }
 0x102   : > { %v4861_v61 = vsel %vm4860_vm6, %v4859_v29, %v4858_v50  ;;  %v6932_v36 = vor.u32 %v6931_v20, %v6930_v25  ;;  %v6550_v37 = vand.u32 2147483647, %v7960_v26  ;;  %v5722_v38 = vrot.slane %v2807_v27, 10 }
 0x103   : > { %v3786_v39 = vmax.f32 %v2806_v18, %v5721_v28  ;;  %v6533_v40 = vsel %vm7956_vm10, %v6532_v30, %v1428_v59  ;;  %v6552_v41 = vcvt.f32.s32 %v7960_v26  ;;  %v4079_v42 = vmin.f32 %v3883_v22, 32767.0 }
 0x104   : > { %v7306_v43 = vtrunc.f32 %v4078_v35  ;;  %v1624_v44 = vmax.f32 %v6533_v40, -32768.0  ;;  %v6933_v45 = vsel %vm7962_vm11, %v6932_v36, %v1478_v60  ;;  %v3787_v29 = vmax.f32 %v2807_v27, %v5722_v38 }
 0x105   : > { %v3982_v46 = vmax.f32 %v3786_v39, -32768.0  ;;  %v7973_v47 = vsel %vm4863_vm9, %v4862_v57, %v4861_v61  ;;  %v1674_v48 = vmax.f32 %v6933_v45, -32768.0  ;;  %v7308_v50 = vtrunc.f32 %v4079_v42 }
 0x106   : > { %v7307_v49 = vcvt.f32.s32 %v7306_v43  ;;  %v1722_v52 = vmin.f32 %v1624_v44, 32767.0  ;;  %v1383_v53 = vmax.f32 %v7954_v0, 0.0  ;;  %v3983_v54 = vmax.f32 %v3787_v29, -32768.0  ;;  %v859_v43 = vpop.f32.mrf.mxu0 }
 0x107   : > { %v4178_v58 = vmin.f32 %v3982_v46, 32767.0  ;;  %v1772_v59 = vmin.f32 %v1674_v48, 32767.0  ;;  %vm7976_vm12 = vcmp.lt.f32.partialorder %v6550_v37, 8388608.0  ;;  %v6553_v63 = vcvt.s32.f32 %v6552_v41 }
 0x108   : > { %v7309_v60 = vcvt.f32.s32 %v7308_v50  ;;  %v5817_v1 = vunpack.i.l.s16 %v7307_v49  ;;  %v1918_v2 = vcombine.high %v1722_v52, %v1722_v52  ;;  %v5423_v3 = vrot.slane %v1722_v52, 9 }
 0x109   : > { %v4179_v57 = vmin.f32 %v3983_v54, 32767.0  ;;  %v7506_v61 = vtrunc.f32 %v4178_v58  ;;  %v1968_v4 = vcombine.high %v1772_v59, %v1772_v59  ;;  %v5523_v5 = vrot.slane %v1772_v59, 9 }
 0x10a   : > { %v5818_v6 = vunpack.i.l.s16 %v7309_v60  ;;  %v5424_v7 = vrot.slane %v1918_v2, 9  ;;  %v2704_v56 = vmax.f32 %v1722_v52, %v5423_v3  ;;  %v6555_v0 = vand.u32 2147483648, %v7960_v26 }
 0x10b   : > { %v7507_v8 = vcvt.f32.s32 %v7506_v61  ;;  %v7508_v9 = vtrunc.f32 %v4179_v57  ;;  %v5524_v10 = vrot.slane %v1968_v4, 9  ;;  %v2804_v11 = vmax.f32 %v1772_v59, %v5523_v5 }
 0x10c   : > { %v7981_v12 = vrot.slane %v5817_v1, 2  ;;  %v2705_v13 = vmax.f32 %v1918_v2, %v5424_v7  ;;  %v5619_v14 = vrot.slane %v2704_v56, 10  ;;  %v6554_v16 = vand.u32 2147483647, %v6553_v63 }
 0x10d   : > { %v7509_v17 = vcvt.f32.s32 %v7508_v9  ;;  %v5917_v18 = vunpack.i.l.s16 %v7507_v8  ;;  %v2805_v19 = vmax.f32 %v1968_v4, %v5524_v10  ;;  %v5719_v20 = vrot.slane %v2804_v11, 10 }
 0x10e   : > { %v5620_v21 = vrot.slane %v2705_v13, 10  ;;  %v3684_v24 = vmax.f32 %v2704_v56, %v5619_v14  ;;  %v6556_v25 = vor.u32 %v6555_v0, %v6554_v16  ;;  %v1481_v27 = vmul.f32 256.0, %v1383_v53 }
 0x10f   : > { %v7983_v28 = vrot.slane %v5818_v6, 1  ;;  %v5918_v30 = vunpack.i.l.s16 %v7509_v17  ;;  %v5720_v33 = vrot.slane %v2805_v19, 10  ;;  %v3784_v22 = vmax.f32 %v2804_v11, %v5719_v20 }
 0x110   : > { %v3685_v35 = vmax.f32 %v2705_v13, %v5620_v21  ;;  %v3880_v36 = vmax.f32 %v3684_v24, -32768.0  ;;  %v6557_v37 = vsel %vm7976_vm12, %v6556_v25, %v7960_v26  ;;  %v6950_v38 = vand.u32 2147483647, %v1481_v27  ;;  %v1109_v25 = vpop.f32.mrf.mxu1 }
 0x111   : > { %v7988_v39 = vrot.slane %v5917_v18, 6  ;;  %v3785_v40 = vmax.f32 %v2805_v19, %v5720_v33  ;;  %v3980_v41 = vmax.f32 %v3784_v22, -32768.0  ;;  %v1627_v42 = vmax.f32 %v6557_v37, -32768.0 }
 0x112   : > { %v3881_v44 = vmax.f32 %v3685_v35, -32768.0  ;;  %v4076_v45 = vmin.f32 %v3880_v36, 32767.0  ;;  %vm7990_vm14 = vcmp.lt.f32.partialorder %v6950_v38, 8388608.0  ;;  %v6952_v46 = vcvt.f32.s32 %v1481_v27 }
 0x113   : > { %v3981_v48 = vmax.f32 %v3785_v40, -32768.0  ;;  %v4176_v49 = vmin.f32 %v3980_v41, 32767.0  ;;  %v1725_v50 = vmin.f32 %v1627_v42, 32767.0  ;;  %v6955_v26 = vand.u32 2147483648, %v1481_v27 }
 0x114   : > { %v4077_v52 = vmin.f32 %v3881_v44, 32767.0  ;;  %v7302_v53 = vtrunc.f32 %v4076_v45  ;;  %v6953_v54 = vcvt.s32.f32 %v6952_v46  ;;  %v860_v58 = vadd.f32 %v7900_v55, %v859_v43 }
 0x115   : > { %v4177_v59 = vmin.f32 %v3981_v48, 32767.0  ;;  %v7502_v62 = vtrunc.f32 %v4176_v49  ;;  %v1921_v63 = vcombine.high %v1725_v50, %v1725_v50  ;;  %v5429_v60 = vrot.slane %v1725_v50, 9 }
 0x116   : > { %v7303_v1 = vcvt.f32.s32 %v7302_v53  ;;  %v7304_v2 = vtrunc.f32 %v4077_v52  ;;  %v6954_v3 = vand.u32 2147483647, %v6953_v54  ;;  %v1332_v57 = vmax.f32 %v860_v58, 0.0  ;;  %v6443_v58 = vpop.f32.mrf.mxu1 }
 0x117   : > { %v7503_v61 = vcvt.f32.s32 %v7502_v62  ;;  %v7504_v4 = vtrunc.f32 %v4177_v59  ;;  %v5430_v5 = vrot.slane %v1921_v63, 9  ;;  %v2710_v6 = vmax.f32 %v1725_v50, %v5429_v60 }
 0x118   : > { %v7305_v7 = vcvt.f32.s32 %v7304_v2  ;;  %v5815_v56 = vunpack.i.l.s16 %v7303_v1  ;;  %v6956_v0 = vor.u32 %v6955_v26, %v6954_v3  ;;  %v1430_v8 = vmul.f32 256.0, %v1332_v57  ;;  %v6368_v26 = vpop.f32.mrf.mxu0 }
 0x119   : > { %v7995_v9 = vrot.slane %v5918_v30, 5  ;;  %v7505_v10 = vcvt.f32.s32 %v7504_v4  ;;  %v2711_v11 = vmax.f32 %v1921_v63, %v5430_v5  ;;  %v5625_v13 = vrot.slane %v2710_v6, 10 }
 0x11a   : > { %v5816_v14 = vunpack.i.l.s16 %v7305_v7  ;;  %v4865_v16 = vrot.slane %v5815_v56, 4  ;;  %v6957_v17 = vsel %vm7990_vm14, %v6956_v0, %v1481_v27  ;;  %v6542_v18 = vand.u32 2147483647, %v1430_v8 }
 0x11b   : > { %v5916_v19 = vunpack.i.l.s16 %v7505_v10  ;;  %v5626_v20 = vrot.slane %v2711_v11, 10  ;;  %v3690_v21 = vmax.f32 %v2710_v6, %v5625_v13  ;;  %v1677_v24 = vmax.f32 %v6957_v17, -32768.0 }
 0x11c   : > { %v4867_v33 = vsel %vm4866_vm13, %v4865_v16, %v7973_v47  ;;  %v4868_v30 = vrot.slane %v5816_v14, 3  ;;  %v5915_v22 = vunpack.i.l.s16 %v7503_v61  ;;  %v6544_v35 = vcvt.f32.s32 %v1430_v8 }
 0x11d   : > { %v5045_v36 = vrot.slane %v5916_v19, 7  ;;  %v3691_v37 = vmax.f32 %v2711_v11, %v5626_v20  ;;  %v3886_v38 = vmax.f32 %v3690_v21, -32768.0  ;;  %v1775_v40 = vmin.f32 %v1677_v24, 32767.0 }
 0x11e   : > { %v4870_v41 = vsel %vm4869_vm15, %v4868_v30, %v4867_v33  ;;  %vm8003_vm3 = vcmp.lt.f32.partialorder %v6542_v18, 8388608.0  ;;  %v6545_v42 = vcvt.s32.f32 %v6544_v35  ;;  %v1110_v43 = vadd.f32 %v7900_v55, %v1109_v25 }
 0x11f   : > { %v4873_v44 = vsel %vm4872_vm0, %v7981_v12, %v4870_v41  ;;  %v5046_v47 = vsel %vm4857_vm5, %v5045_v36, %v5915_v22  ;;  %v3887_v45 = vmax.f32 %v3691_v37, -32768.0  ;;  %v4082_v29 = vmin.f32 %v3886_v38, 32767.0 }
 0x120   : > { %v4876_v46 = vsel %vm4875_vm1, %v7983_v28, %v4873_v44  ;;  %v1971_v48 = vcombine.high %v1775_v40, %v1775_v40  ;;  %v5529_v49 = vrot.slane %v1775_v40, 9  ;;  %v6547_v50 = vand.u32 2147483648, %v1430_v8 }
 0x121   : > { %v5205_v52 = vpack.c.b16 %v4876_v46, %v4876_v46  ;;  %v4083_v53 = vmin.f32 %v3887_v45, 32767.0  ;;  %v7314_v12 = vtrunc.f32 %v4082_v29  ;;  %v6546_v54 = vand.u32 2147483647, %v6545_v42 }
 0x122   : > { %v5048_v59 = vsel %vm4860_vm6, %v7988_v39, %v5046_v47  ;;  %v5530_v62 = vrot.slane %v1971_v48, 9  ;;  %v2810_v63 = vmax.f32 %v1775_v40, %v5529_v49  ;;  %v1382_v60 = vmax.f32 %v1110_v43, 0.0 }
 0x123   : > { %5231 = vst.msk [vmem:[%s8014_s27] sm:$0xf] %vm5230_vm2, %v5205_v52  ;;  %v7315_v1 = vcvt.f32.s32 %v7314_v12  ;;  %v7316_v2 = vtrunc.f32 %v4083_v53  ;;  %v6548_v28 = vor.u32 %v6547_v50, %v6546_v54  ;;  %v875_v3 = vadd.f32 %v6368_v26, %v7900_v55 }
 0x124   : > { %v2811_v57 = vmax.f32 %v1971_v48, %v5530_v62  ;;  %v5725_v61 = vrot.slane %v2810_v63, 10  ;;  %v1480_v4 = vmul.f32 256.0, %v1382_v60  ;;  %v1125_v5 = vadd.f32 %v6443_v58, %v7900_v55 }
 0x125   : > { %v7317_v6 = vcvt.f32.s32 %v7316_v2  ;;  %v5821_v7 = vunpack.i.l.s16 %v7315_v1  ;;  %v6549_v39 = vsel %vm8003_vm3, %v6548_v28, %v1430_v8  ;;  %v1335_v56 = vmax.f32 %v875_v3, 0.0 }
 0x126   : > { %v5726_v0 = vrot.slane %v2811_v57, 10  ;;  %v3790_v10 = vmax.f32 %v2810_v63, %v5725_v61  ;;  %v1626_v11 = vmax.f32 %v6549_v39, -32768.0  ;;  %v6942_v13 = vand.u32 2147483647, %v1480_v4 }
 0x127   : > { %v5822_v14 = vunpack.i.l.s16 %v7317_v6  ;;  %v8026_v16 = vrot.slane %v5821_v7, 6  ;;  %v6944_v17 = vcvt.f32.s32 %v1480_v4  ;;  %v8030_v18 = vsel %vm4863_vm9, %v7995_v9, %v5048_v59 }
 0x128   : > { %v3791_v19 = vmax.f32 %v2811_v57, %v5726_v0  ;;  %v3986_v20 = vmax.f32 %v3790_v10, -32768.0  ;;  %v1724_v21 = vmin.f32 %v1626_v11, 32767.0  ;;  %v6947_v24 = vand.u32 2147483648, %v1480_v4 }
 0x129   : > { %vm8032_vm4 = vcmp.lt.f32.partialorder %v6942_v13, 8388608.0  ;;  %v6945_v8 = vcvt.s32.f32 %v6944_v17  ;;  %v1433_v33 = vmul.f32 256.0, %v1335_v56  ;;  %v1385_v30 = vmax.f32 %v1125_v5, 0.0  ;;  %v869_v5 = vpop.f32.mrf.mxu0 }
 0x12a   : > { %v3987_v22 = vmax.f32 %v3791_v19, -32768.0  ;;  %v4182_v35 = vmin.f32 %v3986_v20, 32767.0  ;;  %v1920_v36 = vcombine.high %v1724_v21, %v1724_v21  ;;  %v5427_v37 = vrot.slane %v1724_v21, 9  ;;  %v1119_v20 = vpop.f32.mrf.mxu1 }
 0x12b   : > { %v8036_v38 = vrot.slane %v5822_v14, 5  ;;  %v6946_v40 = vand.u32 2147483647, %v6945_v8  ;;  %v6566_v9 = vand.u32 2147483647, %v1433_v33  ;;  %v6568_v41 = vcvt.f32.s32 %v1433_v33 }
 0x12c   : > { %v4183_v27 = vmin.f32 %v3987_v22, 32767.0  ;;  %v7514_v42 = vtrunc.f32 %v4182_v35  ;;  %v5428_v43 = vrot.slane %v1920_v36, 9  ;;  %v2708_v44 = vmax.f32 %v1724_v21, %v5427_v37 }
 0x12d   : > { %v6948_v47 = vor.u32 %v6947_v24, %v6946_v40  ;;  %v6569_v45 = vcvt.s32.f32 %v6568_v41  ;;  %v6571_v29 = vand.u32 2147483648, %v1433_v33  ;;  %v1483_v46 = vmul.f32 256.0, %v1385_v30 }
 0x12e   : > { %v7515_v48 = vcvt.f32.s32 %v7514_v42  ;;  %v7516_v49 = vtrunc.f32 %v4183_v27  ;;  %v2709_v50 = vmax.f32 %v1920_v36, %v5428_v43  ;;  %v5623_v26 = vrot.slane %v2708_v44, 10 }
 0x12f   : > { %v6949_v52 = vsel %vm8032_vm4, %v6948_v47, %v1480_v4  ;;  %v6570_v53 = vand.u32 2147483647, %v6569_v45  ;;  %v6966_v12 = vand.u32 2147483647, %v1483_v46  ;;  %v6968_v54 = vcvt.f32.s32 %v1483_v46 }
 0x130   : > { %v7517_v58 = vcvt.f32.s32 %v7516_v49  ;;  %v5921_v59 = vunpack.i.l.s16 %v7515_v48  ;;  %v5624_v62 = vrot.slane %v2709_v50, 10  ;;  %v3688_v63 = vmax.f32 %v2708_v44, %v5623_v26 }
 0x131   : > { %v1676_v60 = vmax.f32 %v6949_v52, -32768.0  ;;  %vm6567_vm7 = vcmp.lt.f32.partialorder %v6566_v9, 8388608.0  ;;  %v6572_v1 = vor.u32 %v6571_v29, %v6570_v53  ;;  %v6969_v2 = vcvt.s32.f32 %v6968_v54 }
 0x132   : > { %v5922_v28 = vunpack.i.l.s16 %v7517_v58  ;;  %v3689_v3 = vmax.f32 %v2709_v50, %v5624_v62  ;;  %v3884_v57 = vmax.f32 %v3688_v63, -32768.0  ;;  %vm8040_vm8 = vcmp.lt.f32.partialorder %v6966_v12, 8388608.0 }
 0x133   : > { %v1774_v4 = vmin.f32 %v1676_v60, 32767.0  ;;  %v6573_v6 = vsel %vm6567_vm7, %v6572_v1, %v1433_v33  ;;  %v6970_v7 = vand.u32 2147483647, %v6969_v2  ;;  %v6971_v39 = vand.u32 2147483648, %v1483_v46 }
 0x134   : > { %v8044_v56 = vrot.slane %v5921_v59, 2  ;;  %v3885_v0 = vmax.f32 %v3689_v3, -32768.0  ;;  %v4080_v10 = vmin.f32 %v3884_v57, 32767.0  ;;  %v1629_v11 = vmax.f32 %v6573_v6, -32768.0 }
 0x135   : > { %v1970_v13 = vcombine.high %v1774_v4, %v1774_v4  ;;  %v5527_v14 = vrot.slane %v1774_v4, 9  ;;  %v6972_v17 = vor.u32 %v6971_v39, %v6970_v7  ;;  %v870_v19 = vadd.f32 %v7900_v55, %v869_v5 }
 0x136   : > { %v8047_v21 = vrot.slane %v5922_v28, 1  ;;  %v4081_v24 = vmin.f32 %v3885_v0, 32767.0  ;;  %v7310_v25 = vtrunc.f32 %v4080_v10  ;;  %v1727_v8 = vmin.f32 %v1629_v11, 32767.0 }
 0x137   : > { %v5528_v30 = vrot.slane %v1970_v13, 9  ;;  %v2808_v33 = vmax.f32 %v1774_v4, %v5527_v14  ;;  %v6973_v22 = vsel %vm8040_vm8, %v6972_v17, %v1483_v46  ;;  %v1334_v35 = vmax.f32 %v870_v19, 0.0 }
 0x138   : > { %v7312_v36 = vtrunc.f32 %v4081_v24  ;;  %v1923_v37 = vcombine.high %v1727_v8, %v1727_v8  ;;  %v5433_v40 = vrot.slane %v1727_v8, 9  ;;  %v8052_v9 = vadd.f32 %v7900_v55, %v1119_v20 }
 0x139   : > { %v2809_v41 = vmax.f32 %v1970_v13, %v5528_v30  ;;  %v5723_v27 = vrot.slane %v2808_v33, 10  ;;  %v1679_v42 = vmax.f32 %v6973_v22, -32768.0  ;;  %v1432_v43 = vmul.f32 256.0, %v1334_v35 }
 0x13a   : > { %v7311_v44 = vcvt.f32.s32 %v7310_v25  ;;  %v7313_v47 = vcvt.f32.s32 %v7312_v36  ;;  %v5434_v45 = vrot.slane %v1923_v37, 9  ;;  %v2714_v29 = vmax.f32 %v1727_v8, %v5433_v40 }
 0x13b   : > { %v5724_v48 = vrot.slane %v2809_v41, 10  ;;  %v3788_v49 = vmax.f32 %v2808_v33, %v5723_v27  ;;  %v1777_v50 = vmin.f32 %v1679_v42, 32767.0  ;;  %v6558_v26 = vand.u32 2147483647, %v1432_v43 }
 0x13c   : > { %v5820_v46 = vunpack.i.l.s16 %v7313_v47  ;;  %v2715_v52 = vmax.f32 %v1923_v37, %v5434_v45  ;;  %v5629_v53 = vrot.slane %v2714_v29, 10  ;;  %v6560_v12 = vcvt.f32.s32 %v1432_v43 }
 0x13d   : > { %v3789_v54 = vmax.f32 %v2809_v41, %v5724_v48  ;;  %v3984_v58 = vmax.f32 %v3788_v49, -32768.0  ;;  %v1973_v59 = vcombine.high %v1777_v50, %v1777_v50  ;;  %v5533_v62 = vrot.slane %v1777_v50, 9 }
 0x13e   : > { %v5819_v63 = vunpack.i.l.s16 %v7311_v44  ;;  %v4877_v60 = vrot.slane %v5820_v46, 7  ;;  %v5630_v1 = vrot.slane %v2715_v52, 10  ;;  %v3694_v2 = vmax.f32 %v2714_v29, %v5629_v53 }
 0x13f   : > { %v3985_v28 = vmax.f32 %v3789_v54, -32768.0  ;;  %v4180_v3 = vmin.f32 %v3984_v58, 32767.0  ;;  %v5534_v57 = vrot.slane %v1973_v59, 9  ;;  %v2814_v61 = vmax.f32 %v1777_v50, %v5533_v62  ;;  %v6371_v58 = vpop.f32.mrf.mxu0 }
 0x140   : > { %v3695_v5 = vmax.f32 %v2715_v52, %v5630_v1  ;;  %v3890_v4 = vmax.f32 %v3694_v2, -32768.0  ;;  %vm8054_vm10 = vcmp.lt.f32.partialorder %v6558_v26, 8388608.0  ;;  %v6561_v7 = vcvt.s32.f32 %v6560_v12 }
 0x141   : > { %v4878_v39 = vsel %vm4857_vm5, %v4877_v60, %v5819_v63  ;;  %v4181_v0 = vmin.f32 %v3985_v28, 32767.0  ;;  %v7510_v10 = vtrunc.f32 %v4180_v3  ;;  %v2815_v11 = vmax.f32 %v1973_v59, %v5534_v57  ;;  %v6446_v28 = vpop.f32.mrf.mxu1 }
 0x142   : > { %v3891_v13 = vmax.f32 %v3695_v5, -32768.0  ;;  %v4086_v14 = vmin.f32 %v3890_v4, 32767.0  ;;  %v5729_v17 = vrot.slane %v2814_v61, 10  ;;  %v6562_v19 = vand.u32 2147483647, %v6561_v7  ;;  %v879_v7 = vpop.f32.mrf.mxu0 }
 0x143   : > { %v7511_v20 = vcvt.f32.s32 %v7510_v10  ;;  %v7512_v24 = vtrunc.f32 %v4181_v0  ;;  %v5730_v25 = vrot.slane %v2815_v11, 10  ;;  %v6563_v8 = vand.u32 2147483648, %v1432_v43 }
 0x144   : > { %v4880_v30 = vsel %vm4860_vm6, %v8026_v16, %v4878_v39  ;;  %v4087_v33 = vmin.f32 %v3891_v13, 32767.0  ;;  %v7322_v22 = vtrunc.f32 %v4086_v14  ;;  %v3794_v35 = vmax.f32 %v2814_v61, %v5729_v17 }
 0x145   : > { %v7513_v36 = vcvt.f32.s32 %v7512_v24  ;;  %v5919_v37 = vunpack.i.l.s16 %v7511_v20  ;;  %v3795_v40 = vmax.f32 %v2815_v11, %v5730_v25  ;;  %v6564_v41 = vor.u32 %v6563_v8, %v6562_v19  ;;  %v1129_v19 = vpop.f32.mrf.mxu1 }
 0x146   : > { %v7323_v27 = vcvt.f32.s32 %v7322_v22  ;;  %v7324_v42 = vtrunc.f32 %v4087_v33  ;;  %v3990_v44 = vmax.f32 %v3794_v35, -32768.0  ;;  %v1384_v47 = vmax.f32 %v8052_v9, 0.0  ;;  %v6374_v35 = vpop.f32.mrf.mxu0 }
 0x147   : > { %v5920_v45 = vunpack.i.l.s16 %v7513_v36  ;;  %v5051_v29 = vrot.slane %v5919_v37, 4  ;;  %v3991_v48 = vmax.f32 %v3795_v40, -32768.0  ;;  %v6565_v49 = vsel %vm8054_vm10, %v6564_v41, %v1432_v43  ;;  %v8093_v41 = vld [vmem:[%s9256_s2] ss:$0 sm:$0xff] }
 0x148   : > { %v7325_v50 = vcvt.f32.s32 %v7324_v42  ;;  %v5825_v16 = vunpack.i.l.s16 %v7323_v27  ;;  %v4186_v26 = vmin.f32 %v3990_v44, 32767.0  ;;  %v1628_v46 = vmax.f32 %v6565_v49, -32768.0 }
 0x149   : > { %v5052_v52 = vsel %vm4866_vm13, %v5051_v29, %v8030_v18  ;;  %v5053_v53 = vrot.slane %v5920_v45, 3  ;;  %v4187_v12 = vmin.f32 %v3991_v48, 32767.0  ;;  %v1482_v54 = vmul.f32 256.0, %v1384_v47 }
 0x14a   : > { %v5826_v59 = vunpack.i.l.s16 %v7325_v50  ;;  %v7522_v62 = vtrunc.f32 %v4186_v26  ;;  %v1726_v9 = vmin.f32 %v1628_v46, 32767.0  ;;  %v8068_v63 = vsel %vm4863_vm9, %v8036_v38, %v4880_v30 }
 0x14b   : > { %v5054_v43 = vsel %vm4869_vm15, %v5053_v53, %v5052_v52  ;;  %v8071_v60 = vrot.slane %v5825_v16, 2  ;;  %v7524_v1 = vtrunc.f32 %v4187_v12  ;;  %v6960_v2 = vcvt.f32.s32 %v1482_v54 }
 0x14c   : > { %v5056_v18 = vsel %vm4872_vm0, %v8044_v56, %v5054_v43  ;;  %v7523_v3 = vcvt.f32.s32 %v7522_v62  ;;  %v1922_v57 = vcombine.high %v1726_v9, %v1726_v9  ;;  %v6958_v61 = vand.u32 2147483647, %v1482_v54 }
 0x14d   : > { %v5058_v5 = vsel %vm4875_vm1, %v8047_v21, %v5056_v18  ;;  %v8077_v4 = vrot.slane %v5826_v59, 1  ;;  %v7525_v38 = vcvt.f32.s32 %v7524_v1  ;;  %v5431_v6 = vrot.slane %v1726_v9, 9 }
 0x14e   : > { %v5218_v39 = vpack.c.b16 %v5058_v5, %v5058_v5  ;;  %v5925_v0 = vunpack.i.l.s16 %v7523_v3  ;;  %v5432_v10 = vrot.slane %v1922_v57, 9  ;;  %v6961_v11 = vcvt.s32.f32 %v6960_v2 }
 0x14f   : > { %v5926_v13 = vunpack.i.l.s16 %v7525_v38  ;;  %v2712_v14 = vmax.f32 %v1726_v9, %v5431_v6  ;;  %v6963_v17 = vand.u32 2147483648, %v1482_v54  ;;  %v885_v56 = vadd.f32 %v6371_v58, %v7900_v55 }
 0x150   : > { %5244 = vst.msk [vmem:[%s8014_s27 + $0x34] sm:$0xf] %vm5230_vm2, %v5218_v39  ;;  %v2713_v20 = vmax.f32 %v1922_v57, %v5432_v10  ;;  %vm8082_vm11 = vcmp.lt.f32.partialorder %v6958_v61, 8388608.0  ;;  %v6962_v24 = vand.u32 2147483647, %v6961_v11  ;;  %v1135_v25 = vadd.f32 %v6446_v28, %v7900_v55 }
 0x151   : > { %v8087_v8 = vrot.slane %v5925_v0, 6  ;;  %v5627_v30 = vrot.slane %v2712_v14, 10  ;;  %v1337_v33 = vmax.f32 %v885_v56, 0.0  ;;  %v880_v22 = vadd.f32 %v7900_v55, %v879_v7 }
 0x152   : > { %v5628_v36 = vrot.slane %v2713_v20, 10  ;;  %v6964_v37 = vor.u32 %v6963_v17, %v6962_v24  ;;  %v1387_v40 = vmax.f32 %v1135_v25, 0.0  ;;  %v1130_v27 = vadd.f32 %v8093_v41, %v1129_v19 }
 0x153   : > { %v8096_v42 = vrot.slane %v5926_v13, 5  ;;  %v3692_v44 = vmax.f32 %v2712_v14, %v5627_v30  ;;  %v1435_v47 = vmul.f32 256.0, %v1337_v33  ;;  %v1336_v45 = vmax.f32 %v880_v22, 0.0 }
 0x154   : > { %v3693_v29 = vmax.f32 %v2713_v20, %v5628_v36  ;;  %v6965_v55 = vsel %vm8082_vm11, %v6964_v37, %v1482_v54  ;;  %v1485_v48 = vmul.f32 256.0, %v1387_v40  ;;  %v8101_v49 = vadd.f32 %v8093_v41, %v6374_v35 }
 0x155   : > { %v3888_v50 = vmax.f32 %v3692_v44, -32768.0  ;;  %v1678_v16 = vmax.f32 %v6965_v55, -32768.0  ;;  %v6582_v26 = vand.u32 2147483647, %v1435_v47  ;;  %v6584_v46 = vcvt.f32.s32 %v1435_v47 }
 0x156   : > { %v3889_v52 = vmax.f32 %v3693_v29, -32768.0  ;;  %v6982_v53 = vand.u32 2147483647, %v1485_v48  ;;  %v6984_v12 = vcvt.f32.s32 %v1485_v48  ;;  %v1386_v58 = vmax.f32 %v1130_v27, 0.0 }
 0x157   : > { %v4084_v59 = vmin.f32 %v3888_v50, 32767.0  ;;  %v1776_v62 = vmin.f32 %v1678_v16, 32767.0  ;;  %v6585_v9 = vcvt.s32.f32 %v6584_v46  ;;  %v6587_v43 = vand.u32 2147483648, %v1435_v47 }
 0x158   : > { %v4085_v1 = vmin.f32 %v3889_v52, 32767.0  ;;  %vm8103_vm12 = vcmp.lt.f32.partialorder %v6582_v26, 8388608.0  ;;  %v6985_v54 = vcvt.s32.f32 %v6984_v12  ;;  %v6987_v28 = vand.u32 2147483648, %v1485_v48 }
 0x159   : > { %v7318_v18 = vtrunc.f32 %v4084_v59  ;;  %v1972_v3 = vcombine.high %v1776_v62, %v1776_v62  ;;  %v5531_v57 = vrot.slane %v1776_v62, 9  ;;  %v6586_v61 = vand.u32 2147483647, %v6585_v9 }
 0x15a   : > { %v7320_v5 = vtrunc.f32 %v4085_v1  ;;  %vm8107_vm14 = vcmp.lt.f32.partialorder %v6982_v53, 8388608.0  ;;  %v6986_v6 = vand.u32 2147483647, %v6985_v54  ;;  %v1434_v7 = vmul.f32 256.0, %v1336_v45 }
 0x15b   : > { %v7319_v39 = vcvt.f32.s32 %v7318_v18  ;;  %v5532_v0 = vrot.slane %v1972_v3, 9  ;;  %v2812_v10 = vmax.f32 %v1776_v62, %v5531_v57  ;;  %v6588_v11 = vor.u32 %v6587_v43, %v6586_v61 }
 0x15c   : > { %v7321_v13 = vcvt.f32.s32 %v7320_v5  ;;  %v6988_v14 = vor.u32 %v6987_v28, %v6986_v6  ;;  %v6576_v17 = vcvt.f32.s32 %v1434_v7  ;;  %v8111_v56 = vmul.f32 256.0, %v1386_v58 }
 0x15d   : > { %v5823_v19 = vunpack.i.l.s16 %v7319_v39  ;;  %v2813_v20 = vmax.f32 %v1972_v3, %v5532_v0  ;;  %v5727_v21 = vrot.slane %v2812_v10, 10  ;;  %v6589_v24 = vsel %vm8103_vm12, %v6588_v11, %v1435_v47 }
 0x15e   : > { %v5824_v25 = vunpack.i.l.s16 %v7321_v13  ;;  %v1631_v30 = vmax.f32 %v6589_v24, -32768.0  ;;  %v6989_v33 = vsel %vm8107_vm14, %v6988_v14, %v1485_v48  ;;  %v6574_v22 = vand.u32 2147483647, %v1434_v7 }
 0x15f   : > { %v4883_v35 = vrot.slane %v5823_v19, 4  ;;  %v5728_v36 = vrot.slane %v2813_v20, 10  ;;  %v3792_v37 = vmax.f32 %v2812_v10, %v5727_v21  ;;  %v1681_v40 = vmax.f32 %v6989_v33, -32768.0 }
 0x160   : > { %v4885_v27 = vrot.slane %v5824_v25, 3  ;;  %v1729_v44 = vmin.f32 %v1631_v30, 32767.0  ;;  %v6577_v45 = vcvt.s32.f32 %v6576_v17  ;;  %v6579_v29 = vand.u32 2147483648, %v1434_v7 }
 0x161   : > { %v4884_v55 = vsel %vm4866_vm13, %v4883_v35, %v8068_v63  ;;  %v3793_v50 = vmax.f32 %v2813_v20, %v5728_v36  ;;  %v3988_v16 = vmax.f32 %v3792_v37, -32768.0  ;;  %v1779_v47 = vmin.f32 %v1681_v40, 32767.0 }
 0x162   : > { %v4886_v26 = vsel %vm4869_vm15, %v4885_v27, %v4884_v55  ;;  %v1925_v46 = vcombine.high %v1729_v44, %v1729_v44  ;;  %v5437_v52 = vrot.slane %v1729_v44, 9  ;;  %v6578_v48 = vand.u32 2147483647, %v6577_v45 }
 0x163   : > { %v4888_v53 = vsel %vm4872_vm0, %v8071_v60, %v4886_v26  ;;  %v3989_v12 = vmax.f32 %v3793_v50, -32768.0  ;;  %v4184_v58 = vmin.f32 %v3988_v16, 32767.0  ;;  %v1975_v59 = vcombine.high %v1779_v47, %v1779_v47 }
 0x164   : > { %v4890_v62 = vsel %vm4875_vm1, %v8077_v4, %v4888_v53  ;;  %v5438_v9 = vrot.slane %v1925_v46, 9  ;;  %v2718_v63 = vmax.f32 %v1729_v44, %v5437_v52  ;;  %v5537_v43 = vrot.slane %v1779_v47, 9 }
 0x165   : > { %v5206_v1 = vpack.c.b16 %v4890_v62, %v4890_v62  ;;  %v4185_v2 = vmin.f32 %v3989_v12, 32767.0  ;;  %v7518_v54 = vtrunc.f32 %v4184_v58  ;;  %v5538_v28 = vrot.slane %v1975_v59, 9 }
 0x166   : > { %v2719_v18 = vmax.f32 %v1925_v46, %v5438_v9  ;;  %v5633_v3 = vrot.slane %v2718_v63, 10  ;;  %v2818_v57 = vmax.f32 %v1779_v47, %v5537_v43  ;;  %v6580_v61 = vor.u32 %v6579_v29, %v6578_v48 }
 0x167   : > { %5232 = vst.msk [vmem:[%s8014_s27 + $0x4] sm:$0xf] %vm5230_vm2, %v5206_v1  ;;  %v7519_v60 = vcvt.f32.s32 %v7518_v54  ;;  %v7520_v5 = vtrunc.f32 %v4185_v2  ;;  %v2819_v38 = vmax.f32 %v1975_v59, %v5538_v28  ;;  %vm6575_vm3 = vcmp.lt.f32.partialorder %v6574_v22, 8388608.0 }
 0x168   : > { %v5634_v6 = vrot.slane %v2719_v18, 10  ;;  %v3698_v39 = vmax.f32 %v2718_v63, %v5633_v3  ;;  %v5733_v4 = vrot.slane %v2818_v57, 10  ;;  %v6581_v0 = vsel %vm6575_vm3, %v6580_v61, %v1434_v7 }
 0x169   : > { %v7521_v10 = vcvt.f32.s32 %v7520_v5  ;;  %v5734_v11 = vrot.slane %v2819_v38, 10  ;;  %v1630_v13 = vmax.f32 %v6581_v0, -32768.0  ;;  %v6974_v14 = vand.u32 2147483647, %v8111_v56  ;;  %v6449_v5 = vpop.f32.mrf.mxu1 }
 0x16a   : > { %v5923_v17 = vunpack.i.l.s16 %v7519_v60  ;;  %v3699_v19 = vmax.f32 %v2719_v18, %v5634_v6  ;;  %v3894_v20 = vmax.f32 %v3698_v39, -32768.0  ;;  %v3798_v21 = vmax.f32 %v2818_v57, %v5733_v4 }
 0x16b   : > { %v5924_v24 = vunpack.i.l.s16 %v7521_v10  ;;  %v3799_v25 = vmax.f32 %v2819_v38, %v5734_v11  ;;  %v1728_v30 = vmin.f32 %v1630_v13, 32767.0  ;;  %v6976_v33 = vcvt.f32.s32 %v8111_v56 }
 0x16c   : > { %v3895_v35 = vmax.f32 %v3699_v19, -32768.0  ;;  %v4090_v22 = vmin.f32 %v3894_v20, 32767.0  ;;  %v3994_v36 = vmax.f32 %v3798_v21, -32768.0  ;;  %v6979_v37 = vand.u32 2147483648, %v8111_v56 }
 0x16d   : > { %v5059_v7 = vrot.slane %v5924_v24, 7  ;;  %v3995_v40 = vmax.f32 %v3799_v25, -32768.0  ;;  %v1924_v27 = vcombine.high %v1728_v30, %v1728_v30  ;;  %v5435_v44 = vrot.slane %v1728_v30, 9 }
 0x16e   : > { %v4091_v45 = vmin.f32 %v3895_v35, 32767.0  ;;  %v7330_v29 = vtrunc.f32 %v4090_v22  ;;  %v4190_v55 = vmin.f32 %v3994_v36, 32767.0  ;;  %v6977_v50 = vcvt.s32.f32 %v6976_v33 }
 0x16f   : > { %v5060_v16 = vsel %vm4857_vm5, %v5059_v7, %v5923_v17  ;;  %v4191_v47 = vmin.f32 %v3995_v40, 32767.0  ;;  %v5436_v26 = vrot.slane %v1924_v27, 9  ;;  %v2716_v46 = vmax.f32 %v1728_v30, %v5435_v44  ;;  %v1139_v40 = vpop.f32.mrf.mxu1 }
 0x170   : > { %v5062_v52 = vsel %vm4860_vm6, %v8087_v8, %v5060_v16  ;;  %v7331_v48 = vcvt.f32.s32 %v7330_v29  ;;  %v7332_v53 = vtrunc.f32 %v4091_v45  ;;  %v7530_v12 = vtrunc.f32 %v4190_v55 }
 0x171   : > { %v7532_v58 = vtrunc.f32 %v4191_v47  ;;  %v2717_v59 = vmax.f32 %v1924_v27, %v5436_v26  ;;  %v5631_v62 = vrot.slane %v2716_v46, 10  ;;  %v6978_v9 = vand.u32 2147483647, %v6977_v50 }
 0x172   : > { %v7333_v63 = vcvt.f32.s32 %v7332_v53  ;;  %v5829_v43 = vunpack.i.l.s16 %v7331_v48  ;;  %v7531_v1 = vcvt.f32.s32 %v7530_v12  ;;  %vm8132_vm4 = vcmp.lt.f32.partialorder %v6974_v14, 8388608.0  ;;  %v889_v14 = vpop.f32.mrf.mxu0 }
 0x173   : > { %v7533_v54 = vcvt.f32.s32 %v7532_v58  ;;  %v5632_v28 = vrot.slane %v2717_v59, 10  ;;  %v3696_v18 = vmax.f32 %v2716_v46, %v5631_v62  ;;  %v6980_v3 = vor.u32 %v6979_v37, %v6978_v9 }
 0x174   : > { %v5830_v57 = vunpack.i.l.s16 %v7333_v63  ;;  %v5929_v8 = vunpack.i.l.s16 %v7531_v1  ;;  %v8138_v61 = vsel %vm4863_vm9, %v8096_v42, %v5062_v52  ;;  %v1339_v60 = vmax.f32 %v8101_v49, 0.0 }
 0x175   : > { %v5930_v38 = vunpack.i.l.s16 %v7533_v54  ;;  %v3697_v6 = vmax.f32 %v2717_v59, %v5632_v28  ;;  %v3892_v39 = vmax.f32 %v3696_v18, -32768.0  ;;  %v6981_v4 = vsel %vm8132_vm4, %v6980_v3, %v8111_v56 }
 0x176   : > { %v8144_v0 = vrot.slane %v5829_v43, 6  ;;  %v8146_v10 = vrot.slane %v5830_v57, 5  ;;  %v1680_v11 = vmax.f32 %v6981_v4, -32768.0  ;;  %v1437_v13 = vmul.f32 256.0, %v1339_v60 }
 0x177   : > { %v8148_v17 = vrot.slane %v5929_v8, 2  ;;  %v3893_v42 = vmax.f32 %v3697_v6, -32768.0  ;;  %v4088_v19 = vmin.f32 %v3892_v39, 32767.0  ;;  %v1145_v49 = vadd.f32 %v8093_v41, %v6449_v5 }
 0x178   : > { %v8151_v20 = vrot.slane %v5930_v38, 1  ;;  %v1778_v21 = vmin.f32 %v1680_v11, 32767.0  ;;  %v6598_v24 = vand.u32 2147483647, %v1437_v13  ;;  %v6600_v25 = vcvt.f32.s32 %v1437_v13 }
 0x179   : > { %v4089_v30 = vmin.f32 %v3893_v42, 32767.0  ;;  %v7326_v56 = vtrunc.f32 %v4088_v19  ;;  %v1389_v33 = vmax.f32 %v1145_v49, 0.0  ;;  %v890_v35 = vadd.f32 %v8093_v41, %v889_v14 }
 0x17a   : > { %v1974_v22 = vcombine.high %v1778_v21, %v1778_v21  ;;  %v5535_v36 = vrot.slane %v1778_v21, 9  ;;  %v6601_v37 = vcvt.s32.f32 %v6600_v25  ;;  %v6603_v7 = vand.u32 2147483648, %v1437_v13 }
 0x17b   : > { %v7327_v27 = vcvt.f32.s32 %v7326_v56  ;;  %v7328_v44 = vtrunc.f32 %v4089_v30  ;;  %v1487_v45 = vmul.f32 256.0, %v1389_v33  ;;  %v1338_v29 = vmax.f32 %v890_v35, 0.0 }
 0x17c   : > { %v5536_v55 = vrot.slane %v1974_v22, 9  ;;  %v2816_v50 = vmax.f32 %v1778_v21, %v5535_v36  ;;  %vm8154_vm7 = vcmp.lt.f32.partialorder %v6598_v24, 8388608.0  ;;  %v6602_v47 = vand.u32 2147483647, %v6601_v37  ;;  %v6377_v21 = vpop.f32.mrf.mxu0 }
 0x17d   : > { %v7329_v26 = vcvt.f32.s32 %v7328_v44  ;;  %v6998_v46 = vand.u32 2147483647, %v1487_v45  ;;  %v7000_v52 = vcvt.f32.s32 %v1487_v45  ;;  %v1140_v48 = vadd.f32 %v8093_v41, %v1139_v40 }
 0x17e   : > { %v5827_v53 = vunpack.i.l.s16 %v7327_v27  ;;  %v2817_v12 = vmax.f32 %v1974_v22, %v5536_v55  ;;  %v5731_v58 = vrot.slane %v2816_v50, 10  ;;  %v6604_v59 = vor.u32 %v6603_v7, %v6602_v47 }
 0x17f   : > { %v5828_v62 = vunpack.i.l.s16 %v7329_v26  ;;  %v7001_v9 = vcvt.s32.f32 %v7000_v52  ;;  %v7003_v63 = vand.u32 2147483648, %v1487_v45  ;;  %v1436_v43 = vmul.f32 256.0, %v1338_v29 }
 0x180   : > { %v5732_v1 = vrot.slane %v2817_v12, 10  ;;  %v3796_v2 = vmax.f32 %v2816_v50, %v5731_v58  ;;  %v6605_v54 = vsel %vm8154_vm7, %v6604_v59, %v1437_v13  ;;  %vm8161_vm8 = vcmp.lt.f32.partialorder %v6998_v46, 8388608.0 }
 0x181   : > { %v4891_v18 = vrot.slane %v5828_v62, 7  ;;  %v1633_v3 = vmax.f32 %v6605_v54, -32768.0  ;;  %v7002_v57 = vand.u32 2147483647, %v7001_v9  ;;  %v6590_v8 = vand.u32 2147483647, %v1436_v43 }
 0x182   : > { %v3797_v60 = vmax.f32 %v2817_v12, %v5732_v1  ;;  %v3992_v5 = vmax.f32 %v3796_v2, -32768.0  ;;  %v6592_v38 = vcvt.f32.s32 %v1436_v43  ;;  %v1388_v6 = vmax.f32 %v1140_v48, 0.0 }
 0x183   : > { %v4892_v39 = vsel %vm4857_vm5, %v4891_v18, %v5827_v53  ;;  %v1731_v4 = vmin.f32 %v1633_v3, 32767.0  ;;  %v7004_v11 = vor.u32 %v7003_v63, %v7002_v57  ;;  %v6595_v14 = vand.u32 2147483648, %v1436_v43 }
 0x184   : > { %v3993_v42 = vmax.f32 %v3797_v60, -32768.0  ;;  %v4188_v19 = vmin.f32 %v3992_v5, 32767.0  ;;  %vm8166_vm10 = vcmp.lt.f32.partialorder %v6590_v8, 8388608.0  ;;  %v6593_v49 = vcvt.s32.f32 %v6592_v38 }
 0x185   : > { %v8172_v24 = vsel %vm4860_vm6, %v8144_v0, %v4892_v39  ;;  %v1927_v25 = vcombine.high %v1731_v4, %v1731_v4  ;;  %v5441_v30 = vrot.slane %v1731_v4, 9  ;;  %v7005_v56 = vsel %vm8161_vm8, %v7004_v11, %v1487_v45 }
 0x186   : > { %v4189_v33 = vmin.f32 %v3993_v42, 32767.0  ;;  %v7526_v35 = vtrunc.f32 %v4188_v19  ;;  %v1683_v22 = vmax.f32 %v7005_v56, -32768.0  ;;  %v6594_v36 = vand.u32 2147483647, %v6593_v49 }
 0x187   : > { %v5442_v37 = vrot.slane %v1927_v25, 9  ;;  %v2722_v7 = vmax.f32 %v1731_v4, %v5441_v30  ;;  %v8176_v40 = vmul.f32 256.0, %v1388_v6  ;;  %v8179_v27 = vadd.f32 %v8093_v41, %v6377_v21 }
 0x188   : > { %v7527_v44 = vcvt.f32.s32 %v7526_v35  ;;  %v7528_v29 = vtrunc.f32 %v4189_v33  ;;  %v1781_v0 = vmin.f32 %v1683_v22, 32767.0  ;;  %v6596_v55 = vor.u32 %v6595_v14, %v6594_v36 }
 0x189   : > { %v2723_v50 = vmax.f32 %v1927_v25, %v5442_v37  ;;  %v5637_v16 = vrot.slane %v2722_v7, 10  ;;  %v6990_v47 = vand.u32 2147483647, %v8176_v40  ;;  %v6992_v45 = vcvt.f32.s32 %v8176_v40 }
 0x18a   : > { %v7529_v26 = vcvt.f32.s32 %v7528_v29  ;;  %v5927_v46 = vunpack.i.l.s16 %v7527_v44  ;;  %v1977_v52 = vcombine.high %v1781_v0, %v1781_v0  ;;  %v5541_v48 = vrot.slane %v1781_v0, 9 }
 0x18b   : > { %v5638_v53 = vrot.slane %v2723_v50, 10  ;;  %v3702_v12 = vmax.f32 %v2722_v7, %v5637_v16  ;;  %v6597_v58 = vsel %vm8166_vm10, %v6596_v55, %v1436_v43  ;;  %vm8185_vm11 = vcmp.lt.f32.partialorder %v6990_v47, 8388608.0 }
 0x18c   : > { %v5928_v62 = vunpack.i.l.s16 %v7529_v26  ;;  %v5065_v9 = vrot.slane %v5927_v46, 4  ;;  %v5542_v63 = vrot.slane %v1977_v52, 9  ;;  %v2822_v1 = vmax.f32 %v1781_v0, %v5541_v48 }
 0x18d   : > { %v3703_v2 = vmax.f32 %v2723_v50, %v5638_v53  ;;  %v3898_v54 = vmax.f32 %v3702_v12, -32768.0  ;;  %v1632_v28 = vmax.f32 %v6597_v58, -32768.0  ;;  %v6993_v18 = vcvt.s32.f32 %v6992_v45  ;;  %v6452_v45 = vpop.f32.mrf.mxu1 }
 0x18e   : > { %v5066_v3 = vsel %vm4866_vm13, %v5065_v9, %v8138_v61  ;;  %v5067_v57 = vrot.slane %v5928_v62, 3  ;;  %v2823_v8 = vmax.f32 %v1977_v52, %v5542_v63  ;;  %v5737_v60 = vrot.slane %v2822_v1, 10 }
 0x18f   : > { %v3899_v5 = vmax.f32 %v3703_v2, -32768.0  ;;  %v4094_v43 = vmin.f32 %v3898_v54, 32767.0  ;;  %v1730_v38 = vmin.f32 %v1632_v28, 32767.0  ;;  %v6995_v6 = vand.u32 2147483648, %v8176_v40 }
 0x190   : > { %v5068_v39 = vsel %vm4869_vm15, %v5067_v57, %v5066_v3  ;;  %v5738_v4 = vrot.slane %v2823_v8, 10  ;;  %v3802_v11 = vmax.f32 %v2822_v1, %v5737_v60  ;;  %v6994_v14 = vand.u32 2147483647, %v6993_v18 }
 0x191   : > { %v5070_v42 = vsel %vm4872_vm0, %v8148_v17, %v5068_v39  ;;  %v4095_v19 = vmin.f32 %v3899_v5, 32767.0  ;;  %v7338_v13 = vtrunc.f32 %v4094_v43  ;;  %v1926_v61 = vcombine.high %v1730_v38, %v1730_v38  ;;  %v899_v39 = vpop.f32.mrf.mxu0 }
 0x192   : > { %v5072_v49 = vsel %vm4875_vm1, %v8151_v20, %v5070_v42  ;;  %v3803_v21 = vmax.f32 %v2823_v8, %v5738_v4  ;;  %v3998_v25 = vmax.f32 %v3802_v11, -32768.0  ;;  %v5439_v30 = vrot.slane %v1730_v38, 9  ;;  %v1149_v4 = vpop.f32.mrf.mxu1 }
 0x193   : > { %v5219_v56 = vpack.c.b16 %v5072_v49, %v5072_v49  ;;  %v7339_v33 = vcvt.f32.s32 %v7338_v13  ;;  %v7340_v35 = vtrunc.f32 %v4095_v19  ;;  %v5440_v22 = vrot.slane %v1926_v61, 9 }
 0x194   : > { %v3999_v36 = vmax.f32 %v3803_v21, -32768.0  ;;  %v4194_v37 = vmin.f32 %v3998_v25, 32767.0  ;;  %v2720_v7 = vmax.f32 %v1730_v38, %v5439_v30  ;;  %v6996_v44 = vor.u32 %v6995_v6, %v6994_v14 }
 0x195   : > { %5245 = vst.msk [vmem:[%s8014_s27 + $0x38] sm:$0xf] %vm5230_vm2, %v5219_v56  ;;  %v7341_v17 = vcvt.f32.s32 %v7340_v35  ;;  %v5833_v29 = vunpack.i.l.s16 %v7339_v33  ;;  %v2721_v0 = vmax.f32 %v1926_v61, %v5440_v22  ;;  %v1341_v55 = vmax.f32 %v8179_v27, 0.0 }
 0x196   : > { %v4195_v50 = vmin.f32 %v3999_v36, 32767.0  ;;  %v7538_v20 = vtrunc.f32 %v4194_v37  ;;  %v5635_v16 = vrot.slane %v2720_v7, 10  ;;  %v6997_v47 = vsel %vm8185_vm11, %v6996_v44, %v8176_v40 }
 0x197   : > { %v5834_v26 = vunpack.i.l.s16 %v7341_v17  ;;  %v5636_v46 = vrot.slane %v2721_v0, 10  ;;  %v4896_v52 = vsel %vm4863_vm9, %v8146_v10, %v8172_v24  ;;  %v1682_v48 = vmax.f32 %v6997_v47, -32768.0 }
 0x198   : > { %v7539_v53 = vcvt.f32.s32 %v7538_v20  ;;  %v7540_v12 = vtrunc.f32 %v4195_v50  ;;  %v3700_v58 = vmax.f32 %v2720_v7, %v5635_v16  ;;  %v1439_v62 = vmul.f32 256.0, %v1341_v55 }
 0x199   : > { %v8206_v27 = vrot.slane %v5833_v29, 2  ;;  %v3701_v9 = vmax.f32 %v2721_v0, %v5636_v46  ;;  %v1780_v63 = vmin.f32 %v1682_v48, 32767.0  ;;  %v1155_v1 = vadd.f32 %v8093_v41, %v6452_v45 }
 0x19a   : > { %v8209_v59 = vcvt.f32.s32 %v7540_v12  ;;  %v5933_v40 = vunpack.i.l.s16 %v7539_v53  ;;  %v3896_v2 = vmax.f32 %v3700_v58, -32768.0  ;;  %v6614_v54 = vand.u32 2147483647, %v1439_v62 }
 0x19b   : > { %v3897_v28 = vmax.f32 %v3701_v9, -32768.0  ;;  %v1976_v18 = vcombine.high %v1780_v63, %v1780_v63  ;;  %v5539_v3 = vrot.slane %v1780_v63, 9  ;;  %v6616_v10 = vcvt.f32.s32 %v1439_v62 }
 0x19c   : > { %v4903_v24 = vrot.slane %v5834_v26, 1  ;;  %v5934_v57 = vunpack.i.l.s16 %v8209_v59  ;;  %v8212_v8 = vrot.slane %v5933_v40, 6  ;;  %v4092_v60 = vmin.f32 %v3896_v2, 32767.0 }
 0x19d   : > { %v4093_v5 = vmin.f32 %v3897_v28, 32767.0  ;;  %v5540_v43 = vrot.slane %v1976_v18, 9  ;;  %v2820_v38 = vmax.f32 %v1780_v63, %v5539_v3  ;;  %v6617_v6 = vcvt.s32.f32 %v6616_v10 }
 0x19e   : > { %v7334_v11 = vtrunc.f32 %v4092_v60  ;;  %vm8214_vm12 = vcmp.lt.f32.partialorder %v6614_v54, 8388608.0  ;;  %v6619_v42 = vand.u32 2147483648, %v1439_v62  ;;  %v1391_v19 = vmax.f32 %v1155_v1, 0.0 }
 0x19f   : > { %v7336_v13 = vtrunc.f32 %v4093_v5  ;;  %v2821_v61 = vmax.f32 %v1976_v18, %v5540_v43  ;;  %v5735_v49 = vrot.slane %v2820_v38, 10  ;;  %v6618_v21 = vand.u32 2147483647, %v6617_v6 }
 0x1a0   : > { %v7335_v25 = vcvt.f32.s32 %v7334_v11  ;;  %v1489_v30 = vmul.f32 256.0, %v1391_v19  ;;  %v900_v56 = vadd.f32 %v8093_v41, %v899_v39  ;;  %v1150_v33 = vadd.f32 %v8093_v41, %v1149_v4 }
 0x1a1   : > { %v7337_v35 = vcvt.f32.s32 %v7336_v13  ;;  %v5736_v22 = vrot.slane %v2821_v61, 10  ;;  %v3800_v36 = vmax.f32 %v2820_v38, %v5735_v49  ;;  %v6620_v37 = vor.u32 %v6619_v42, %v6618_v21 }
 0x1a2   : > { %v5831_v7 = vunpack.i.l.s16 %v7335_v25  ;;  %v7014_v44 = vand.u32 2147483647, %v1489_v30  ;;  %v7016_v17 = vcvt.f32.s32 %v1489_v30  ;;  %v7019_v29 = vand.u32 2147483648, %v1489_v30 }
 0x1a3   : > { %v5832_v0 = vunpack.i.l.s16 %v7337_v35  ;;  %v3801_v55 = vmax.f32 %v2821_v61, %v5736_v22  ;;  %v3996_v50 = vmax.f32 %v3800_v36, -32768.0  ;;  %v6621_v20 = vsel %vm8214_vm12, %v6620_v37, %v1439_v62  ;;  %v6455_v22 = vpop.f32.mrf.mxu1 }
 0x1a4   : > { %v4897_v16 = vrot.slane %v5831_v7, 4  ;;  %v1635_v47 = vmax.f32 %v6621_v20, -32768.0  ;;  %vm8222_vm14 = vcmp.lt.f32.partialorder %v7014_v44, 8388608.0  ;;  %v7017_v26 = vcvt.s32.f32 %v7016_v17 }
 0x1a5   : > { %v4899_v46 = vrot.slane %v5832_v0, 3  ;;  %v3997_v48 = vmax.f32 %v3801_v55, -32768.0  ;;  %v4192_v53 = vmin.f32 %v3996_v50, 32767.0  ;;  %v1340_v12 = vmax.f32 %v900_v56, 0.0 }
 0x1a6   : > { %v4898_v58 = vsel %vm4866_vm13, %v4897_v16, %v4896_v52  ;;  %v1733_v9 = vmin.f32 %v1635_v47, 32767.0  ;;  %v7018_v63 = vand.u32 2147483647, %v7017_v26  ;;  %v1390_v1 = vmax.f32 %v1150_v33, 0.0 }
 0x1a7   : > { %v4900_v59 = vsel %vm4869_vm15, %v4899_v46, %v4898_v58  ;;  %v4193_v40 = vmin.f32 %v3997_v48, 32767.0  ;;  %v7534_v62 = vtrunc.f32 %v4192_v53  ;;  %v1438_v2 = vmul.f32 256.0, %v1340_v12 }
 0x1a8   : > { %v4902_v54 = vsel %vm4872_vm0, %v8206_v27, %v4900_v59  ;;  %v1929_v28 = vcombine.high %v1733_v9, %v1733_v9  ;;  %v5445_v18 = vrot.slane %v1733_v9, 9  ;;  %v7020_v3 = vor.u32 %v7019_v29, %v7018_v63  ;;  %v6380_v27 = vpop.f32.mrf.mxu0 }
 0x1a9   : > { %v4904_v10 = vsel %vm4875_vm1, %v4903_v24, %v4902_v54  ;;  %v7535_v60 = vcvt.f32.s32 %v7534_v62  ;;  %v7536_v5 = vtrunc.f32 %v4193_v40  ;;  %v6606_v52 = vand.u32 2147483647, %v1438_v2 }
 0x1aa   : > { %v5207_v43 = vpack.c.b16 %v4904_v10, %v4904_v10  ;;  %v5446_v38 = vrot.slane %v1929_v28, 9  ;;  %v2726_v6 = vmax.f32 %v1733_v9, %v5445_v18  ;;  %v7021_v39 = vsel %vm8222_vm14, %v7020_v3, %v1489_v30 }
 0x1ab   : > { %v5077_v4 = vrot.slane %v5934_v57, 5  ;;  %v7537_v11 = vcvt.f32.s32 %v7536_v5  ;;  %v5931_v14 = vunpack.i.l.s16 %v7535_v60  ;;  %v1685_v42 = vmax.f32 %v7021_v39, -32768.0 }
 0x1ac   : > { %5233 = vst.msk [vmem:[%s8014_s27 + $0x8] sm:$0xf] %vm5230_vm2, %v5207_v43  ;;  %v2727_v19 = vmax.f32 %v1929_v28, %v5446_v38  ;;  %v5641_v13 = vrot.slane %v2726_v6, 10  ;;  %vm8235_vm3 = vcmp.lt.f32.partialorder %v6606_v52, 8388608.0  ;;  %v6608_v61 = vcvt.f32.s32 %v1438_v2 }
 0x1ad   : > { %v5932_v49 = vunpack.i.l.s16 %v7537_v11  ;;  %v1783_v21 = vmin.f32 %v1685_v42, 32767.0  ;;  %v6611_v25 = vand.u32 2147483648, %v1438_v2  ;;  %v1488_v56 = vmul.f32 256.0, %v1390_v1 }
 0x1ae   : > { %v5642_v33 = vrot.slane %v2727_v19, 10  ;;  %v3706_v30 = vmax.f32 %v2726_v6, %v5641_v13  ;;  %v6609_v57 = vcvt.s32.f32 %v6608_v61  ;;  %v915_v35 = vadd.f32 %v8093_v41, %v6380_v27 }
 0x1af   : > { %v5073_v36 = vrot.slane %v5932_v49, 7  ;;  %v1979_v37 = vcombine.high %v1783_v21, %v1783_v21  ;;  %v5545_v7 = vrot.slane %v1783_v21, 9  ;;  %v7006_v44 = vand.u32 2147483647, %v1488_v56 }
 0x1b0   : > { %v3707_v17 = vmax.f32 %v2727_v19, %v5642_v33  ;;  %v3902_v29 = vmax.f32 %v3706_v30, -32768.0  ;;  %v6610_v0 = vand.u32 2147483647, %v6609_v57  ;;  %v7008_v55 = vcvt.f32.s32 %v1488_v56 }
 0x1b1   : > { %v5074_v50 = vsel %vm4857_vm5, %v5073_v36, %v5931_v14  ;;  %v5546_v20 = vrot.slane %v1979_v37, 9  ;;  %v2826_v16 = vmax.f32 %v1783_v21, %v5545_v7  ;;  %v1165_v47 = vadd.f32 %v8093_v41, %v6455_v22 }
 0x1b2   : > { %v3903_v45 = vmax.f32 %v3707_v17, -32768.0  ;;  %v4098_v26 = vmin.f32 %v3902_v29, 32767.0  ;;  %v6612_v46 = vor.u32 %v6611_v25, %v6610_v0  ;;  %vm8242_vm4 = vcmp.lt.f32.partialorder %v7006_v44, 8388608.0 }
 0x1b3   : > { %v2827_v53 = vmax.f32 %v1979_v37, %v5546_v20  ;;  %v5741_v12 = vrot.slane %v2826_v16, 10  ;;  %v7009_v58 = vcvt.s32.f32 %v7008_v55  ;;  %v7011_v9 = vand.u32 2147483648, %v1488_v56 }
 0x1b4   : > { %v5076_v63 = vsel %vm4860_vm6, %v8212_v8, %v5074_v50  ;;  %v4099_v1 = vmin.f32 %v3903_v45, 32767.0  ;;  %v7346_v59 = vtrunc.f32 %v4098_v26  ;;  %v6613_v40 = vsel %vm8235_vm3, %v6612_v46, %v1438_v2 }
 0x1b5   : > { %v5742_v62 = vrot.slane %v2827_v53, 10  ;;  %v3806_v54 = vmax.f32 %v2826_v16, %v5741_v12  ;;  %v1634_v28 = vmax.f32 %v6613_v40, -32768.0  ;;  %v7010_v18 = vand.u32 2147483647, %v7009_v58  ;;  %v909_v40 = vpop.f32.mrf.mxu0 }
 0x1b6   : > { %v7347_v3 = vcvt.f32.s32 %v7346_v59  ;;  %v7348_v10 = vtrunc.f32 %v4099_v1  ;;  %v1343_v60 = vmax.f32 %v915_v35, 0.0  ;;  %v1393_v5 = vmax.f32 %v1165_v47, 0.0 }
 0x1b7   : > { %v3807_v52 = vmax.f32 %v2827_v53, %v5742_v62  ;;  %v4002_v43 = vmax.f32 %v3806_v54, -32768.0  ;;  %v1732_v38 = vmin.f32 %v1634_v28, 32767.0  ;;  %v7012_v6 = vor.u32 %v7011_v9, %v7010_v18 }
 0x1b8   : > { %v7349_v39 = vcvt.f32.s32 %v7348_v10  ;;  %v5837_v11 = vunpack.i.l.s16 %v7347_v3  ;;  %v8251_v8 = vsel %vm4863_vm9, %v5077_v4, %v5076_v63  ;;  %v1441_v14 = vmul.f32 256.0, %v1343_v60  ;;  %v1159_v3 = vpop.f32.mrf.mxu1 }
 0x1b9   : > { %v4003_v42 = vmax.f32 %v3807_v52, -32768.0  ;;  %v4198_v2 = vmin.f32 %v4002_v43, 32767.0  ;;  %v1928_v27 = vcombine.high %v1732_v38, %v1732_v38  ;;  %v5443_v19 = vrot.slane %v1732_v38, 9 }
 0x1ba   : > { %v5838_v13 = vunpack.i.l.s16 %v7349_v39  ;;  %v7013_v24 = vsel %vm8242_vm4, %v7012_v6, %v1488_v56  ;;  %v6630_v61 = vand.u32 2147483647, %v1441_v14  ;;  %v8255_v49 = vmul.f32 256.0, %v1393_v5 }
 0x1bb   : > { %v4199_v21 = vmin.f32 %v4003_v42, 32767.0  ;;  %v7546_v25 = vtrunc.f32 %v4198_v2  ;;  %v5444_v33 = vrot.slane %v1928_v27, 9  ;;  %v2724_v30 = vmax.f32 %v1732_v38, %v5443_v19 }
 0x1bc   : > { %v8257_v57 = vrot.slane %v5837_v11, 6  ;;  %v8259_v4 = vrot.slane %v5838_v13, 5  ;;  %v1684_v35 = vmax.f32 %v7013_v24, -32768.0  ;;  %v6632_v22 = vcvt.f32.s32 %v1441_v14 }
 0x1bd   : > { %v7547_v36 = vcvt.f32.s32 %v7546_v25  ;;  %v7548_v37 = vtrunc.f32 %v4199_v21  ;;  %v2725_v7 = vmax.f32 %v1928_v27, %v5444_v33  ;;  %v5639_v44 = vrot.slane %v2724_v30, 10 }
 0x1be   : > { %v1782_v17 = vmin.f32 %v1684_v35, 32767.0  ;;  %vm8261_vm7 = vcmp.lt.f32.partialorder %v6630_v61, 8388608.0  ;;  %v6633_v29 = vcvt.s32.f32 %v6632_v22  ;;  %v7030_v0 = vand.u32 2147483647, %v8255_v49 }
 0x1bf   : > { %v7549_v55 = vcvt.f32.s32 %v7548_v37  ;;  %v5937_v50 = vunpack.i.l.s16 %v7547_v36  ;;  %v5640_v20 = vrot.slane %v2725_v7, 10  ;;  %v3704_v16 = vmax.f32 %v2724_v30, %v5639_v44 }
 0x1c0   : > { %v1978_v47 = vcombine.high %v1782_v17, %v1782_v17  ;;  %v5543_v45 = vrot.slane %v1782_v17, 9  ;;  %v6634_v26 = vand.u32 2147483647, %v6633_v29  ;;  %v6635_v46 = vand.u32 2147483648, %v1441_v14 }
 0x1c1   : > { %v5938_v48 = vunpack.i.l.s16 %v7549_v55  ;;  %v3705_v53 = vmax.f32 %v2725_v7, %v5640_v20  ;;  %v3900_v12 = vmax.f32 %v3704_v16, -32768.0  ;;  %vm8266_vm8 = vcmp.lt.f32.partialorder %v7030_v0, 8388608.0 }
 0x1c2   : > { %v5544_v9 = vrot.slane %v1978_v47, 9  ;;  %v2824_v63 = vmax.f32 %v1782_v17, %v5543_v45  ;;  %v6636_v1 = vor.u32 %v6635_v46, %v6634_v26  ;;  %v7032_v59 = vcvt.f32.s32 %v8255_v49 }
 0x1c3   : > { %v8271_v62 = vrot.slane %v5937_v50, 2  ;;  %v3901_v54 = vmax.f32 %v3705_v53, -32768.0  ;;  %v4096_v28 = vmin.f32 %v3900_v12, 32767.0  ;;  %v7035_v18 = vand.u32 2147483648, %v8255_v49 }
 0x1c4   : > { %v2825_v10 = vmax.f32 %v1978_v47, %v5544_v9  ;;  %v5739_v60 = vrot.slane %v2824_v63, 10  ;;  %v6637_v5 = vsel %vm8261_vm7, %v6636_v1, %v1441_v14  ;;  %v7033_v52 = vcvt.s32.f32 %v7032_v59 }
 0x1c5   : > { %v4097_v43 = vmin.f32 %v3901_v54, 32767.0  ;;  %v7342_v38 = vtrunc.f32 %v4096_v28  ;;  %v1637_v6 = vmax.f32 %v6637_v5, -32768.0  ;;  %v910_v39 = vadd.f32 %v8093_v41, %v909_v40 }
 0x1c6   : > { %v5740_v11 = vrot.slane %v2825_v10, 10  ;;  %v3804_v42 = vmax.f32 %v2824_v63, %v5739_v60  ;;  %v7034_v2 = vand.u32 2147483647, %v7033_v52  ;;  %v1160_v27 = vadd.f32 %v8093_v41, %v1159_v3 }
 0x1c7   : > { %v8278_v19 = vrot.slane %v5938_v48, 1  ;;  %v7344_v13 = vtrunc.f32 %v4097_v43  ;;  %v1735_v24 = vmin.f32 %v1637_v6, 32767.0  ;;  %v1342_v61 = vmax.f32 %v910_v39, 0.0 }
 0x1c8   : > { %v7343_v21 = vcvt.f32.s32 %v7342_v38  ;;  %v3805_v25 = vmax.f32 %v2825_v10, %v5740_v11  ;;  %v4000_v33 = vmax.f32 %v3804_v42, -32768.0  ;;  %v7036_v14 = vor.u32 %v7035_v18, %v7034_v2  ;;  %v6383_v2 = vpop.f32.mrf.mxu0 }
 0x1c9   : > { %v7345_v30 = vcvt.f32.s32 %v7344_v13  ;;  %v1931_v35 = vcombine.high %v1735_v24, %v1735_v24  ;;  %v5449_v22 = vrot.slane %v1735_v24, 9  ;;  %v1392_v36 = vmax.f32 %v1160_v27, 0.0 }
 0x1ca   : > { %v4001_v37 = vmax.f32 %v3805_v25, -32768.0  ;;  %v4196_v7 = vmin.f32 %v4000_v33, 32767.0  ;;  %v7037_v44 = vsel %vm8266_vm8, %v7036_v14, %v8255_v49  ;;  %v1440_v41 = vmul.f32 256.0, %v1342_v61 }
 0x1cb   : > { %v5836_v17 = vunpack.i.l.s16 %v7345_v30  ;;  %v5450_v56 = vrot.slane %v1931_v35, 9  ;;  %v2730_v29 = vmax.f32 %v1735_v24, %v5449_v22  ;;  %v1687_v0 = vmax.f32 %v7037_v44, -32768.0  ;;  %v8298_v22 = vld [vmem:[%s9256_s2] ss:$0 sm:$0xff] }
 0x1cc   : > { %v4197_v55 = vmin.f32 %v4001_v37, 32767.0  ;;  %v7542_v50 = vtrunc.f32 %v4196_v7  ;;  %v6622_v20 = vand.u32 2147483647, %v1440_v41  ;;  %v6624_v16 = vcvt.f32.s32 %v1440_v41 }
 0x1cd   : > { %v4905_v47 = vrot.slane %v5836_v17, 7  ;;  %v2731_v45 = vmax.f32 %v1931_v35, %v5450_v56  ;;  %v5645_v26 = vrot.slane %v2730_v29, 10  ;;  %v1785_v46 = vmin.f32 %v1687_v0, 32767.0 }
 0x1ce   : > { %v5835_v48 = vunpack.i.l.s16 %v7343_v21  ;;  %v7543_v53 = vcvt.f32.s32 %v7542_v50  ;;  %v7544_v12 = vtrunc.f32 %v4197_v55  ;;  %v6625_v9 = vcvt.s32.f32 %v6624_v16 }
 0x1cf   : > { %v5646_v63 = vrot.slane %v2731_v45, 10  ;;  %v3710_v58 = vmax.f32 %v2730_v29, %v5645_v26  ;;  %v1981_v49 = vcombine.high %v1785_v46, %v1785_v46  ;;  %vm8283_vm10 = vcmp.lt.f32.partialorder %v6622_v20, 8388608.0  ;;  %v6458_v26 = vpop.f32.mrf.mxu1 }
 0x1d0   : > { %v4906_v59 = vsel %vm4857_vm5, %v4905_v47, %v5835_v48  ;;  %v7545_v40 = vcvt.f32.s32 %v7544_v12  ;;  %v5935_v54 = vunpack.i.l.s16 %v7543_v53  ;;  %v5549_v28 = vrot.slane %v1785_v46, 9 }
 0x1d1   : > { %v3711_v18 = vmax.f32 %v2731_v45, %v5646_v63  ;;  %v3906_v3 = vmax.f32 %v3710_v58, -32768.0  ;;  %v5550_v10 = vrot.slane %v1981_v49, 9  ;;  %v6626_v60 = vand.u32 2147483647, %v6625_v9 }
 0x1d2   : > { %v5936_v5 = vunpack.i.l.s16 %v7545_v40  ;;  %v5079_v52 = vrot.slane %v5935_v54, 4  ;;  %v2830_v43 = vmax.f32 %v1785_v46, %v5549_v28  ;;  %v6627_v38 = vand.u32 2147483648, %v1440_v41 }
 0x1d3   : > { %v4908_v6 = vsel %vm4860_vm6, %v8257_v57, %v4906_v59  ;;  %v3907_v39 = vmax.f32 %v3711_v18, -32768.0  ;;  %v4102_v11 = vmin.f32 %v3906_v3, 32767.0  ;;  %v2831_v42 = vmax.f32 %v1981_v49, %v5550_v10  ;;  %v919_v3 = vpop.f32.mrf.mxu0 }
 0x1d4   : > { %v5080_v27 = vsel %vm4866_vm13, %v5079_v52, %v8251_v8  ;;  %v5081_v13 = vrot.slane %v5936_v5, 3  ;;  %v5745_v24 = vrot.slane %v2830_v43, 10  ;;  %v6628_v61 = vor.u32 %v6627_v38, %v6626_v60 }
 0x1d5   : > { %v4103_v21 = vmin.f32 %v3907_v39, 32767.0  ;;  %v7354_v25 = vtrunc.f32 %v4102_v11  ;;  %v5746_v33 = vrot.slane %v2831_v42, 10  ;;  %v1490_v14 = vmul.f32 256.0, %v1392_v36 }
 0x1d6   : > { %v5082_v30 = vsel %vm4869_vm15, %v5081_v13, %v5080_v27  ;;  %v3810_v35 = vmax.f32 %v2830_v43, %v5745_v24  ;;  %v6629_v57 = vsel %vm8283_vm10, %v6628_v61, %v1440_v41  ;;  %v925_v8 = vadd.f32 %v8298_v22, %v6383_v2 }
 0x1d7   : > { %v5084_v37 = vsel %vm4872_vm0, %v8271_v62, %v5082_v30  ;;  %v7355_v7 = vcvt.f32.s32 %v7354_v25  ;;  %v7356_v44 = vtrunc.f32 %v4103_v21  ;;  %v3811_v36 = vmax.f32 %v2831_v42, %v5746_v33  ;;  %v1169_v25 = vpop.f32.mrf.mxu1 }
 0x1d8   : > { %v5086_v17 = vsel %vm4875_vm1, %v8278_v19, %v5084_v37  ;;  %v4006_v56 = vmax.f32 %v3810_v35, -32768.0  ;;  %v1636_v29 = vmax.f32 %v6629_v57, -32768.0  ;;  %v7022_v41 = vand.u32 2147483647, %v1490_v14 }
 0x1d9   : > { %v5220_v0 = vpack.c.b16 %v5086_v17, %v5086_v17  ;;  %v7357_v55 = vcvt.f32.s32 %v7356_v44  ;;  %v5841_v50 = vunpack.i.l.s16 %v7355_v7  ;;  %v4007_v20 = vmax.f32 %v3811_v36, -32768.0 }
 0x1da   : > { %v4202_v16 = vmin.f32 %v4006_v56, 32767.0  ;;  %v1734_v47 = vmin.f32 %v1636_v29, 32767.0  ;;  %v8307_v45 = vsel %vm4863_vm9, %v8259_v4, %v4908_v6  ;;  %v7024_v62 = vcvt.f32.s32 %v1490_v14 }
 0x1db   : > { %5246 = vst.msk [vmem:[%s8014_s27 + $0x3c] sm:$0xf] %vm5230_vm2, %v5220_v0  ;;  %v5842_v46 = vunpack.i.l.s16 %v7357_v55  ;;  %v4203_v48 = vmin.f32 %v4007_v20, 32767.0  ;;  %vm8311_vm11 = vcmp.lt.f32.partialorder %v7022_v41, 8388608.0  ;;  %v7027_v53 = vand.u32 2147483648, %v1490_v14 }
 0x1dc   : > { %v7554_v12 = vtrunc.f32 %v4202_v16  ;;  %v1930_v9 = vcombine.high %v1734_v47, %v1734_v47  ;;  %v5447_v63 = vrot.slane %v1734_v47, 9  ;;  %v7025_v58 = vcvt.s32.f32 %v7024_v62 }
 0x1dd   : > { %v8315_v49 = vrot.slane %v5841_v50, 2  ;;  %v7556_v1 = vtrunc.f32 %v4203_v48  ;;  %v1345_v4 = vmax.f32 %v925_v8, 0.0  ;;  %v1175_v59 = vadd.f32 %v8298_v22, %v6458_v26 }
 0x1de   : > { %v7555_v40 = vcvt.f32.s32 %v7554_v12  ;;  %v5448_v54 = vrot.slane %v1930_v9, 9  ;;  %v2728_v28 = vmax.f32 %v1734_v47, %v5447_v63  ;;  %v7026_v18 = vand.u32 2147483647, %v7025_v58 }
 0x1df   : > { %v8318_v10 = vrot.slane %v5842_v46, 1  ;;  %v7557_v60 = vcvt.f32.s32 %v7556_v1  ;;  %v1443_v5 = vmul.f32 256.0, %v1345_v4  ;;  %v1395_v52 = vmax.f32 %v1175_v59, 0.0 }
 0x1e0   : > { %v5941_v43 = vunpack.i.l.s16 %v7555_v40  ;;  %v2729_v38 = vmax.f32 %v1930_v9, %v5448_v54  ;;  %v5643_v6 = vrot.slane %v2728_v28, 10  ;;  %v7028_v39 = vor.u32 %v7027_v53, %v7026_v18 }
 0x1e1   : > { %v5942_v11 = vunpack.i.l.s16 %v7557_v60  ;;  %v6646_v42 = vand.u32 2147483647, %v1443_v5  ;;  %v6648_v2 = vcvt.f32.s32 %v1443_v5  ;;  %v920_v27 = vadd.f32 %v8298_v22, %v919_v3 }
 0x1e2   : > { %v5644_v13 = vrot.slane %v2729_v38, 10  ;;  %v3708_v24 = vmax.f32 %v2728_v28, %v5643_v6  ;;  %v7029_v61 = vsel %vm8311_vm11, %v7028_v39, %v1490_v14  ;;  %v6651_v21 = vand.u32 2147483648, %v1443_v5 }
 0x1e3   : > { %v8323_v33 = vrot.slane %v5941_v43, 6  ;;  %v8325_v30 = vrot.slane %v5942_v11, 5  ;;  %v1686_v35 = vmax.f32 %v7029_v61, -32768.0  ;;  %v6649_v57 = vcvt.s32.f32 %v6648_v2 }
 0x1e4   : > { %v3709_v8 = vmax.f32 %v2729_v38, %v5644_v13  ;;  %v3904_v37 = vmax.f32 %v3708_v24, -32768.0  ;;  %vm8327_vm12 = vcmp.lt.f32.partialorder %v6646_v42, 8388608.0  ;;  %v1493_v44 = vmul.f32 256.0, %v1395_v52 }
 0x1e5   : > { %v1784_v36 = vmin.f32 %v1686_v35, 32767.0  ;;  %v6650_v17 = vand.u32 2147483647, %v6649_v57  ;;  %v1344_v56 = vmax.f32 %v920_v27, 0.0  ;;  %v8332_v14 = vadd.f32 %v8298_v22, %v1169_v25 }
 0x1e6   : > { %v3905_v29 = vmax.f32 %v3709_v8, -32768.0  ;;  %v4100_v41 = vmin.f32 %v3904_v37, 32767.0  ;;  %v7046_v0 = vand.u32 2147483647, %v1493_v44  ;;  %v7048_v55 = vcvt.f32.s32 %v1493_v44 }
 0x1e7   : > { %v1980_v50 = vcombine.high %v1784_v36, %v1784_v36  ;;  %v5547_v20 = vrot.slane %v1784_v36, 9  ;;  %v6652_v16 = vor.u32 %v6651_v21, %v6650_v17  ;;  %v7051_v47 = vand.u32 2147483648, %v1493_v44 }
 0x1e8   : > { %v4101_v62 = vmin.f32 %v3905_v29, 32767.0  ;;  %v7350_v26 = vtrunc.f32 %v4100_v41  ;;  %vm8334_vm14 = vcmp.lt.f32.partialorder %v7046_v0, 8388608.0  ;;  %v7049_v48 = vcvt.s32.f32 %v7048_v55 }
 0x1e9   : > { %v5548_v19 = vrot.slane %v1980_v50, 9  ;;  %v2828_v53 = vmax.f32 %v1784_v36, %v5547_v20  ;;  %v6653_v12 = vsel %vm8327_vm12, %v6652_v16, %v1443_v5  ;;  %v1442_v9 = vmul.f32 256.0, %v1344_v56 }
 0x1ea   : > { %v7351_v63 = vcvt.f32.s32 %v7350_v26  ;;  %v7352_v58 = vtrunc.f32 %v4101_v62  ;;  %v1639_v1 = vmax.f32 %v6653_v12, -32768.0  ;;  %v7050_v4 = vand.u32 2147483647, %v7049_v48  ;;  %v6386_v62 = vpop.f32.mrf.mxu0 }
 0x1eb   : > { %v2829_v59 = vmax.f32 %v1980_v50, %v5548_v19  ;;  %v5743_v40 = vrot.slane %v2828_v53, 10  ;;  %v6638_v54 = vand.u32 2147483647, %v1442_v9  ;;  %v6640_v28 = vcvt.f32.s32 %v1442_v9 }
 0x1ec   : > { %v7353_v18 = vcvt.f32.s32 %v7352_v58  ;;  %v5839_v3 = vunpack.i.l.s16 %v7351_v63  ;;  %v1737_v60 = vmin.f32 %v1639_v1, 32767.0  ;;  %v7052_v52 = vor.u32 %v7051_v47, %v7050_v4 }
 0x1ed   : > { %v5744_v43 = vrot.slane %v2829_v59, 10  ;;  %v3808_v38 = vmax.f32 %v2828_v53, %v5743_v40  ;;  %vm8340_vm3 = vcmp.lt.f32.partialorder %v6638_v54, 8388608.0  ;;  %v6641_v5 = vcvt.s32.f32 %v6640_v28 }
 0x1ee   : > { %v5840_v39 = vunpack.i.l.s16 %v7353_v18  ;;  %v4911_v11 = vrot.slane %v5839_v3, 4  ;;  %v1933_v42 = vcombine.high %v1737_v60, %v1737_v60  ;;  %v5453_v2 = vrot.slane %v1737_v60, 9 }
 0x1ef   : > { %v3809_v27 = vmax.f32 %v2829_v59, %v5744_v43  ;;  %v4004_v13 = vmax.f32 %v3808_v38, -32768.0  ;;  %v7053_v24 = vsel %vm8334_vm14, %v7052_v52, %v1493_v44  ;;  %v6642_v61 = vand.u32 2147483647, %v6641_v5 }
 0x1f0   : > { %v4912_v21 = vsel %vm4866_vm13, %v4911_v11, %v8307_v45  ;;  %v4913_v25 = vrot.slane %v5840_v39, 3  ;;  %v5454_v35 = vrot.slane %v1933_v42, 9  ;;  %v2734_v57 = vmax.f32 %v1737_v60, %v5453_v2 }
 0x1f1   : > { %v4005_v8 = vmax.f32 %v3809_v27, -32768.0  ;;  %v4200_v37 = vmin.f32 %v4004_v13, 32767.0  ;;  %v1689_v7 = vmax.f32 %v7053_v24, -32768.0  ;;  %v6643_v36 = vand.u32 2147483648, %v1442_v9 }
 0x1f2   : > { %v4914_v17 = vsel %vm4869_vm15, %v4913_v25, %v4912_v21  ;;  %v2735_v56 = vmax.f32 %v1933_v42, %v5454_v35  ;;  %v5649_v29 = vrot.slane %v2734_v57, 10  ;;  %v1394_v41 = vmax.f32 %v8332_v14, 0.0 }
 0x1f3   : > { %v4916_v44 = vsel %vm4872_vm0, %v8315_v49, %v4914_v17  ;;  %v4201_v0 = vmin.f32 %v4005_v8, 32767.0  ;;  %v7550_v55 = vtrunc.f32 %v4200_v37  ;;  %v1787_v45 = vmin.f32 %v1689_v7, 32767.0 }
 0x1f4   : > { %v4918_v50 = vsel %vm4875_vm1, %v8318_v10, %v4916_v44  ;;  %v5650_v20 = vrot.slane %v2735_v56, 10  ;;  %v3714_v16 = vmax.f32 %v2734_v57, %v5649_v29  ;;  %v6644_v47 = vor.u32 %v6643_v36, %v6642_v61 }
 0x1f5   : > { %v5208_v26 = vpack.c.b16 %v4918_v50, %v4918_v50  ;;  %v7551_v46 = vcvt.f32.s32 %v7550_v55  ;;  %v7552_v48 = vtrunc.f32 %v4201_v0  ;;  %v1983_v19 = vcombine.high %v1787_v45, %v1787_v45 }
 0x1f6   : > { %v3715_v53 = vmax.f32 %v2735_v56, %v5650_v20  ;;  %v3910_v14 = vmax.f32 %v3714_v16, -32768.0  ;;  %v5553_v12 = vrot.slane %v1787_v45, 9  ;;  %v6645_v49 = vsel %vm8340_vm3, %v6644_v47, %v1442_v9 }
 0x1f7   : > { %5234 = vst.msk [vmem:[%s8014_s27 + $0xc] sm:$0xf] %vm5230_vm2, %v5208_v26  ;;  %v7553_v63 = vcvt.f32.s32 %v7552_v48  ;;  %v5554_v58 = vrot.slane %v1983_v19, 9  ;;  %v1638_v1 = vmax.f32 %v6645_v49, -32768.0  ;;  %v935_v10 = vadd.f32 %v8298_v22, %v6386_v62 }
 0x1f8   : > { %v3911_v4 = vmax.f32 %v3715_v53, -32768.0  ;;  %v4106_v59 = vmin.f32 %v3910_v14, 32767.0  ;;  %v2834_v40 = vmax.f32 %v1787_v45, %v5553_v12  ;;  %v8359_v54 = vmul.f32 256.0, %v1394_v41  ;;  %v6461_v14 = vpop.f32.mrf.mxu1 }
 0x1f9   : > { %v5939_v28 = vunpack.i.l.s16 %v7551_v46  ;;  %v5940_v18 = vunpack.i.l.s16 %v7553_v63  ;;  %v2835_v3 = vmax.f32 %v1983_v19, %v5554_v58  ;;  %v1736_v60 = vmin.f32 %v1638_v1, 32767.0 }
 0x1fa   : > { %v4107_v52 = vmin.f32 %v3911_v4, 32767.0  ;;  %v7362_v43 = vtrunc.f32 %v4106_v59  ;;  %v5749_v38 = vrot.slane %v2834_v40, 10  ;;  %v7038_v9 = vand.u32 2147483647, %v8359_v54 }
 0x1fb   : > { %v5087_v6 = vrot.slane %v5940_v18, 7  ;;  %v5750_v5 = vrot.slane %v2835_v3, 10  ;;  %v1932_v39 = vcombine.high %v1736_v60, %v1736_v60  ;;  %v5451_v11 = vrot.slane %v1736_v60, 9 }
 0x1fc   : > { %v7363_v42 = vcvt.f32.s32 %v7362_v43  ;;  %v7364_v2 = vtrunc.f32 %v4107_v52  ;;  %v3814_v27 = vmax.f32 %v2834_v40, %v5749_v38  ;;  %v1347_v13 = vmax.f32 %v935_v10, 0.0 }
 0x1fd   : > { %v5088_v24 = vsel %vm4857_vm5, %v5087_v6, %v5939_v28  ;;  %v3815_v61 = vmax.f32 %v2835_v3, %v5750_v5  ;;  %v5452_v21 = vrot.slane %v1932_v39, 9  ;;  %v2732_v25 = vmax.f32 %v1736_v60, %v5451_v11  ;;  %v929_v3 = vpop.f32.mrf.mxu0 }
 0x1fe   : > { %v7365_v35 = vcvt.f32.s32 %v7364_v2  ;;  %v5845_v57 = vunpack.i.l.s16 %v7363_v42  ;;  %v4010_v8 = vmax.f32 %v3814_v27, -32768.0  ;;  %vm8363_vm4 = vcmp.lt.f32.partialorder %v7038_v9, 8388608.0 }
 0x1ff   : > { %v4011_v7 = vmax.f32 %v3815_v61, -32768.0  ;;  %v2733_v36 = vmax.f32 %v1932_v39, %v5452_v21  ;;  %v5647_v17 = vrot.slane %v2732_v25, 10  ;;  %v7040_v56 = vcvt.f32.s32 %v8359_v54  ;;  %v1179_v39 = vpop.f32.mrf.mxu1 }
 0x200   : > { %v5090_v29 = vsel %vm4860_vm6, %v8323_v33, %v5088_v24  ;;  %v5846_v41 = vunpack.i.l.s16 %v7365_v35  ;;  %v4206_v44 = vmin.f32 %v4010_v8, 32767.0  ;;  %v7043_v0 = vand.u32 2147483648, %v8359_v54 }
 0x201   : > { %v4207_v55 = vmin.f32 %v4011_v7, 32767.0  ;;  %v5648_v45 = vrot.slane %v2733_v36, 10  ;;  %v3712_v50 = vmax.f32 %v2732_v25, %v5647_v17  ;;  %v7041_v20 = vcvt.s32.f32 %v7040_v56 }
 0x202   : > { %v8371_v16 = vrot.slane %v5845_v57, 6  ;;  %v8373_v47 = vrot.slane %v5846_v41, 5  ;;  %v7562_v62 = vtrunc.f32 %v4206_v44  ;;  %v1445_v26 = vmul.f32 256.0, %v1347_v13 }
 0x203   : > { %v7564_v46 = vtrunc.f32 %v4207_v55  ;;  %v3713_v48 = vmax.f32 %v2733_v36, %v5648_v45  ;;  %v3908_v19 = vmax.f32 %v3712_v50, -32768.0  ;;  %v7042_v53 = vand.u32 2147483647, %v7041_v20 }
 0x204   : > { %v7563_v33 = vcvt.f32.s32 %v7562_v62  ;;  %v8377_v12 = vsel %vm4863_vm9, %v8325_v30, %v5090_v29  ;;  %v6662_v49 = vand.u32 2147483647, %v1445_v26  ;;  %v6664_v63 = vcvt.f32.s32 %v1445_v26 }
 0x205   : > { %v7565_v58 = vcvt.f32.s32 %v7564_v46  ;;  %v3909_v1 = vmax.f32 %v3713_v48, -32768.0  ;;  %v4104_v10 = vmin.f32 %v3908_v19, 32767.0  ;;  %v7044_v4 = vor.u32 %v7043_v0, %v7042_v53 }
 0x206   : > { %v5945_v59 = vunpack.i.l.s16 %v7563_v33  ;;  %v6665_v40 = vcvt.s32.f32 %v6664_v63  ;;  %v6667_v28 = vand.u32 2147483648, %v1445_v26  ;;  %v1185_v18 = vadd.f32 %v8298_v22, %v6461_v14 }
 0x207   : > { %v5946_v60 = vunpack.i.l.s16 %v7565_v58  ;;  %v4105_v52 = vmin.f32 %v3909_v1, 32767.0  ;;  %v7358_v43 = vtrunc.f32 %v4104_v10  ;;  %v7045_v30 = vsel %vm8363_vm4, %v7044_v4, %v8359_v54  ;;  %v6389_v54 = vpop.f32.mrf.mxu0 }
 0x208   : > { %v1688_v38 = vmax.f32 %v7045_v30, -32768.0  ;;  %vm8383_vm7 = vcmp.lt.f32.partialorder %v6662_v49, 8388608.0  ;;  %v6666_v6 = vand.u32 2147483647, %v6665_v40  ;;  %v1397_v5 = vmax.f32 %v1185_v18, 0.0 }
 0x209   : > { %v8387_v11 = vrot.slane %v5945_v59, 2  ;;  %v7359_v42 = vcvt.f32.s32 %v7358_v43  ;;  %v7360_v2 = vtrunc.f32 %v4105_v52  ;;  %v930_v27 = vadd.f32 %v8298_v22, %v929_v3 }
 0x20a   : > { %v8390_v13 = vrot.slane %v5946_v60, 1  ;;  %v1786_v24 = vmin.f32 %v1688_v38, 32767.0  ;;  %v6668_v61 = vor.u32 %v6667_v28, %v6666_v6  ;;  %v1495_v21 = vmul.f32 256.0, %v1397_v5 }
 0x20b   : > { %v7361_v25 = vcvt.f32.s32 %v7360_v2  ;;  %v5843_v35 = vunpack.i.l.s16 %v7359_v42  ;;  %v1346_v57 = vmax.f32 %v930_v27, 0.0  ;;  %v1180_v8 = vadd.f32 %v8298_v22, %v1179_v39 }
 0x20c   : > { %v1982_v37 = vcombine.high %v1786_v24, %v1786_v24  ;;  %v5551_v7 = vrot.slane %v1786_v24, 9  ;;  %v6669_v36 = vsel %vm8383_vm7, %v6668_v61, %v1445_v26  ;;  %v7062_v17 = vand.u32 2147483647, %v1495_v21 }
 0x20d   : > { %v5844_v56 = vunpack.i.l.s16 %v7361_v25  ;;  %v1641_v29 = vmax.f32 %v6669_v36, -32768.0  ;;  %v7064_v41 = vcvt.f32.s32 %v1495_v21  ;;  %v8396_v44 = vadd.f32 %v8298_v22, %v6389_v54 }
 0x20e   : > { %v5552_v0 = vrot.slane %v1982_v37, 9  ;;  %v2832_v55 = vmax.f32 %v1786_v24, %v5551_v7  ;;  %v7067_v45 = vand.u32 2147483648, %v1495_v21  ;;  %v1444_v50 = vmul.f32 256.0, %v1346_v57 }
 0x20f   : > { %v4919_v20 = vrot.slane %v5844_v56, 7  ;;  %v1739_v62 = vmin.f32 %v1641_v29, 32767.0  ;;  %vm8398_vm8 = vcmp.lt.f32.partialorder %v7062_v17, 8388608.0  ;;  %v7065_v48 = vcvt.s32.f32 %v7064_v41 }
 0x210   : > { %v2833_v19 = vmax.f32 %v1982_v37, %v5552_v0  ;;  %v5747_v26 = vrot.slane %v2832_v55, 10  ;;  %v6654_v53 = vand.u32 2147483647, %v1444_v50  ;;  %v6656_v14 = vcvt.f32.s32 %v1444_v50 }
 0x211   : > { %v4920_v33 = vsel %vm4857_vm5, %v4919_v20, %v5843_v35  ;;  %v1935_v49 = vcombine.high %v1739_v62, %v1739_v62  ;;  %v5457_v63 = vrot.slane %v1739_v62, 9  ;;  %v7066_v58 = vand.u32 2147483647, %v7065_v48 }
 0x212   : > { %v4922_v1 = vsel %vm4860_vm6, %v8371_v16, %v4920_v33  ;;  %v5748_v10 = vrot.slane %v2833_v19, 10  ;;  %v3812_v4 = vmax.f32 %v2832_v55, %v5747_v26  ;;  %v1396_v59 = vmax.f32 %v1180_v8, 0.0 }
 0x213   : > { %v5458_v40 = vrot.slane %v1935_v49, 9  ;;  %v2738_v28 = vmax.f32 %v1739_v62, %v5457_v63  ;;  %v7068_v18 = vor.u32 %v7067_v45, %v7066_v58  ;;  %v6657_v3 = vcvt.s32.f32 %v6656_v14 }
 0x214   : > { %v3813_v60 = vmax.f32 %v2833_v19, %v5748_v10  ;;  %v4008_v52 = vmax.f32 %v3812_v4, -32768.0  ;;  %vm8405_vm10 = vcmp.lt.f32.partialorder %v6654_v53, 8388608.0  ;;  %v6659_v30 = vand.u32 2147483648, %v1444_v50 }
 0x215   : > { %v2739_v38 = vmax.f32 %v1935_v49, %v5458_v40  ;;  %v5653_v9 = vrot.slane %v2738_v28, 10  ;;  %v7069_v6 = vsel %vm8398_vm8, %v7068_v18, %v1495_v21  ;;  %v6658_v16 = vand.u32 2147483647, %v6657_v3 }
 0x216   : > { %v4009_v5 = vmax.f32 %v3813_v60, -32768.0  ;;  %v4204_v39 = vmin.f32 %v4008_v52, 32767.0  ;;  %v1691_v42 = vmax.f32 %v7069_v6, -32768.0  ;;  %v8411_v2 = vmul.f32 256.0, %v1396_v59 }
 0x217   : > { %v5654_v27 = vrot.slane %v2739_v38, 10  ;;  %v3718_v24 = vmax.f32 %v2738_v28, %v5653_v9  ;;  %v6660_v61 = vor.u32 %v6659_v30, %v6658_v16  ;;  %v8415_v54 = vsel %vm4863_vm9, %v8373_v47, %v4922_v1 }
 0x218   : > { %v4205_v25 = vmin.f32 %v4009_v5, 32767.0  ;;  %v7558_v35 = vtrunc.f32 %v4204_v39  ;;  %v1789_v57 = vmin.f32 %v1691_v42, 32767.0  ;;  %v1349_v8 = vmax.f32 %v8396_v44, 0.0 }
 0x219   : > { %v3719_v37 = vmax.f32 %v2739_v38, %v5654_v27  ;;  %v3914_v21 = vmax.f32 %v3718_v24, -32768.0  ;;  %v6661_v7 = vsel %vm8405_vm10, %v6660_v61, %v1444_v50  ;;  %v7056_v36 = vcvt.f32.s32 %v8411_v2  ;;  %v6464_v61 = vpop.f32.mrf.mxu1 }
 0x21a   : > { %v7559_v17 = vcvt.f32.s32 %v7558_v35  ;;  %v7560_v56 = vtrunc.f32 %v4205_v25  ;;  %v1985_v29 = vcombine.high %v1789_v57, %v1789_v57  ;;  %v5557_v41 = vrot.slane %v1789_v57, 9 }
 0x21b   : > { %v3915_v0 = vmax.f32 %v3719_v37, -32768.0  ;;  %v4110_v55 = vmin.f32 %v3914_v21, 32767.0  ;;  %v1640_v47 = vmax.f32 %v6661_v7, -32768.0  ;;  %v7054_v45 = vand.u32 2147483647, %v8411_v2 }
 0x21c   : > { %v7561_v20 = vcvt.f32.s32 %v7560_v56  ;;  %v5943_v62 = vunpack.i.l.s16 %v7559_v17  ;;  %v5558_v46 = vrot.slane %v1985_v29, 9  ;;  %v2838_v44 = vmax.f32 %v1789_v57, %v5557_v41  ;;  %v939_v17 = vpop.f32.mrf.mxu0 }
 0x21d   : > { %v4111_v48 = vmin.f32 %v3915_v0, 32767.0  ;;  %v7370_v19 = vtrunc.f32 %v4110_v55  ;;  %v1738_v26 = vmin.f32 %v1640_v47, 32767.0  ;;  %v7057_v53 = vcvt.s32.f32 %v7056_v36 }
 0x21e   : > { %v5944_v50 = vunpack.i.l.s16 %v7561_v20  ;;  %v5093_v14 = vrot.slane %v5943_v62, 4  ;;  %v2839_v33 = vmax.f32 %v1985_v29, %v5558_v46  ;;  %v5753_v49 = vrot.slane %v2838_v44, 10 }
 0x21f   : > { %v7371_v63 = vcvt.f32.s32 %v7370_v19  ;;  %v7372_v58 = vtrunc.f32 %v4111_v48  ;;  %v1934_v1 = vcombine.high %v1738_v26, %v1738_v26  ;;  %v5455_v10 = vrot.slane %v1738_v26, 9 }
 0x220   : > { %v5094_v4 = vsel %vm4866_vm13, %v5093_v14, %v8377_v12  ;;  %v5095_v59 = vrot.slane %v5944_v50, 3  ;;  %v5754_v40 = vrot.slane %v2839_v33, 10  ;;  %v3818_v28 = vmax.f32 %v2838_v44, %v5753_v49 }
 0x221   : > { %v7373_v18 = vcvt.f32.s32 %v7372_v58  ;;  %v5849_v3 = vunpack.i.l.s16 %v7371_v63  ;;  %v5456_v60 = vrot.slane %v1934_v1, 9  ;;  %v2736_v52 = vmax.f32 %v1738_v26, %v5455_v10 }
 0x222   : > { %v5096_v43 = vsel %vm4869_vm15, %v5095_v59, %v5094_v4  ;;  %v3819_v30 = vmax.f32 %v2839_v33, %v5754_v40  ;;  %v4014_v38 = vmax.f32 %v3818_v28, -32768.0  ;;  %vm8425_vm11 = vcmp.lt.f32.partialorder %v7054_v45, 8388608.0 }
 0x223   : > { %v5098_v6 = vsel %vm4872_vm0, %v8387_v11, %v5096_v43  ;;  %v5850_v16 = vunpack.i.l.s16 %v7373_v18  ;;  %v2737_v12 = vmax.f32 %v1934_v1, %v5456_v60  ;;  %v7058_v5 = vand.u32 2147483647, %v7057_v53 }
 0x224   : > { %v5100_v39 = vsel %vm4875_vm1, %v8390_v13, %v5098_v6  ;;  %v4015_v42 = vmax.f32 %v3819_v30, -32768.0  ;;  %v4210_v27 = vmin.f32 %v4014_v38, 32767.0  ;;  %v5651_v24 = vrot.slane %v2736_v52, 10 }
 0x225   : > { %v5221_v25 = vpack.c.b16 %v5100_v39, %v5100_v39  ;;  %v8433_v35 = vrot.slane %v5849_v3, 2  ;;  %v5652_v57 = vrot.slane %v2737_v12, 10  ;;  %v7059_v37 = vand.u32 2147483648, %v8411_v2 }
 0x226   : > { %v4211_v21 = vmin.f32 %v4015_v42, 32767.0  ;;  %v7570_v7 = vtrunc.f32 %v4210_v27  ;;  %v3716_v11 = vmax.f32 %v2736_v52, %v5651_v24  ;;  %v1447_v36 = vmul.f32 256.0, %v1349_v8 }
 0x227   : > { %5247 = vst.msk [vmem:[%s8014_s27 + $0x40] sm:$0xf] %vm5230_vm2, %v5221_v25  ;;  %v8438_v56 = vrot.slane %v5850_v16, 1  ;;  %v3717_v13 = vmax.f32 %v2737_v12, %v5652_v57  ;;  %v7060_v29 = vor.u32 %v7059_v37, %v7058_v5  ;;  %v1195_v41 = vadd.f32 %v8298_v22, %v6464_v61  ;;  %v1189_v12 = vpop.f32.mrf.mxu1 }
 0x228   : > { %v7571_v0 = vcvt.f32.s32 %v7570_v7  ;;  %v7572_v55 = vtrunc.f32 %v4211_v21  ;;  %v3912_v47 = vmax.f32 %v3716_v11, -32768.0  ;;  %v6678_v45 = vand.u32 2147483647, %v1447_v36 }
 0x229   : > { %v3913_v20 = vmax.f32 %v3717_v13, -32768.0  ;;  %v7061_v62 = vsel %vm8425_vm11, %v7060_v29, %v8411_v2  ;;  %v6680_v46 = vcvt.f32.s32 %v1447_v36  ;;  %v940_v8 = vadd.f32 %v8298_v22, %v939_v17 }
 0x22a   : > { %v7573_v44 = vcvt.f32.s32 %v7572_v55  ;;  %v5949_v48 = vunpack.i.l.s16 %v7571_v0  ;;  %v4108_v19 = vmin.f32 %v3912_v47, 32767.0  ;;  %v1690_v26 = vmax.f32 %v7061_v62, -32768.0 }
 0x22b   : > { %v4109_v53 = vmin.f32 %v3913_v20, 32767.0  ;;  %v6681_v50 = vcvt.s32.f32 %v6680_v46  ;;  %v6683_v14 = vand.u32 2147483648, %v1447_v36  ;;  %v1399_v33 = vmax.f32 %v1195_v41, 0.0 }
 0x22c   : > { %v5950_v49 = vunpack.i.l.s16 %v7573_v44  ;;  %v7366_v63 = vtrunc.f32 %v4108_v19  ;;  %v1788_v58 = vmin.f32 %v1690_v26, 32767.0  ;;  %vm8445_vm12 = vcmp.lt.f32.partialorder %v6678_v45, 8388608.0 }
 0x22d   : > { %v8449_v10 = vrot.slane %v5949_v48, 6  ;;  %v7368_v2 = vtrunc.f32 %v4109_v53  ;;  %v6682_v4 = vand.u32 2147483647, %v6681_v50  ;;  %v1497_v59 = vmul.f32 256.0, %v1399_v33 }
 0x22e   : > { %v7367_v40 = vcvt.f32.s32 %v7366_v63  ;;  %v1984_v28 = vcombine.high %v1788_v58, %v1788_v58  ;;  %v5555_v18 = vrot.slane %v1788_v58, 9  ;;  %v1348_v3 = vmax.f32 %v940_v8, 0.0 }
 0x22f   : > { %v7369_v60 = vcvt.f32.s32 %v7368_v2  ;;  %v6684_v52 = vor.u32 %v6683_v14, %v6682_v4  ;;  %v7078_v43 = vand.u32 2147483647, %v1497_v59  ;;  %v7080_v30 = vcvt.f32.s32 %v1497_v59 }
 0x230   : > { %v5847_v38 = vunpack.i.l.s16 %v7367_v40  ;;  %v5556_v9 = vrot.slane %v1984_v28, 9  ;;  %v2836_v6 = vmax.f32 %v1788_v58, %v5555_v18  ;;  %v7083_v16 = vand.u32 2147483648, %v1497_v59 }
 0x231   : > { %v5848_v5 = vunpack.i.l.s16 %v7369_v60  ;;  %v6685_v39 = vsel %vm8445_vm12, %v6684_v52, %v1447_v36  ;;  %vm8453_vm14 = vcmp.lt.f32.partialorder %v7078_v43, 8388608.0  ;;  %v7081_v27 = vcvt.s32.f32 %v7080_v30 }
 0x232   : > { %v4925_v24 = vrot.slane %v5847_v38, 4  ;;  %v2837_v61 = vmax.f32 %v1984_v28, %v5556_v9  ;;  %v5751_v25 = vrot.slane %v2836_v6, 10  ;;  %v1643_v57 = vmax.f32 %v6685_v39, -32768.0  ;;  %v6392_v28 = vpop.f32.mrf.mxu0 }
 0x233   : > { %v4927_v37 = vrot.slane %v5848_v5, 3  ;;  %v7082_v21 = vand.u32 2147483647, %v7081_v27  ;;  %v1446_v7 = vmul.f32 256.0, %v1348_v3  ;;  %v1190_v11 = vadd.f32 %v8298_v22, %v1189_v12 }
 0x234   : > { %v4926_v17 = vsel %vm4866_vm13, %v4925_v24, %v8415_v54  ;;  %v5752_v13 = vrot.slane %v2837_v61, 10  ;;  %v3816_v29 = vmax.f32 %v2836_v6, %v5751_v25  ;;  %v1741_v36 = vmin.f32 %v1643_v57, 32767.0 }
 0x235   : > { %v4928_v41 = vsel %vm4869_vm15, %v4927_v37, %v4926_v17  ;;  %v7084_v0 = vor.u32 %v7083_v16, %v7082_v21  ;;  %v6670_v55 = vand.u32 2147483647, %v1446_v7  ;;  %v6672_v47 = vcvt.f32.s32 %v1446_v7 }
 0x236   : > { %v4930_v45 = vsel %vm4872_vm0, %v8433_v35, %v4928_v41  ;;  %v3817_v20 = vmax.f32 %v2837_v61, %v5752_v13  ;;  %v4012_v62 = vmax.f32 %v3816_v29, -32768.0  ;;  %v1937_v46 = vcombine.high %v1741_v36, %v1741_v36 }
 0x237   : > { %v8463_v8 = vrot.slane %v5950_v49, 5  ;;  %v4932_v54 = vsel %vm4875_vm1, %v8438_v56, %v4930_v45  ;;  %v5461_v44 = vrot.slane %v1741_v36, 9  ;;  %v7085_v48 = vsel %vm8453_vm14, %v7084_v0, %v1497_v59 }
 0x238   : > { %v5209_v19 = vpack.c.b16 %v4932_v54, %v4932_v54  ;;  %v4013_v26 = vmax.f32 %v3817_v20, -32768.0  ;;  %v4208_v53 = vmin.f32 %v4012_v62, 32767.0  ;;  %v5462_v50 = vrot.slane %v1937_v46, 9 }
 0x239   : > { %v2742_v14 = vmax.f32 %v1741_v36, %v5461_v44  ;;  %v1693_v33 = vmax.f32 %v7085_v48, -32768.0  ;;  %vm8469_vm3 = vcmp.lt.f32.partialorder %v6670_v55, 8388608.0  ;;  %v6673_v63 = vcvt.s32.f32 %v6672_v47 }
 0x23a   : > { %5235 = vst.msk [vmem:[%s8014_s27 + $0x10] sm:$0xf] %vm5230_vm2, %v5209_v19  ;;  %v4209_v49 = vmin.f32 %v4013_v26, 32767.0  ;;  %v7566_v58 = vtrunc.f32 %v4208_v53  ;;  %v2743_v56 = vmax.f32 %v1937_v46, %v5462_v50  ;;  %v1398_v1 = vmax.f32 %v1190_v11, 0.0 }
 0x23b   : > { %v5657_v2 = vrot.slane %v2742_v14, 10  ;;  %v1791_v4 = vmin.f32 %v1693_v33, 32767.0  ;;  %v6674_v59 = vand.u32 2147483647, %v6673_v63  ;;  %v6675_v40 = vand.u32 2147483648, %v1446_v7 }
 0x23c   : > { %v7567_v18 = vcvt.f32.s32 %v7566_v58  ;;  %v7568_v3 = vtrunc.f32 %v4209_v49  ;;  %v5658_v60 = vrot.slane %v2743_v56, 10  ;;  %v1496_v52 = vmul.f32 256.0, %v1398_v1 }
 0x23d   : > { %v3722_v43 = vmax.f32 %v2742_v14, %v5657_v2  ;;  %v1987_v30 = vcombine.high %v1791_v4, %v1791_v4  ;;  %v5561_v38 = vrot.slane %v1791_v4, 9  ;;  %v6676_v9 = vor.u32 %v6675_v40, %v6674_v59 }
 0x23e   : > { %v7569_v6 = vcvt.f32.s32 %v7568_v3  ;;  %v5947_v16 = vunpack.i.l.s16 %v7567_v18  ;;  %v3723_v12 = vmax.f32 %v2743_v56, %v5658_v60  ;;  %v955_v5 = vadd.f32 %v8298_v22, %v6392_v28  ;;  %v6467_v18 = vpop.f32.mrf.mxu1 }
 0x23f   : > { %v3918_v39 = vmax.f32 %v3722_v43, -32768.0  ;;  %v5562_v42 = vrot.slane %v1987_v30, 9  ;;  %v2842_v27 = vmax.f32 %v1791_v4, %v5561_v38  ;;  %v6677_v24 = vsel %vm8469_vm3, %v6676_v9, %v1446_v7 }
 0x240   : > { %v5948_v61 = vunpack.i.l.s16 %v7569_v6  ;;  %v3919_v25 = vmax.f32 %v3723_v12, -32768.0  ;;  %v1642_v57 = vmax.f32 %v6677_v24, -32768.0  ;;  %v7070_v37 = vand.u32 2147483647, %v1496_v52  ;;  %v949_v12 = vpop.f32.mrf.mxu0 }
 0x241   : > { %v4114_v21 = vmin.f32 %v3918_v39, 32767.0  ;;  %v2843_v11 = vmax.f32 %v1987_v30, %v5562_v42  ;;  %v5757_v17 = vrot.slane %v2842_v27, 10  ;;  %v7072_v13 = vcvt.f32.s32 %v1496_v52 }
 0x242   : > { %v5101_v29 = vrot.slane %v5948_v61, 7  ;;  %v4115_v36 = vmin.f32 %v3919_v25, 32767.0  ;;  %v1740_v41 = vmin.f32 %v1642_v57, 32767.0  ;;  %v7075_v0 = vand.u32 2147483648, %v1496_v52 }
 0x243   : > { %v7378_v55 = vtrunc.f32 %v4114_v21  ;;  %v5758_v47 = vrot.slane %v2843_v11, 10  ;;  %v3822_v45 = vmax.f32 %v2842_v27, %v5757_v17  ;;  %v7073_v20 = vcvt.s32.f32 %v7072_v13 }
 0x244   : > { %v5102_v62 = vsel %vm4857_vm5, %v5101_v29, %v5947_v16  ;;  %v7380_v46 = vtrunc.f32 %v4115_v36  ;;  %v1936_v7 = vcombine.high %v1740_v41, %v1740_v41  ;;  %v5459_v54 = vrot.slane %v1740_v41, 9 }
 0x245   : > { %v5104_v44 = vsel %vm4860_vm6, %v8449_v10, %v5102_v62  ;;  %v7379_v48 = vcvt.f32.s32 %v7378_v55  ;;  %v3823_v19 = vmax.f32 %v2843_v11, %v5758_v47  ;;  %v4018_v26 = vmax.f32 %v3822_v45, -32768.0 }
 0x246   : > { %v7381_v53 = vcvt.f32.s32 %v7380_v46  ;;  %v5460_v50 = vrot.slane %v1936_v7, 9  ;;  %v2740_v14 = vmax.f32 %v1740_v41, %v5459_v54  ;;  %v7074_v33 = vand.u32 2147483647, %v7073_v20  ;;  %v1199_v46 = vpop.f32.mrf.mxu1 }
 0x247   : > { %v5853_v35 = vunpack.i.l.s16 %v7379_v48  ;;  %v4019_v63 = vmax.f32 %v3823_v19, -32768.0  ;;  %v4214_v49 = vmin.f32 %v4018_v26, 32767.0  ;;  %vm8481_vm4 = vcmp.lt.f32.partialorder %v7070_v37, 8388608.0 }
 0x248   : > { %v5854_v56 = vunpack.i.l.s16 %v7381_v53  ;;  %v2741_v1 = vmax.f32 %v1936_v7, %v5460_v50  ;;  %v5655_v2 = vrot.slane %v2740_v14, 10  ;;  %v7076_v4 = vor.u32 %v7075_v0, %v7074_v33 }
 0x249   : > { %v4215_v59 = vmin.f32 %v4019_v63, 32767.0  ;;  %v7578_v10 = vtrunc.f32 %v4214_v49  ;;  %v8487_v40 = vsel %vm4863_vm9, %v8463_v8, %v5104_v44  ;;  %v1351_v28 = vmax.f32 %v955_v5, 0.0 }
 0x24a   : > { %v8489_v3 = vrot.slane %v5853_v35, 6  ;;  %v5656_v60 = vrot.slane %v2741_v1, 10  ;;  %v3720_v43 = vmax.f32 %v2740_v14, %v5655_v2  ;;  %v7077_v30 = vsel %vm8481_vm4, %v7076_v4, %v1496_v52  ;;  %v8508_v35 = vld [vmem:[%s9256_s2] ss:$0 sm:$0xff] }
 0x24b   : > { %v7579_v38 = vcvt.f32.s32 %v7578_v10  ;;  %v7580_v9 = vtrunc.f32 %v4215_v59  ;;  %v1692_v6 = vmax.f32 %v7077_v30, -32768.0  ;;  %v1449_v16 = vmul.f32 256.0, %v1351_v28 }
 0x24c   : > { %v8493_v39 = vrot.slane %v5854_v56, 5  ;;  %v3721_v42 = vmax.f32 %v2741_v1, %v5656_v60  ;;  %v3916_v27 = vmax.f32 %v3720_v43, -32768.0  ;;  %v1205_v8 = vadd.f32 %v8298_v22, %v6467_v18 }
 0x24d   : > { %v7581_v5 = vcvt.f32.s32 %v7580_v9  ;;  %v5953_v24 = vunpack.i.l.s16 %v7579_v38  ;;  %v1790_v61 = vmin.f32 %v1692_v6, 32767.0  ;;  %v6694_v25 = vand.u32 2147483647, %v1449_v16 }
 0x24e   : > { %v3917_v57 = vmax.f32 %v3721_v42, -32768.0  ;;  %v4112_v37 = vmin.f32 %v3916_v27, 32767.0  ;;  %v6696_v21 = vcvt.f32.s32 %v1449_v16  ;;  %v950_v52 = vadd.f32 %v8298_v22, %v949_v12 }
 0x24f   : > { %v5954_v11 = vunpack.i.l.s16 %v7581_v5  ;;  %v1986_v17 = vcombine.high %v1790_v61, %v1790_v61  ;;  %v5559_v13 = vrot.slane %v1790_v61, 9  ;;  %v6699_v29 = vand.u32 2147483648, %v1449_v16 }
 0x250   : > { %v8497_v36 = vrot.slane %v5953_v24, 2  ;;  %v4113_v41 = vmin.f32 %v3917_v57, 32767.0  ;;  %v7374_v0 = vtrunc.f32 %v4112_v37  ;;  %v6697_v55 = vcvt.s32.f32 %v6696_v21 }
 0x251   : > { %v5560_v47 = vrot.slane %v1986_v17, 9  ;;  %v2840_v45 = vmax.f32 %v1790_v61, %v5559_v13  ;;  %vm8499_vm7 = vcmp.lt.f32.partialorder %v6694_v25, 8388608.0  ;;  %v1401_v62 = vmax.f32 %v1205_v8, 0.0 }
 0x252   : > { %v7375_v7 = vcvt.f32.s32 %v7374_v0  ;;  %v7376_v54 = vtrunc.f32 %v4113_v41  ;;  %v6698_v22 = vand.u32 2147483647, %v6697_v55  ;;  %v1350_v44 = vmax.f32 %v950_v52, 0.0  ;;  %v6395_v52 = vpop.f32.mrf.mxu0 }
 0x253   : > { %v8503_v48 = vrot.slane %v5954_v11, 1  ;;  %v2841_v19 = vmax.f32 %v1986_v17, %v5560_v47  ;;  %v5755_v26 = vrot.slane %v2840_v45, 10  ;;  %v1499_v53 = vmul.f32 256.0, %v1401_v62 }
 0x254   : > { %v7377_v50 = vcvt.f32.s32 %v7376_v54  ;;  %v6700_v14 = vor.u32 %v6699_v29, %v6698_v22  ;;  %v1448_v33 = vmul.f32 256.0, %v1350_v44  ;;  %v1200_v63 = vadd.f32 %v8508_v35, %v1199_v46 }
 0x255   : > { %v5756_v49 = vrot.slane %v2841_v19, 10  ;;  %v3820_v58 = vmax.f32 %v2840_v45, %v5755_v26  ;;  %v7094_v56 = vand.u32 2147483647, %v1499_v53  ;;  %v7096_v1 = vcvt.f32.s32 %v1499_v53 }
 0x256   : > { %v5851_v2 = vunpack.i.l.s16 %v7375_v7  ;;  %v5852_v4 = vunpack.i.l.s16 %v7377_v50  ;;  %v6701_v59 = vsel %vm8499_vm7, %v6700_v14, %v1449_v16  ;;  %v6686_v10 = vand.u32 2147483647, %v1448_v33 }
 0x257   : > { %v3821_v28 = vmax.f32 %v2841_v19, %v5756_v49  ;;  %v4016_v18 = vmax.f32 %v3820_v58, -32768.0  ;;  %v1645_v60 = vmax.f32 %v6701_v59, -32768.0  ;;  %v7099_v43 = vand.u32 2147483648, %v1499_v53 }
 0x258   : > { %v4933_v30 = vrot.slane %v5852_v4, 7  ;;  %vm8513_vm8 = vcmp.lt.f32.partialorder %v7094_v56, 8388608.0  ;;  %v7097_v9 = vcvt.s32.f32 %v7096_v1  ;;  %v6688_v6 = vcvt.f32.s32 %v1448_v33 }
 0x259   : > { %v4017_v12 = vmax.f32 %v3821_v28, -32768.0  ;;  %v4212_v42 = vmin.f32 %v4016_v18, 32767.0  ;;  %v1743_v27 = vmin.f32 %v1645_v60, 32767.0  ;;  %vm8517_vm10 = vcmp.lt.f32.partialorder %v6686_v10, 8388608.0 }
 0x25a   : > { %v4934_v16 = vsel %vm4857_vm5, %v4933_v30, %v5851_v2  ;;  %v7098_v5 = vand.u32 2147483647, %v7097_v9  ;;  %v6689_v24 = vcvt.s32.f32 %v6688_v6  ;;  %v1400_v61 = vmax.f32 %v1200_v63, 0.0 }
 0x25b   : > { %v4213_v25 = vmin.f32 %v4017_v12, 32767.0  ;;  %v7574_v57 = vtrunc.f32 %v4212_v42  ;;  %v1939_v37 = vcombine.high %v1743_v27, %v1743_v27  ;;  %v6691_v21 = vand.u32 2147483648, %v1448_v33 }
 0x25c   : > { %v8524_v11 = vsel %vm4860_vm6, %v8489_v3, %v4934_v16  ;;  %v5465_v17 = vrot.slane %v1743_v27, 9  ;;  %v7100_v13 = vor.u32 %v7099_v43, %v7098_v5  ;;  %v6690_v29 = vand.u32 2147483647, %v6689_v24 }
 0x25d   : > { %v7575_v41 = vcvt.f32.s32 %v7574_v57  ;;  %v7576_v0 = vtrunc.f32 %v4213_v25  ;;  %v5466_v55 = vrot.slane %v1939_v37, 9  ;;  %v1498_v47 = vmul.f32 256.0, %v1400_v61 }
 0x25e   : > { %v2746_v45 = vmax.f32 %v1743_v27, %v5465_v17  ;;  %v7101_v20 = vsel %vm8513_vm8, %v7100_v13, %v1499_v53  ;;  %v6692_v62 = vor.u32 %v6691_v21, %v6690_v29  ;;  %v965_v46 = vadd.f32 %v8508_v35, %v6395_v52 }
 0x25f   : > { %v7577_v7 = vcvt.f32.s32 %v7576_v0  ;;  %v5951_v54 = vunpack.i.l.s16 %v7575_v41  ;;  %v2747_v22 = vmax.f32 %v1939_v37, %v5466_v55  ;;  %v1695_v44 = vmax.f32 %v7101_v20, -32768.0 }
 0x260   : > { %v5661_v3 = vrot.slane %v2746_v45, 10  ;;  %v6693_v19 = vsel %vm8517_vm10, %v6692_v62, %v1448_v33  ;;  %v7086_v26 = vand.u32 2147483647, %v1498_v47  ;;  %v7088_v50 = vcvt.f32.s32 %v1498_v47 }
 0x261   : > { %v5952_v14 = vunpack.i.l.s16 %v7577_v7  ;;  %v5107_v63 = vrot.slane %v5951_v54, 4  ;;  %v5662_v49 = vrot.slane %v2747_v22, 10  ;;  %v1793_v58 = vmin.f32 %v1695_v44, 32767.0 }
 0x262   : > { %v3726_v56 = vmax.f32 %v2746_v45, %v5661_v3  ;;  %v1644_v1 = vmax.f32 %v6693_v19, -32768.0  ;;  %vm8531_vm11 = vcmp.lt.f32.partialorder %v7086_v26, 8388608.0  ;;  %v7089_v2 = vcvt.s32.f32 %v7088_v50 }
 0x263   : > { %v5108_v4 = vsel %vm4866_vm13, %v5107_v63, %v8487_v40  ;;  %v5109_v59 = vrot.slane %v5952_v14, 3  ;;  %v3727_v10 = vmax.f32 %v2747_v22, %v5662_v49  ;;  %v1989_v28 = vcombine.high %v1793_v58, %v1793_v58 }
 0x264   : > { %v3922_v33 = vmax.f32 %v3726_v56, -32768.0  ;;  %v5565_v18 = vrot.slane %v1793_v58, 9  ;;  %v1742_v60 = vmin.f32 %v1644_v1, 32767.0  ;;  %v7090_v43 = vand.u32 2147483647, %v7089_v2 }
 0x265   : > { %v5110_v30 = vsel %vm4869_vm15, %v5109_v59, %v5108_v4  ;;  %v3923_v38 = vmax.f32 %v3727_v10, -32768.0  ;;  %v5566_v9 = vrot.slane %v1989_v28, 9  ;;  %v7091_v6 = vand.u32 2147483648, %v1498_v47 }
 0x266   : > { %v5112_v12 = vsel %vm4872_vm0, %v8497_v36, %v5110_v30  ;;  %v4118_v42 = vmin.f32 %v3922_v33, 32767.0  ;;  %v2846_v27 = vmax.f32 %v1793_v58, %v5565_v18  ;;  %v1938_v8 = vcombine.high %v1742_v60, %v1742_v60 }
 0x267   : > { %v5114_v40 = vsel %vm4875_vm1, %v8503_v48, %v5112_v12  ;;  %v4119_v16 = vmin.f32 %v3923_v38, 32767.0  ;;  %v2847_v5 = vmax.f32 %v1989_v28, %v5566_v9  ;;  %v5463_v24 = vrot.slane %v1742_v60, 9 }
 0x268   : > { %v5222_v61 = vpack.c.b16 %v5114_v40, %v5114_v40  ;;  %v7386_v25 = vtrunc.f32 %v4118_v42  ;;  %v5761_v57 = vrot.slane %v2846_v27, 10  ;;  %v5464_v37 = vrot.slane %v1938_v8, 9 }
 0x269   : > { %v7388_v21 = vtrunc.f32 %v4119_v16  ;;  %v5762_v52 = vrot.slane %v2847_v5, 10  ;;  %v2744_v17 = vmax.f32 %v1742_v60, %v5463_v24  ;;  %v7092_v13 = vor.u32 %v7091_v6, %v7090_v43  ;;  %v6470_v60 = vpop.f32.mrf.mxu1 }
 0x26a   : > { %5248 = vst.msk [vmem:[%s8014_s27 + $0x44] sm:$0xf] %vm5230_vm2, %v5222_v61  ;;  %v7387_v36 = vcvt.f32.s32 %v7386_v25  ;;  %v3826_v29 = vmax.f32 %v2846_v27, %v5761_v57  ;;  %v2745_v41 = vmax.f32 %v1938_v8, %v5464_v37  ;;  %v1353_v0 = vmax.f32 %v965_v46, 0.0  ;;  %v959_v25 = vpop.f32.mrf.mxu0 }
 0x26b   : > { %v7389_v55 = vcvt.f32.s32 %v7388_v21  ;;  %v3827_v45 = vmax.f32 %v2847_v5, %v5762_v52  ;;  %v5659_v48 = vrot.slane %v2744_v17, 10  ;;  %v7093_v20 = vsel %vm8531_vm11, %v7092_v13, %v1498_v47 }
 0x26c   : > { %v5857_v62 = vunpack.i.l.s16 %v7387_v36  ;;  %v4022_v7 = vmax.f32 %v3826_v29, -32768.0  ;;  %v5660_v54 = vrot.slane %v2745_v41, 10  ;;  %v1694_v22 = vmax.f32 %v7093_v20, -32768.0 }
 0x26d   : > { %v8550_v44 = vor.u32 %v6915_v32, %v6914_v31  ;;  %v4023_v3 = vmax.f32 %v3827_v45, -32768.0  ;;  %v3724_v19 = vmax.f32 %v2744_v17, %v5659_v48  ;;  %v1451_v26 = vmul.f32 256.0, %v1353_v0 }
 0x26e   : > { %v4218_v46 = vmin.f32 %v4022_v7, 32767.0  ;;  %v3725_v50 = vmax.f32 %v2745_v41, %v5660_v54  ;;  %v4938_v14 = vsel %vm4863_vm9, %v8493_v39, %v8524_v11  ;;  %v1792_v47 = vmin.f32 %v1694_v22, 32767.0  ;;  %v1209_v41 = vpop.f32.mrf.mxu1 }
 0x26f   : > { %v5858_v63 = vunpack.i.l.s16 %v7389_v55  ;;  %v4943_v49 = vrot.slane %v5857_v62, 2  ;;  %v4219_v58 = vmin.f32 %v4023_v3, 32767.0  ;;  %v3920_v56 = vmax.f32 %v3724_v19, -32768.0 }
 0x270   : > { %v7586_v1 = vtrunc.f32 %v4218_v46  ;;  %v3921_v15 = vmax.f32 %v3725_v50, -32768.0  ;;  %v1988_v53 = vcombine.high %v1792_v47, %v1792_v47  ;;  %v5563_v2 = vrot.slane %v1792_v47, 9 }
 0x271   : > { %v7588_v31 = vtrunc.f32 %v4219_v58  ;;  %v4116_v32 = vmin.f32 %v3920_v56, 32767.0  ;;  %v6710_v4 = vand.u32 2147483647, %v1451_v26  ;;  %v6712_v59 = vcvt.f32.s32 %v1451_v26 }
 0x272   : > { %v7587_v10 = vcvt.f32.s32 %v7586_v1  ;;  %v4117_v28 = vmin.f32 %v3921_v15, 32767.0  ;;  %v5564_v33 = vrot.slane %v1988_v53, 9  ;;  %v2844_v18 = vmax.f32 %v1792_v47, %v5563_v2 }
 0x273   : > { %v4945_v43 = vrot.slane %v5858_v63, 1  ;;  %v8555_v39 = vcvt.f32.s32 %v7588_v31  ;;  %v7382_v11 = vtrunc.f32 %v4116_v32  ;;  %v6713_v30 = vcvt.s32.f32 %v6712_v59 }
 0x274   : > { %v5957_v38 = vunpack.i.l.s16 %v7587_v10  ;;  %v7384_v9 = vtrunc.f32 %v4117_v28  ;;  %v2845_v6 = vmax.f32 %v1988_v53, %v5564_v33  ;;  %v5759_v12 = vrot.slane %v2844_v18, 10 }
 0x275   : > { %v7383_v42 = vcvt.f32.s32 %v7382_v11  ;;  %v6714_v27 = vand.u32 2147483647, %v6713_v30  ;;  %v6715_v8 = vand.u32 2147483648, %v1451_v26  ;;  %v1215_v40 = vadd.f32 %v8508_v35, %v6470_v60 }
 0x276   : > { %v7385_v16 = vcvt.f32.s32 %v7384_v9  ;;  %v5760_v5 = vrot.slane %v2845_v6, 10  ;;  %v3824_v24 = vmax.f32 %v2844_v18, %v5759_v12  ;;  %vm8558_vm12 = vcmp.lt.f32.partialorder %v6710_v4, 8388608.0 }
 0x277   : > { %v5958_v57 = vunpack.i.l.s16 %v8555_v39  ;;  %v5855_v37 = vunpack.i.l.s16 %v7383_v42  ;;  %v6716_v21 = vor.u32 %v6715_v8, %v6714_v27  ;;  %v1403_v52 = vmax.f32 %v1215_v40, 0.0 }
 0x278   : > { %v8563_v17 = vrot.slane %v5957_v38, 6  ;;  %v5856_v13 = vunpack.i.l.s16 %v7385_v16  ;;  %v3825_v36 = vmax.f32 %v2845_v6, %v5760_v5  ;;  %v4020_v29 = vmax.f32 %v3824_v24, -32768.0 }
 0x279   : > { %v4939_v0 = vrot.slane %v5855_v37, 4  ;;  %v6717_v55 = vsel %vm8558_vm12, %v6716_v21, %v1451_v26  ;;  %v1501_v45 = vmul.f32 256.0, %v1403_v52  ;;  %v960_v48 = vadd.f32 %v8508_v35, %v959_v25 }
 0x27a   : > { %v4941_v20 = vrot.slane %v5856_v13, 3  ;;  %v4021_v62 = vmax.f32 %v3825_v36, -32768.0  ;;  %v4216_v7 = vmin.f32 %v4020_v29, 32767.0  ;;  %v1647_v54 = vmax.f32 %v6717_v55, -32768.0 }
 0x27b   : > { %v4940_v22 = vsel %vm4866_vm13, %v4939_v0, %v4938_v14  ;;  %v7110_v3 = vand.u32 2147483647, %v1501_v45  ;;  %v7112_v19 = vcvt.f32.s32 %v1501_v45  ;;  %v1210_v46 = vadd.f32 %v8508_v35, %v1209_v41  ;;  %v6398_v0 = vpop.f32.mrf.mxu0 }
 0x27c   : > { %v4942_v50 = vsel %vm4869_vm15, %v4941_v20, %v4940_v22  ;;  %v4217_v47 = vmin.f32 %v4021_v62, 32767.0  ;;  %v7582_v63 = vtrunc.f32 %v4216_v7  ;;  %v1745_v58 = vmin.f32 %v1647_v54, 32767.0 }
 0x27d   : > { %v4944_v26 = vsel %vm4872_vm0, %v4943_v49, %v4942_v50  ;;  %v7113_v56 = vcvt.s32.f32 %v7112_v19  ;;  %v7115_v1 = vand.u32 2147483648, %v1501_v45  ;;  %v1352_v15 = vmax.f32 %v960_v48, 0.0 }
 0x27e   : > { %v4946_v53 = vsel %vm4875_vm1, %v4945_v43, %v4944_v26  ;;  %v7583_v2 = vcvt.f32.s32 %v7582_v63  ;;  %v7584_v31 = vtrunc.f32 %v4217_v47  ;;  %v1941_v14 = vcombine.high %v1745_v58, %v1745_v58 }
 0x27f   : > { %v5210_v32 = vpack.c.b16 %v4946_v53, %v4946_v53  ;;  %v5469_v4 = vrot.slane %v1745_v58, 9  ;;  %v7114_v59 = vand.u32 2147483647, %v7113_v56  ;;  %v1450_v10 = vmul.f32 256.0, %v1352_v15 }
 0x280   : > { %v7585_v28 = vcvt.f32.s32 %v7584_v31  ;;  %v5470_v33 = vrot.slane %v1941_v14, 9  ;;  %vm8573_vm14 = vcmp.lt.f32.partialorder %v7110_v3, 8388608.0  ;;  %v1402_v49 = vmax.f32 %v1210_v46, 0.0  ;;  %v6473_v3 = vpop.f32.mrf.mxu1 }
 0x281   : > { %5236 = vst.msk [vmem:[%s8014_s27 + $0x14] sm:$0xf] %vm5230_vm2, %v5210_v32  ;;  %v2750_v60 = vmax.f32 %v1745_v58, %v5469_v4  ;;  %v7116_v11 = vor.u32 %v7115_v1, %v7114_v59  ;;  %v6702_v30 = vand.u32 2147483647, %v1450_v10  ;;  %v6704_v43 = vcvt.f32.s32 %v1450_v10 }
 0x282   : > { %v5955_v38 = vunpack.i.l.s16 %v7583_v2  ;;  %v5956_v9 = vunpack.i.l.s16 %v7585_v28  ;;  %v2751_v6 = vmax.f32 %v1941_v14, %v5470_v33  ;;  %v1500_v12 = vmul.f32 256.0, %v1402_v49 }
 0x283   : > { %v5665_v42 = vrot.slane %v2750_v60, 10  ;;  %v7117_v27 = vsel %vm8573_vm14, %v7116_v11, %v1501_v45  ;;  %v6705_v8 = vcvt.s32.f32 %v6704_v43  ;;  %v6707_v40 = vand.u32 2147483648, %v1450_v10 }
 0x284   : > { %v5115_v16 = vrot.slane %v5956_v9, 7  ;;  %v5666_v5 = vrot.slane %v2751_v6, 10  ;;  %v1697_v24 = vmax.f32 %v7117_v27, -32768.0  ;;  %v7102_v61 = vand.u32 2147483647, %v1500_v12 }
 0x285   : > { %v3730_v25 = vmax.f32 %v2750_v60, %v5665_v42  ;;  %vm8581_vm3 = vcmp.lt.f32.partialorder %v6702_v30, 8388608.0  ;;  %v6706_v21 = vand.u32 2147483647, %v6705_v8  ;;  %v7104_v52 = vcvt.f32.s32 %v1500_v12 }
 0x286   : > { %v5116_v13 = vsel %vm4857_vm5, %v5115_v16, %v5955_v38  ;;  %v3731_v36 = vmax.f32 %v2751_v6, %v5666_v5  ;;  %v1795_v29 = vmin.f32 %v1697_v24, 32767.0  ;;  %v7107_v41 = vand.u32 2147483648, %v1500_v12 }
 0x287   : > { %v3926_v55 = vmax.f32 %v3730_v25, -32768.0  ;;  %v6708_v45 = vor.u32 %v6707_v40, %v6706_v21  ;;  %vm8586_vm4 = vcmp.lt.f32.partialorder %v7102_v61, 8388608.0  ;;  %v7105_v20 = vcvt.s32.f32 %v7104_v52 }
 0x288   : > { %v5118_v62 = vsel %vm4860_vm6, %v8563_v17, %v5116_v13  ;;  %v3927_v7 = vmax.f32 %v3731_v36, -32768.0  ;;  %v1991_v54 = vcombine.high %v1795_v29, %v1795_v29  ;;  %v5569_v22 = vrot.slane %v1795_v29, 9 }
 0x289   : > { %v4122_v19 = vmin.f32 %v3926_v55, 32767.0  ;;  %v6709_v46 = vsel %vm8581_vm3, %v6708_v45, %v1450_v10  ;;  %v7106_v50 = vand.u32 2147483647, %v7105_v20  ;;  %v975_v47 = vadd.f32 %v8508_v35, %v6398_v0 }
 0x28a   : > { %v4123_v63 = vmin.f32 %v3927_v7, 32767.0  ;;  %v5570_v58 = vrot.slane %v1991_v54, 9  ;;  %v2850_v26 = vmax.f32 %v1795_v29, %v5569_v22  ;;  %v1646_v56 = vmax.f32 %v6709_v46, -32768.0 }
 0x28b   : > { %v7394_v1 = vtrunc.f32 %v4122_v19  ;;  %v7108_v15 = vor.u32 %v7107_v41, %v7106_v50  ;;  %v1355_v53 = vmax.f32 %v975_v47, 0.0  ;;  %v1225_v17 = vadd.f32 %v8508_v35, %v6473_v3 }
 0x28c   : > { %v7396_v2 = vtrunc.f32 %v4123_v63  ;;  %v2851_v31 = vmax.f32 %v1991_v54, %v5570_v58  ;;  %v5765_v14 = vrot.slane %v2850_v26, 10  ;;  %v1744_v32 = vmin.f32 %v1646_v56, 32767.0 }
 0x28d   : > { %v5119_v4 = vrot.slane %v5958_v57, 5  ;;  %v7395_v59 = vcvt.f32.s32 %v7394_v1  ;;  %v7109_v10 = vsel %vm8586_vm4, %v7108_v15, %v1500_v12  ;;  %v1453_v28 = vmul.f32 256.0, %v1355_v53 }
 0x28e   : > { %v7397_v33 = vcvt.f32.s32 %v7396_v2  ;;  %v5766_v18 = vrot.slane %v2851_v31, 10  ;;  %v3830_v49 = vmax.f32 %v2850_v26, %v5765_v14  ;;  %v1940_v60 = vcombine.high %v1744_v32, %v1744_v32 }
 0x28f   : > { %v5861_v11 = vunpack.i.l.s16 %v7395_v59  ;;  %v5467_v30 = vrot.slane %v1744_v32, 9  ;;  %v1696_v43 = vmax.f32 %v7109_v10, -32768.0  ;;  %v8601_v38 = vsel %vm4863_vm9, %v5119_v4, %v5118_v62  ;;  %v969_v4 = vpop.f32.mrf.mxu0 }
 0x290   : > { %v3831_v9 = vmax.f32 %v2851_v31, %v5766_v18  ;;  %v4026_v6 = vmax.f32 %v3830_v49, -32768.0  ;;  %v5468_v42 = vrot.slane %v1940_v60, 9  ;;  %v1405_v39 = vmax.f32 %v1225_v17, 0.0  ;;  %v1219_v49 = vpop.f32.mrf.mxu1 }
 0x291   : > { %v5862_v57 = vunpack.i.l.s16 %v7397_v33  ;;  %v2748_v27 = vmax.f32 %v1744_v32, %v5467_v30  ;;  %v1794_v8 = vmin.f32 %v1696_v43, 32767.0  ;;  %v6726_v40 = vand.u32 2147483647, %v1453_v28 }
 0x292   : > { %v8603_v12 = vrot.slane %v5861_v11, 6  ;;  %v4027_v16 = vmax.f32 %v3831_v9, -32768.0  ;;  %v4222_v5 = vmin.f32 %v4026_v6, 32767.0  ;;  %v2749_v24 = vmax.f32 %v1940_v60, %v5468_v42 }
 0x293   : > { %v5663_v61 = vrot.slane %v2748_v27, 10  ;;  %v1990_v25 = vcombine.high %v1794_v8, %v1794_v8  ;;  %v5567_v37 = vrot.slane %v1794_v8, 9  ;;  %v6728_v21 = vcvt.f32.s32 %v1453_v28 }
 0x294   : > { %v4223_v52 = vmin.f32 %v4027_v16, 32767.0  ;;  %v7594_v13 = vtrunc.f32 %v4222_v5  ;;  %v5664_v36 = vrot.slane %v2749_v24, 10  ;;  %v6731_v29 = vand.u32 2147483648, %v1453_v28 }
 0x295   : > { %v3728_v41 = vmax.f32 %v2748_v27, %v5663_v61  ;;  %v5568_v0 = vrot.slane %v1990_v25, 9  ;;  %v2848_v55 = vmax.f32 %v1794_v8, %v5567_v37  ;;  %v6729_v45 = vcvt.s32.f32 %v6728_v21 }
 0x296   : > { %v7595_v48 = vcvt.f32.s32 %v7594_v13  ;;  %v7596_v20 = vtrunc.f32 %v4223_v52  ;;  %v3729_v62 = vmax.f32 %v2749_v24, %v5664_v36  ;;  %v1503_v7 = vmul.f32 256.0, %v1405_v39 }
 0x297   : > { %v3924_v54 = vmax.f32 %v3728_v41, -32768.0  ;;  %v2849_v22 = vmax.f32 %v1990_v25, %v5568_v0  ;;  %v5763_v3 = vrot.slane %v2848_v55, 10  ;;  %v6730_v19 = vand.u32 2147483647, %v6729_v45 }
 0x298   : > { %v7597_v46 = vcvt.f32.s32 %v7596_v20  ;;  %v5961_v50 = vunpack.i.l.s16 %v7595_v48  ;;  %v3925_v47 = vmax.f32 %v3729_v62, -32768.0  ;;  %v7126_v63 = vand.u32 2147483647, %v1503_v7 }
 0x299   : > { %v4120_v58 = vmin.f32 %v3924_v54, 32767.0  ;;  %v5764_v26 = vrot.slane %v2849_v22, 10  ;;  %v3828_v56 = vmax.f32 %v2848_v55, %v5763_v3  ;;  %v6732_v1 = vor.u32 %v6731_v29, %v6730_v19 }
 0x29a   : > { %v8605_v15 = vrot.slane %v5862_v57, 5  ;;  %v5962_v53 = vunpack.i.l.s16 %v7597_v46  ;;  %v4121_v17 = vmin.f32 %v3925_v47, 32767.0  ;;  %vm6727_vm7 = vcmp.lt.f32.partialorder %v6726_v40, 8388608.0 }
 0x29b   : > { %v7390_v2 = vtrunc.f32 %v4120_v58  ;;  %v3829_v31 = vmax.f32 %v2849_v22, %v5764_v26  ;;  %v4024_v14 = vmax.f32 %v3828_v56, -32768.0  ;;  %v6733_v32 = vsel %vm6727_vm7, %v6732_v1, %v1453_v28 }
 0x29c   : > { %v5125_v59 = vrot.slane %v5961_v50, 2  ;;  %v7392_v10 = vtrunc.f32 %v4121_v17  ;;  %v1649_v33 = vmax.f32 %v6733_v32, -32768.0  ;;  %v7128_v18 = vcvt.f32.s32 %v1503_v7 }
 0x29d   : > { %v4025_v60 = vmax.f32 %v3829_v31, -32768.0  ;;  %v4220_v11 = vmin.f32 %v4024_v14, 32767.0  ;;  %vm8607_vm8 = vcmp.lt.f32.partialorder %v7126_v63, 8388608.0  ;;  %v7131_v43 = vand.u32 2147483648, %v1503_v7 }
 0x29e   : > { %v7393_v9 = vcvt.f32.s32 %v7392_v10  ;;  %v1747_v6 = vmin.f32 %v1649_v33, 32767.0  ;;  %v7129_v42 = vcvt.s32.f32 %v7128_v18  ;;  %v970_v39 = vadd.f32 %v8508_v35, %v969_v4 }
 0x29f   : > { %v7391_v57 = vcvt.f32.s32 %v7390_v2  ;;  %v4221_v28 = vmin.f32 %v4025_v60, 32767.0  ;;  %v7590_v27 = vtrunc.f32 %v4220_v11  ;;  %v1220_v8 = vadd.f32 %v8508_v35, %v1219_v49 }
 0x2a0   : > { %v5860_v40 = vunpack.i.l.s16 %v7393_v9  ;;  %v1943_v16 = vcombine.high %v1747_v6, %v1747_v6  ;;  %v5473_v5 = vrot.slane %v1747_v6, 9  ;;  %v7130_v24 = vand.u32 2147483647, %v7129_v42 }
 0x2a1   : > { %v7591_v61 = vcvt.f32.s32 %v7590_v27  ;;  %v7592_v25 = vtrunc.f32 %v4221_v28  ;;  %v1354_v37 = vmax.f32 %v970_v39, 0.0  ;;  %v1404_v21 = vmax.f32 %v1220_v8, 0.0  ;;  %v6401_v27 = vpop.f32.mrf.mxu0  ;;  %v6476_v8 = vpop.f32.mrf.mxu1 }
 0x2a2   : > { %v4947_v52 = vrot.slane %v5860_v40, 7  ;;  %v5474_v13 = vrot.slane %v1943_v16, 9  ;;  %v2754_v36 = vmax.f32 %v1747_v6, %v5473_v5  ;;  %v7132_v29 = vor.u32 %v7131_v43, %v7130_v24 }
 0x2a3   : > { %v5859_v41 = vunpack.i.l.s16 %v7391_v57  ;;  %v7593_v0 = vcvt.f32.s32 %v7592_v25  ;;  %v5959_v55 = vunpack.i.l.s16 %v7591_v61  ;;  %v1452_v45 = vmul.f32 256.0, %v1354_v37 }
 0x2a4   : > { %v5127_v48 = vrot.slane %v5962_v53, 1  ;;  %v2755_v20 = vmax.f32 %v1943_v16, %v5474_v13  ;;  %v5669_v62 = vrot.slane %v2754_v36, 10  ;;  %v7133_v54 = vsel %vm8607_vm8, %v7132_v29, %v1503_v7 }
 0x2a5   : > { %v4948_v22 = vsel %vm4857_vm5, %v4947_v52, %v5859_v41  ;;  %v5960_v3 = vunpack.i.l.s16 %v7593_v0  ;;  %v5121_v19 = vrot.slane %v5959_v55, 4  ;;  %v1699_v46 = vmax.f32 %v7133_v54, -32768.0 }
 0x2a6   : > { %v5670_v50 = vrot.slane %v2755_v20, 10  ;;  %v3734_v47 = vmax.f32 %v2754_v36, %v5669_v62  ;;  %v6720_v63 = vcvt.f32.s32 %v1452_v45  ;;  %v8616_v58 = vmul.f32 256.0, %v1404_v21 }
 0x2a7   : > { %v5122_v26 = vsel %vm4866_vm13, %v5121_v19, %v8601_v38  ;;  %v5123_v56 = vrot.slane %v5960_v3, 3  ;;  %v1797_v1 = vmin.f32 %v1699_v46, 32767.0  ;;  %v6718_v53 = vand.u32 2147483647, %v1452_v45 }
 0x2a8   : > { %v4950_v17 = vsel %vm4860_vm6, %v8603_v12, %v4948_v22  ;;  %v3735_v7 = vmax.f32 %v2755_v20, %v5670_v50  ;;  %v3930_v2 = vmax.f32 %v3734_v47, -32768.0  ;;  %v6721_v31 = vcvt.s32.f32 %v6720_v63 }
 0x2a9   : > { %v5124_v14 = vsel %vm4869_vm15, %v5123_v56, %v5122_v26  ;;  %v1993_v32 = vcombine.high %v1797_v1, %v1797_v1  ;;  %v5573_v4 = vrot.slane %v1797_v1, 9  ;;  %v6723_v10 = vand.u32 2147483648, %v1452_v45 }
 0x2aa   : > { %v5126_v33 = vsel %vm4872_vm0, %v5125_v59, %v5124_v14  ;;  %v3931_v18 = vmax.f32 %v3735_v7, -32768.0  ;;  %v4126_v49 = vmin.f32 %v3930_v2, 32767.0  ;;  %v6722_v38 = vand.u32 2147483647, %v6721_v31 }
 0x2ab   : > { %v5128_v60 = vsel %vm4875_vm1, %v5127_v48, %v5126_v33  ;;  %v5574_v11 = vrot.slane %v1993_v32, 9  ;;  %v2854_v30 = vmax.f32 %v1797_v1, %v5573_v4  ;;  %vm8625_vm10 = vcmp.lt.f32.partialorder %v6718_v53, 8388608.0 }
 0x2ac   : > { %v5223_v43 = vpack.c.b16 %v5128_v60, %v5128_v60  ;;  %v4127_v9 = vmin.f32 %v3931_v18, 32767.0  ;;  %v7402_v6 = vtrunc.f32 %v4126_v49  ;;  %v6724_v42 = vor.u32 %v6723_v10, %v6722_v38 }
 0x2ad   : > { %v2855_v39 = vmax.f32 %v1993_v32, %v5574_v11  ;;  %v5769_v57 = vrot.slane %v2854_v30, 10  ;;  %v7118_v59 = vand.u32 2147483647, %v8616_v58  ;;  %v7120_v28 = vcvt.f32.s32 %v8616_v58 }
 0x2ae   : > { %5249 = vst.msk [vmem:[%s8014_s27 + $0x48] sm:$0xf] %vm5230_vm2, %v5223_v43  ;;  %v7403_v40 = vcvt.f32.s32 %v7402_v6  ;;  %v7404_v16 = vtrunc.f32 %v4127_v9  ;;  %v6725_v5 = vsel %vm8625_vm10, %v6724_v42, %v1452_v45  ;;  %v7123_v24 = vand.u32 2147483648, %v8616_v58 }
 0x2af   : > { %v5770_v61 = vrot.slane %v2855_v39, 10  ;;  %v3834_v25 = vmax.f32 %v2854_v30, %v5769_v57  ;;  %v1648_v37 = vmax.f32 %v6725_v5, -32768.0  ;;  %v7121_v21 = vcvt.s32.f32 %v7120_v28 }
 0x2b0   : > { %v7405_v52 = vcvt.f32.s32 %v7404_v16  ;;  %v5865_v13 = vunpack.i.l.s16 %v7403_v40  ;;  %v985_v36 = vadd.f32 %v8508_v35, %v6401_v27  ;;  %v1235_v29 = vadd.f32 %v8508_v35, %v6476_v8  ;;  %v979_v16 = vpop.f32.mrf.mxu0 }
 0x2b1   : > { %v3835_v41 = vmax.f32 %v2855_v39, %v5770_v61  ;;  %v4030_v0 = vmax.f32 %v3834_v25, -32768.0  ;;  %v1746_v55 = vmin.f32 %v1648_v37, 32767.0  ;;  %v7122_v48 = vand.u32 2147483647, %v7121_v21  ;;  %v1229_v37 = vpop.f32.mrf.mxu1 }
 0x2b2   : > { %v8640_v20 = vsel %vm4863_vm9, %v8605_v15, %v4950_v17  ;;  %vm8642_vm11 = vcmp.lt.f32.partialorder %v7118_v59, 8388608.0  ;;  %v1357_v62 = vmax.f32 %v985_v36, 0.0  ;;  %v1407_v54 = vmax.f32 %v1235_v29, 0.0 }
 0x2b3   : > { %v4031_v22 = vmax.f32 %v3835_v41, -32768.0  ;;  %v4226_v3 = vmin.f32 %v4030_v0, 32767.0  ;;  %v1942_v19 = vcombine.high %v1746_v55, %v1746_v55  ;;  %v5471_v46 = vrot.slane %v1746_v55, 9 }
 0x2b4   : > { %v5866_v50 = vunpack.i.l.s16 %v7405_v52  ;;  %v8646_v47 = vrot.slane %v5865_v13, 2  ;;  %v7124_v63 = vor.u32 %v7123_v24, %v7122_v48  ;;  %v1455_v26 = vmul.f32 256.0, %v1357_v62 }
 0x2b5   : > { %v4227_v56 = vmin.f32 %v4031_v22, 32767.0  ;;  %v7602_v1 = vtrunc.f32 %v4226_v3  ;;  %v5472_v53 = vrot.slane %v1942_v19, 9  ;;  %v2752_v15 = vmax.f32 %v1746_v55, %v5471_v46 }
 0x2b6   : > { %v7125_v17 = vsel %vm8642_vm11, %v7124_v63, %v8616_v58  ;;  %v6742_v7 = vand.u32 2147483647, %v1455_v26  ;;  %v6744_v2 = vcvt.f32.s32 %v1455_v26  ;;  %v1505_v31 = vmul.f32 256.0, %v1407_v54 }
 0x2b7   : > { %v8651_v14 = vcvt.f32.s32 %v7602_v1  ;;  %v7604_v32 = vtrunc.f32 %v4227_v56  ;;  %v2753_v4 = vmax.f32 %v1942_v19, %v5472_v53  ;;  %v5667_v10 = vrot.slane %v2752_v15, 10 }
 0x2b8   : > { %v8653_v33 = vrot.slane %v5866_v50, 1  ;;  %v1698_v18 = vmax.f32 %v7125_v17, -32768.0  ;;  %v6745_v49 = vcvt.s32.f32 %v6744_v2  ;;  %v7142_v38 = vand.u32 2147483647, %v1505_v31 }
 0x2b9   : > { %v8655_v60 = vcvt.f32.s32 %v7604_v32  ;;  %v5668_v11 = vrot.slane %v2753_v4, 10  ;;  %v3732_v30 = vmax.f32 %v2752_v15, %v5667_v10  ;;  %v6747_v12 = vand.u32 2147483648, %v1455_v26 }
 0x2ba   : > { %v1796_v43 = vmin.f32 %v1698_v18, 32767.0  ;;  %vm8657_vm12 = vcmp.lt.f32.partialorder %v6742_v7, 8388608.0  ;;  %v6746_v9 = vand.u32 2147483647, %v6745_v49  ;;  %v7144_v6 = vcvt.f32.s32 %v1505_v31 }
 0x2bb   : > { %v5965_v42 = vunpack.i.l.s16 %v8651_v14  ;;  %v3733_v39 = vmax.f32 %v2753_v4, %v5668_v11  ;;  %v3928_v57 = vmax.f32 %v3732_v30, -32768.0  ;;  %vm8662_vm14 = vcmp.lt.f32.partialorder %v7142_v38, 8388608.0 }
 0x2bc   : > { %v1992_v28 = vcombine.high %v1796_v43, %v1796_v43  ;;  %v5571_v27 = vrot.slane %v1796_v43, 9  ;;  %v6748_v8 = vor.u32 %v6747_v12, %v6746_v9  ;;  %v7145_v40 = vcvt.s32.f32 %v7144_v6 }
 0x2bd   : > { %v5966_v5 = vunpack.i.l.s16 %v8655_v60  ;;  %v3929_v24 = vmax.f32 %v3733_v39, -32768.0  ;;  %v4124_v61 = vmin.f32 %v3928_v57, 32767.0  ;;  %v7147_v25 = vand.u32 2147483648, %v1505_v31 }
 0x2be   : > { %v5572_v21 = vrot.slane %v1992_v28, 9  ;;  %v2852_v52 = vmax.f32 %v1796_v43, %v5571_v27  ;;  %v6749_v13 = vsel %vm8657_vm12, %v6748_v8, %v1455_v26  ;;  %v7146_v36 = vand.u32 2147483647, %v7145_v40 }
 0x2bf   : > { %v4125_v29 = vmin.f32 %v3929_v24, 32767.0  ;;  %v7398_v41 = vtrunc.f32 %v4124_v61  ;;  %v1651_v0 = vmax.f32 %v6749_v13, -32768.0  ;;  %v980_v55 = vadd.f32 %v8508_v35, %v979_v16 }
 0x2c0   : > { %v2853_v48 = vmax.f32 %v1992_v28, %v5572_v21  ;;  %v5767_v45 = vrot.slane %v2852_v52, 10  ;;  %v7148_v62 = vor.u32 %v7147_v25, %v7146_v36  ;;  %v1230_v54 = vadd.f32 %v8508_v35, %v1229_v37 }
 0x2c1   : > { %v7399_v22 = vcvt.f32.s32 %v7398_v41  ;;  %v7400_v3 = vtrunc.f32 %v4125_v29  ;;  %v1749_v19 = vmin.f32 %v1651_v0, 32767.0  ;;  %v1356_v46 = vmax.f32 %v980_v55, 0.0 }
 0x2c2   : > { %v5768_v50 = vrot.slane %v2853_v48, 10  ;;  %v3832_v63 = vmax.f32 %v2852_v52, %v5767_v45  ;;  %v7149_v26 = vsel %vm8662_vm14, %v7148_v62, %v1505_v31  ;;  %v1406_v56 = vmax.f32 %v1230_v54, 0.0 }
 0x2c3   : > { %v7401_v1 = vcvt.f32.s32 %v7400_v3  ;;  %v5863_v53 = vunpack.i.l.s16 %v7399_v22  ;;  %v1945_v15 = vcombine.high %v1749_v19, %v1749_v19  ;;  %v5477_v17 = vrot.slane %v1749_v19, 9 }
 0x2c4   : > { %v3833_v7 = vmax.f32 %v2853_v48, %v5768_v50  ;;  %v4028_v2 = vmax.f32 %v3832_v63, -32768.0  ;;  %v1701_v32 = vmax.f32 %v7149_v26, -32768.0  ;;  %v8673_v4 = vmul.f32 256.0, %v1356_v46  ;;  %v6404_v26 = vpop.f32.mrf.mxu0 }
 0x2c5   : > { %v5864_v35 = vunpack.i.l.s16 %v7401_v1  ;;  %v4953_v10 = vrot.slane %v5863_v53, 4  ;;  %v5478_v18 = vrot.slane %v1945_v15, 9  ;;  %v2758_v49 = vmax.f32 %v1749_v19, %v5477_v17 }
 0x2c6   : > { %v4029_v38 = vmax.f32 %v3833_v7, -32768.0  ;;  %v4224_v11 = vmin.f32 %v4028_v2, 32767.0  ;;  %v1799_v30 = vmin.f32 %v1701_v32, 32767.0  ;;  %v6736_v12 = vcvt.f32.s32 %v8673_v4 }
 0x2c7   : > { %v4954_v31 = vsel %vm4866_vm13, %v4953_v10, %v8640_v20  ;;  %v4955_v43 = vrot.slane %v5864_v35, 3  ;;  %v2759_v58 = vmax.f32 %v1945_v15, %v5478_v18  ;;  %v5673_v9 = vrot.slane %v2758_v49, 10 }
 0x2c8   : > { %v4225_v6 = vmin.f32 %v4029_v38, 32767.0  ;;  %v7598_v39 = vtrunc.f32 %v4224_v11  ;;  %v1995_v57 = vcombine.high %v1799_v30, %v1799_v30  ;;  %v5577_v59 = vrot.slane %v1799_v30, 9 }
 0x2c9   : > { %v4956_v28 = vsel %vm4869_vm15, %v4955_v43, %v4954_v31  ;;  %v5674_v27 = vrot.slane %v2759_v58, 10  ;;  %v3738_v8 = vmax.f32 %v2758_v49, %v5673_v9  ;;  %v6734_v40 = vand.u32 2147483647, %v8673_v4 }
 0x2ca   : > { %v4958_v16 = vsel %vm4872_vm0, %v8646_v47, %v4956_v28  ;;  %v7599_v24 = vcvt.f32.s32 %v7598_v39  ;;  %v7600_v61 = vtrunc.f32 %v4225_v6  ;;  %v5578_v20 = vrot.slane %v1995_v57, 9  ;;  %v6479_v39 = vpop.f32.mrf.mxu1 }
 0x2cb   : > { %v4960_v25 = vsel %vm4875_vm1, %v8653_v33, %v4958_v16  ;;  %v3739_v37 = vmax.f32 %v2759_v58, %v5674_v27  ;;  %v3934_v21 = vmax.f32 %v3738_v8, -32768.0  ;;  %v2858_v52 = vmax.f32 %v1799_v30, %v5577_v59 }
 0x2cc   : > { %v5131_v13 = vrot.slane %v5965_v42, 6  ;;  %v5211_v36 = vpack.c.b16 %v4960_v25, %v4960_v25  ;;  %v7601_v29 = vcvt.f32.s32 %v7600_v61  ;;  %v2859_v41 = vmax.f32 %v1995_v57, %v5578_v20  ;;  %v989_v57 = vpop.f32.mrf.mxu0  ;;  %v1239_v6 = vpop.f32.mrf.mxu1 }
 0x2cd   : > { %v5963_v0 = vunpack.i.l.s16 %v7599_v24  ;;  %v3935_v55 = vmax.f32 %v3739_v37, -32768.0  ;;  %v4130_v48 = vmin.f32 %v3934_v21, 32767.0  ;;  %v5773_v47 = vrot.slane %v2858_v52, 10 }
 0x2ce   : > { %5237 = vst.msk [vmem:[%s8014_s27 + $0x18] sm:$0xf] %vm5230_vm2, %v5211_v36  ;;  %v5964_v45 = vunpack.i.l.s16 %v7601_v29  ;;  %v5774_v62 = vrot.slane %v2859_v41, 10  ;;  %vm8688_vm3 = vcmp.lt.f32.partialorder %v6734_v40, 8388608.0  ;;  %v6737_v33 = vcvt.s32.f32 %v6736_v12 }
 0x2cf   : > { %v4131_v22 = vmin.f32 %v3935_v55, 32767.0  ;;  %v7410_v3 = vtrunc.f32 %v4130_v48  ;;  %v3838_v14 = vmax.f32 %v2858_v52, %v5773_v47  ;;  %v1504_v42 = vmul.f32 256.0, %v1406_v56  ;;  %v8697_v56 = vld [vmem:[%s9256_s2] ss:$0 sm:$0xff] }
 0x2d0   : > { %v5129_v19 = vrot.slane %v5964_v45, 7  ;;  %v3839_v46 = vmax.f32 %v2859_v41, %v5774_v62  ;;  %v6738_v50 = vand.u32 2147483647, %v6737_v33  ;;  %v6739_v63 = vand.u32 2147483648, %v8673_v4 }
 0x2d1   : > { %v7411_v1 = vcvt.f32.s32 %v7410_v3  ;;  %v7412_v53 = vtrunc.f32 %v4131_v22  ;;  %v4034_v15 = vmax.f32 %v3838_v14, -32768.0  ;;  %v7134_v17 = vand.u32 2147483647, %v1504_v42 }
 0x2d2   : > { %v5130_v7 = vsel %vm4857_vm5, %v5129_v19, %v5963_v0  ;;  %v4035_v2 = vmax.f32 %v3839_v46, -32768.0  ;;  %v6740_v32 = vor.u32 %v6739_v63, %v6738_v50  ;;  %v7136_v35 = vcvt.f32.s32 %v1504_v42 }
 0x2d3   : > { %v7413_v10 = vcvt.f32.s32 %v7412_v53  ;;  %v5869_v18 = vunpack.i.l.s16 %v7411_v1  ;;  %v4230_v49 = vmin.f32 %v4034_v15, 32767.0  ;;  %v995_v38 = vadd.f32 %v8697_v56, %v6404_v26 }
 0x2d4   : > { %v5133_v11 = vrot.slane %v5966_v5, 5  ;;  %v4231_v30 = vmin.f32 %v4035_v2, 32767.0  ;;  %v6741_v12 = vsel %vm8688_vm3, %v6740_v32, %v8673_v4  ;;  %v7137_v31 = vcvt.s32.f32 %v7136_v35 }
 0x2d5   : > { %v5132_v43 = vsel %vm4860_vm6, %v5131_v13, %v5130_v7  ;;  %v7610_v58 = vtrunc.f32 %v4230_v49  ;;  %v1650_v9 = vmax.f32 %v6741_v12, -32768.0  ;;  %vm8706_vm4 = vcmp.lt.f32.partialorder %v7134_v17, 8388608.0 }
 0x2d6   : > { %v5870_v59 = vunpack.i.l.s16 %v7413_v10  ;;  %v7612_v28 = vtrunc.f32 %v4231_v30  ;;  %v7138_v60 = vand.u32 2147483647, %v7137_v31  ;;  %v7139_v5 = vand.u32 2147483648, %v1504_v42 }
 0x2d7   : > { %v8710_v27 = vrot.slane %v5869_v18, 6  ;;  %v7611_v8 = vcvt.f32.s32 %v7610_v58  ;;  %v1748_v40 = vmin.f32 %v1650_v9, 32767.0  ;;  %v1359_v4 = vmax.f32 %v995_v38, 0.0 }
 0x2d8   : > { %v7613_v16 = vcvt.f32.s32 %v7612_v28  ;;  %v7140_v24 = vor.u32 %v7139_v5, %v7138_v60  ;;  %v1245_v61 = vadd.f32 %v8697_v56, %v6479_v39  ;;  %v990_v20 = vadd.f32 %v8697_v56, %v989_v57 }
 0x2d9   : > { %v5969_v25 = vunpack.i.l.s16 %v7611_v8  ;;  %v1944_v37 = vcombine.high %v1748_v40, %v1748_v40  ;;  %v5475_v21 = vrot.slane %v1748_v40, 9  ;;  %v1457_v52 = vmul.f32 256.0, %v1359_v4 }
 0x2da   : > { %v5970_v13 = vunpack.i.l.s16 %v7613_v16  ;;  %v7141_v36 = vsel %vm8706_vm4, %v7140_v24, %v1504_v42  ;;  %v1409_v29 = vmax.f32 %v1245_v61, 0.0  ;;  %v1358_v41 = vmax.f32 %v990_v20, 0.0 }
 0x2db   : > { %v5476_v0 = vrot.slane %v1944_v37, 9  ;;  %v2756_v55 = vmax.f32 %v1748_v40, %v5475_v21  ;;  %v1700_v48 = vmax.f32 %v7141_v36, -32768.0  ;;  %v8717_v47 = vsel %vm4863_vm9, %v5133_v11, %v5132_v43 }
 0x2dc   : > { %v8719_v45 = vrot.slane %v5870_v59, 5  ;;  %v8721_v62 = vrot.slane %v5969_v25, 2  ;;  %v6758_v54 = vand.u32 2147483647, %v1457_v52  ;;  %v6760_v33 = vcvt.f32.s32 %v1457_v52 }
 0x2dd   : > { %v2757_v22 = vmax.f32 %v1944_v37, %v5476_v0  ;;  %v5671_v3 = vrot.slane %v2756_v55, 10  ;;  %v1798_v14 = vmin.f32 %v1700_v48, 32767.0  ;;  %v1507_v19 = vmul.f32 256.0, %v1409_v29 }
 0x2de   : > { %v8723_v46 = vrot.slane %v5970_v13, 1  ;;  %v6761_v42 = vcvt.s32.f32 %v6760_v33  ;;  %v6763_v50 = vand.u32 2147483648, %v1457_v52  ;;  %v1456_v63 = vmul.f32 256.0, %v1358_v41 }
 0x2df   : > { %v5672_v26 = vrot.slane %v2757_v22, 10  ;;  %v3736_v1 = vmax.f32 %v2756_v55, %v5671_v3  ;;  %v1994_v53 = vcombine.high %v1798_v14, %v1798_v14  ;;  %v5575_v15 = vrot.slane %v1798_v14, 9 }
 0x2e0   : > { %vm8725_vm7 = vcmp.lt.f32.partialorder %v6758_v54, 8388608.0  ;;  %v6762_v7 = vand.u32 2147483647, %v6761_v42  ;;  %v7158_v2 = vand.u32 2147483647, %v1507_v19  ;;  %v7160_v32 = vcvt.f32.s32 %v1507_v19 }
 0x2e1   : > { %v3737_v35 = vmax.f32 %v2757_v22, %v5672_v26  ;;  %v3932_v10 = vmax.f32 %v3736_v1, -32768.0  ;;  %v5576_v18 = vrot.slane %v1994_v53, 9  ;;  %v2856_v49 = vmax.f32 %v1798_v14, %v5575_v15 }
 0x2e2   : > { %v6764_v38 = vor.u32 %v6763_v50, %v6762_v7  ;;  %v7161_v11 = vcvt.s32.f32 %v7160_v32  ;;  %v7163_v30 = vand.u32 2147483648, %v1507_v19  ;;  %v6750_v12 = vand.u32 2147483647, %v1456_v63 }
 0x2e3   : > { %v3933_v31 = vmax.f32 %v3737_v35, -32768.0  ;;  %v4128_v43 = vmin.f32 %v3932_v10, 32767.0  ;;  %v2857_v58 = vmax.f32 %v1994_v53, %v5576_v18  ;;  %v5771_v9 = vrot.slane %v2856_v49, 10 }
 0x2e4   : > { %v6765_v39 = vsel %vm8725_vm7, %v6764_v38, %v1457_v52  ;;  %vm8731_vm8 = vcmp.lt.f32.partialorder %v7158_v2, 8388608.0  ;;  %v7162_v59 = vand.u32 2147483647, %v7161_v11  ;;  %v6752_v28 = vcvt.f32.s32 %v1456_v63 }
 0x2e5   : > { %v4129_v60 = vmin.f32 %v3933_v31, 32767.0  ;;  %v7406_v5 = vtrunc.f32 %v4128_v43  ;;  %v5772_v8 = vrot.slane %v2857_v58, 10  ;;  %v3836_v40 = vmax.f32 %v2856_v49, %v5771_v9 }
 0x2e6   : > { %v1653_v4 = vmax.f32 %v6765_v39, -32768.0  ;;  %v7164_v16 = vor.u32 %v7163_v30, %v7162_v59  ;;  %v6753_v24 = vcvt.s32.f32 %v6752_v28  ;;  %v1240_v61 = vadd.f32 %v8697_v56, %v1239_v6 }
 0x2e7   : > { %v7408_v20 = vtrunc.f32 %v4129_v60  ;;  %v3837_v25 = vmax.f32 %v2857_v58, %v5772_v8  ;;  %v4032_v37 = vmax.f32 %v3836_v40, -32768.0  ;;  %vm8736_vm10 = vcmp.lt.f32.partialorder %v6750_v12, 8388608.0 }
 0x2e8   : > { %v1751_v52 = vmin.f32 %v1653_v4, 32767.0  ;;  %v7165_v13 = vsel %vm8731_vm8, %v7164_v16, %v1507_v19  ;;  %v6754_v36 = vand.u32 2147483647, %v6753_v24  ;;  %v6755_v29 = vand.u32 2147483648, %v1456_v63 }
 0x2e9   : > { %v7407_v41 = vcvt.f32.s32 %v7406_v5  ;;  %v7409_v0 = vcvt.f32.s32 %v7408_v20  ;;  %v4033_v55 = vmax.f32 %v3837_v25, -32768.0  ;;  %v4228_v48 = vmin.f32 %v4032_v37, 32767.0 }
 0x2ea   : > { %v1947_v54 = vcombine.high %v1751_v52, %v1751_v52  ;;  %v5481_v33 = vrot.slane %v1751_v52, 9  ;;  %v1703_v22 = vmax.f32 %v7165_v13, -32768.0  ;;  %v6756_v3 = vor.u32 %v6755_v29, %v6754_v36 }
 0x2eb   : > { %v5868_v14 = vunpack.i.l.s16 %v7409_v0  ;;  %v4229_v42 = vmin.f32 %v4033_v55, 32767.0  ;;  %v7606_v50 = vtrunc.f32 %v4228_v48  ;;  %v1408_v26 = vmax.f32 %v1240_v61, 0.0 }
 0x2ec   : > { %v5482_v1 = vrot.slane %v1947_v54, 9  ;;  %v2762_v53 = vmax.f32 %v1751_v52, %v5481_v33  ;;  %v1801_v15 = vmin.f32 %v1703_v22, 32767.0  ;;  %v6757_v19 = vsel %vm8736_vm10, %v6756_v3, %v1456_v63 }
 0x2ed   : > { %v5867_v17 = vunpack.i.l.s16 %v7407_v41  ;;  %v7607_v7 = vcvt.f32.s32 %v7606_v50  ;;  %v7608_v2 = vtrunc.f32 %v4229_v42  ;;  %v1652_v32 = vmax.f32 %v6757_v19, -32768.0 }
 0x2ee   : > { %v2763_v35 = vmax.f32 %v1947_v54, %v5482_v1  ;;  %v5677_v10 = vrot.slane %v2762_v53, 10  ;;  %v1997_v18 = vcombine.high %v1801_v15, %v1801_v15  ;;  %v5581_v49 = vrot.slane %v1801_v15, 9  ;;  %v6407_v1 = vpop.f32.mrf.mxu0 }
 0x2ef   : > { %v7609_v38 = vcvt.f32.s32 %v7608_v2  ;;  %v5967_v11 = vunpack.i.l.s16 %v7607_v7  ;;  %v1750_v30 = vmin.f32 %v1652_v32, 32767.0  ;;  %v8744_v12 = vmul.f32 256.0, %v1408_v26 }
 0x2f0   : > { %v4961_v31 = vrot.slane %v5868_v14, 7  ;;  %v5678_v43 = vrot.slane %v2763_v35, 10  ;;  %v3742_v58 = vmax.f32 %v2762_v53, %v5677_v10  ;;  %v5582_v9 = vrot.slane %v1997_v18, 9 }
 0x2f1   : > { %vm8748_vm11 = vcmp.lt.f32.partialorder %v6910_v23, 8388608.0  ;;  %v5968_v6 = vunpack.i.l.s16 %v7609_v38  ;;  %v5135_v39 = vrot.slane %v5967_v11, 4  ;;  %v2862_v57 = vmax.f32 %v1801_v15, %v5581_v49  ;;  %v6482_v49 = vpop.f32.mrf.mxu1 }
 0x2f2   : > { %v1946_v59 = vcombine.high %v1750_v30, %v1750_v30  ;;  %v3743_v28 = vmax.f32 %v2763_v35, %v5678_v43  ;;  %v3938_v60 = vmax.f32 %v3742_v58, -32768.0  ;;  %v2863_v5 = vmax.f32 %v1997_v18, %v5582_v9 }
 0x2f3   : > { %v5479_v8 = vrot.slane %v1750_v30, 9  ;;  %v5136_v40 = vsel %vm4866_vm13, %v5135_v39, %v8717_v47  ;;  %v5137_v4 = vrot.slane %v5968_v6, 3  ;;  %v5777_v16 = vrot.slane %v2862_v57, 10 }
 0x2f4   : > { %v5480_v24 = vrot.slane %v1946_v59, 9  ;;  %v3939_v61 = vmax.f32 %v3743_v28, -32768.0  ;;  %v4134_v20 = vmin.f32 %v3938_v60, 32767.0  ;;  %v5778_v23 = vrot.slane %v2863_v5, 10 }
 0x2f5   : > { %v2760_v25 = vmax.f32 %v1750_v30, %v5479_v8  ;;  %v4962_v37 = vsel %vm4857_vm5, %v4961_v31, %v5867_v17  ;;  %v5138_v21 = vsel %vm4869_vm15, %v5137_v4, %v5136_v40  ;;  %v3842_v52 = vmax.f32 %v2862_v57, %v5777_v16  ;;  %v999_v31 = vpop.f32.mrf.mxu0 }
 0x2f6   : > { %v2761_v13 = vmax.f32 %v1946_v59, %v5480_v24  ;;  %v5140_v36 = vsel %vm4872_vm0, %v8721_v62, %v5138_v21  ;;  %v4135_v29 = vmin.f32 %v3939_v61, 32767.0  ;;  %v7418_v41 = vtrunc.f32 %v4134_v20 }
 0x2f7   : > { %v3843_v47 = vmax.f32 %v2863_v5, %v5778_v23  ;;  %v5142_v0 = vsel %vm4875_vm1, %v8723_v46, %v5140_v36  ;;  %v4038_v55 = vmax.f32 %v3842_v52, -32768.0  ;;  %v5675_v48 = vrot.slane %v2760_v25, 10 }
 0x2f8   : > { %v5676_v54 = vrot.slane %v2761_v13, 10  ;;  %v4964_v33 = vsel %vm4860_vm6, %v8710_v27, %v4962_v37  ;;  %v5224_v22 = vpack.c.b16 %v5142_v0, %v5142_v0  ;;  %v7420_v3 = vtrunc.f32 %v4135_v29 }
 0x2f9   : > { %v4039_v14 = vmax.f32 %v3843_v47, -32768.0  ;;  %v7419_v42 = vcvt.f32.s32 %v7418_v41  ;;  %v4234_v50 = vmin.f32 %v4038_v55, 32767.0  ;;  %v3740_v26 = vmax.f32 %v2760_v25, %v5675_v48 }
 0x2fa   : > { %v3741_v62 = vmax.f32 %v2761_v13, %v5676_v54  ;;  %5250 = vst.msk [vmem:[%s8014_s27 + $0x4c] sm:$0xf] %vm5230_vm2, %v5224_v22  ;;  %v7421_v53 = vcvt.f32.s32 %v7420_v3  ;;  %v7150_v46 = vand.u32 2147483647, %v8744_v12  ;;  %v7152_v19 = vcvt.f32.s32 %v8744_v12 }
 0x2fb   : > { %v4235_v15 = vmin.f32 %v4039_v14, 32767.0  ;;  %v8767_v17 = vmin.f32 %v7939_v34, 32767.0  ;;  %v7618_v27 = vtrunc.f32 %v4234_v50  ;;  %v3936_v7 = vmax.f32 %v3740_v26, -32768.0 }
 0x2fc   : > { %v3937_v2 = vmax.f32 %v3741_v62, -32768.0  ;;  %v6917_v32 = vsel %vm8748_vm11, %v8550_v44, %v7914_v51  ;;  %v4966_v10 = vsel %vm4863_vm9, %v8719_v45, %v4964_v33  ;;  %v7153_v18 = vcvt.s32.f32 %v7152_v19 }
 0x2fd   : > { %v7620_v35 = vtrunc.f32 %v4235_v15  ;;  %v5873_v38 = vunpack.i.l.s16 %v7419_v42  ;;  %v4132_v11 = vmin.f32 %v3936_v7, 32767.0  ;;  %v7155_v34 = vand.u32 2147483648, %v8744_v12 }
 0x2fe   : > { %v4133_v30 = vmin.f32 %v3937_v2, 32767.0  ;;  %v5874_v43 = vunpack.i.l.s16 %v7421_v53  ;;  %vm8776_vm12 = vcmp.lt.f32.partialorder %v7150_v46, 8388608.0  ;;  %v7154_v9 = vand.u32 2147483647, %v7153_v18  ;;  %v1249_v2 = vpop.f32.mrf.mxu1 }
 0x2ff   : > { %v1005_v6 = vadd.f32 %v8697_v56, %v6407_v1  ;;  %v8781_v39 = vcvt.f32.s32 %v7618_v27  ;;  %v7414_v57 = vtrunc.f32 %v4132_v11  ;;  %v1255_v59 = vadd.f32 %v8697_v56, %v6482_v49 }
 0x300   : > { %v7416_v45 = vtrunc.f32 %v4133_v30  ;;  %v8784_v28 = vcvt.f32.s32 %v7620_v35  ;;  %v7156_v60 = vor.u32 %v7155_v34, %v7154_v9  ;;  %v1000_v8 = vadd.f32 %v8697_v56, %v999_v31 }
 0x301   : > { %v1361_v5 = vmax.f32 %v1005_v6, 0.0  ;;  %v4971_v40 = vrot.slane %v5873_v38, 2  ;;  %v7415_v4 = vcvt.f32.s32 %v7414_v57  ;;  %v1411_v24 = vmax.f32 %v1255_v59, 0.0  ;;  %v6410_v59 = vpop.f32.mrf.mxu0 }
 0x302   : > { %v7417_v16 = vcvt.f32.s32 %v7416_v45  ;;  %v4973_v61 = vrot.slane %v5874_v43, 1  ;;  %v7157_v20 = vsel %vm8776_vm12, %v7156_v60, %v8744_v12  ;;  %v1360_v25 = vmax.f32 %v1000_v8, 0.0 }
 0x303   : > { %v1459_v23 = vmul.f32 256.0, %v1361_v5  ;;  %v5871_v37 = vunpack.i.l.s16 %v7415_v4  ;;  %v1702_v52 = vmax.f32 %v7157_v20, -32768.0  ;;  %v1509_v13 = vmul.f32 256.0, %v1411_v24 }
 0x304   : > { %v5872_v21 = vunpack.i.l.s16 %v7417_v16  ;;  %v5973_v36 = vunpack.i.l.s16 %v8781_v39  ;;  %v5974_v29 = vunpack.i.l.s16 %v8784_v28  ;;  %v8792_v54 = vmul.f32 256.0, %v1360_v25 }
 0x305   : > { %v6774_v41 = vand.u32 2147483647, %v1459_v23  ;;  %v6776_v47 = vcvt.f32.s32 %v1459_v23  ;;  %v4967_v0 = vrot.slane %v5871_v37, 4  ;;  %v1800_v48 = vmin.f32 %v1702_v52, 32767.0 }
 0x306   : > { %v4969_v55 = vrot.slane %v5872_v21, 3  ;;  %v6779_v22 = vand.u32 2147483648, %v1459_v23  ;;  %v7174_v12 = vand.u32 2147483647, %v1509_v13  ;;  %v7176_v3 = vcvt.f32.s32 %v1509_v13 }
 0x307   : > { %v6777_v33 = vcvt.s32.f32 %v6776_v47  ;;  %v4968_v14 = vsel %vm4866_vm13, %v4967_v0, %v4966_v10  ;;  %v1996_v42 = vcombine.high %v1800_v48, %v1800_v48  ;;  %v5579_v50 = vrot.slane %v1800_v48, 9 }
 0x308   : > { %vm8795_vm14 = vcmp.lt.f32.partialorder %v6774_v41, 8388608.0  ;;  %v4970_v62 = vsel %vm4869_vm15, %v4969_v55, %v4968_v14  ;;  %v7177_v53 = vcvt.s32.f32 %v7176_v3  ;;  %v7179_v15 = vand.u32 2147483648, %v1509_v13  ;;  %v6485_v41 = vpop.f32.mrf.mxu1 }
 0x309   : > { %v6778_v1 = vand.u32 2147483647, %v6777_v33  ;;  %v4972_v46 = vsel %vm4872_vm0, %v4971_v40, %v4970_v62  ;;  %v5580_v19 = vrot.slane %v1996_v42, 9  ;;  %v2860_v27 = vmax.f32 %v1800_v48, %v5579_v50 }
 0x30a   : > { %v6768_v7 = vcvt.f32.s32 %v8792_v54  ;;  %v4974_v35 = vsel %vm4875_vm1, %v4973_v61, %v4972_v46  ;;  %vm8803_vm3 = vcmp.lt.f32.partialorder %v7174_v12, 8388608.0  ;;  %v7178_v49 = vand.u32 2147483647, %v7177_v53 }
 0x30b   : > { %v6780_v10 = vor.u32 %v6779_v22, %v6778_v1  ;;  %v5212_v38 = vpack.c.b16 %v4974_v35, %v4974_v35  ;;  %v2861_v11 = vmax.f32 %v1996_v42, %v5580_v19  ;;  %v5775_v30 = vrot.slane %v2860_v27, 10 }
 0x30c   : > { %v6769_v34 = vcvt.s32.f32 %v6768_v7  ;;  %v7180_v43 = vor.u32 %v7179_v15, %v7178_v49  ;;  %v6766_v58 = vand.u32 2147483647, %v8792_v54  ;;  %v1250_v9 = vadd.f32 %v8697_v56, %v1249_v2 }
 0x30d   : > { %v6781_v31 = vsel %vm8795_vm14, %v6780_v10, %v1459_v23  ;;  %5238 = vst.msk [vmem:[%s8014_s27 + $0x1c] sm:$0xf] %vm5230_vm2, %v5212_v38  ;;  %v5776_v6 = vrot.slane %v2861_v11, 10  ;;  %v3840_v39 = vmax.f32 %v2860_v27, %v5775_v30  ;;  %v8813_v60 = vrot.slane %v5973_v36, 6 }
 0x30e   : > { %v1655_v57 = vmax.f32 %v6781_v31, -32768.0  ;;  %v6770_v45 = vand.u32 2147483647, %v6769_v34  ;;  %v7181_v5 = vsel %vm8803_vm3, %v7180_v43, %v1509_v13  ;;  %v6771_v8 = vand.u32 2147483648, %v8792_v54 }
 0x30f   : > { %v1410_v40 = vmax.f32 %v1250_v9, 0.0  ;;  %v3841_v4 = vmax.f32 %v2861_v11, %v5776_v6  ;;  %v4036_v16 = vmax.f32 %v3840_v39, -32768.0  ;;  %v1705_v61 = vmax.f32 %v7181_v5, -32768.0 }
 0x310   : > { %v1753_v24 = vmin.f32 %v1655_v57, 32767.0  ;;  %vm8818_vm4 = vcmp.lt.f32.partialorder %v6766_v58, 8388608.0  ;;  %v6772_v23 = vor.u32 %v6771_v8, %v6770_v45  ;;  %v8825_v37 = vadd.f32 %v8697_v56, %v6410_v59 }
 0x311   : > { %v8822_v25 = vmul.f32 256.0, %v1410_v40  ;;  %v4037_v21 = vmax.f32 %v3841_v4, -32768.0  ;;  %v4232_v52 = vmin.f32 %v4036_v16, 32767.0  ;;  %v1803_v47 = vmin.f32 %v1705_v61, 32767.0 }
 0x312   : > { %v1949_v13 = vcombine.high %v1753_v24, %v1753_v24  ;;  %v5485_v36 = vrot.slane %v1753_v24, 9  ;;  %v6773_v0 = vsel %vm8818_vm4, %v6772_v23, %v8792_v54  ;;  %v8833_v26 = vadd.f32 %v8697_v56, %v6485_v41 }
 0x313   : > { %v7166_v55 = vand.u32 2147483647, %v8822_v25  ;;  %v7168_v48 = vcvt.f32.s32 %v8822_v25  ;;  %v4233_v33 = vmin.f32 %v4037_v21, 32767.0  ;;  %v7614_v22 = vtrunc.f32 %v4232_v52 }
 0x314   : > { %v5486_v12 = vrot.slane %v1949_v13, 9  ;;  %v2766_v3 = vmax.f32 %v1753_v24, %v5485_v36  ;;  %v1999_v14 = vcombine.high %v1803_v47, %v1803_v47  ;;  %v5585_v42 = vrot.slane %v1803_v47, 9 }
 0x315   : > { %v1654_v50 = vmax.f32 %v6773_v0, -32768.0  ;;  %v7616_v62 = vtrunc.f32 %v4233_v33  ;;  %vm8835_vm7 = vcmp.lt.f32.partialorder %v7166_v55, 8388608.0  ;;  %v7169_v27 = vcvt.s32.f32 %v7168_v48 }
 0x316   : > { %v2767_v1 = vmax.f32 %v1949_v13, %v5486_v12  ;;  %v5681_v53 = vrot.slane %v2766_v3, 10  ;;  %v5586_v54 = vrot.slane %v1999_v14, 9  ;;  %v2866_v46 = vmax.f32 %v1803_v47, %v5585_v42 }
 0x317   : > { %v1752_v19 = vmin.f32 %v1654_v50, 32767.0  ;;  %v7615_v7 = vcvt.f32.s32 %v7614_v22  ;;  %v7617_v2 = vcvt.f32.s32 %v7616_v62  ;;  %v7170_v43 = vand.u32 2147483647, %v7169_v27 }
 0x318   : > { %v5682_v35 = vrot.slane %v2767_v1, 10  ;;  %v3746_v10 = vmax.f32 %v2766_v3, %v5681_v53  ;;  %v2867_v18 = vmax.f32 %v1999_v14, %v5586_v54  ;;  %v5781_v49 = vrot.slane %v2866_v46, 10 }
 0x319   : > { %v1948_v38 = vcombine.high %v1752_v19, %v1752_v19  ;;  %v5483_v11 = vrot.slane %v1752_v19, 9  ;;  %v5972_v30 = vunpack.i.l.s16 %v7617_v2  ;;  %v7171_v5 = vand.u32 2147483648, %v8822_v25 }
 0x31a   : > { %v3747_v34 = vmax.f32 %v2767_v1, %v5682_v35  ;;  %v3942_v31 = vmax.f32 %v3746_v10, -32768.0  ;;  %v5782_v58 = vrot.slane %v2867_v18, 10  ;;  %v3846_v9 = vmax.f32 %v2866_v46, %v5781_v49 }
 0x31b   : > { %v5484_v6 = vrot.slane %v1948_v38, 9  ;;  %v2764_v39 = vmax.f32 %v1752_v19, %v5483_v11  ;;  %v5143_v57 = vrot.slane %v5972_v30, 7  ;;  %v5971_v24 = vunpack.i.l.s16 %v7615_v7 }
 0x31c   : > { %v3943_v45 = vmax.f32 %v3747_v34, -32768.0  ;;  %v4138_v59 = vmin.f32 %v3942_v31, 32767.0  ;;  %v3847_v8 = vmax.f32 %v2867_v18, %v5782_v58  ;;  %v4042_v40 = vmax.f32 %v3846_v9, -32768.0  ;;  %v1009_v31 = vpop.f32.mrf.mxu0 }
 0x31d   : > { %v2765_v4 = vmax.f32 %v1948_v38, %v5484_v6  ;;  %v5679_v16 = vrot.slane %v2764_v39, 10  ;;  %v7172_v23 = vor.u32 %v7171_v5, %v7170_v43  ;;  %v1363_v36 = vmax.f32 %v8825_v37, 0.0  ;;  %v1259_v43 = vpop.f32.mrf.mxu1 }
 0x31e   : > { %v4139_v61 = vmin.f32 %v3943_v45, 32767.0  ;;  %v7426_v20 = vtrunc.f32 %v4138_v59  ;;  %v4043_v21 = vmax.f32 %v3847_v8, -32768.0  ;;  %v4238_v52 = vmin.f32 %v4042_v40, 32767.0 }
 0x31f   : > { %v5680_v13 = vrot.slane %v2765_v4, 10  ;;  %v5144_v41 = vsel %vm4857_vm5, %v5143_v57, %v5971_v24  ;;  %v3744_v0 = vmax.f32 %v2764_v39, %v5679_v16  ;;  %v7173_v55 = vsel %vm8835_vm7, %v7172_v23, %v8822_v25 }
 0x320   : > { %v7428_v47 = vtrunc.f32 %v4139_v61  ;;  %v4239_v48 = vmin.f32 %v4043_v21, 32767.0  ;;  %v7626_v33 = vtrunc.f32 %v4238_v52  ;;  %v1704_v12 = vmax.f32 %v7173_v55, -32768.0 }
 0x321   : > { %v3745_v22 = vmax.f32 %v2765_v4, %v5680_v13  ;;  %v5147_v3 = vrot.slane %v5974_v29, 5  ;;  %v8847_v14 = vcvt.f32.s32 %v7426_v20  ;;  %v3940_v37 = vmax.f32 %v3744_v0, -32768.0 }
 0x322   : > { %v8849_v42 = vcvt.f32.s32 %v7428_v47  ;;  %v7627_v50 = vcvt.f32.s32 %v7626_v33  ;;  %v7628_v62 = vtrunc.f32 %v4239_v48  ;;  %v1802_v53 = vmin.f32 %v1704_v12, 32767.0 }
 0x323   : > { %v3941_v1 = vmax.f32 %v3745_v22, -32768.0  ;;  %v5146_v15 = vsel %vm4860_vm6, %v8813_v60, %v5144_v41  ;;  %v4136_v25 = vmin.f32 %v3940_v37, 32767.0  ;;  %v1461_v54 = vmul.f32 256.0, %v1363_v36 }
 0x324   : > { %v1413_v46 = vmax.f32 %v8833_v26, 0.0  ;;  %v7629_v19 = vcvt.f32.s32 %v7628_v62  ;;  %v5977_v27 = vunpack.i.l.s16 %v7627_v50  ;;  %v1998_v29 = vcombine.high %v1802_v53, %v1802_v53 }
 0x325   : > { %v4137_v28 = vmin.f32 %v3941_v1, 32767.0  ;;  %v5877_v7 = vunpack.i.l.s16 %v8847_v14  ;;  %v7422_v2 = vtrunc.f32 %v4136_v25  ;;  %v5583_v35 = vrot.slane %v1802_v53, 9 }
 0x326   : > { %v6790_v10 = vand.u32 2147483647, %v1461_v54  ;;  %v5878_v18 = vunpack.i.l.s16 %v8849_v42  ;;  %v5584_v38 = vrot.slane %v1998_v29, 9  ;;  %v8857_v11 = vsel %vm4863_vm9, %v5147_v3, %v5146_v15 }
 0x327   : > { %v7424_v49 = vtrunc.f32 %v4137_v28  ;;  %v5978_v60 = vunpack.i.l.s16 %v7629_v19  ;;  %v8859_v30 = vrot.slane %v5977_v27, 2  ;;  %v2864_v26 = vmax.f32 %v1802_v53, %v5583_v35 }
 0x328   : > { %v6792_v34 = vcvt.f32.s32 %v1461_v54  ;;  %v7423_v58 = vcvt.f32.s32 %v7422_v2  ;;  %v2865_v6 = vmax.f32 %v1998_v29, %v5584_v38  ;;  %vm8861_vm8 = vcmp.lt.f32.partialorder %v6790_v10, 8388608.0 }
 0x329   : > { %v7425_v9 = vcvt.f32.s32 %v7424_v49  ;;  %v5779_v57 = vrot.slane %v2864_v26, 10  ;;  %v6795_v59 = vand.u32 2147483648, %v1461_v54  ;;  %v1511_v5 = vmul.f32 256.0, %v1413_v46  ;;  %v6413_v46 = vpop.f32.mrf.mxu0 }
 0x32a   : > { %v6793_v45 = vcvt.s32.f32 %v6792_v34  ;;  %v5780_v40 = vrot.slane %v2865_v6, 10  ;;  %v1010_v4 = vadd.f32 %v8697_v56, %v1009_v31  ;;  %v1260_v16 = vadd.f32 %v8697_v56, %v1259_v43 }
 0x32b   : > { %v5876_v8 = vunpack.i.l.s16 %v7425_v9  ;;  %v3844_v24 = vmax.f32 %v2864_v26, %v5779_v57  ;;  %v7190_v20 = vand.u32 2147483647, %v1511_v5  ;;  %v7192_v23 = vcvt.f32.s32 %v1511_v5 }
 0x32c   : > { %v6794_v61 = vand.u32 2147483647, %v6793_v45  ;;  %v8867_v21 = vrot.slane %v5978_v60, 1  ;;  %v3845_v13 = vmax.f32 %v2865_v6, %v5780_v40  ;;  %v1362_v36 = vmax.f32 %v1010_v4, 0.0 }
 0x32d   : > { %v4975_v52 = vrot.slane %v5876_v8, 7  ;;  %v4040_v41 = vmax.f32 %v3844_v24, -32768.0  ;;  %v7193_v0 = vcvt.s32.f32 %v7192_v23  ;;  %v7195_v55 = vand.u32 2147483648, %v1511_v5 }
 0x32e   : > { %v6796_v47 = vor.u32 %v6795_v59, %v6794_v61  ;;  %v5875_v48 = vunpack.i.l.s16 %v7423_v58  ;;  %v4041_v33 = vmax.f32 %v3845_v13, -32768.0  ;;  %vm8869_vm10 = vcmp.lt.f32.partialorder %v7190_v20, 8388608.0 }
 0x32f   : > { %v1460_v12 = vmul.f32 256.0, %v1362_v36  ;;  %v4236_v3 = vmin.f32 %v4040_v41, 32767.0  ;;  %v7194_v50 = vand.u32 2147483647, %v7193_v0  ;;  %v1412_v62 = vmax.f32 %v1260_v16, 0.0 }
 0x330   : > { %v6797_v37 = vsel %vm8861_vm8, %v6796_v47, %v1461_v54  ;;  %v4237_v1 = vmin.f32 %v4041_v33, 32767.0  ;;  %v8876_v19 = vsel %vm4857_vm5, %v4975_v52, %v5875_v48  ;;  %v8885_v26 = vadd.f32 %v8697_v56, %v6413_v46 }
 0x331   : > { %v1657_v53 = vmax.f32 %v6797_v37, -32768.0  ;;  %v6782_v15 = vand.u32 2147483647, %v1460_v12  ;;  %v6784_v25 = vcvt.f32.s32 %v1460_v12  ;;  %v7622_v27 = vtrunc.f32 %v4236_v3 }
 0x332   : > { %v7196_v28 = vor.u32 %v7195_v55, %v7194_v50  ;;  %v6787_v29 = vand.u32 2147483648, %v1460_v12  ;;  %v7624_v2 = vtrunc.f32 %v4237_v1  ;;  %v1510_v60 = vmul.f32 256.0, %v1412_v62 }
 0x333   : > { %v1755_v35 = vmin.f32 %v1657_v53, 32767.0  ;;  %vm8878_vm12 = vcmp.lt.f32.partialorder %v6782_v15, 8388608.0  ;;  %v6785_v54 = vcvt.s32.f32 %v6784_v25  ;;  %v7623_v49 = vcvt.f32.s32 %v7622_v27 }
 0x334   : > { %v7197_v38 = vsel %vm8869_vm10, %v7196_v28, %v1511_v5  ;;  %v7625_v34 = vcvt.f32.s32 %v7624_v2  ;;  %v7182_v39 = vand.u32 2147483647, %v1510_v60  ;;  %v7184_v57 = vcvt.f32.s32 %v1510_v60 }
 0x335   : > { %v1951_v31 = vcombine.high %v1755_v35, %v1755_v35  ;;  %v5489_v43 = vrot.slane %v1755_v35, 9  ;;  %v1707_v58 = vmax.f32 %v7197_v38, -32768.0  ;;  %v5975_v9 = vunpack.i.l.s16 %v7623_v49 }
 0x336   : > { %v6786_v6 = vand.u32 2147483647, %v6785_v54  ;;  %v5976_v45 = vunpack.i.l.s16 %v7625_v34  ;;  %vm8887_vm14 = vcmp.lt.f32.partialorder %v7182_v39, 8388608.0  ;;  %v7185_v24 = vcvt.s32.f32 %v7184_v57 }
 0x337   : > { %v5490_v59 = vrot.slane %v1951_v31, 9  ;;  %v2770_v8 = vmax.f32 %v1755_v35, %v5489_v43  ;;  %v1805_v40 = vmin.f32 %v1707_v58, 32767.0  ;;  %v5149_v4 = vrot.slane %v5975_v9, 4 }
 0x338   : > { %v6788_v16 = vor.u32 %v6787_v29, %v6786_v6  ;;  %v5151_v61 = vrot.slane %v5976_v45, 3  ;;  %v7186_v47 = vand.u32 2147483647, %v7185_v24  ;;  %v7187_v50 = vand.u32 2147483648, %v1510_v60 }
 0x339   : > { %v2771_v20 = vmax.f32 %v1951_v31, %v5490_v59  ;;  %v5685_v23 = vrot.slane %v2770_v8, 10  ;;  %v2001_v52 = vcombine.high %v1805_v40, %v1805_v40  ;;  %v5150_v13 = vsel %vm4866_vm13, %v5149_v4, %v8857_v11 }
 0x33a   : > { %v5589_v36 = vrot.slane %v1805_v40, 9  ;;  %v6789_v41 = vsel %vm8878_vm12, %v6788_v16, %v1460_v12  ;;  %v5152_v0 = vsel %vm4869_vm15, %v5151_v61, %v5150_v13  ;;  %v7188_v46 = vor.u32 %v7187_v50, %v7186_v47 }
 0x33b   : > { %v5686_v55 = vrot.slane %v2771_v20, 10  ;;  %v3750_v48 = vmax.f32 %v2770_v8, %v5685_v23  ;;  %v5590_v33 = vrot.slane %v2001_v52, 9  ;;  %v5154_v22 = vsel %vm4872_vm0, %v8859_v30, %v5152_v0 }
 0x33c   : > { %v2870_v3 = vmax.f32 %v1805_v40, %v5589_v36  ;;  %v1656_v37 = vmax.f32 %v6789_v41, -32768.0  ;;  %v5156_v11 = vsel %vm4875_vm1, %v8867_v21, %v5154_v22  ;;  %v1365_v2 = vmax.f32 %v8885_v26, 0.0 }
 0x33d   : > { %v3751_v62 = vmax.f32 %v2771_v20, %v5686_v55  ;;  %v3946_v1 = vmax.f32 %v3750_v48, -32768.0  ;;  %v2871_v53 = vmax.f32 %v2001_v52, %v5590_v33  ;;  %v5225_v12 = vpack.c.b16 %v5156_v11, %v5156_v11 }
 0x33e   : > { %v5785_v15 = vrot.slane %v2870_v3, 10  ;;  %v1754_v25 = vmin.f32 %v1656_v37, 32767.0  ;;  %v7189_v21 = vsel %vm8887_vm14, %v7188_v46, %v1510_v60  ;;  %v4977_v31 = vrot.slane %v5877_v7, 6  ;;  %v6488_v37 = vpop.f32.mrf.mxu1 }
 0x33f   : > { %v3947_v27 = vmax.f32 %v3751_v62, -32768.0  ;;  %v4142_v28 = vmin.f32 %v3946_v1, 32767.0  ;;  %v5786_v29 = vrot.slane %v2871_v53, 10  ;;  %5251 = vst.msk [vmem:[%s8014_s27 + $0x50] sm:$0xf] %vm5230_vm2, %v5225_v12  ;;  %v1019_v1 = vpop.f32.mrf.mxu0  ;;  %v1275_v46 = vadd.f32 %v8697_v56, %v6488_v37 }
 0x340   : > { %v3850_v30 = vmax.f32 %v2870_v3, %v5785_v15  ;;  %v1950_v35 = vcombine.high %v1754_v25, %v1754_v25  ;;  %v5487_v10 = vrot.slane %v1754_v25, 9  ;;  %v1706_v34 = vmax.f32 %v7189_v21, -32768.0 }
 0x341   : > { %v4143_v54 = vmin.f32 %v3947_v27, 32767.0  ;;  %v7434_v49 = vtrunc.f32 %v4142_v28  ;;  %v3851_v38 = vmax.f32 %v2871_v53, %v5786_v29  ;;  %v4978_v45 = vsel %vm4860_vm6, %v4977_v31, %v8876_v19 }
 0x342   : > { %v4046_v43 = vmax.f32 %v3850_v30, -32768.0  ;;  %v5488_v58 = vrot.slane %v1950_v35, 9  ;;  %v2768_v9 = vmax.f32 %v1754_v25, %v5487_v10  ;;  %v1804_v57 = vmin.f32 %v1706_v34, 32767.0 }
 0x343   : > { %v7435_v6 = vcvt.f32.s32 %v7434_v49  ;;  %v7436_v26 = vtrunc.f32 %v4143_v54  ;;  %v4047_v39 = vmax.f32 %v3851_v38, -32768.0  ;;  %v8909_v5 = vmul.f32 256.0, %v1365_v2  ;;  %v1269_v54 = vpop.f32.mrf.mxu1 }
 0x344   : > { %v4242_v59 = vmin.f32 %v4046_v43, 32767.0  ;;  %v2769_v8 = vmax.f32 %v1950_v35, %v5488_v58  ;;  %v5683_v60 = vrot.slane %v2768_v9, 10  ;;  %v2000_v16 = vcombine.high %v1804_v57, %v1804_v57 }
 0x345   : > { %v7437_v40 = vcvt.f32.s32 %v7436_v26  ;;  %v4243_v4 = vmin.f32 %v4047_v39, 32767.0  ;;  %v5881_v14 = vunpack.i.l.s16 %v7435_v6  ;;  %v5587_v61 = vrot.slane %v1804_v57, 9 }
 0x346   : > { %v5684_v7 = vrot.slane %v2769_v8, 10  ;;  %v3748_v24 = vmax.f32 %v2768_v9, %v5683_v60  ;;  %v4979_v20 = vrot.slane %v5878_v18, 5  ;;  %v7634_v52 = vtrunc.f32 %v4242_v59 }
 0x347   : > { %v5882_v23 = vunpack.i.l.s16 %v7437_v40  ;;  %v5588_v13 = vrot.slane %v2000_v16, 9  ;;  %v7636_v36 = vtrunc.f32 %v4243_v4  ;;  %v2868_v47 = vmax.f32 %v1804_v57, %v5587_v61 }
 0x348   : > { %v3749_v19 = vmax.f32 %v2769_v8, %v5684_v7  ;;  %v3944_v41 = vmax.f32 %v3748_v24, -32768.0  ;;  %v8918_v0 = vmax.f32 %v6917_v32, -32768.0  ;;  %v4980_v55 = vsel %vm4863_vm9, %v4979_v20, %v4978_v45 }
 0x349   : > { %v2869_v48 = vmax.f32 %v2000_v16, %v5588_v13  ;;  %v6806_v42 = vand.u32 2147483647, %v8909_v5  ;;  %v4985_v18 = vrot.slane %v5881_v14, 2  ;;  %v5783_v3 = vrot.slane %v2868_v47, 10 }
 0x34a   : > { %v3945_v33 = vmax.f32 %v3749_v19, -32768.0  ;;  %v4140_v22 = vmin.f32 %v3944_v41, 32767.0  ;;  %v4987_v50 = vrot.slane %v5882_v23, 1  ;;  %v7635_v11 = vcvt.f32.s32 %v7634_v52 }
 0x34b   : > { %v5784_v62 = vrot.slane %v2869_v48, 10  ;;  %v6808_v63 = vcvt.f32.s32 %v8909_v5  ;;  %v8923_v53 = vcvt.f32.s32 %v7636_v36  ;;  %v3848_v32 = vmax.f32 %v2868_v47, %v5783_v3  ;;  %v6416_v3 = vpop.f32.mrf.mxu0 }
 0x34c   : > { %v4141_v51 = vmin.f32 %v3945_v33, 32767.0  ;;  %v7430_v44 = vtrunc.f32 %v4140_v22  ;;  %vm8925_vm11 = vcmp.lt.f32.partialorder %v6806_v42, 8388608.0  ;;  %v1020_v2 = vadd.f32 %v8697_v56, %v1019_v1  ;;  %v8935_v56 = vld [vmem:[%s9256_s2] ss:$0 sm:$0xff] }
 0x34d   : > { %v3849_v12 = vmax.f32 %v2869_v48, %v5784_v62  ;;  %v6809_v25 = vcvt.s32.f32 %v6808_v63  ;;  %v4044_v29 = vmax.f32 %v3848_v32, -32768.0  ;;  %v6811_v10 = vand.u32 2147483648, %v8909_v5 }
 0x34e   : > { %v7431_v27 = vcvt.f32.s32 %v7430_v44  ;;  %v7432_v28 = vtrunc.f32 %v4141_v51  ;;  %v1415_v21 = vmax.f32 %v1275_v46, 0.0  ;;  %v1364_v31 = vmax.f32 %v1020_v2, 0.0 }
 0x34f   : > { %v4045_v30 = vmax.f32 %v3849_v12, -32768.0  ;;  %v6810_v35 = vand.u32 2147483647, %v6809_v25  ;;  %v4240_v34 = vmin.f32 %v4044_v29, 32767.0  ;;  %v5981_v43 = vunpack.i.l.s16 %v7635_v11 }
 0x350   : > { %v7433_v49 = vcvt.f32.s32 %v7432_v28  ;;  %v5879_v38 = vunpack.i.l.s16 %v7431_v27  ;;  %v1513_v6 = vmul.f32 256.0, %v1415_v21  ;;  %v1270_v45 = vadd.f32 %v8935_v56, %v1269_v54 }
 0x351   : > { %v4241_v58 = vmin.f32 %v4045_v30, 32767.0  ;;  %v6812_v9 = vor.u32 %v6811_v10, %v6810_v35  ;;  %v7630_v57 = vtrunc.f32 %v4240_v34  ;;  %v1462_v40 = vmul.f32 256.0, %v1364_v31 }
 0x352   : > { %v5880_v26 = vunpack.i.l.s16 %v7433_v49  ;;  %v4981_v39 = vrot.slane %v5879_v38, 4  ;;  %v7208_v60 = vcvt.f32.s32 %v1513_v6  ;;  %v7206_v7 = vand.u32 2147483647, %v1513_v6 }
 0x353   : > { %v7632_v59 = vtrunc.f32 %v4241_v58  ;;  %v6813_v8 = vsel %vm8925_vm11, %v6812_v9, %v8909_v5  ;;  %v5982_v24 = vunpack.i.l.s16 %v8923_v53  ;;  %v8943_v61 = vrot.slane %v5981_v43, 6 }
 0x354   : > { %v4982_v4 = vsel %vm4866_vm13, %v4981_v39, %v4980_v55  ;;  %v4983_v16 = vrot.slane %v5880_v26, 3  ;;  %v1659_v14 = vmax.f32 %v6813_v8, -32768.0  ;;  %v7209_v20 = vcvt.s32.f32 %v7208_v60 }
 0x355   : > { %v7211_v23 = vand.u32 2147483648, %v1513_v6  ;;  %v7633_v13 = vcvt.f32.s32 %v7632_v59  ;;  %v1414_v19 = vmax.f32 %v1270_v45, 0.0  ;;  %v7631_v41 = vcvt.f32.s32 %v7630_v57 }
 0x356   : > { %v4984_v52 = vsel %vm4869_vm15, %v4983_v16, %v4982_v4  ;;  %v1757_v36 = vmin.f32 %v1659_v14, 32767.0  ;;  %v7210_v47 = vand.u32 2147483647, %v7209_v20  ;;  %v6800_v55 = vcvt.f32.s32 %v1462_v40 }
 0x357   : > { %v4986_v5 = vsel %vm4872_vm0, %v4985_v18, %v4984_v52  ;;  %vm8948_vm3 = vcmp.lt.f32.partialorder %v7206_v7, 8388608.0  ;;  %v6798_v62 = vand.u32 2147483647, %v1462_v40  ;;  %v5980_v1 = vunpack.i.l.s16 %v7633_v13 }
 0x358   : > { %v4988_v48 = vsel %vm4875_vm1, %v4987_v50, %v4986_v5  ;;  %v1953_v42 = vcombine.high %v1757_v36, %v1757_v36  ;;  %v5493_v33 = vrot.slane %v1757_v36, 9  ;;  %v7212_v11 = vor.u32 %v7211_v23, %v7210_v47 }
 0x359   : > { %v5213_v37 = vpack.c.b16 %v4988_v48, %v4988_v48  ;;  %v6801_v63 = vcvt.s32.f32 %v6800_v55  ;;  %v1512_v44 = vmul.f32 256.0, %v1414_v19  ;;  %v6803_v12 = vand.u32 2147483648, %v1462_v40  ;;  %v6491_v55 = vpop.f32.mrf.mxu1 }
 0x35a   : > { %v5494_v51 = vrot.slane %v1953_v42, 9  ;;  %v2774_v18 = vmax.f32 %v1757_v36, %v5493_v33  ;;  %v7213_v50 = vsel %vm8948_vm3, %v7212_v11, %v1513_v6  ;;  %v1035_v15 = vadd.f32 %v8935_v56, %v6416_v3 }
 0x35b   : > { %5239 = vst.msk [vmem:[%s8014_s27 + $0x20] sm:$0xf] %vm5230_vm2, %v5213_v37  ;;  %v6802_v32 = vand.u32 2147483647, %v6801_v63  ;;  %v5979_v25 = vunpack.i.l.s16 %v7631_v41  ;;  %v1709_v28 = vmax.f32 %v7213_v50, -32768.0  ;;  %vm8957_vm4 = vcmp.lt.f32.partialorder %v6798_v62, 8388608.0 }
 0x35c   : > { %v2775_v46 = vmax.f32 %v1953_v42, %v5494_v51  ;;  %v5689_v27 = vrot.slane %v2774_v18, 10  ;;  %v7198_v30 = vand.u32 2147483647, %v1512_v44  ;;  %v7200_v35 = vcvt.f32.s32 %v1512_v44 }
 0x35d   : > { %v6804_v2 = vor.u32 %v6803_v12, %v6802_v32  ;;  %v5157_v10 = vrot.slane %v5980_v1, 7  ;;  %v1807_v49 = vmin.f32 %v1709_v28, 32767.0  ;;  %v7203_v31 = vand.u32 2147483648, %v1512_v44 }
 0x35e   : > { %v5690_v21 = vrot.slane %v2775_v46, 10  ;;  %v3754_v54 = vmax.f32 %v2774_v18, %v5689_v27  ;;  %v7201_v34 = vcvt.s32.f32 %v7200_v35  ;;  %v1367_v43 = vmax.f32 %v1035_v15, 0.0 }
 0x35f   : > { %v6805_v38 = vsel %vm8957_vm4, %v6804_v2, %v1462_v40  ;;  %v2003_v6 = vcombine.high %v1807_v49, %v1807_v49  ;;  %v5593_v26 = vrot.slane %v1807_v49, 9  ;;  %vm8963_vm7 = vcmp.lt.f32.partialorder %v7198_v30, 8388608.0 }
 0x360   : > { %v3755_v58 = vmax.f32 %v2775_v46, %v5690_v21  ;;  %v3950_v9 = vmax.f32 %v3754_v54, -32768.0  ;;  %v1658_v39 = vmax.f32 %v6805_v38, -32768.0  ;;  %v7202_v45 = vand.u32 2147483647, %v7201_v34 }
 0x361   : > { %v8967_v59 = vmul.f32 256.0, %v1367_v43  ;;  %v5594_v4 = vrot.slane %v2003_v6, 9  ;;  %v2874_v16 = vmax.f32 %v1807_v49, %v5593_v26  ;;  %v5158_v40 = vsel %vm4857_vm5, %v5157_v10, %v5979_v25 }
 0x362   : > { %v3951_v8 = vmax.f32 %v3755_v58, -32768.0  ;;  %v4146_v60 = vmin.f32 %v3950_v9, 32767.0  ;;  %v1756_v14 = vmin.f32 %v1658_v39, 32767.0  ;;  %v7204_v7 = vor.u32 %v7203_v31, %v7202_v45 }
 0x363   : > { %v6824_v20 = vcvt.f32.s32 %v8967_v59  ;;  %v2875_v13 = vmax.f32 %v2003_v6, %v5594_v4  ;;  %v5789_v36 = vrot.slane %v2874_v16, 10  ;;  %v6822_v47 = vand.u32 2147483647, %v8967_v59 }
 0x364   : > { %v4147_v23 = vmin.f32 %v3951_v8, 32767.0  ;;  %v7442_v52 = vtrunc.f32 %v4146_v60  ;;  %v1952_v19 = vcombine.high %v1756_v14, %v1756_v14  ;;  %v5491_v5 = vrot.slane %v1756_v14, 9 }
 0x365   : > { %v7205_v41 = vsel %vm8963_vm7, %v7204_v7, %v1512_v44  ;;  %v5160_v48 = vsel %vm4860_vm6, %v8943_v61, %v5158_v40  ;;  %v5790_v33 = vrot.slane %v2875_v13, 10  ;;  %v3854_v22 = vmax.f32 %v2874_v16, %v5789_v36 }
 0x366   : > { %v7444_v42 = vtrunc.f32 %v4147_v23  ;;  %v5492_v3 = vrot.slane %v1952_v19, 9  ;;  %v2772_v37 = vmax.f32 %v1756_v14, %v5491_v5  ;;  %v1708_v11 = vmax.f32 %v7205_v41, -32768.0 }
 0x367   : > { %v6825_v62 = vcvt.s32.f32 %v6824_v20  ;;  %v7443_v63 = vcvt.f32.s32 %v7442_v52  ;;  %v3855_v1 = vmax.f32 %v2875_v13, %v5790_v33  ;;  %v4050_v51 = vmax.f32 %v3854_v22, -32768.0 }
 0x368   : > { %v1285_v18 = vadd.f32 %v8935_v56, %v6491_v55  ;;  %v2773_v50 = vmax.f32 %v1952_v19, %v5492_v3  ;;  %v5687_v44 = vrot.slane %v2772_v37, 10  ;;  %v1806_v32 = vmin.f32 %v1708_v11, 32767.0  ;;  %v1029_v55 = vpop.f32.mrf.mxu0 }
 0x369   : > { %vm8977_vm8 = vcmp.lt.f32.partialorder %v6822_v47, 8388608.0  ;;  %v7445_v61 = vcvt.f32.s32 %v7444_v42  ;;  %v4051_v15 = vmax.f32 %v3855_v1, -32768.0  ;;  %v4246_v25 = vmin.f32 %v4050_v51, 32767.0  ;;  %v1279_v1 = vpop.f32.mrf.mxu1 }
 0x36a   : > { %v6826_v46 = vand.u32 2147483647, %v6825_v62  ;;  %v5688_v27 = vrot.slane %v2773_v50, 10  ;;  %v3752_v28 = vmax.f32 %v2772_v37, %v5687_v44  ;;  %v2002_v29 = vcombine.high %v1806_v32, %v1806_v32 }
 0x36b   : > { %v5591_v2 = vrot.slane %v1806_v32, 9  ;;  %v5885_v30 = vunpack.i.l.s16 %v7443_v63  ;;  %v4247_v35 = vmin.f32 %v4051_v15, 32767.0  ;;  %v7642_v10 = vtrunc.f32 %v4246_v25 }
 0x36c   : > { %v6827_v21 = vand.u32 2147483648, %v8967_v59  ;;  %v3753_v54 = vmax.f32 %v2773_v50, %v5688_v27  ;;  %v3948_v49 = vmax.f32 %v3752_v28, -32768.0  ;;  %v5592_v38 = vrot.slane %v2002_v29, 9 }
 0x36d   : > { %v2872_v34 = vmax.f32 %v1806_v32, %v5591_v2  ;;  %v5886_v31 = vunpack.i.l.s16 %v7445_v61  ;;  %v7644_v43 = vtrunc.f32 %v4247_v35  ;;  %v1417_v9 = vmax.f32 %v1285_v18, 0.0 }
 0x36e   : > { %v6828_v58 = vor.u32 %v6827_v21, %v6826_v46  ;;  %v7643_v6 = vcvt.f32.s32 %v7642_v10  ;;  %v3949_v26 = vmax.f32 %v3753_v54, -32768.0  ;;  %v2873_v39 = vmax.f32 %v2002_v29, %v5592_v38 }
 0x36f   : > { %v5787_v57 = vrot.slane %v2872_v34, 10  ;;  %v5161_v45 = vrot.slane %v5982_v24, 5  ;;  %v4144_v8 = vmin.f32 %v3948_v49, 32767.0  ;;  %v1515_v4 = vmul.f32 256.0, %v1417_v9 }
 0x370   : > { %v6829_v60 = vsel %vm8977_vm8, %v6828_v58, %v8967_v59  ;;  %v7645_v16 = vcvt.f32.s32 %v7644_v43  ;;  %v4145_v40 = vmin.f32 %v3949_v26, 32767.0  ;;  %v5788_v14 = vrot.slane %v2873_v39, 10 }
 0x371   : > { %v3852_v7 = vmax.f32 %v2872_v34, %v5787_v57  ;;  %v8987_v20 = vrot.slane %v5885_v30, 6  ;;  %v8989_v23 = vrot.slane %v5886_v31, 5  ;;  %v5162_v52 = vsel %vm4863_vm9, %v5161_v45, %v5160_v48 }
 0x372   : > { %v1661_v13 = vmax.f32 %v6829_v60, -32768.0  ;;  %v5985_v36 = vunpack.i.l.s16 %v7643_v6  ;;  %v7440_v53 = vtrunc.f32 %v4145_v40  ;;  %v3853_v24 = vmax.f32 %v2873_v39, %v5788_v14 }
 0x373   : > { %v4048_v19 = vmax.f32 %v3852_v7, -32768.0  ;;  %v7438_v5 = vtrunc.f32 %v4144_v8  ;;  %v7222_v47 = vand.u32 2147483647, %v1515_v4  ;;  %v7224_v59 = vcvt.f32.s32 %v1515_v4 }
 0x374   : > { %v1759_v41 = vmin.f32 %v1661_v13, 32767.0  ;;  %v5986_v42 = vunpack.i.l.s16 %v7645_v16  ;;  %v7441_v33 = vcvt.f32.s32 %v7440_v53  ;;  %v4049_v22 = vmax.f32 %v3853_v24, -32768.0 }
 0x375   : > { %v4244_v3 = vmin.f32 %v4048_v19, 32767.0  ;;  %v7225_v62 = vcvt.s32.f32 %v7224_v59  ;;  %v7227_v63 = vand.u32 2147483648, %v1515_v4  ;;  %v5167_v48 = vrot.slane %v5985_v36, 2 }
 0x376   : > { %v1955_v37 = vcombine.high %v1759_v41, %v1759_v41  ;;  %v5497_v11 = vrot.slane %v1759_v41, 9  ;;  %v4245_v51 = vmin.f32 %v4049_v22, 32767.0  ;;  %v1030_v50 = vadd.f32 %v8935_v56, %v1029_v55 }
 0x377   : > { %v7638_v18 = vtrunc.f32 %v4244_v3  ;;  %vm8993_vm10 = vcmp.lt.f32.partialorder %v7222_v47, 8388608.0  ;;  %v7226_v61 = vand.u32 2147483647, %v7225_v62  ;;  %v1280_v27 = vadd.f32 %v8935_v56, %v1279_v1 }
 0x378   : > { %v5498_v44 = vrot.slane %v1955_v37, 9  ;;  %v2778_v32 = vmax.f32 %v1759_v41, %v5497_v11  ;;  %v7640_v25 = vtrunc.f32 %v4245_v51  ;;  %v1366_v46 = vmax.f32 %v1030_v50, 0.0  ;;  %v6419_v51 = vpop.f32.mrf.mxu0 }
 0x379   : > { %v7639_v15 = vcvt.f32.s32 %v7638_v18  ;;  %v5884_v28 = vunpack.i.l.s16 %v7441_v33  ;;  %v7228_v30 = vor.u32 %v7227_v63, %v7226_v61  ;;  %v7439_v35 = vcvt.f32.s32 %v7438_v5  ;;  %v6494_v18 = vpop.f32.mrf.mxu1 }
 0x37a   : > { %v2779_v29 = vmax.f32 %v1955_v37, %v5498_v44  ;;  %v5693_v2 = vrot.slane %v2778_v32, 10  ;;  %v7641_v10 = vcvt.f32.s32 %v7640_v25  ;;  %v1464_v54 = vmul.f32 256.0, %v1366_v46 }
 0x37b   : > { %v5983_v21 = vunpack.i.l.s16 %v7639_v15  ;;  %v5169_v49 = vrot.slane %v5986_v42, 1  ;;  %v7229_v31 = vsel %vm8993_vm10, %v7228_v30, %v1515_v4  ;;  %v1416_v6 = vmax.f32 %v1280_v27, 0.0 }
 0x37c   : > { %v5694_v38 = vrot.slane %v2779_v29, 10  ;;  %v3758_v34 = vmax.f32 %v2778_v32, %v5693_v2  ;;  %v5984_v43 = vunpack.i.l.s16 %v7641_v10  ;;  %v1711_v9 = vmax.f32 %v7229_v31, -32768.0 }
 0x37d   : > { %v5163_v58 = vrot.slane %v5983_v21, 4  ;;  %v4989_v26 = vrot.slane %v5884_v28, 7  ;;  %v6816_v45 = vcvt.f32.s32 %v1464_v54  ;;  %v6814_v40 = vand.u32 2147483647, %v1464_v54  ;;  %v1039_v21 = vpop.f32.mrf.mxu0 }
 0x37e   : > { %v3759_v39 = vmax.f32 %v2779_v29, %v5694_v38  ;;  %v3954_v57 = vmax.f32 %v3758_v34, -32768.0  ;;  %v5165_v60 = vrot.slane %v5984_v43, 3  ;;  %v1809_v16 = vmin.f32 %v1711_v9, 32767.0 }
 0x37f   : > { %v5164_v8 = vsel %vm4866_vm13, %v5163_v58, %v5162_v52  ;;  %v6817_v13 = vcvt.s32.f32 %v6816_v45  ;;  %v6819_v36 = vand.u32 2147483648, %v1464_v54  ;;  %v1514_v19 = vmul.f32 256.0, %v1416_v6 }
 0x380   : > { %v3955_v14 = vmax.f32 %v3759_v39, -32768.0  ;;  %v4150_v7 = vmin.f32 %v3954_v57, 32767.0  ;;  %v5166_v53 = vsel %vm4869_vm15, %v5165_v60, %v5164_v8  ;;  %v2005_v4 = vcombine.high %v1809_v16, %v1809_v16 }
 0x381   : > { %v5597_v24 = vrot.slane %v1809_v16, 9  ;;  %v5168_v5 = vsel %vm4872_vm0, %v5167_v48, %v5166_v53  ;;  %v6818_v59 = vand.u32 2147483647, %v6817_v13  ;;  %v5883_v55 = vunpack.i.l.s16 %v7439_v35 }
 0x382   : > { %v4151_v41 = vmin.f32 %v3955_v14, 32767.0  ;;  %v7450_v47 = vtrunc.f32 %v4150_v7  ;;  %v5170_v52 = vsel %vm4875_vm1, %v5169_v49, %v5168_v5  ;;  %v5598_v42 = vrot.slane %v2005_v4, 9 }
 0x383   : > { %v2878_v33 = vmax.f32 %v1809_v16, %v5597_v24  ;;  %v5226_v22 = vpack.c.b16 %v5170_v52, %v5170_v52  ;;  %v6820_v11 = vor.u32 %v6819_v36, %v6818_v59  ;;  %vm6815_vm12 = vcmp.lt.f32.partialorder %v6814_v40, 8388608.0 }
 0x384   : > { %v7451_v3 = vcvt.f32.s32 %v7450_v47  ;;  %v7452_v37 = vtrunc.f32 %v4151_v41  ;;  %v2879_v62 = vmax.f32 %v2005_v4, %v5598_v42  ;;  %v7216_v1 = vcvt.f32.s32 %v1514_v19 }
 0x385   : > { %v5793_v63 = vrot.slane %v2878_v33, 10  ;;  %v4990_v48 = vsel %vm4857_vm5, %v4989_v26, %v5883_v55  ;;  %5252 = vst.msk [vmem:[%s8014_s27 + $0x54] sm:$0xf] %vm5230_vm2, %v5226_v22  ;;  %v6821_v44 = vsel %vm6815_vm12, %v6820_v11, %v1464_v54  ;;  %v7214_v32 = vand.u32 2147483647, %v1514_v19 }
 0x386   : > { %v7453_v50 = vcvt.f32.s32 %v7452_v37  ;;  %v5794_v12 = vrot.slane %v2879_v62, 10  ;;  %v1660_v15 = vmax.f32 %v6821_v44, -32768.0  ;;  %v7217_v25 = vcvt.s32.f32 %v7216_v1 }
 0x387   : > { %v3858_v61 = vmax.f32 %v2878_v33, %v5793_v63  ;;  %v5889_v46 = vunpack.i.l.s16 %v7451_v3  ;;  %v7219_v27 = vand.u32 2147483648, %v1514_v19  ;;  %v1045_v28 = vadd.f32 %v8935_v56, %v6419_v51 }
 0x388   : > { %v1295_v29 = vadd.f32 %v8935_v56, %v6494_v18  ;;  %v3859_v2 = vmax.f32 %v2879_v62, %v5794_v12  ;;  %v1758_v35 = vmin.f32 %v1660_v15, 32767.0  ;;  %v7218_v10 = vand.u32 2147483647, %v7217_v25 }
 0x389   : > { %v4054_v30 = vmax.f32 %v3858_v61, -32768.0  ;;  %v4992_v49 = vsel %vm4860_vm6, %v8987_v20, %v4990_v48  ;;  %vm9011_vm14 = vcmp.lt.f32.partialorder %v7214_v32, 8388608.0  ;;  %v1369_v38 = vmax.f32 %v1045_v28, 0.0 }
 0x38a   : > { %v1419_v34 = vmax.f32 %v1295_v29, 0.0  ;;  %v4055_v31 = vmax.f32 %v3859_v2, -32768.0  ;;  %v1954_v58 = vcombine.high %v1758_v35, %v1758_v35  ;;  %v5495_v9 = vrot.slane %v1758_v35, 9 }
 0x38b   : > { %v4250_v43 = vmin.f32 %v4054_v30, 32767.0  ;;  %v5890_v6 = vunpack.i.l.s16 %v7453_v50  ;;  %v7220_v26 = vor.u32 %v7219_v27, %v7218_v10  ;;  %v1467_v39 = vmul.f32 256.0, %v1369_v38  ;;  %v1289_v38 = vpop.f32.mrf.mxu1 }
 0x38c   : > { %v1040_v57 = vadd.f32 %v8935_v56, %v1039_v21  ;;  %v9016_v45 = vrot.slane %v5889_v46, 2  ;;  %v5496_v8 = vrot.slane %v1954_v58, 9  ;;  %v2776_v60 = vmax.f32 %v1758_v35, %v5495_v9 }
 0x38d   : > { %v9020_v20 = vsel %vm4863_vm9, %v8989_v23, %v4992_v49  ;;  %v7650_v16 = vtrunc.f32 %v4250_v43  ;;  %v7221_v40 = vsel %vm9011_vm14, %v7220_v26, %v1514_v19  ;;  %v6840_v14 = vcvt.f32.s32 %v1467_v39 }
 0x38e   : > { %v1517_v7 = vmul.f32 256.0, %v1419_v34  ;;  %v4251_v13 = vmin.f32 %v4055_v31, 32767.0  ;;  %v2777_v36 = vmax.f32 %v1954_v58, %v5496_v8  ;;  %v5691_v53 = vrot.slane %v2776_v60, 10 }
 0x38f   : > { %v6838_v4 = vand.u32 2147483647, %v1467_v39  ;;  %v9024_v24 = vrot.slane %v5890_v6, 1  ;;  %v1710_v5 = vmax.f32 %v7221_v40, -32768.0  ;;  %v6841_v41 = vcvt.s32.f32 %v6840_v14 }
 0x390   : > { %v1368_v47 = vmax.f32 %v1040_v57, 0.0  ;;  %v5692_v59 = vrot.slane %v2777_v36, 10  ;;  %v3756_v55 = vmax.f32 %v2776_v60, %v5691_v53  ;;  %v6843_v52 = vand.u32 2147483648, %v1467_v39 }
 0x391   : > { %v7238_v23 = vand.u32 2147483647, %v1517_v7  ;;  %v9026_v42 = vcvt.f32.s32 %v7650_v16  ;;  %v1808_v33 = vmin.f32 %v1710_v5, 32767.0  ;;  %v6842_v22 = vand.u32 2147483647, %v6841_v41 }
 0x392   : > { %v7240_v19 = vcvt.f32.s32 %v1517_v7  ;;  %v7652_v3 = vtrunc.f32 %v4251_v13  ;;  %v3757_v37 = vmax.f32 %v2777_v36, %v5692_v59  ;;  %v3952_v11 = vmax.f32 %v3756_v55, -32768.0 }
 0x393   : > { %vm6839_vm11 = vcmp.lt.f32.partialorder %v6838_v4, 8388608.0  ;;  %v2004_v62 = vcombine.high %v1808_v33, %v1808_v33  ;;  %v5595_v63 = vrot.slane %v1808_v33, 9  ;;  %v6844_v1 = vor.u32 %v6843_v52, %v6842_v22 }
 0x394   : > { %v7241_v51 = vcvt.s32.f32 %v7240_v19  ;;  %v3953_v18 = vmax.f32 %v3757_v37, -32768.0  ;;  %v4148_v48 = vmin.f32 %v3952_v11, 32767.0  ;;  %vm9028_vm3 = vcmp.lt.f32.partialorder %v7238_v23, 8388608.0 }
 0x395   : > { %v7243_v44 = vand.u32 2147483648, %v1517_v7  ;;  %v5596_v32 = vrot.slane %v2004_v62, 9  ;;  %v2876_v12 = vmax.f32 %v1808_v33, %v5595_v63  ;;  %v6845_v61 = vsel %vm6839_vm11, %v6844_v1, %v1467_v39 }
 0x396   : > { %v7242_v15 = vand.u32 2147483647, %v7241_v51  ;;  %v4149_v25 = vmin.f32 %v3953_v18, 32767.0  ;;  %v7446_v46 = vtrunc.f32 %v4148_v48  ;;  %v1663_v27 = vmax.f32 %v6845_v61, -32768.0 }
 0x397   : > { %v9032_v28 = vmul.f32 256.0, %v1368_v47  ;;  %v9034_v29 = vcvt.f32.s32 %v7652_v3  ;;  %v2877_v2 = vmax.f32 %v2004_v62, %v5596_v32  ;;  %v5791_v30 = vrot.slane %v2876_v12, 10 }
 0x398   : > { %v7244_v35 = vor.u32 %v7243_v44, %v7242_v15  ;;  %v5989_v10 = vunpack.i.l.s16 %v9026_v42  ;;  %v7447_v21 = vcvt.f32.s32 %v7446_v46  ;;  %v7448_v49 = vtrunc.f32 %v4149_v25  ;;  %v6422_v44 = vpop.f32.mrf.mxu0 }
 0x399   : > { %v1761_v54 = vmin.f32 %v1663_v27, 32767.0  ;;  %v5792_v34 = vrot.slane %v2877_v2, 10  ;;  %v3856_v31 = vmax.f32 %v2876_v12, %v5791_v30  ;;  %v6832_v58 = vcvt.f32.s32 %v9032_v28 }
 0x39a   : > { %v7245_v43 = vsel %vm9028_vm3, %v7244_v35, %v1517_v7  ;;  %v7449_v9 = vcvt.f32.s32 %v7448_v49  ;;  %v5887_v6 = vunpack.i.l.s16 %v7447_v21  ;;  %v1290_v16 = vadd.f32 %v8935_v56, %v1289_v38 }
 0x39b   : > { %v1957_v26 = vcombine.high %v1761_v54, %v1761_v54  ;;  %v5501_v39 = vrot.slane %v1761_v54, 9  ;;  %v3857_v57 = vmax.f32 %v2877_v2, %v5792_v34  ;;  %v4052_v8 = vmax.f32 %v3856_v31, -32768.0 }
 0x39c   : > { %v1713_v60 = vmax.f32 %v7245_v43, -32768.0  ;;  %v5888_v40 = vunpack.i.l.s16 %v7449_v9  ;;  %v4995_v14 = vrot.slane %v5887_v6, 4  ;;  %v6833_v41 = vcvt.s32.f32 %v6832_v58 }
 0x39d   : > { %v5502_v13 = vrot.slane %v1957_v26, 9  ;;  %v2782_v36 = vmax.f32 %v1761_v54, %v5501_v39  ;;  %v4053_v53 = vmax.f32 %v3857_v57, -32768.0  ;;  %v4248_v4 = vmin.f32 %v4052_v8, 32767.0 }
 0x39e   : > { %v1811_v5 = vmin.f32 %v1713_v60, 32767.0  ;;  %v4996_v7 = vsel %vm4866_vm13, %v4995_v14, %v9020_v20  ;;  %v4997_v47 = vrot.slane %v5888_v40, 3  ;;  %v6830_v11 = vand.u32 2147483647, %v9032_v28 }
 0x39f   : > { %v2783_v59 = vmax.f32 %v1957_v26, %v5502_v13  ;;  %v5697_v55 = vrot.slane %v2782_v36, 10  ;;  %v4249_v52 = vmin.f32 %v4053_v53, 32767.0  ;;  %v7646_v23 = vtrunc.f32 %v4248_v4 }
 0x3a0   : > { %v2007_v33 = vcombine.high %v1811_v5, %v1811_v5  ;;  %v5601_v22 = vrot.slane %v1811_v5, 9  ;;  %v4998_v19 = vsel %vm4869_vm15, %v4997_v47, %v4996_v7  ;;  %v6834_v20 = vand.u32 2147483647, %v6833_v41 }
 0x3a1   : > { %v5698_v3 = vrot.slane %v2783_v59, 10  ;;  %v3762_v37 = vmax.f32 %v2782_v36, %v5697_v55  ;;  %v5000_v62 = vsel %vm4872_vm0, %v9016_v45, %v4998_v19  ;;  %v7648_v63 = vtrunc.f32 %v4249_v52 }
 0x3a2   : > { %v5602_v1 = vrot.slane %v2007_v33, 9  ;;  %v5002_v51 = vsel %vm4875_vm1, %v9024_v24, %v5000_v62  ;;  %v2882_v50 = vmax.f32 %v1811_v5, %v5601_v22  ;;  %v7647_v12 = vcvt.f32.s32 %v7646_v23 }
 0x3a3   : > { %v3763_v18 = vmax.f32 %v2783_v59, %v5698_v3  ;;  %v3958_v48 = vmax.f32 %v3762_v37, -32768.0  ;;  %v5214_v32 = vpack.c.b16 %v5002_v51, %v5002_v51  ;;  %v7649_v61 = vcvt.f32.s32 %v7648_v63 }
 0x3a4   : > { %v2883_v15 = vmax.f32 %v2007_v33, %v5602_v1  ;;  %v5797_v27 = vrot.slane %v2882_v50, 10  ;;  %v6835_v45 = vand.u32 2147483648, %v9032_v28  ;;  %v1418_v35 = vmax.f32 %v1290_v16, 0.0 }
 0x3a5   : > { %v3959_v25 = vmax.f32 %v3763_v18, -32768.0  ;;  %v4154_v46 = vmin.f32 %v3958_v48, 32767.0  ;;  %5240 = vst.msk [vmem:[%s8014_s27 + $0x24] sm:$0xf] %vm5230_vm2, %v5214_v32  ;;  %v5988_v2 = vunpack.i.l.s16 %v7649_v61  ;;  %v1055_v24 = vadd.f32 %v8935_v56, %v6422_v44 }
 0x3a6   : > { %v5798_v30 = vrot.slane %v2883_v15, 10  ;;  %v3862_v54 = vmax.f32 %v2882_v50, %v5797_v27  ;;  %v6836_v38 = vor.u32 %v6835_v45, %v6834_v20  ;;  %vm6831_vm4 = vcmp.lt.f32.partialorder %v6830_v11, 8388608.0  ;;  %v6497_v11 = vpop.f32.mrf.mxu1  ;;  %v1049_v50 = vpop.f32.mrf.mxu0 }
 0x3a7   : > { %v4155_v21 = vmin.f32 %v3959_v25, 32767.0  ;;  %v7458_v49 = vtrunc.f32 %v4154_v46  ;;  %v5171_v34 = vrot.slane %v5988_v2, 7  ;;  %v1516_v43 = vmul.f32 256.0, %v1418_v35 }
 0x3a8   : > { %v3863_v31 = vmax.f32 %v2883_v15, %v5798_v30  ;;  %v4058_v6 = vmax.f32 %v3862_v54, -32768.0  ;;  %v6837_v26 = vsel %vm6831_vm4, %v6836_v38, %v9032_v28  ;;  %v9056_v39 = vcombine.high %v8767_v17, %v8767_v17 }
 0x3a9   : > { %v7459_v58 = vcvt.f32.s32 %v7458_v49  ;;  %v7460_v9 = vtrunc.f32 %v4155_v21  ;;  %v5987_v57 = vunpack.i.l.s16 %v7647_v12  ;;  %v1662_v60 = vmax.f32 %v6837_v26, -32768.0 }
 0x3aa   : > { %v4059_v8 = vmax.f32 %v3863_v31, -32768.0  ;;  %v5990_v16 = vunpack.i.l.s16 %v9034_v29  ;;  %v5173_v40 = vrot.slane %v5989_v10, 6  ;;  %v4254_v14 = vmin.f32 %v4058_v6, 32767.0 }
 0x3ab   : > { %v1371_v13 = vmax.f32 %v1055_v24, 0.0  ;;  %v5172_v36 = vsel %vm4857_vm5, %v5171_v34, %v5987_v57  ;;  %v1760_v4 = vmin.f32 %v1662_v60, 32767.0  ;;  %v7232_v5 = vcvt.f32.s32 %v1516_v43 }
 0x3ac   : > { %v4255_v53 = vmin.f32 %v4059_v8, 32767.0  ;;  %v7461_v28 = vcvt.f32.s32 %v7460_v9  ;;  %v5893_v41 = vunpack.i.l.s16 %v7459_v58  ;;  %v7658_v7 = vtrunc.f32 %v4254_v14  ;;  %v1299_v9 = vpop.f32.mrf.mxu1 }
 0x3ad   : > { %v7230_v47 = vand.u32 2147483647, %v1516_v43  ;;  %v1956_v59 = vcombine.high %v1760_v4, %v1760_v4  ;;  %v5499_v55 = vrot.slane %v1760_v4, 9  ;;  %v7233_v52 = vcvt.s32.f32 %v7232_v5 }
 0x3ae   : > { %v7235_v23 = vand.u32 2147483648, %v1516_v43  ;;  %v5521_v29 = vrot.slane %v8767_v17, 9  ;;  %v5175_v33 = vrot.slane %v5990_v16, 5  ;;  %v7660_v42 = vtrunc.f32 %v4255_v53 }
 0x3af   : > { %v1469_v10 = vmul.f32 256.0, %v1371_v13  ;;  %v5174_v22 = vsel %vm4860_vm6, %v5173_v40, %v5172_v36  ;;  %v5500_v19 = vrot.slane %v1956_v59, 9  ;;  %v2780_v3 = vmax.f32 %v1760_v4, %v5499_v55 }
 0x3b0   : > { %v7234_v37 = vand.u32 2147483647, %v7233_v52  ;;  %v5894_v62 = vunpack.i.l.s16 %v7461_v28  ;;  %v9064_v63 = vrot.slane %v5893_v41, 6  ;;  %vm7231_vm7 = vcmp.lt.f32.partialorder %v7230_v47, 8388608.0  ;;  %v6425_v41 = vpop.f32.mrf.mxu0 }
 0x3b1   : > { %v6856_v1 = vcvt.f32.s32 %v1469_v10  ;;  %v7659_v20 = vcvt.f32.s32 %v7658_v7  ;;  %v2781_v51 = vmax.f32 %v1956_v59, %v5500_v19  ;;  %v5695_v18 = vrot.slane %v2780_v3, 10 }
 0x3b2   : > { %v7236_v48 = vor.u32 %v7235_v23, %v7234_v37  ;;  %v9066_v44 = vcvt.f32.s32 %v7660_v42  ;;  %v6854_v32 = vand.u32 2147483647, %v1469_v10  ;;  %v1305_v61 = vadd.f32 %v8935_v56, %v6497_v11 }
 0x3b3   : > { %v6857_v12 = vcvt.s32.f32 %v6856_v1  ;;  %v5696_v15 = vrot.slane %v2781_v51, 10  ;;  %v3760_v25 = vmax.f32 %v2780_v3, %v5695_v18  ;;  %v6859_v27 = vand.u32 2147483648, %v1469_v10 }
 0x3b4   : > { %v7237_v46 = vsel %vm7231_vm7, %v7236_v48, %v1516_v43  ;;  %v1421_v30 = vmax.f32 %v1305_v61, 0.0  ;;  %v1050_v35 = vadd.f32 %v8935_v56, %v1049_v50  ;;  %v9070_v24 = vrot.slane %v5894_v62, 5 }
 0x3b5   : > { %v1712_v45 = vmax.f32 %v7237_v46, -32768.0  ;;  %v6858_v2 = vand.u32 2147483647, %v6857_v12  ;;  %v3761_v21 = vmax.f32 %v2781_v51, %v5696_v15  ;;  %v3956_v49 = vmax.f32 %v3760_v25, -32768.0 }
 0x3b6   : > { %v9073_v54 = vsel %vm4863_vm9, %v5175_v33, %v5174_v22  ;;  %v5993_v38 = vunpack.i.l.s16 %v7659_v20  ;;  %v1519_v58 = vmul.f32 256.0, %v1421_v30  ;;  %v5994_v43 = vunpack.i.l.s16 %v9066_v44 }
 0x3b7   : > { %v1810_v34 = vmin.f32 %v1712_v45, 32767.0  ;;  %v6860_v31 = vor.u32 %v6859_v27, %v6858_v2  ;;  %v3957_v6 = vmax.f32 %v3761_v21, -32768.0  ;;  %v4152_v26 = vmin.f32 %v3956_v49, 32767.0 }
 0x3b8   : > { %vm6855_vm8 = vcmp.lt.f32.partialorder %v6854_v32, 8388608.0  ;;  %v1370_v16 = vmax.f32 %v1050_v35, 0.0  ;;  %v7256_v13 = vcvt.f32.s32 %v1519_v58  ;;  %v1300_v36 = vadd.f32 %v8935_v56, %v1299_v9 }
 0x3b9   : > { %v2006_v57 = vcombine.high %v1810_v34, %v1810_v34  ;;  %v5599_v8 = vrot.slane %v1810_v34, 9  ;;  %v6861_v60 = vsel %vm6855_vm8, %v6860_v31, %v1469_v10  ;;  %v4153_v40 = vmin.f32 %v3957_v6, 32767.0 }
 0x3ba   : > { %v1665_v14 = vmax.f32 %v6861_v60, -32768.0  ;;  %v9077_v53 = vrot.slane %v5993_v38, 2  ;;  %v7254_v28 = vand.u32 2147483647, %v1519_v58  ;;  %v7454_v7 = vtrunc.f32 %v4152_v26 }
 0x3bb   : > { %v5600_v4 = vrot.slane %v2006_v57, 9  ;;  %v2880_v5 = vmax.f32 %v1810_v34, %v5599_v8  ;;  %v7456_v47 = vtrunc.f32 %v4153_v40  ;;  %v7257_v55 = vcvt.s32.f32 %v7256_v13 }
 0x3bc   : > { %v1763_v59 = vmin.f32 %v1665_v14, 32767.0  ;;  %v7259_v33 = vand.u32 2147483648, %v1519_v58  ;;  %v1468_v42 = vmul.f32 256.0, %v1370_v16  ;;  %v1420_v19 = vmax.f32 %v1300_v36, 0.0 }
 0x3bd   : > { %v2881_v52 = vmax.f32 %v2006_v57, %v5600_v4  ;;  %v5795_v23 = vrot.slane %v2880_v5, 10  ;;  %v9080_v3 = vadd.f32 %v8935_v56, %v6425_v41  ;;  %v7457_v37 = vcvt.f32.s32 %v7456_v47 }
 0x3be   : > { %v1959_v10 = vcombine.high %v1763_v59, %v1763_v59  ;;  %v5505_v22 = vrot.slane %v1763_v59, 9  ;;  %v7258_v1 = vand.u32 2147483647, %v7257_v55  ;;  %vm9082_vm10 = vcmp.lt.f32.partialorder %v7254_v28, 8388608.0 }
 0x3bf   : > { %v5796_v11 = vrot.slane %v2881_v52, 10  ;;  %v3860_v62 = vmax.f32 %v2880_v5, %v5795_v23  ;;  %v6848_v48 = vcvt.f32.s32 %v1468_v42  ;;  %v7455_v50 = vcvt.f32.s32 %v7454_v7 }
 0x3c0   : > { %v5506_v20 = vrot.slane %v1959_v10, 9  ;;  %v2786_v51 = vmax.f32 %v1763_v59, %v5505_v22  ;;  %v7260_v61 = vor.u32 %v7259_v33, %v7258_v1  ;;  %v6846_v46 = vand.u32 2147483647, %v1468_v42 }
 0x3c1   : > { %v3861_v32 = vmax.f32 %v2881_v52, %v5796_v11  ;;  %v4056_v12 = vmax.f32 %v3860_v62, -32768.0  ;;  %v6849_v56 = vcvt.s32.f32 %v6848_v48  ;;  %v5892_v27 = vunpack.i.l.s16 %v7457_v37 }
 0x3c2   : > { %v2787_v15 = vmax.f32 %v1959_v10, %v5506_v20  ;;  %v5701_v25 = vrot.slane %v2786_v51, 10  ;;  %v7261_v30 = vsel %vm9082_vm10, %v7260_v61, %v1519_v58  ;;  %v9088_v38 = vmul.f32 256.0, %v1420_v19 }
 0x3c3   : > { %v4057_v45 = vmax.f32 %v3861_v32, -32768.0  ;;  %v4252_v2 = vmin.f32 %v4056_v12, 32767.0  ;;  %v1715_v49 = vmax.f32 %v7261_v30, -32768.0  ;;  %v6850_v9 = vand.u32 2147483647, %v6849_v56  ;;  %v6500_v30 = vpop.f32.mrf.mxu1 }
 0x3c4   : > { %v5702_v35 = vrot.slane %v2787_v15, 10  ;;  %v3766_v21 = vmax.f32 %v2786_v51, %v5701_v25  ;;  %v6851_v6 = vand.u32 2147483648, %v1468_v42  ;;  %vm9090_vm12 = vcmp.lt.f32.partialorder %v6846_v46, 8388608.0 }
 0x3c5   : > { %v4253_v34 = vmin.f32 %v4057_v45, 32767.0  ;;  %v7654_v31 = vtrunc.f32 %v4252_v2  ;;  %v1813_v8 = vmin.f32 %v1715_v49, 32767.0  ;;  %v5003_v16 = vrot.slane %v5892_v27, 7 }
 0x3c6   : > { %v3767_v26 = vmax.f32 %v2787_v15, %v5702_v35  ;;  %v3962_v57 = vmax.f32 %v3766_v21, -32768.0  ;;  %v6852_v58 = vor.u32 %v6851_v6, %v6850_v9  ;;  %v5891_v28 = vunpack.i.l.s16 %v7455_v50 }
 0x3c7   : > { %v7655_v40 = vcvt.f32.s32 %v7654_v31  ;;  %v7656_v14 = vtrunc.f32 %v4253_v34  ;;  %v2009_v4 = vcombine.high %v1813_v8, %v1813_v8  ;;  %v5605_v5 = vrot.slane %v1813_v8, 9 }
 0x3c8   : > { %v3963_v13 = vmax.f32 %v3767_v26, -32768.0  ;;  %v4158_v36 = vmin.f32 %v3962_v57, 32767.0  ;;  %v6853_v47 = vsel %vm9090_vm12, %v6852_v58, %v1468_v42  ;;  %v7248_v19 = vcvt.f32.s32 %v9088_v38 }
 0x3c9   : > { %v7657_v41 = vcvt.f32.s32 %v7656_v14  ;;  %v5991_v7 = vunpack.i.l.s16 %v7655_v40  ;;  %v5606_v52 = vrot.slane %v2009_v4, 9  ;;  %v2886_v23 = vmax.f32 %v1813_v8, %v5605_v5  ;;  %v9124_v8 = vld [vmem:[%s9256_s2] ss:$0 sm:$0xff] }
 0x3ca   : > { %v4159_v59 = vmin.f32 %v3963_v13, 32767.0  ;;  %v7466_v55 = vtrunc.f32 %v4158_v36  ;;  %v1664_v22 = vmax.f32 %v6853_v47, -32768.0  ;;  %v5004_v37 = vsel %vm4857_vm5, %v5003_v16, %v5891_v28  ;;  %v1059_v13 = vpop.f32.mrf.mxu0 }
 0x3cb   : > { %v5992_v33 = vunpack.i.l.s16 %v7657_v41  ;;  %v5177_v10 = vrot.slane %v5991_v7, 4  ;;  %v2887_v62 = vmax.f32 %v2009_v4, %v5606_v52  ;;  %v7246_v1 = vand.u32 2147483647, %v9088_v38 }
 0x3cc   : > { %v7468_v11 = vtrunc.f32 %v4159_v59  ;;  %v1762_v42 = vmin.f32 %v1664_v22, 32767.0  ;;  %v7249_v18 = vcvt.s32.f32 %v7248_v19  ;;  %v5183_v48 = vrot.slane %v5994_v43, 1 }
 0x3cd   : > { %v5178_v20 = vsel %vm4866_vm13, %v5177_v10, %v9073_v54  ;;  %v5179_v51 = vrot.slane %v5992_v33, 3  ;;  %v7467_v50 = vcvt.f32.s32 %v7466_v55  ;;  %v5801_v32 = vrot.slane %v2886_v23, 10 }
 0x3ce   : > { %v1373_v12 = vmax.f32 %v9080_v3, 0.0  ;;  %v5802_v15 = vrot.slane %v2887_v62, 10  ;;  %v1958_v25 = vcombine.high %v1762_v42, %v1762_v42  ;;  %v5503_v46 = vrot.slane %v1762_v42, 9 }
 0x3cf   : > { %v5180_v61 = vsel %vm4869_vm15, %v5179_v51, %v5178_v20  ;;  %v5006_v56 = vsel %vm4860_vm6, %v9064_v63, %v5004_v37  ;;  %vm9109_vm14 = vcmp.lt.f32.partialorder %v7246_v1, 8388608.0  ;;  %v7250_v44 = vand.u32 2147483647, %v7249_v18 }
 0x3d0   : > { %v5182_v54 = vsel %vm4872_vm0, %v9077_v53, %v5180_v61  ;;  %v7469_v3 = vcvt.f32.s32 %v7468_v11  ;;  %v5504_v45 = vrot.slane %v1958_v25, 9  ;;  %v2784_v2 = vmax.f32 %v1762_v42, %v5503_v46 }
 0x3d1   : > { %v5184_v43 = vsel %vm4875_vm1, %v5183_v48, %v5182_v54  ;;  %v5897_v21 = vunpack.i.l.s16 %v7467_v50  ;;  %v3866_v49 = vmax.f32 %v2886_v23, %v5801_v32  ;;  %v7251_v63 = vand.u32 2147483648, %v9088_v38 }
 0x3d2   : > { %v5227_v35 = vpack.c.b16 %v5184_v43, %v5184_v43  ;;  %v3867_v34 = vmax.f32 %v2887_v62, %v5802_v15  ;;  %v2785_v31 = vmax.f32 %v1958_v25, %v5504_v45  ;;  %v5699_v53 = vrot.slane %v2784_v2, 10 }
 0x3d3   : > { %v1471_v9 = vmul.f32 256.0, %v1373_v12  ;;  %v5522_v6 = vrot.slane %v9056_v39, 9  ;;  %v9117_v26 = vmin.f32 %v8918_v0, 32767.0  ;;  %v7252_v57 = vor.u32 %v7251_v63, %v7250_v44 }
 0x3d4   : > { %5253 = vst.msk [vmem:[%s8014_s27 + $0x58] sm:$0xf] %vm5230_vm2, %v5227_v35  ;;  %v1315_v60 = vadd.f32 %v9124_v8, %v6500_v30  ;;  %v5898_v16 = vunpack.i.l.s16 %v7469_v3  ;;  %v5700_v40 = vrot.slane %v2785_v31, 10  ;;  %v3764_v14 = vmax.f32 %v2784_v2, %v5699_v53 }
 0x3d5   : > { %v5008_v58 = vsel %vm4863_vm9, %v9070_v24, %v5006_v56  ;;  %v9129_v36 = vrot.slane %v5897_v21, 2  ;;  %v4062_v0 = vmax.f32 %v3866_v49, -32768.0  ;;  %v7253_v4 = vsel %vm9109_vm14, %v7252_v57, %v9088_v38 }
 0x3d6   : > { %v6872_v5 = vcvt.f32.s32 %v1471_v9  ;;  %v4063_v28 = vmax.f32 %v3867_v34, -32768.0  ;;  %v3765_v41 = vmax.f32 %v2785_v31, %v5700_v40  ;;  %v3960_v7 = vmax.f32 %v3764_v14, -32768.0  ;;  %v1309_v34 = vpop.f32.mrf.mxu1 }
 0x3d7   : > { %v1714_v47 = vmax.f32 %v7253_v4, -32768.0  ;;  %v6870_v59 = vand.u32 2147483647, %v1471_v9  ;;  %v1423_v52 = vmax.f32 %v1315_v60, 0.0  ;;  %v1060_v23 = vadd.f32 %v9124_v8, %v1059_v13 }
 0x3d8   : > { %v6873_v55 = vcvt.s32.f32 %v6872_v5  ;;  %v5015_v33 = vrot.slane %v5898_v16, 1  ;;  %v3961_v24 = vmax.f32 %v3765_v41, -32768.0  ;;  %v4156_v10 = vmin.f32 %v3960_v7, 32767.0 }
 0x3d9   : > { %v1812_v22 = vmin.f32 %v1714_v47, 32767.0  ;;  %v9135_v19 = vmin.f32 %v4062_v0, 32767.0  ;;  %v6875_v11 = vand.u32 2147483648, %v1471_v9  ;;  %v1521_v62 = vmul.f32 256.0, %v1423_v52 }
 0x3da   : > { %v6874_v37 = vand.u32 2147483647, %v6873_v55  ;;  %v9137_v38 = vmin.f32 %v4063_v28, 32767.0  ;;  %v4157_v1 = vmin.f32 %v3961_v24, 32767.0  ;;  %v7462_v20 = vtrunc.f32 %v4156_v10 }
 0x3db   : > { %v2008_v51 = vcombine.high %v1812_v22, %v1812_v22  ;;  %v5603_v42 = vrot.slane %v1812_v22, 9  ;;  %vm6871_vm11 = vcmp.lt.f32.partialorder %v6870_v59, 8388608.0  ;;  %v1372_v48 = vmax.f32 %v1060_v23, 0.0 }
 0x3dc   : > { %v6876_v18 = vor.u32 %v6875_v11, %v6874_v37  ;;  %v7463_v50 = vcvt.f32.s32 %v7462_v20  ;;  %v7464_v32 = vtrunc.f32 %v4157_v1  ;;  %v7272_v61 = vcvt.f32.s32 %v1521_v62 }
 0x3dd   : > { %v5604_v12 = vrot.slane %v2008_v51, 9  ;;  %v7666_v15 = vtrunc.f32 %v9135_v19  ;;  %v2884_v25 = vmax.f32 %v1812_v22, %v5603_v42  ;;  %v7270_v56 = vand.u32 2147483647, %v1521_v62 }
 0x3de   : > { %v6877_v46 = vsel %vm6871_vm11, %v6876_v18, %v1471_v9  ;;  %v7465_v54 = vcvt.f32.s32 %v7464_v32  ;;  %v5895_v27 = vunpack.i.l.s16 %v7463_v50  ;;  %v7273_v45 = vcvt.s32.f32 %v7272_v61 }
 0x3df   : > { %v2885_v44 = vmax.f32 %v2008_v51, %v5604_v12  ;;  %v1667_v43 = vmax.f32 %v6877_v46, -32768.0  ;;  %v5799_v3 = vrot.slane %v2884_v25, 10  ;;  %v7275_v2 = vand.u32 2147483648, %v1521_v62 }
 0x3e0   : > { %v9140_v30 = vmul.f32 256.0, %v1372_v48  ;;  %v5896_v35 = vunpack.i.l.s16 %v7465_v54  ;;  %v5009_v21 = vrot.slane %v5895_v27, 4  ;;  %vm9142_vm3 = vcmp.lt.f32.partialorder %v7270_v56, 8388608.0 }
 0x3e1   : > { %v5800_v49 = vrot.slane %v2885_v44, 10  ;;  %v1765_v63 = vmin.f32 %v1667_v43, 32767.0  ;;  %v3864_v31 = vmax.f32 %v2884_v25, %v5799_v3  ;;  %v7274_v9 = vand.u32 2147483647, %v7273_v45 }
 0x3e2   : > { %v6864_v57 = vcvt.f32.s32 %v9140_v30  ;;  %v5010_v60 = vsel %vm4866_vm13, %v5009_v21, %v5008_v58  ;;  %v5011_v16 = vrot.slane %v5896_v35, 3  ;;  %v1310_v5 = vadd.f32 %v9124_v8, %v1309_v34  ;;  %v6428_v21 = vpop.f32.mrf.mxu0 }
 0x3e3   : > { %v3865_v40 = vmax.f32 %v2885_v44, %v5800_v49  ;;  %v1961_v14 = vcombine.high %v1765_v63, %v1765_v63  ;;  %v4060_v13 = vmax.f32 %v3864_v31, -32768.0  ;;  %v5509_v0 = vrot.slane %v1765_v63, 9 }
 0x3e4   : > { %v7276_v4 = vor.u32 %v7275_v2, %v7274_v9  ;;  %v5012_v28 = vsel %vm4869_vm15, %v5011_v16, %v5010_v60  ;;  %v6865_v47 = vcvt.s32.f32 %v6864_v57  ;;  %v7668_v19 = vtrunc.f32 %v9137_v38 }
 0x3e5   : > { %v4061_v41 = vmax.f32 %v3865_v40, -32768.0  ;;  %v5510_v7 = vrot.slane %v1961_v14, 9  ;;  %v5014_v59 = vsel %vm4872_vm0, %v9129_v36, %v5012_v28  ;;  %v4256_v55 = vmin.f32 %v4060_v13, 32767.0 }
 0x3e6   : > { %v2790_v52 = vmax.f32 %v1765_v63, %v5509_v0  ;;  %v7277_v58 = vsel %vm9142_vm3, %v7276_v4, %v1521_v62  ;;  %v5016_v23 = vsel %vm4875_vm1, %v5015_v33, %v5014_v59  ;;  %v6866_v1 = vand.u32 2147483647, %v6865_v47 }
 0x3e7   : > { %v4257_v24 = vmin.f32 %v4061_v41, 32767.0  ;;  %v2791_v10 = vmax.f32 %v1961_v14, %v5510_v7  ;;  %v1717_v22 = vmax.f32 %v7277_v58, -32768.0  ;;  %v5215_v37 = vpack.c.b16 %v5016_v23, %v5016_v23 }
 0x3e8   : > { %v5705_v11 = vrot.slane %v2790_v52, 10  ;;  %v6862_v36 = vand.u32 2147483647, %v9140_v30  ;;  %v9160_v18 = vmax.f32 %v8767_v17, %v5521_v29  ;;  %v7662_v33 = vtrunc.f32 %v4256_v55 }
 0x3e9   : > { %v7664_v20 = vtrunc.f32 %v4257_v24  ;;  %v5706_v51 = vrot.slane %v2791_v10, 10  ;;  %v1815_v42 = vmin.f32 %v1717_v22, 32767.0  ;;  %5241 = vst.msk [vmem:[%s8014_s27 + $0x28] sm:$0xf] %vm5230_vm2, %v5215_v37  ;;  %v6867_v62 = vand.u32 2147483648, %v9140_v30 }
 0x3ea   : > { %v1422_v48 = vmax.f32 %v1310_v5, 0.0  ;;  %v7667_v38 = vcvt.f32.s32 %v7666_v15  ;;  %v7669_v61 = vcvt.f32.s32 %v7668_v19  ;;  %v3770_v25 = vmax.f32 %v2790_v52, %v5705_v11 }
 0x3eb   : > { %v7665_v50 = vcvt.f32.s32 %v7664_v20  ;;  %v2011_v32 = vcombine.high %v1815_v42, %v1815_v42  ;;  %v5609_v12 = vrot.slane %v1815_v42, 9  ;;  %v6868_v46 = vor.u32 %v6867_v62, %v6866_v1 }
 0x3ec   : > { %v1520_v56 = vmul.f32 256.0, %v1422_v48  ;;  %v3771_v54 = vmax.f32 %v2791_v10, %v5706_v51  ;;  %vm6863_vm4 = vcmp.lt.f32.partialorder %v6862_v36, 8388608.0  ;;  %v9167_v17 = vcombine.high %v9117_v26, %v9117_v26  ;;  %v6503_v36 = vpop.f32.mrf.mxu1 }
 0x3ed   : > { %v5610_v27 = vrot.slane %v2011_v32, 9  ;;  %v2890_v44 = vmax.f32 %v1815_v42, %v5609_v12  ;;  %v7663_v29 = vcvt.f32.s32 %v7662_v33  ;;  %v6869_v43 = vsel %vm6863_vm4, %v6868_v46, %v9140_v30  ;;  %v1069_v33 = vpop.f32.mrf.mxu0 }
 0x3ee   : > { %v7264_v3 = vcvt.f32.s32 %v1520_v56  ;;  %v5997_v15 = vunpack.i.l.s16 %v7667_v38  ;;  %v5996_v45 = vunpack.i.l.s16 %v7665_v50  ;;  %v3966_v49 = vmax.f32 %v3770_v25, -32768.0 }
 0x3ef   : > { %v2891_v2 = vmax.f32 %v2011_v32, %v5610_v27  ;;  %v5805_v35 = vrot.slane %v2890_v44, 10  ;;  %v1666_v63 = vmax.f32 %v6869_v43, -32768.0  ;;  %v7262_v34 = vand.u32 2147483647, %v1520_v56 }
 0x3f0   : > { %v7265_v31 = vcvt.s32.f32 %v7264_v3  ;;  %v5998_v53 = vunpack.i.l.s16 %v7669_v61  ;;  %v3967_v9 = vmax.f32 %v3771_v54, -32768.0  ;;  %v5995_v16 = vunpack.i.l.s16 %v7663_v29 }
 0x3f1   : > { %v5806_v57 = vrot.slane %v2891_v2, 10  ;;  %v3870_v60 = vmax.f32 %v2890_v44, %v5805_v35  ;;  %v1764_v40 = vmin.f32 %v1666_v63, 32767.0  ;;  %v1075_v13 = vadd.f32 %v9124_v8, %v6428_v21 }
 0x3f2   : > { %v7266_v14 = vand.u32 2147483647, %v7265_v31  ;;  %v5185_v30 = vrot.slane %v5996_v45, 7  ;;  %v7267_v5 = vand.u32 2147483648, %v1520_v56  ;;  %v4162_v28 = vmin.f32 %v3966_v49, 32767.0 }
 0x3f3   : > { %v3871_v0 = vmax.f32 %v2891_v2, %v5806_v57  ;;  %v4066_v4 = vmax.f32 %v3870_v60, -32768.0  ;;  %v1960_v41 = vcombine.high %v1764_v40, %v1764_v40  ;;  %v5507_v7 = vrot.slane %v1764_v40, 9 }
 0x3f4   : > { %vm7263_vm7 = vcmp.lt.f32.partialorder %v7262_v34, 8388608.0  ;;  %v4163_v47 = vmin.f32 %v3967_v9, 32767.0  ;;  %v7268_v52 = vor.u32 %v7267_v5, %v7266_v14  ;;  %v5187_v58 = vrot.slane %v5997_v15, 6 }
 0x3f5   : > { %v4067_v59 = vmax.f32 %v3871_v0, -32768.0  ;;  %v4262_v55 = vmin.f32 %v4066_v4, 32767.0  ;;  %v5508_v23 = vrot.slane %v1960_v41, 9  ;;  %v2788_v24 = vmax.f32 %v1764_v40, %v5507_v7 }
 0x3f6   : > { %v1375_v10 = vmax.f32 %v1075_v13, 0.0  ;;  %v5186_v22 = vsel %vm4857_vm5, %v5185_v30, %v5995_v16  ;;  %v7269_v11 = vsel %vm7263_vm7, %v7268_v52, %v1520_v56  ;;  %v5189_v62 = vrot.slane %v5998_v53, 5 }
 0x3f7   : > { %v4263_v19 = vmin.f32 %v4067_v59, 32767.0  ;;  %v7674_v37 = vtrunc.f32 %v4262_v55  ;;  %v2789_v1 = vmax.f32 %v1960_v41, %v5508_v23  ;;  %v5703_v20 = vrot.slane %v2788_v24, 10 }
 0x3f8   : > { %v1716_v51 = vmax.f32 %v7269_v11, -32768.0  ;;  %v1473_v42 = vmul.f32 256.0, %v1375_v10  ;;  %v7474_v48 = vtrunc.f32 %v4162_v28  ;;  %v7476_v38 = vtrunc.f32 %v4163_v47  ;;  %v1319_v47 = vpop.f32.mrf.mxu1 }
 0x3f9   : > { %v7676_v50 = vtrunc.f32 %v4263_v19  ;;  %v5188_v32 = vsel %vm4860_vm6, %v5187_v58, %v5186_v22  ;;  %v5704_v12 = vrot.slane %v2789_v1, 10  ;;  %v3768_v61 = vmax.f32 %v2788_v24, %v5703_v20 }
 0x3fa   : > { %v1814_v25 = vmin.f32 %v1716_v51, 32767.0  ;;  %v7675_v46 = vcvt.f32.s32 %v7674_v37  ;;  %v6888_v54 = vcvt.f32.s32 %v1473_v42  ;;  %v1325_v27 = vadd.f32 %v9124_v8, %v6503_v36 }
 0x3fb   : > { %v1070_v56 = vadd.f32 %v9124_v8, %v1069_v33  ;;  %v7677_v44 = vcvt.f32.s32 %v7676_v50  ;;  %v3769_v29 = vmax.f32 %v2789_v1, %v5704_v12  ;;  %v9175_v15 = vcvt.f32.s32 %v7474_v48 }
 0x3fc   : > { %v2010_v43 = vcombine.high %v1814_v25, %v1814_v25  ;;  %v5607_v3 = vrot.slane %v1814_v25, 9  ;;  %v9177_v45 = vcvt.f32.s32 %v7476_v38  ;;  %v6886_v2 = vand.u32 2147483647, %v1473_v42 }
 0x3fd   : > { %v6889_v35 = vcvt.s32.f32 %v6888_v54  ;;  %v3964_v21 = vmax.f32 %v3768_v61, -32768.0  ;;  %v6891_v34 = vand.u32 2147483648, %v1473_v42  ;;  %v3965_v31 = vmax.f32 %v3769_v29, -32768.0 }
 0x3fe   : > { %v5608_v49 = vrot.slane %v2010_v43, 9  ;;  %v2888_v63 = vmax.f32 %v1814_v25, %v5607_v3  ;;  %v1425_v9 = vmax.f32 %v1325_v27, 0.0  ;;  %v1374_v57 = vmax.f32 %v1070_v56, 0.0 }
 0x3ff   : > { %v6890_v53 = vand.u32 2147483647, %v6889_v35  ;;  %v6001_v60 = vunpack.i.l.s16 %v7675_v46  ;;  %v6002_v16 = vunpack.i.l.s16 %v7677_v44  ;;  %v5190_v13 = vsel %vm4863_vm9, %v5189_v62, %v5188_v32 }
 0x400   : > { %v2889_v40 = vmax.f32 %v2010_v43, %v5608_v49  ;;  %v5803_v14 = vrot.slane %v2888_v63, 10  ;;  %vm9180_vm8 = vcmp.lt.f32.partialorder %v6886_v2, 8388608.0  ;;  %v1523_v4 = vmul.f32 256.0, %v1425_v9 }
 0x401   : > { %v6892_v0 = vor.u32 %v6891_v34, %v6890_v53  ;;  %v4160_v5 = vmin.f32 %v3964_v21, 32767.0  ;;  %v1472_v7 = vmul.f32 256.0, %v1374_v57  ;;  %v4161_v59 = vmin.f32 %v3965_v31, 32767.0 }
 0x402   : > { %v5804_v28 = vrot.slane %v2889_v40, 10  ;;  %v3868_v41 = vmax.f32 %v2888_v63, %v5803_v14  ;;  %v7286_v52 = vand.u32 2147483647, %v1523_v4  ;;  %v7288_v58 = vcvt.f32.s32 %v1523_v4 }
 0x403   : > { %v6893_v55 = vsel %vm9180_vm8, %v6892_v0, %v1473_v42  ;;  %v5195_v23 = vrot.slane %v6001_v60, 2  ;;  %v9186_v24 = vrot.slane %v6002_v16, 1  ;;  %v7291_v11 = vand.u32 2147483648, %v1523_v4 }
 0x404   : > { %v3869_v10 = vmax.f32 %v2889_v40, %v5804_v28  ;;  %v4064_v22 = vmax.f32 %v3868_v41, -32768.0  ;;  %v1669_v19 = vmax.f32 %v6893_v55, -32768.0  ;;  %v7289_v37 = vcvt.s32.f32 %v7288_v58 }
 0x405   : > { %v1320_v1 = vadd.f32 %v9124_v8, %v1319_v47  ;;  %v7470_v20 = vtrunc.f32 %v4160_v5  ;;  %v6880_v33 = vcvt.f32.s32 %v1472_v7  ;;  %v7472_v62 = vtrunc.f32 %v4161_v59 }
 0x406   : > { %v4065_v51 = vmax.f32 %v3869_v10, -32768.0  ;;  %v4260_v36 = vmin.f32 %v4064_v22, 32767.0  ;;  %v1767_v48 = vmin.f32 %v1669_v19, 32767.0  ;;  %vm9189_vm10 = vcmp.lt.f32.partialorder %v7286_v52, 8388608.0 }
 0x407   : > { %v7290_v38 = vand.u32 2147483647, %v7289_v37  ;;  %v6878_v12 = vand.u32 2147483647, %v1472_v7  ;;  %v6881_v61 = vcvt.s32.f32 %v6880_v33  ;;  %v1424_v27 = vmax.f32 %v1320_v1, 0.0 }
 0x408   : > { %v4261_v50 = vmin.f32 %v4065_v51, 32767.0  ;;  %v7670_v32 = vtrunc.f32 %v4260_v36  ;;  %v1963_v25 = vcombine.high %v1767_v48, %v1767_v48  ;;  %v5513_v46 = vrot.slane %v1767_v48, 9 }
 0x409   : > { %v7292_v54 = vor.u32 %v7291_v11, %v7290_v38  ;;  %v6882_v29 = vand.u32 2147483647, %v6881_v61  ;;  %v6883_v43 = vand.u32 2147483648, %v1472_v7  ;;  %v7473_v3 = vcvt.f32.s32 %v7472_v62 }
 0x40a   : > { %v7671_v56 = vcvt.f32.s32 %v7670_v32  ;;  %v7672_v44 = vtrunc.f32 %v4261_v50  ;;  %v5514_v2 = vrot.slane %v1963_v25, 9  ;;  %v2794_v35 = vmax.f32 %v1767_v48, %v5513_v46 }
 0x40b   : > { %v7293_v21 = vsel %vm9189_vm10, %v7292_v54, %v1523_v4  ;;  %v6884_v31 = vor.u32 %v6883_v43, %v6882_v29  ;;  %vm6879_vm12 = vcmp.lt.f32.partialorder %v6878_v12, 8388608.0  ;;  %v9195_v57 = vmul.f32 256.0, %v1424_v27  ;;  %v6431_v27 = vpop.f32.mrf.mxu0 }
 0x40c   : > { %v7673_v49 = vcvt.f32.s32 %v7672_v44  ;;  %v5999_v63 = vunpack.i.l.s16 %v7671_v56  ;;  %v1719_v34 = vmax.f32 %v7293_v21, -32768.0  ;;  %v2795_v53 = vmax.f32 %v1963_v25, %v5514_v2 }
 0x40d   : > { %v5709_v9 = vrot.slane %v2794_v35, 10  ;;  %v6885_v14 = vsel %vm6879_vm12, %v6884_v31, %v1472_v7  ;;  %v7471_v30 = vcvt.f32.s32 %v7470_v20  ;;  %v5900_v55 = vunpack.i.l.s16 %v7473_v3 }
 0x40e   : > { %v6000_v60 = vunpack.i.l.s16 %v7673_v49  ;;  %v5191_v16 = vrot.slane %v5999_v63, 4  ;;  %v1817_v40 = vmin.f32 %v1719_v34, 32767.0  ;;  %v5710_v0 = vrot.slane %v2795_v53, 10 }
 0x40f   : > { %v3774_v5 = vmax.f32 %v2794_v35, %v5709_v9  ;;  %v1668_v28 = vmax.f32 %v6885_v14, -32768.0  ;;  %v7280_v11 = vcvt.f32.s32 %v9195_v57  ;;  %v5017_v48 = vrot.slane %v5900_v55, 7 }
 0x410   : > { %v5192_v41 = vsel %vm4866_vm13, %v5191_v16, %v5190_v13  ;;  %v5193_v4 = vrot.slane %v6000_v60, 3  ;;  %v2013_v47 = vcombine.high %v1817_v40, %v1817_v40  ;;  %v5613_v59 = vrot.slane %v1817_v40, 9  ;;  %v1079_v60 = vpop.f32.mrf.mxu0 }
 0x411   : > { %v3775_v52 = vmax.f32 %v2795_v53, %v5710_v0  ;;  %v3970_v58 = vmax.f32 %v3774_v5, -32768.0  ;;  %v1766_v10 = vmin.f32 %v1668_v28, 32767.0  ;;  %v5901_v13 = vunpack.i.l.s16 %v9175_v15 }
 0x412   : > { %v5194_v22 = vsel %vm4869_vm15, %v5193_v4, %v5192_v41  ;;  %v5614_v19 = vrot.slane %v2013_v47, 9  ;;  %v2894_v37 = vmax.f32 %v1817_v40, %v5613_v59  ;;  %v7278_v50 = vand.u32 2147483647, %v9195_v57 }
 0x413   : > { %v5196_v7 = vsel %vm4872_vm0, %v5195_v23, %v5194_v22  ;;  %v3971_v1 = vmax.f32 %v3775_v52, -32768.0  ;;  %v4166_v20 = vmin.f32 %v3970_v58, 32767.0  ;;  %v1962_v51 = vcombine.high %v1766_v10, %v1766_v10 }
 0x414   : > { %v5198_v36 = vsel %vm4875_vm1, %v9186_v24, %v5196_v7  ;;  %v2895_v33 = vmax.f32 %v2013_v47, %v5614_v19  ;;  %v5511_v62 = vrot.slane %v1766_v10, 9  ;;  %v5809_v12 = vrot.slane %v2894_v37, 10 }
 0x415   : > { %v5228_v42 = vpack.c.b16 %v5198_v36, %v5198_v36  ;;  %v5512_v38 = vrot.slane %v1962_v51, 9  ;;  %v4167_v32 = vmin.f32 %v3971_v1, 32767.0  ;;  %v7281_v23 = vcvt.s32.f32 %v7280_v11 }
 0x416   : > { %v2792_v61 = vmax.f32 %v1766_v10, %v5511_v62  ;;  %v5899_v25 = vunpack.i.l.s16 %v7471_v30  ;;  %v7482_v46 = vtrunc.f32 %v4166_v20  ;;  %v7283_v15 = vand.u32 2147483648, %v9195_v57 }
 0x417   : > { %5254 = vst.msk [vmem:[%s8014_s27 + $0x5c] sm:$0xf] %vm5230_vm2, %v5228_v42  ;;  %v2793_v54 = vmax.f32 %v1962_v51, %v5512_v38  ;;  %v5902_v24 = vunpack.i.l.s16 %v9177_v45  ;;  %v5810_v56 = vrot.slane %v2895_v33, 10  ;;  %v7282_v29 = vand.u32 2147483647, %v7281_v23 }
 0x418   : > { %v5707_v44 = vrot.slane %v2792_v61, 10  ;;  %v5519_v43 = vrot.slane %v9117_v26, 9  ;;  %v5018_v3 = vsel %vm4857_vm5, %v5017_v48, %v5899_v25  ;;  %vm9211_vm14 = vcmp.lt.f32.partialorder %v7278_v50, 8388608.0 }
 0x419   : > { %v5708_v2 = vrot.slane %v2793_v54, 10  ;;  %v7484_v21 = vtrunc.f32 %v4167_v32  ;;  %v3874_v49 = vmax.f32 %v2894_v37, %v5809_v12  ;;  %v7284_v34 = vor.u32 %v7283_v15, %v7282_v29 }
 0x41a   : > { %v3772_v63 = vmax.f32 %v2792_v61, %v5707_v44  ;;  %v5019_v31 = vrot.slane %v5901_v13, 6  ;;  %v7483_v53 = vcvt.f32.s32 %v7482_v46  ;;  %v1085_v45 = vadd.f32 %v9124_v8, %v6431_v27 }
 0x41b   : > { %v3773_v9 = vmax.f32 %v2793_v54, %v5708_v2  ;;  %v5021_v16 = vrot.slane %v5902_v24, 5  ;;  %v3875_v40 = vmax.f32 %v2895_v33, %v5810_v56  ;;  %v7285_v30 = vsel %vm9211_vm14, %v7284_v34, %v9195_v57 }
 0x41c   : > { %v3968_v14 = vmax.f32 %v3772_v63, -32768.0  ;;  %v5020_v0 = vsel %vm4860_vm6, %v5019_v31, %v5018_v3  ;;  %v1718_v28 = vmax.f32 %v7285_v30, -32768.0  ;;  %v1377_v41 = vmax.f32 %v1085_v45, 0.0 }
 0x41d   : > { %v3969_v5 = vmax.f32 %v3773_v9, -32768.0  ;;  %v7485_v4 = vcvt.f32.s32 %v7484_v21  ;;  %v4070_v47 = vmax.f32 %v3874_v49, -32768.0  ;;  %v1080_v55 = vadd.f32 %v9124_v8, %v1079_v60 }
 0x41e   : > { %v4164_v59 = vmin.f32 %v3968_v14, 32767.0  ;;  %v5905_v52 = vunpack.i.l.s16 %v7483_v53  ;;  %v1816_v10 = vmin.f32 %v1718_v28, 32767.0  ;;  %v1475_v22 = vmul.f32 256.0, %v1377_v41 }
 0x41f   : > { %v4165_v58 = vmin.f32 %v3969_v5, 32767.0  ;;  %v5520_v19 = vrot.slane %v9167_v17, 9  ;;  %v4071_v37 = vmax.f32 %v3875_v40, -32768.0  ;;  %v5022_v57 = vsel %vm4863_vm9, %v5021_v16, %v5020_v0 }
 0x420   : > { %v7478_v11 = vtrunc.f32 %v4164_v59  ;;  %v2012_v1 = vcombine.high %v1816_v10, %v1816_v10  ;;  %v5611_v20 = vrot.slane %v1816_v10, 9  ;;  %v1376_v51 = vmax.f32 %v1080_v55, 0.0 }
 0x421   : > { %v7480_v7 = vtrunc.f32 %v4165_v58  ;;  %v5906_v13 = vunpack.i.l.s16 %v7485_v4  ;;  %v4266_v36 = vmin.f32 %v4070_v47, 32767.0  ;;  %v6904_v62 = vcvt.f32.s32 %v1475_v22 }
 0x422   : > { %v7479_v33 = vcvt.f32.s32 %v7478_v11  ;;  %v5027_v48 = vrot.slane %v5905_v52, 2  ;;  %v5612_v42 = vrot.slane %v2012_v1, 9  ;;  %v2892_v38 = vmax.f32 %v1816_v10, %v5611_v20 }
 0x423   : > { %v7481_v8 = vcvt.f32.s32 %v7480_v7  ;;  %v4267_v50 = vmin.f32 %v4071_v37, 32767.0  ;;  %v6902_v12 = vand.u32 2147483647, %v1475_v22  ;;  %v6905_v61 = vcvt.s32.f32 %v6904_v62 }
 0x424   : > { %v5903_v32 = vunpack.i.l.s16 %v7479_v33  ;;  %v2893_v25 = vmax.f32 %v2012_v1, %v5612_v42  ;;  %v5807_v46 = vrot.slane %v2892_v38, 10  ;;  %v1474_v54 = vmul.f32 256.0, %v1376_v51 }
 0x425   : > { %v5904_v23 = vunpack.i.l.s16 %v7481_v8  ;;  %v7682_v15 = vtrunc.f32 %v4266_v36  ;;  %v6906_v24 = vand.u32 2147483647, %v6905_v61  ;;  %v6907_v56 = vand.u32 2147483648, %v1475_v22 }
 0x426   : > { %v5023_v27 = vrot.slane %v5903_v32, 4  ;;  %v5029_v44 = vrot.slane %v5906_v13, 1  ;;  %v5808_v3 = vrot.slane %v2893_v25, 10  ;;  %v3872_v2 = vmax.f32 %v2892_v38, %v5807_v46 }
 0x427   : > { %v5025_v29 = vrot.slane %v5904_v23, 3  ;;  %v7684_v35 = vtrunc.f32 %v4267_v50  ;;  %v6908_v49 = vor.u32 %v6907_v56, %v6906_v24  ;;  %v6896_v63 = vcvt.f32.s32 %v1474_v54 }
 0x428   : > { %v5024_v21 = vsel %vm4866_vm13, %v5023_v27, %v5022_v57  ;;  %v3873_v31 = vmax.f32 %v2893_v25, %v5808_v3  ;;  %v4068_v53 = vmax.f32 %v3872_v2, -32768.0  ;;  %vm6903_vm11 = vcmp.lt.f32.partialorder %v6902_v12, 8388608.0 }
 0x429   : > { %v5026_v34 = vsel %vm4869_vm15, %v5025_v29, %v5024_v21  ;;  %v6909_v45 = vsel %vm6903_vm11, %v6908_v49, %v1475_v22  ;;  %v6894_v60 = vand.u32 2147483647, %v1474_v54  ;;  %v6897_v16 = vcvt.s32.f32 %v6896_v63 }
 0x42a   : > { %v5028_v9 = vsel %vm4872_vm0, %v5027_v48, %v5026_v34  ;;  %v4069_v14 = vmax.f32 %v3873_v31, -32768.0  ;;  %v4264_v30 = vmin.f32 %v4068_v53, 32767.0  ;;  %v1671_v0 = vmax.f32 %v6909_v45, -32768.0 }
 0x42b   : > { %v5030_v40 = vsel %vm4875_vm1, %v5029_v44, %v5028_v9  ;;  %v2800_v5 = vmax.f32 %v9117_v26, %v5519_v43  ;;  %v6898_v41 = vand.u32 2147483647, %v6897_v16  ;;  %v6899_v4 = vand.u32 2147483648, %v1474_v54 }
 0x42c   : > { %v5216_v28 = vpack.c.b16 %v5030_v40, %v5030_v40  ;;  %v4265_v47 = vmin.f32 %v4069_v14, 32767.0  ;;  %v7678_v59 = vtrunc.f32 %v4264_v30  ;;  %v1769_v55 = vmin.f32 %v1671_v0, 32767.0 }
 0x42d   : > { %v2801_v52 = vmax.f32 %v9167_v17, %v5520_v19  ;;  %v7683_v58 = vcvt.f32.s32 %v7682_v15  ;;  %v7685_v10 = vcvt.f32.s32 %v7684_v35  ;;  %v6900_v22 = vor.u32 %v6899_v4, %v6898_v41 }
 0x42e   : > { %5242 = vst.msk [vmem:[%s8014_s27 + $0x2c] sm:$0xf] %vm5230_vm2, %v5216_v28  ;;  %v7680_v37 = vtrunc.f32 %v4265_v47  ;;  %v1965_v11 = vcombine.high %v1769_v55, %v1769_v55  ;;  %v5517_v57 = vrot.slane %v1769_v55, 9  ;;  %vm6895_vm3 = vcmp.lt.f32.partialorder %v6894_v60, 8388608.0 }
 0x42f   : > { %v2803_v26 = vmax.f32 %v9056_v39, %v5522_v6  ;;  %v5717_v43 = vrot.slane %v9160_v18, 10  ;;  %v5715_v7 = vrot.slane %v2800_v5, 10  ;;  %v6901_v1 = vsel %vm6895_vm3, %v6900_v22, %v1474_v54 }
 0x430   : > { %v7679_v20 = vcvt.f32.s32 %v7678_v59  ;;  %v7681_v51 = vcvt.f32.s32 %v7680_v37  ;;  %v5518_v17 = vrot.slane %v1965_v11, 9  ;;  %v2798_v19 = vmax.f32 %v1769_v55, %v5517_v57 }
 0x431   : > { %v5716_v13 = vrot.slane %v2801_v52, 10  ;;  %v6005_v36 = vunpack.i.l.s16 %v7683_v58  ;;  %v1670_v33 = vmax.f32 %v6901_v1, -32768.0  ;;  %v6006_v62 = vunpack.i.l.s16 %v7685_v10 }
 0x432   : > { %v6004_v48 = vunpack.i.l.s16 %v7681_v51  ;;  %v2799_v8 = vmax.f32 %v1965_v11, %v5518_v17  ;;  %v5713_v42 = vrot.slane %v2798_v19, 10  ;;  %v5718_v38 = vrot.slane %v2803_v26, 10 }
 0x433   : > { %v3782_v50 = vmax.f32 %v9160_v18, %v5717_v43  ;;  %v3780_v32 = vmax.f32 %v2800_v5, %v5715_v7  ;;  %v1768_v39 = vmin.f32 %v1670_v33, 32767.0  ;;  %v6003_v6 = vunpack.i.l.s16 %v7679_v20 }
 0x434   : > { %v5199_v12 = vrot.slane %v6004_v48, 7  ;;  %v5714_v61 = vrot.slane %v2799_v8, 10  ;;  %v3778_v23 = vmax.f32 %v2798_v19, %v5713_v42  ;;  %v3781_v25 = vmax.f32 %v2801_v52, %v5716_v13 }
 0x435   : > { %v5201_v46 = vrot.slane %v6005_v36, 6  ;;  %v1964_v54 = vcombine.high %v1768_v39, %v1768_v39  ;;  %v5515_v15 = vrot.slane %v1768_v39, 9  ;;  %v5203_v27 = vrot.slane %v6006_v62, 5 }
 0x436   : > { %v5200_v24 = vsel %vm4857_vm5, %v5199_v12, %v6003_v6  ;;  %v3779_v56 = vmax.f32 %v2799_v8, %v5714_v61  ;;  %v3974_v44 = vmax.f32 %v3778_v23, -32768.0  ;;  %v3783_v29 = vmax.f32 %v2803_v26, %v5718_v38 }
 0x437   : > { %v5202_v3 = vsel %vm4860_vm6, %v5201_v46, %v5200_v24  ;;  %v5516_v18 = vrot.slane %v1964_v54, 9  ;;  %v2796_v2 = vmax.f32 %v1768_v39, %v5515_v15  ;;  %v3976_v35 = vmax.f32 %v3780_v32, -32768.0 }
 0x438   : > { %v5204_v21 = vsel %vm4863_vm9, %v5203_v27, %v5202_v3  ;;  %vm5255_vm4 = vcmask 123904   ;;  %v3975_v49 = vmax.f32 %v3779_v56, -32768.0  ;;  %v3977_v63 = vmax.f32 %v3781_v25, -32768.0 }
 0x439   : > { %v5229_v34 = vpack.c.b16 %v5204_v21, %v5204_v21  ;;  %v2797_v31 = vmax.f32 %v1964_v54, %v5516_v18  ;;  %v5711_v53 = vrot.slane %v2796_v2, 10  ;;  %v3978_v9 = vmax.f32 %v3782_v50, -32768.0 }
 0x43a   : > { %v4170_v45 = vmin.f32 %v3974_v44, 32767.0  ;;  %v3979_v60 = vmax.f32 %v3783_v29, -32768.0  ;;  %v4171_v16 = vmin.f32 %v3975_v49, 32767.0 }
 0x43b   : > { %5256 = vst.msk [vmem:[%s8014_s27 + $0x60] sm:$0x3] %vm5255_vm4, %v5229_v34  ;;  %v5712_v40 = vrot.slane %v2797_v31, 10  ;;  %v3776_v14 = vmax.f32 %v2796_v2, %v5711_v53  ;;  %v4172_v30 = vmin.f32 %v3976_v35, 32767.0 }
 0x43c   : > { %v4173_v0 = vmin.f32 %v3977_v63, 32767.0  ;;  %v4174_v41 = vmin.f32 %v3978_v9, 32767.0  ;;  %v7490_v4 = vtrunc.f32 %v4170_v45  ;;  %v4175_v47 = vmin.f32 %v3979_v60, 32767.0 }
 0x43d   : > { %v3777_v5 = vmax.f32 %v2797_v31, %v5712_v40  ;;  %v3972_v28 = vmax.f32 %v3776_v14, -32768.0  ;;  %v7492_v59 = vtrunc.f32 %v4171_v16  ;;  %v7494_v58 = vtrunc.f32 %v4172_v30 }
 0x43e   : > { %v7496_v10 = vtrunc.f32 %v4173_v0  ;;  %v7498_v11 = vtrunc.f32 %v4174_v41  ;;  %v7491_v57 = vcvt.f32.s32 %v7490_v4  ;;  %v7500_v26 = vtrunc.f32 %v4175_v47 }
 0x43f   : > { %v3973_v55 = vmax.f32 %v3777_v5, -32768.0  ;;  %v4168_v52 = vmin.f32 %v3972_v28, 32767.0  ;;  %v7493_v43 = vcvt.f32.s32 %v7492_v59  ;;  %v7495_v1 = vcvt.f32.s32 %v7494_v58 }
 0x440   : > { %v7497_v20 = vcvt.f32.s32 %v7496_v10  ;;  %v7499_v19 = vcvt.f32.s32 %v7498_v11  ;;  %v5909_v13 = vunpack.i.l.s16 %v7491_v57  ;;  %v7501_v36 = vcvt.f32.s32 %v7500_v26 }
 0x441   : > { %v4169_v22 = vmin.f32 %v3973_v55, 32767.0  ;;  %v7486_v37 = vtrunc.f32 %v4168_v52  ;;  %v5910_v33 = vunpack.i.l.s16 %v7493_v43  ;;  %v5911_v48 = vunpack.i.l.s16 %v7495_v1 }
 0x442   : > { %v5912_v8 = vunpack.i.l.s16 %v7497_v20  ;;  %v5913_v50 = vunpack.i.l.s16 %v7499_v19  ;;  %v5033_v32 = vrot.slane %v5909_v13, 6  ;;  %v5914_v39 = vunpack.i.l.s16 %v7501_v36 }
 0x443   : > { %v7488_v7 = vtrunc.f32 %v4169_v22  ;;  %v7487_v51 = vcvt.f32.s32 %v7486_v37  ;;  %v5035_v6 = vrot.slane %v5910_v33, 5  ;;  %v5037_v61 = vrot.slane %v5911_v48, 4 }
 0x444   : > { %v5039_v25 = vrot.slane %v5912_v8, 3  ;;  %v5041_v54 = vrot.slane %v5913_v50, 2  ;;  %v5043_v27 = vrot.slane %v5914_v39, 1 }
 0x445   : > { %v7489_v17 = vcvt.f32.s32 %v7488_v7  ;;  %v5907_v42 = vunpack.i.l.s16 %v7487_v51 }
 0x447   : > { %v5908_v62 = vunpack.i.l.s16 %v7489_v17 }
 0x449   : > { %v5031_v38 = vrot.slane %v5908_v62, 7 }
 0x44b   : > { %v5032_v12 = vsel %vm4857_vm5, %v5031_v38, %v5907_v42 }
 0x44c   : > { %v5034_v23 = vsel %vm4860_vm6, %v5033_v32, %v5032_v12 }
 0x44d   : > { %v5036_v46 = vsel %vm4863_vm9, %v5035_v6, %v5034_v23 }
 0x44e   : > { %v5038_v15 = vsel %vm4866_vm13, %v5037_v61, %v5036_v46 }
 0x44f   : > { %v5040_v24 = vsel %vm4869_vm15, %v5039_v25, %v5038_v15 }
 0x450   : > { %v5042_v56 = vsel %vm4872_vm0, %v5041_v54, %v5040_v24 }
 0x451   : > { %v5044_v44 = vsel %vm4875_vm1, %v5043_v27, %v5042_v56 }
 0x452   : > { %v5217_v29 = vpack.c.b16 %v5044_v44, %v5044_v44 }
 0x454   : > { %5243 = vst.msk [vmem:[%s8014_s27 + $0x30] sm:$0xf] %vm5230_vm2, %v5217_v29 }
 0x455 PF: > { %s13_s12 = sadd.s32 1, %s7706_s12  }
 0x456   : > { %p10_p4 = scmp.ge.s32.totalorder %s13_s12, 4  }
 0x458   :  { %12 = sbr.rel (!%p10_p4) target bundleno = 1 (0x1), region = 62 }

// kernel: quantized_cnn_forward.5
= control target key start
LH: loop header
LB: loop body
LE: loop exit
PB: predicated region body
PF: predicated region fallthrough
CT: control target
= control target key end

     0   :  { %v1244_v34 = vmov 1983009808   ;;  %v242_v36 = vlaneseq  ;;  %s1968_s0 = inlined_call_operand.vmem [shape: s16[2,1568], index: 0, kind: input, shape index: {}]   ;;  %s1969_s1 = inlined_call_operand.vmem [shape: f32[1568,128], index: 1, kind: input, shape index: {}]   ;;  %s1970_s2 = inlined_call_operand.vmem [shape: f32[1,128], index: 2, kind: input, shape index: {}]   ;;  %s1971_s3 = inlined_call_operand.vmem [shape: f32[128,10], index: 3, kind: input, shape index: {}]   ;;  %s1972_s4 = inlined_call_operand.vmem [shape: f32[1,10], index: 4, kind: input, shape index: {}]   ;;  %s1973_s5 = inlined_call_operand.hbm [shape: f32[2,10], index: 5, kind: output, shape index: {}]  }
   0x1   :  { %v62_v0 = vld [vmem:[%s1969_s1 + $0xf8] sm:$0xff]  ;;  %v61_v4 = vld [vmem:[%s1969_s1 + $0xf0] sm:$0xff]  ;;  %v60_v8 = vld [vmem:[%s1969_s1 + $0xe8] sm:$0xff]  ;;  %v240_v35 = vunpack.c.l.s4 %v1244_v34 }
   0x2   :  { %v94_v1 = vld [vmem:[%s1969_s1 + $0x1f8] sm:$0xff]  ;;  %924 = vmatprep.subr.mxu0 %v62_v0  ;;  %v93_v5 = vld [vmem:[%s1969_s1 + $0x1f0] sm:$0xff]  ;;  %v92_v9 = vld [vmem:[%s1969_s1 + $0x1e8] sm:$0xff]  ;;  %v243_v46 = vshrl.u32 %v242_v36, 7 }
   0x3   :  { %v46_v2 = vld [vmem:[%s1969_s1 + $0x78] sm:$0xff]  ;;  %959 = vmatprep.subr.mxu1 %v94_v1  ;;  %v45_v6 = vld [vmem:[%s1969_s1 + $0x70] sm:$0xff]  ;;  %v44_v10 = vld [vmem:[%s1969_s1 + $0x68] sm:$0xff]  ;;  %v241_v45 = vunpack.c.0.s8 %v240_v35 }
   0x4   :  { %v78_v3 = vld [vmem:[%s1969_s1 + $0x178] sm:$0xff]  ;;  %925 = vmatpush3.msra.mxu0 %v46_v2  ;;  %v77_v7 = vld [vmem:[%s1969_s1 + $0x170] sm:$0xff]  ;;  %v76_v11 = vld [vmem:[%s1969_s1 + $0x168] sm:$0xff] }
   0x5   :  { %960 = vmatpush3.msra.mxu1 %v78_v3  ;;  %926 = vmatprep.subr.mxu0 %v61_v4  ;;  %v59_v12 = vld [vmem:[%s1969_s1 + $0xe0] sm:$0xff]  ;;  %v58_v16 = vld [vmem:[%s1969_s1 + $0xd8] sm:$0xff]  ;;  %v57_v20 = vld [vmem:[%s1969_s1 + $0xd0] sm:$0xff]  ;;  %v1434_v57 = vsub.s32 %v241_v45, %v243_v46 }
   0x6   :  { %961 = vmatprep.subr.mxu1 %v93_v5  ;;  %927 = vmatpush3.msra.mxu0 %v45_v6  ;;  %v91_v13 = vld [vmem:[%s1969_s1 + $0x1e0] sm:$0xff]  ;;  %v90_v17 = vld [vmem:[%s1969_s1 + $0x1d8] sm:$0xff]  ;;  %v89_v21 = vld [vmem:[%s1969_s1 + $0x1d0] sm:$0xff] }
   0x7   :  { %962 = vmatpush3.msra.mxu1 %v77_v7  ;;  %928 = vmatprep.subr.mxu0 %v60_v8  ;;  %v43_v14 = vld [vmem:[%s1969_s1 + $0x60] sm:$0xff]  ;;  %v42_v18 = vld [vmem:[%s1969_s1 + $0x58] sm:$0xff]  ;;  %v41_v22 = vld [vmem:[%s1969_s1 + $0x50] sm:$0xff] }
   0x8   :  { %963 = vmatprep.subr.mxu1 %v92_v9  ;;  %v75_v15 = vld [vmem:[%s1969_s1 + $0x160] sm:$0xff]  ;;  %929 = vmatpush3.msra.mxu0 %v44_v10  ;;  %v74_v19 = vld [vmem:[%s1969_s1 + $0x158] sm:$0xff]  ;;  %v73_v23 = vld [vmem:[%s1969_s1 + $0x150] sm:$0xff] }
   0x9   :  { %964 = vmatpush3.msra.mxu1 %v76_v11  ;;  %930 = vmatprep.subr.mxu0 %v59_v12  ;;  %v56_v24 = vld [vmem:[%s1969_s1 + $0xc8] sm:$0xff]  ;;  %v55_v28 = vld [vmem:[%s1969_s1 + $0xc0] sm:$0xff]  ;;  %v54_v32 = vld [vmem:[%s1969_s1 + $0xb8] sm:$0xff] }
   0xa   :  { %965 = vmatprep.subr.mxu1 %v91_v13  ;;  %931 = vmatpush3.msra.mxu0 %v43_v14  ;;  %v88_v25 = vld [vmem:[%s1969_s1 + $0x1c8] sm:$0xff]  ;;  %v87_v29 = vld [vmem:[%s1969_s1 + $0x1c0] sm:$0xff]  ;;  %v86_v33 = vld [vmem:[%s1969_s1 + $0x1b8] sm:$0xff] }
   0xb   :  { %966 = vmatpush3.msra.mxu1 %v75_v15  ;;  %932 = vmatprep.subr.mxu0 %v58_v16  ;;  %v40_v26 = vld [vmem:[%s1969_s1 + $0x48] sm:$0xff]  ;;  %v39_v30 = vld [vmem:[%s1969_s1 + $0x40] sm:$0xff]  ;;  %v38_v37 = vld [vmem:[%s1969_s1 + $0x38] sm:$0xff] }
   0xc   :  { %967 = vmatprep.subr.mxu1 %v90_v17  ;;  %933 = vmatpush3.msra.mxu0 %v42_v18  ;;  %v72_v27 = vld [vmem:[%s1969_s1 + $0x148] sm:$0xff]  ;;  %v71_v31 = vld [vmem:[%s1969_s1 + $0x140] sm:$0xff]  ;;  %v70_v38 = vld [vmem:[%s1969_s1 + $0x138] sm:$0xff] }
   0xd   :  { %968 = vmatpush3.msra.mxu1 %v74_v19  ;;  %934 = vmatprep.subr.mxu0 %v57_v20  ;;  %v53_v39 = vld [vmem:[%s1969_s1 + $0xb0] sm:$0xff]  ;;  %v52_v43 = vld [vmem:[%s1969_s1 + $0xa8] sm:$0xff]  ;;  %v51_v49 = vld [vmem:[%s1969_s1 + $0xa0] sm:$0xff] }
   0xe   :  { %969 = vmatprep.subr.mxu1 %v89_v21  ;;  %935 = vmatpush3.msra.mxu0 %v41_v22  ;;  %v85_v40 = vld [vmem:[%s1969_s1 + $0x1b0] sm:$0xff]  ;;  %v84_v44 = vld [vmem:[%s1969_s1 + $0x1a8] sm:$0xff]  ;;  %v83_v50 = vld [vmem:[%s1969_s1 + $0x1a0] sm:$0xff] }
   0xf   :  { %970 = vmatpush3.msra.mxu1 %v73_v23  ;;  %936 = vmatprep.subr.mxu0 %v56_v24  ;;  %v37_v41 = vld [vmem:[%s1969_s1 + $0x30] sm:$0xff]  ;;  %v36_v47 = vld [vmem:[%s1969_s1 + $0x28] sm:$0xff]  ;;  %v35_v51 = vld [vmem:[%s1969_s1 + $0x20] sm:$0xff] }
  0x10   :  { %971 = vmatprep.subr.mxu1 %v88_v25  ;;  %937 = vmatpush3.msra.mxu0 %v40_v26  ;;  %v69_v42 = vld [vmem:[%s1969_s1 + $0x130] sm:$0xff]  ;;  %v68_v48 = vld [vmem:[%s1969_s1 + $0x128] sm:$0xff]  ;;  %v67_v52 = vld [vmem:[%s1969_s1 + $0x120] sm:$0xff] }
  0x11   :  { %972 = vmatpush3.msra.mxu1 %v72_v27  ;;  %938 = vmatprep.subr.mxu0 %v55_v28  ;;  %v1425_v53 = vld [vmem:[%s1968_s0] sm:$0xff]  ;;  %v50_v54 = vld [vmem:[%s1969_s1 + $0x98] sm:$0xff]  ;;  %v49_v60 = vld [vmem:[%s1969_s1 + $0x90] sm:$0xff] }
  0x12   :  { %973 = vmatprep.subr.mxu1 %v87_v29  ;;  %939 = vmatpush3.msra.mxu0 %v39_v30  ;;  %v82_v55 = vld [vmem:[%s1969_s1 + $0x198] sm:$0xff]  ;;  %v23_v56 = vunpack.c.l.b16 %v1425_v53  ;;  %v81_v61 = vld [vmem:[%s1969_s1 + $0x190] sm:$0xff]  ;;  %v48_v1 = vld [vmem:[%s1969_s1 + $0x88] sm:$0xff]  ;;  %v24_v46 = vunpack.c.h.b16 %v1425_v53 }
  0x13   :  { %974 = vmatpush3.msra.mxu1 %v71_v31  ;;  %940 = vmatprep.subr.mxu0 %v54_v32  ;;  %v34_v58 = vld [vmem:[%s1969_s1 + $0x18] sm:$0xff]  ;;  %v33_v63 = vld [vmem:[%s1969_s1 + $0x10] sm:$0xff]  ;;  %v80_v2 = vld [vmem:[%s1969_s1 + $0x188] sm:$0xff] }
  0x14   :  { %975 = vmatprep.subr.mxu1 %v86_v33  ;;  %941 = vmatpush3.msra.mxu0 %v38_v37  ;;  %v66_v59 = vld [vmem:[%s1969_s1 + $0x118] sm:$0xff]  ;;  %v27_v62 = vcvt.s32.f32 %v23_v56  ;;  %v65_v0 = vld [vmem:[%s1969_s1 + $0x110] sm:$0xff]  ;;  %v32_v5 = vld [vmem:[%s1969_s1 + $0x8] sm:$0xff] }
  0x15   :  { %976 = vmatpush3.msra.mxu1 %v70_v38  ;;  %942 = vmatprep.subr.mxu0 %v53_v39  ;;  %v64_v6 = vld [vmem:[%s1969_s1 + $0x108] sm:$0xff]  ;;  %v47_v7 = vld [vmem:[%s1969_s1 + $0x80] sm:$0xff]  ;;  %v126_v14 = vld [vmem:[%s1969_s1 + $0x2f8] sm:$0xff] }
  0x16   :  { %977 = vmatprep.subr.mxu1 %v85_v40  ;;  %943 = vmatpush3.msra.mxu0 %v37_v41  ;;  %v245_v3 = vrot.slane %v27_v62, %v1434_v57  ;;  %v238_v4 = vcombine.high %v27_v62, %v27_v62  ;;  %v79_v8 = vld [vmem:[%s1969_s1 + $0x180] sm:$0xff]  ;;  %v158_v15 = vld [vmem:[%s1969_s1 + $0x3f8] sm:$0xff]  ;;  %v125_v18 = vld [vmem:[%s1969_s1 + $0x2f0] sm:$0xff] }
  0x17   :  { %978 = vmatpush3.msra.mxu1 %v69_v42  ;;  %944 = vmatprep.subr.mxu0 %v52_v43  ;;  %v31_v11 = vld [vmem:[%s1969_s1] sm:$0xff]  ;;  %v110_v16 = vld [vmem:[%s1969_s1 + $0x278] sm:$0xff]  ;;  %v157_v19 = vld [vmem:[%s1969_s1 + $0x3f0] sm:$0xff] }
  0x18   :  { %979 = vmatprep.subr.mxu1 %v84_v44  ;;  %945 = vmatpush3.msra.mxu0 %v36_v47  ;;  %v253_v9 = vcombine.high %v245_v3, %v245_v3  ;;  %v252_v10 = vrot.slane %v238_v4, %v1434_v57  ;;  %v63_v12 = vld [vmem:[%s1969_s1 + $0x100] sm:$0xff]  ;;  %v142_v17 = vld [vmem:[%s1969_s1 + $0x378] sm:$0xff]  ;;  %v109_v20 = vld [vmem:[%s1969_s1 + $0x270] sm:$0xff] }
  0x19   :  { %980 = vmatpush3.msra.mxu1 %v68_v48  ;;  %946 = vmatprep.subr.mxu0 %v51_v49  ;;  %v141_v21 = vld [vmem:[%s1969_s1 + $0x370] sm:$0xff]  ;;  %v124_v22 = vld [vmem:[%s1969_s1 + $0x2e8] sm:$0xff]  ;;  %v123_v26 = vld [vmem:[%s1969_s1 + $0x2e0] sm:$0xff] }
  0x1a   :  { %981 = vmatprep.subr.mxu1 %v83_v50  ;;  %947 = vmatpush3.msra.mxu0 %v35_v51  ;;  %v254_v13 = vcombine.high %v252_v10, %v252_v10  ;;  %v156_v23 = vld [vmem:[%s1969_s1 + $0x3e8] sm:$0xff]  ;;  %v155_v27 = vld [vmem:[%s1969_s1 + $0x3e0] sm:$0xff]  ;;  %v122_v30 = vld [vmem:[%s1969_s1 + $0x2d8] sm:$0xff] }
  0x1b   :  { %982 = vmatpush3.msra.mxu1 %v67_v52  ;;  %948 = vmatprep.subr.mxu0 %v50_v54  ;;  %v108_v24 = vld [vmem:[%s1969_s1 + $0x268] sm:$0xff]  ;;  %v107_v28 = vld [vmem:[%s1969_s1 + $0x260] sm:$0xff]  ;;  %v154_v31 = vld [vmem:[%s1969_s1 + $0x3d8] sm:$0xff] }
  0x1c   :  { %983 = vmatprep.subr.mxu1 %v82_v55  ;;  %949 = vmatpush3.msra.mxu0 %v34_v58  ;;  %v140_v25 = vld [vmem:[%s1969_s1 + $0x368] sm:$0xff]  ;;  %v139_v29 = vld [vmem:[%s1969_s1 + $0x360] sm:$0xff]  ;;  %v106_v32 = vld [vmem:[%s1969_s1 + $0x258] sm:$0xff]  ;;  %v28_v55 = vcvt.s32.f32 %v24_v46 }
  0x1d   :  { %984 = vmatpush3.msra.mxu1 %v66_v59  ;;  %950 = vmatprep.subr.mxu0 %v49_v60  ;;  %v138_v33 = vld [vmem:[%s1969_s1 + $0x358] sm:$0xff]  ;;  %v121_v34 = vld [vmem:[%s1969_s1 + $0x2d0] sm:$0xff]  ;;  %v120_v38 = vld [vmem:[%s1969_s1 + $0x2c8] sm:$0xff] }
  0x1e   :  { %985 = vmatprep.subr.mxu1 %v81_v61  ;;  %951 = vmatpush3.msra.mxu0 %v33_v63  ;;  %v153_v35 = vld [vmem:[%s1969_s1 + $0x3d0] sm:$0xff]  ;;  %v152_v39 = vld [vmem:[%s1969_s1 + $0x3c8] sm:$0xff]  ;;  %v119_v42 = vld [vmem:[%s1969_s1 + $0x2c0] sm:$0xff] }
  0x1f   :  { %986 = vmatpush3.msra.mxu1 %v65_v0  ;;  %952 = vmatprep.subr.mxu0 %v48_v1  ;;  %v105_v36 = vld [vmem:[%s1969_s1 + $0x250] sm:$0xff]  ;;  %v104_v40 = vld [vmem:[%s1969_s1 + $0x248] sm:$0xff]  ;;  %v151_v43 = vld [vmem:[%s1969_s1 + $0x3c0] sm:$0xff] }
  0x20   :  { %987 = vmatprep.subr.mxu1 %v80_v2  ;;  %953 = vmatpush3.msra.mxu0 %v32_v5  ;;  %v137_v37 = vld [vmem:[%s1969_s1 + $0x350] sm:$0xff]  ;;  %v136_v41 = vld [vmem:[%s1969_s1 + $0x348] sm:$0xff]  ;;  %v103_v44 = vld [vmem:[%s1969_s1 + $0x240] sm:$0xff] }
  0x21   :  { %988 = vmatpush3.msra.mxu1 %v64_v6  ;;  %954 = vmatprep.subr.mxu0 %v47_v7  ;;  %v135_v45 = vld [vmem:[%s1969_s1 + $0x340] sm:$0xff]  ;;  %v118_v47 = vld [vmem:[%s1969_s1 + $0x2b8] sm:$0xff]  ;;  %v117_v51 = vld [vmem:[%s1969_s1 + $0x2b0] sm:$0xff] }
  0x22   :  { %989 = vmatprep.subr.mxu1 %v79_v8  ;;  %955 = vmatpush3.msra.mxu0 %v31_v11  ;;  %v150_v48 = vld [vmem:[%s1969_s1 + $0x3b8] sm:$0xff]  ;;  %v149_v52 = vld [vmem:[%s1969_s1 + $0x3b0] sm:$0xff]  ;;  %v116_v56 = vld [vmem:[%s1969_s1 + $0x2a8] sm:$0xff]  ;;  %v262_v8 = vrot.slane %v28_v55, %v1434_v57 }
  0x23   :  { %375 = vmatprep.mubr.f32.mxu0 %v253_v9  ;;  %990 = vmatpush3.msra.mxu1 %v63_v12  ;;  %v102_v49 = vld [vmem:[%s1969_s1 + $0x238] sm:$0xff]  ;;  %v101_v53 = vld [vmem:[%s1969_s1 + $0x230] sm:$0xff]  ;;  %v148_v58 = vld [vmem:[%s1969_s1 + $0x3a8] sm:$0xff] }
  0x24   :  { %376 = vmatmul.mubr.f32.vlgmr.msra.gmra.mxu0 %v245_v3  ;;  %445 = vmatprep.mubr.f32.mxu1 %v254_v13  ;;  %v134_v50 = vld [vmem:[%s1969_s1 + $0x338] sm:$0xff]  ;;  %v133_v54 = vld [vmem:[%s1969_s1 + $0x330] sm:$0xff]  ;;  %v100_v59 = vld [vmem:[%s1969_s1 + $0x228] sm:$0xff]  ;;  %v255_v3 = vcombine.high %v28_v55, %v28_v55 }
  0x25   :  { %994 = vmatprep.subr.mxu0 %v126_v14  ;;  %1029 = vmatprep.subr.mxu1 %v158_v15  ;;  %v132_v60 = vld [vmem:[%s1969_s1 + $0x328] sm:$0xff]  ;;  %v115_v61 = vld [vmem:[%s1969_s1 + $0x2a0] sm:$0xff]  ;;  %v114_v1 = vld [vmem:[%s1969_s1 + $0x298] sm:$0xff] }
  0x26   :  { %446 = vmatmul.mubr.f32.vlgmr.msra.gmra.mxu1 %v252_v10  ;;  %995 = vmatpush3.msra.mxu0 %v110_v16  ;;  %v147_v62 = vld [vmem:[%s1969_s1 + $0x3a0] sm:$0xff]  ;;  %v146_v2 = vld [vmem:[%s1969_s1 + $0x398] sm:$0xff]  ;;  %v113_v6 = vld [vmem:[%s1969_s1 + $0x290] sm:$0xff]  ;;  %v269_v13 = vrot.slane %v255_v3, %v1434_v57 }
  0x27   :  { %1030 = vmatpush3.msra.mxu1 %v142_v17  ;;  %996 = vmatprep.subr.mxu0 %v125_v18  ;;  %v99_v63 = vld [vmem:[%s1969_s1 + $0x220] sm:$0xff]  ;;  %v98_v4 = vld [vmem:[%s1969_s1 + $0x218] sm:$0xff]  ;;  %v145_v7 = vld [vmem:[%s1969_s1 + $0x390] sm:$0xff]  ;;  %v270_v18 = vcombine.high %v262_v8, %v262_v8 }
  0x28   :  { %1031 = vmatprep.subr.mxu1 %v157_v19  ;;  %997 = vmatpush3.msra.mxu0 %v109_v20  ;;  %v131_v0 = vld [vmem:[%s1969_s1 + $0x320] sm:$0xff]  ;;  %v130_v5 = vld [vmem:[%s1969_s1 + $0x318] sm:$0xff]  ;;  %v97_v9 = vld [vmem:[%s1969_s1 + $0x210] sm:$0xff] }
  0x29   :  { %1032 = vmatpush3.msra.mxu1 %v141_v21  ;;  %998 = vmatprep.subr.mxu0 %v124_v22  ;;  %v129_v10 = vld [vmem:[%s1969_s1 + $0x310] sm:$0xff]  ;;  %v112_v11 = vld [vmem:[%s1969_s1 + $0x288] sm:$0xff]  ;;  %v111_v16 = vld [vmem:[%s1969_s1 + $0x280] sm:$0xff]  ;;  %v271_v21 = vcombine.high %v269_v13, %v269_v13 }
  0x2a   :  { %1033 = vmatprep.subr.mxu1 %v156_v23  ;;  %999 = vmatpush3.msra.mxu0 %v108_v24  ;;  %v144_v12 = vld [vmem:[%s1969_s1 + $0x388] sm:$0xff]  ;;  %v143_v17 = vld [vmem:[%s1969_s1 + $0x380] sm:$0xff]  ;;  %v190_v22 = vld [vmem:[%s1969_s1 + $0x4f8] sm:$0xff] }
  0x2b   :  { %1034 = vmatpush3.msra.mxu1 %v140_v25  ;;  %1000 = vmatprep.subr.mxu0 %v123_v26  ;;  %v96_v14 = vld [vmem:[%s1969_s1 + $0x208] sm:$0xff]  ;;  %v95_v19 = vld [vmem:[%s1969_s1 + $0x200] sm:$0xff]  ;;  %v222_v23 = vld [vmem:[%s1969_s1 + $0x5f8] sm:$0xff] }
  0x2c   :  { %1035 = vmatprep.subr.mxu1 %v155_v27  ;;  %1001 = vmatpush3.msra.mxu0 %v107_v28  ;;  %v128_v15 = vld [vmem:[%s1969_s1 + $0x308] sm:$0xff]  ;;  %v127_v20 = vld [vmem:[%s1969_s1 + $0x300] sm:$0xff] }
  0x2d   :  { %1036 = vmatpush3.msra.mxu1 %v139_v29  ;;  %1002 = vmatprep.subr.mxu0 %v122_v30 }
  0x2e   :  { %1037 = vmatprep.subr.mxu1 %v154_v31  ;;  %1003 = vmatpush3.msra.mxu0 %v106_v32 }
  0x2f   :  { %1038 = vmatpush3.msra.mxu1 %v138_v33  ;;  %1004 = vmatprep.subr.mxu0 %v121_v34 }
  0x30   :  { %1039 = vmatprep.subr.mxu1 %v153_v35  ;;  %1005 = vmatpush3.msra.mxu0 %v105_v36 }
  0x31   :  { %1040 = vmatpush3.msra.mxu1 %v137_v37  ;;  %1006 = vmatprep.subr.mxu0 %v120_v38 }
  0x32   :  { %1041 = vmatprep.subr.mxu1 %v152_v39  ;;  %1007 = vmatpush3.msra.mxu0 %v104_v40 }
  0x33   :  { %1042 = vmatpush3.msra.mxu1 %v136_v41  ;;  %1008 = vmatprep.subr.mxu0 %v119_v42 }
  0x34   :  { %1043 = vmatprep.subr.mxu1 %v151_v43  ;;  %1009 = vmatpush3.msra.mxu0 %v103_v44 }
  0x35   :  { %1044 = vmatpush3.msra.mxu1 %v135_v45  ;;  %1010 = vmatprep.subr.mxu0 %v118_v47 }
  0x36   :  { %1045 = vmatprep.subr.mxu1 %v150_v48  ;;  %1011 = vmatpush3.msra.mxu0 %v102_v49 }
  0x37   :  { %1046 = vmatpush3.msra.mxu1 %v134_v50  ;;  %1012 = vmatprep.subr.mxu0 %v117_v51 }
  0x38   :  { %1047 = vmatprep.subr.mxu1 %v149_v52  ;;  %1013 = vmatpush3.msra.mxu0 %v101_v53 }
  0x39   :  { %1048 = vmatpush3.msra.mxu1 %v133_v54  ;;  %1014 = vmatprep.subr.mxu0 %v116_v56 }
  0x3a   :  { %1049 = vmatprep.subr.mxu1 %v148_v58  ;;  %1015 = vmatpush3.msra.mxu0 %v100_v59 }
  0x3b   :  { %1050 = vmatpush3.msra.mxu1 %v132_v60  ;;  %1016 = vmatprep.subr.mxu0 %v115_v61 }
  0x3c   :  { %1051 = vmatprep.subr.mxu1 %v147_v62  ;;  %1017 = vmatpush3.msra.mxu0 %v99_v63 }
  0x3d   :  { %1052 = vmatpush3.msra.mxu1 %v131_v0  ;;  %1018 = vmatprep.subr.mxu0 %v114_v1 }
  0x3e   :  { %1053 = vmatprep.subr.mxu1 %v146_v2  ;;  %1019 = vmatpush3.msra.mxu0 %v98_v4 }
  0x3f   :  { %1054 = vmatpush3.msra.mxu1 %v130_v5  ;;  %1020 = vmatprep.subr.mxu0 %v113_v6 }
  0x40   :  { %1055 = vmatprep.subr.mxu1 %v145_v7  ;;  %1021 = vmatpush3.msra.mxu0 %v97_v9 }
  0x41   :  { %1056 = vmatpush3.msra.mxu1 %v129_v10  ;;  %1022 = vmatprep.subr.mxu0 %v112_v11 }
  0x42   :  { %1057 = vmatprep.subr.mxu1 %v144_v12  ;;  %1023 = vmatpush3.msra.mxu0 %v96_v14 }
  0x43   :  { %1058 = vmatpush3.msra.mxu1 %v128_v15  ;;  %1024 = vmatprep.subr.mxu0 %v111_v16 }
  0x44   :  { %1059 = vmatprep.subr.mxu1 %v143_v17  ;;  %1025 = vmatpush3.msra.mxu0 %v95_v19 }
  0x45   :  { %515 = vmatprep.mubr.f32.mxu0 %v270_v18 }
  0x46   :  { %10 = vsyncpa [#allocation3], 0  ;;  %1060 = vmatpush3.msra.mxu1 %v127_v20  ;;  %516 = vmatmul.mubr.f32.vlgmr.msra.gmra.mxu0 %v262_v8  ;;  %v174_v24 = vld [vmem:[%s1969_s1 + $0x478] sm:$0xff]  ;;  %v189_v26 = vld [vmem:[%s1969_s1 + $0x4f0] sm:$0xff]  ;;  %vm1246_vm0 = vmmov 0   ;;  %vm308_vm1 = vcmask 261120  }
  0x47   :  { %v206_v25 = vld [vmem:[%s1969_s1 + $0x578] sm:$0xff]  ;;  %585 = vmatprep.mubr.f32.mxu1 %v271_v21  ;;  %1064 = vmatprep.subr.mxu0 %v190_v22  ;;  %v221_v27 = vld [vmem:[%s1969_s1 + $0x5f0] sm:$0xff]  ;;  %v188_v30 = vld [vmem:[%s1969_s1 + $0x4e8] sm:$0xff]  ;;  %s1247_s16 = smov [#allocation2]   ;;  %vm905_vm4 = vcmask 74752  }
  0x48   :  { %1099 = vmatprep.subr.mxu1 %v222_v23  ;;  %586 = vmatmul.mubr.f32.vlgmr.msra.gmra.mxu1 %v269_v13  ;;  %v173_v28 = vld [vmem:[%s1969_s1 + $0x470] sm:$0xff]  ;;  %v220_v31 = vld [vmem:[%s1969_s1 + $0x5e8] sm:$0xff]  ;;  %v187_v34 = vld [vmem:[%s1969_s1 + $0x4e0] sm:$0xff]  ;;  %s913_s17 = sshll.u32 %s1247_s16, 4  ;;  %s914_s17 = int_to_ptr.vmem [resolvable:$true] %s913_s17 }
  0x49   :  { %v205_v29 = vld [vmem:[%s1969_s1 + $0x570] sm:$0xff]  ;;  %1065 = vmatpush3.msra.mxu0 %v174_v24  ;;  %1100 = vmatpush3.msra.mxu1 %v206_v25  ;;  %v172_v32 = vld [vmem:[%s1969_s1 + $0x468] sm:$0xff]  ;;  %v219_v35 = vld [vmem:[%s1969_s1 + $0x5e0] sm:$0xff]  ;;  %p1227_p1 = scmp.lt.s32.totalorder %s914_s17, %s914_s17 }
  0x4a   :  { %1066 = vmatprep.subr.mxu0 %v189_v26  ;;  %1101 = vmatprep.subr.mxu1 %v221_v27  ;;  %v204_v33 = vld [vmem:[%s1969_s1 + $0x568] sm:$0xff]  ;;  %v171_v36 = vld [vmem:[%s1969_s1 + $0x460] sm:$0xff]  ;;  %v186_v38 = vld [vmem:[%s1969_s1 + $0x4d8] sm:$0xff] }
  0x4b   :  { %1067 = vmatpush3.msra.mxu0 %v173_v28  ;;  %1102 = vmatpush3.msra.mxu1 %v205_v29  ;;  %v203_v37 = vld [vmem:[%s1969_s1 + $0x560] sm:$0xff]  ;;  %v218_v39 = vld [vmem:[%s1969_s1 + $0x5d8] sm:$0xff]  ;;  %v185_v42 = vld [vmem:[%s1969_s1 + $0x4d0] sm:$0xff] }
  0x4c   :  { %1068 = vmatprep.subr.mxu0 %v188_v30  ;;  %1103 = vmatprep.subr.mxu1 %v220_v31  ;;  %v170_v40 = vld [vmem:[%s1969_s1 + $0x458] sm:$0xff]  ;;  %v217_v43 = vld [vmem:[%s1969_s1 + $0x5d0] sm:$0xff]  ;;  %v184_v46 = vld [vmem:[%s1969_s1 + $0x4c8] sm:$0xff] }
  0x4d   :  { %1069 = vmatpush3.msra.mxu0 %v172_v32  ;;  %1104 = vmatpush3.msra.mxu1 %v204_v33  ;;  %v202_v41 = vld [vmem:[%s1969_s1 + $0x558] sm:$0xff]  ;;  %v169_v44 = vld [vmem:[%s1969_s1 + $0x450] sm:$0xff]  ;;  %v216_v47 = vld [vmem:[%s1969_s1 + $0x5c8] sm:$0xff] }
  0x4e   :  { %1070 = vmatprep.subr.mxu0 %v187_v34  ;;  %1105 = vmatprep.subr.mxu1 %v219_v35  ;;  %v201_v45 = vld [vmem:[%s1969_s1 + $0x550] sm:$0xff]  ;;  %v1756_v48 = vld [vmem:[%s1968_s0 + $0x8] sm:$0x1f]  ;;  %v183_v51 = vld [vmem:[%s1969_s1 + $0x4c0] sm:$0xff]  ;;  %v1245_v34 = vmov 0.0  }
  0x4f   :  { %1071 = vmatpush3.msra.mxu0 %v171_v36  ;;  %1106 = vmatpush3.msra.mxu1 %v203_v37  ;;  %v168_v49 = vld [vmem:[%s1969_s1 + $0x448] sm:$0xff]  ;;  %v215_v52 = vld [vmem:[%s1969_s1 + $0x5c0] sm:$0xff]  ;;  %v25_v55 = vunpack.c.l.b16 %v1756_v48  ;;  %v182_v56 = vld [vmem:[%s1969_s1 + $0x4b8] sm:$0xff]  ;;  %v26_v31 = vunpack.c.h.b16 %v1756_v48 }
  0x50   :  { %1072 = vmatprep.subr.mxu0 %v186_v38  ;;  %1107 = vmatprep.subr.mxu1 %v218_v39  ;;  %v200_v50 = vld [vmem:[%s1969_s1 + $0x548] sm:$0xff]  ;;  %v167_v53 = vld [vmem:[%s1969_s1 + $0x440] sm:$0xff]  ;;  %v214_v58 = vld [vmem:[%s1969_s1 + $0x5b8] sm:$0xff] }
  0x51   :  { %1073 = vmatpush3.msra.mxu0 %v170_v40  ;;  %1108 = vmatpush3.msra.mxu1 %v202_v41  ;;  %v199_v54 = vld [vmem:[%s1969_s1 + $0x540] sm:$0xff]  ;;  %v166_v59 = vld [vmem:[%s1969_s1 + $0x438] sm:$0xff]  ;;  %v181_v61 = vld [vmem:[%s1969_s1 + $0x4b0] sm:$0xff]  ;;  %v29_v1 = vcvt.s32.f32 %v25_v55  ;;  %v30_v33 = vcvt.s32.f32 %v26_v31 }
  0x52   :  { %1074 = vmatprep.subr.mxu0 %v185_v42  ;;  %1109 = vmatprep.subr.mxu1 %v217_v43  ;;  %v198_v60 = vld [vmem:[%s1969_s1 + $0x538] sm:$0xff]  ;;  %v213_v62 = vld [vmem:[%s1969_s1 + $0x5b0] sm:$0xff]  ;;  %v180_v2 = vld [vmem:[%s1969_s1 + $0x4a8] sm:$0xff] }
  0x53   :  { %1075 = vmatpush3.msra.mxu0 %v169_v44  ;;  %1110 = vmatpush3.msra.mxu1 %v201_v45  ;;  %v165_v63 = vld [vmem:[%s1969_s1 + $0x430] sm:$0xff]  ;;  %v212_v3 = vld [vmem:[%s1969_s1 + $0x5a8] sm:$0xff]  ;;  %v179_v6 = vld [vmem:[%s1969_s1 + $0x4a0] sm:$0xff]  ;;  %v272_v10 = vcombine.high %v29_v1, %v29_v1  ;;  %v279_v17 = vrot.slane %v29_v1, %v1434_v57  ;;  %v295_v38 = vrot.slane %v30_v33, %v1434_v57 }
  0x54   :  { %1076 = vmatprep.subr.mxu0 %v184_v46  ;;  %1111 = vmatprep.subr.mxu1 %v216_v47  ;;  %v197_v0 = vld [vmem:[%s1969_s1 + $0x530] sm:$0xff]  ;;  %v164_v4 = vld [vmem:[%s1969_s1 + $0x428] sm:$0xff]  ;;  %v211_v7 = vld [vmem:[%s1969_s1 + $0x5a0] sm:$0xff] }
  0x55   :  { %1077 = vmatpush3.msra.mxu0 %v168_v49  ;;  %1112 = vmatpush3.msra.mxu1 %v200_v50  ;;  %v196_v5 = vld [vmem:[%s1969_s1 + $0x528] sm:$0xff]  ;;  %v163_v8 = vld [vmem:[%s1969_s1 + $0x420] sm:$0xff]  ;;  %v178_v11 = vld [vmem:[%s1969_s1 + $0x498] sm:$0xff]  ;;  %v286_v20 = vrot.slane %v272_v10, %v1434_v57  ;;  %v287_v27 = vcombine.high %v279_v17, %v279_v17 }
  0x56   :  { %1078 = vmatprep.subr.mxu0 %v183_v51  ;;  %1113 = vmatprep.subr.mxu1 %v215_v52  ;;  %v195_v9 = vld [vmem:[%s1969_s1 + $0x520] sm:$0xff]  ;;  %v210_v12 = vld [vmem:[%s1969_s1 + $0x598] sm:$0xff]  ;;  %v177_v15 = vld [vmem:[%s1969_s1 + $0x490] sm:$0xff] }
  0x57   :  { %1079 = vmatpush3.msra.mxu0 %v167_v53  ;;  %1114 = vmatpush3.msra.mxu1 %v199_v54  ;;  %v162_v13 = vld [vmem:[%s1969_s1 + $0x418] sm:$0xff]  ;;  %v209_v16 = vld [vmem:[%s1969_s1 + $0x590] sm:$0xff]  ;;  %v176_v21 = vld [vmem:[%s1969_s1 + $0x488] sm:$0xff]  ;;  %v288_v29 = vcombine.high %v286_v20, %v286_v20 }
  0x58   :  { %1080 = vmatprep.subr.mxu0 %v182_v56  ;;  %1115 = vmatprep.subr.mxu1 %v214_v58  ;;  %v194_v14 = vld [vmem:[%s1969_s1 + $0x518] sm:$0xff]  ;;  %v161_v18 = vld [vmem:[%s1969_s1 + $0x410] sm:$0xff]  ;;  %v208_v22 = vld [vmem:[%s1969_s1 + $0x588] sm:$0xff] }
  0x59   :  { %1081 = vmatpush3.msra.mxu0 %v166_v59  ;;  %1116 = vmatpush3.msra.mxu1 %v198_v60  ;;  %v193_v19 = vld [vmem:[%s1969_s1 + $0x510] sm:$0xff]  ;;  %v160_v23 = vld [vmem:[%s1969_s1 + $0x408] sm:$0xff]  ;;  %v175_v25 = vld [vmem:[%s1969_s1 + $0x480] sm:$0xff] }
  0x5a   :  { %1082 = vmatprep.subr.mxu0 %v181_v61  ;;  %1117 = vmatprep.subr.mxu1 %v213_v62  ;;  %v192_v24 = vld [vmem:[%s1969_s1 + $0x508] sm:$0xff]  ;;  %v207_v26 = vld [vmem:[%s1969_s1 + $0x580] sm:$0xff]  ;;  %v226_v32 = vld [vmem:[%s1969_s1 + $0x618] sm:$0xff] }
  0x5b   :  { %1083 = vmatpush3.msra.mxu0 %v165_v63  ;;  %1118 = vmatpush3.msra.mxu1 %v197_v0  ;;  %v159_v28 = vld [vmem:[%s1969_s1 + $0x400] sm:$0xff]  ;;  %v225_v35 = vld [vmem:[%s1969_s1 + $0x610] sm:$0xff]  ;;  %v224_v36 = vld [vmem:[%s1969_s1 + $0x608] sm:$0xff] }
  0x5c   :  { %1084 = vmatprep.subr.mxu0 %v180_v2  ;;  %1119 = vmatprep.subr.mxu1 %v212_v3  ;;  %v191_v30 = vld [vmem:[%s1969_s1 + $0x500] sm:$0xff]  ;;  %v822_v39 = vld [vmem:[%s1971_s3 + $0x78] sm:$0xff]  ;;  %v821_v40 = vld [vmem:[%s1971_s3 + $0x70] sm:$0xff] }
  0x5d   :  { %1085 = vmatpush3.msra.mxu0 %v164_v4  ;;  %1120 = vmatpush3.msra.mxu1 %v196_v5  ;;  %v223_v37 = vld [vmem:[%s1969_s1 + $0x600] sm:$0xff]  ;;  %v820_v57 = vld [vmem:[%s1971_s3 + $0x68] sm:$0xff]  ;;  %v818_v42 = vld [vmem:[%s1971_s3 + $0x58] sm:$0xff] }
  0x5e   :  { %1086 = vmatprep.subr.mxu0 %v179_v6  ;;  %1121 = vmatprep.subr.mxu1 %v211_v7  ;;  %v819_v41 = vld [vmem:[%s1971_s3 + $0x60] sm:$0xff]  ;;  %v817_v43 = vld [vmem:[%s1971_s3 + $0x50] sm:$0xff]  ;;  %v816_v44 = vld [vmem:[%s1971_s3 + $0x48] sm:$0xff] }
  0x5f   :  { %1087 = vmatpush3.msra.mxu0 %v163_v8  ;;  %1122 = vmatpush3.msra.mxu1 %v195_v9  ;;  %v815_v45 = vld [vmem:[%s1971_s3 + $0x40] sm:$0xff]  ;;  %v814_v46 = vld [vmem:[%s1971_s3 + $0x38] sm:$0xff]  ;;  %v813_v47 = vld [vmem:[%s1971_s3 + $0x30] sm:$0xff] }
  0x60   :  { %1088 = vmatprep.subr.mxu0 %v178_v11  ;;  %1123 = vmatprep.subr.mxu1 %v210_v12  ;;  %v812_v48 = vld [vmem:[%s1971_s3 + $0x28] sm:$0xff]  ;;  %v811_v49 = vld [vmem:[%s1971_s3 + $0x20] sm:$0xff]  ;;  %v810_v50 = vld [vmem:[%s1971_s3 + $0x18] sm:$0xff] }
  0x61   :  { %1089 = vmatpush3.msra.mxu0 %v162_v13  ;;  %1124 = vmatpush3.msra.mxu1 %v194_v14  ;;  %v809_v51 = vld [vmem:[%s1971_s3 + $0x10] sm:$0xff]  ;;  %v808_v52 = vld [vmem:[%s1971_s3 + $0x8] sm:$0xff]  ;;  %v807_v53 = vld [vmem:[%s1971_s3] sm:$0xff] }
  0x62   :  { %1090 = vmatprep.subr.mxu0 %v177_v15  ;;  %1125 = vmatprep.subr.mxu1 %v209_v16  ;;  %v921_v60 = vld [vmem:[%s1970_s2] ss:$0 sm:$0xff] }
  0x63   :  { %1091 = vmatpush3.msra.mxu0 %v161_v18  ;;  %1126 = vmatpush3.msra.mxu1 %v193_v19  ;;  %v923_v31 = vld [vmem:[%s1972_s4] ss:$0 sm:$0xff]  ;;  %s1222_s4 = scalar_lea.vmem %s914_s17, 32 }
  0x64   :  { %1092 = vmatprep.subr.mxu0 %v176_v21  ;;  %1127 = vmatprep.subr.mxu1 %v208_v22  ;;  %p1223_p0 = scmp.ne.s32.totalorder %s914_s17, %s1222_s4  ;;  %p1228_p2 = scmp.lt.s32.totalorder %s1222_s4, %s1222_s4 }
  0x65   :  { %1093 = vmatpush3.msra.mxu0 %v160_v23  ;;  %1128 = vmatpush3.msra.mxu1 %v192_v24 }
  0x66   :  { %1094 = vmatprep.subr.mxu0 %v175_v25  ;;  %1129 = vmatprep.subr.mxu1 %v207_v26  ;;  %p1229_p3 = por %p1228_p2, %p1227_p1 }
  0x67   :  { %1095 = vmatpush3.msra.mxu0 %v159_v28  ;;  %655 = vmatprep.mubr.f32.mxu0 %v287_v27 }
  0x68   :  { %1130 = vmatpush3.msra.mxu1 %v191_v30  ;;  %725 = vmatprep.mubr.f32.mxu1 %v288_v29  ;;  %p1230_p4 = pnand %p1229_p3, %p1223_p0 }
  0x69   :  { %656 = vmatmul.mubr.f32.vlgmr.msra.gmra.mxu0 %v279_v17  ;;  %726 = vmatmul.mubr.f32.vlgmr.msra.gmra.mxu1 %v286_v20 }
  0x6a   :  { %1156 = vmatprep.subr.mxu0 %v1245_v34  ;;  %1164 = vmatprep.mubr.msk.f32.mxu0 %vm1246_vm0, %v1245_v34 }
  0x6b   :  { %1157 = vmatpush3.msra.mxu0 %v226_v32  ;;  %1167 = vmatprep.subr.mxu1 %v1245_v34 }
  0x6c   :  { %1158 = vmatprep.subr.mxu0 %v1245_v34  ;;  %1199 = vmatprep.mubr.msk.f32.mxu1 %vm1246_vm0, %v1245_v34 }
  0x6d   :  { %1159 = vmatpush3.msra.mxu0 %v225_v35  ;;  %1168 = vmatpush3.msra.mxu1 %v822_v39 }
  0x6e   :  { %1160 = vmatprep.subr.mxu0 %v1245_v34  ;;  %1169 = vmatprep.subr.mxu1 %v1245_v34 }
  0x6f   :  { %1161 = vmatpush3.msra.mxu0 %v224_v36  ;;  %1170 = vmatpush3.msra.mxu1 %v821_v40 }
  0x70   :  { %1162 = vmatprep.subr.mxu0 %v1245_v34  ;;  %1171 = vmatprep.subr.mxu1 %v1245_v34 }
  0x71   :  { %1163 = vmatpush3.msra.mxu0 %v223_v37  ;;  %1172 = vmatpush3.msra.mxu1 %v820_v57 }
  0x72   :  { %1165 = vmatmul.mubr.msk.f32.vlgmr.msra.gmra.mxu0 %vm308_vm1, %v295_v38  ;;  %1173 = vmatprep.subr.mxu1 %v1245_v34 }
  0x73   :  { %1174 = vmatpush3.msra.mxu1 %v819_v41 }
  0x74   :  { %1175 = vmatprep.subr.mxu1 %v1245_v34 }
  0x75   :  { %1176 = vmatpush3.msra.mxu1 %v818_v42 }
  0x76   :  { %1177 = vmatprep.subr.mxu1 %v1245_v34 }
  0x77   :  { %1178 = vmatpush3.msra.mxu1 %v817_v43 }
  0x78   :  { %1179 = vmatprep.subr.mxu1 %v1245_v34 }
  0x79   :  { %1180 = vmatpush3.msra.mxu1 %v816_v44 }
  0x7a   :  { %1181 = vmatprep.subr.mxu1 %v1245_v34 }
  0x7b   :  { %1182 = vmatpush3.msra.mxu1 %v815_v45 }
  0x7c   :  { %1183 = vmatprep.subr.mxu1 %v1245_v34 }
  0x7d   :  { %1184 = vmatpush3.msra.mxu1 %v814_v46 }
  0x7e   :  { %1185 = vmatprep.subr.mxu1 %v1245_v34 }
  0x7f   :  { %1186 = vmatpush3.msra.mxu1 %v813_v47 }
  0x80   :  { %1187 = vmatprep.subr.mxu1 %v1245_v34 }
  0x81   :  { %1188 = vmatpush3.msra.mxu1 %v812_v48 }
  0x82   :  { %1189 = vmatprep.subr.mxu1 %v1245_v34 }
  0x83   :  { %1190 = vmatpush3.msra.mxu1 %v811_v49 }
  0x84   :  { %1191 = vmatprep.subr.mxu1 %v1245_v34 }
  0x85   :  { %1192 = vmatpush3.msra.mxu1 %v810_v50 }
  0x86   :  { %1193 = vmatprep.subr.mxu1 %v1245_v34 }
  0x87   :  { %1194 = vmatpush3.msra.mxu1 %v809_v51 }
  0x88   :  { %1195 = vmatprep.subr.mxu1 %v1245_v34 }
  0x89   :  { %1196 = vmatpush3.msra.mxu1 %v808_v52 }
  0x8a   :  { %1197 = vmatprep.subr.mxu1 %v1245_v34 }
  0x8b   :  { %1198 = vmatpush3.msra.mxu1 %v807_v53 }
  0xe4   :  { %v956_v54 = vpop.f32.mrf.mxu0 }
  0xe6   :  { %v991_v55 = vpop.f32.mrf.mxu1  ;;  %v957_v56 = vpop.f32.mrf.mxu0 }
  0xe7   :  { %v958_v59 = vadd.f32 %v957_v56, %v956_v54 }
  0xe8   :  { %v992_v61 = vpop.f32.mrf.mxu1 }
  0xe9   :  { %v378_v0 = vadd.f32 %v958_v59, %v921_v60  ;;  %v993_v1 = vadd.f32 %v992_v61, %v991_v55 }
  0xeb   :  { %v448_v4 = vadd.f32 %v993_v1, %v378_v0 }
 0x106   :  { %v1026_v58 = vpop.f32.mrf.mxu0 }
 0x108   :  { %v1061_v62 = vpop.f32.mrf.mxu1  ;;  %v1027_v63 = vpop.f32.mrf.mxu0 }
 0x109   :  { %v1028_v2 = vadd.f32 %v1027_v63, %v1026_v58 }
 0x10a   :  { %v1062_v3 = vpop.f32.mrf.mxu1 }
 0x10b   :  { %v518_v5 = vadd.f32 %v1028_v2, %v448_v4  ;;  %v1063_v6 = vadd.f32 %v1062_v3, %v1061_v62 }
 0x10d   :  { %v588_v11 = vadd.f32 %v1063_v6, %v518_v5 }
 0x129   :  { %v1096_v7 = vpop.f32.mrf.mxu0  ;;  %v1131_v8 = vpop.f32.mrf.mxu1 }
 0x12b   :  { %v1097_v9 = vpop.f32.mrf.mxu0  ;;  %v1132_v10 = vpop.f32.mrf.mxu1 }
 0x12c   :  { %v1098_v12 = vadd.f32 %v1097_v9, %v1096_v7  ;;  %v1133_v14 = vadd.f32 %v1132_v10, %v1131_v8 }
 0x12e   :  { %v658_v13 = vadd.f32 %v1098_v12, %v588_v11 }
 0x130   :  { %v728_v15 = vadd.f32 %v1133_v14, %v658_v13 }
 0x132   :  { %v797_v16 = vpop.f32.mrf.mxu0 }
 0x133   :  { %v798_v17 = vadd.f32 %v797_v16, %v728_v15 }
 0x134   :  { %v1166_v18 = vpop.f32.mrf.mxu0 }
 0x135   :  { %v801_v19 = vmax.f32 %v798_v17, 0.0 }
 0x137   :  { %v802_v20 = vmul.f32 256.0, %v801_v19 }
 0x139   :  { %v1204_v21 = vcvt.f32.s32 %v802_v20  ;;  %v1202_v23 = vand.u32 2147483647, %v802_v20  ;;  %v1207_v25 = vand.u32 2147483648, %v802_v20 }
 0x13b   :  { %v1205_v22 = vcvt.s32.f32 %v1204_v21  ;;  %vm1203_vm2 = vcmp.lt.f32.partialorder %v1202_v23, 8388608.0 }
 0x13d   :  { %v1206_v24 = vand.u32 2147483647, %v1205_v22 }
 0x13f   :  { %v1208_v26 = vor.u32 %v1207_v25, %v1206_v24 }
 0x141   :  { %v1209_v27 = vsel %vm1203_vm2, %v1208_v26, %v802_v20 }
 0x142   :  { %v804_v28 = vmax.f32 %v1209_v27, -32768.0 }
 0x144   :  { %v805_v29 = vmin.f32 %v804_v28, 32767.0 }
 0x146   :  { %v806_v30 = vmul.f32 0.00390625, %v805_v29 }
 0x148   :  { %1200 = vmatmul.mubr.f32.vlgmr.msra.gmra.mxu1 %v806_v30 }
 0x208   :  { %v896_v32 = vpop.f32.mrf.mxu1 }
 0x209   :  { %v897_v33 = vadd.f32 %v923_v31, %v896_v32 }
 0x20a   :  { %v1201_v34 = vpop.f32.mrf.mxu1 }
 0x20b   :  { %v900_v35 = vmul.f32 256.0, %v897_v33 }
 0x20d   :  { %v1212_v36 = vcvt.f32.s32 %v900_v35  ;;  %v1210_v38 = vand.u32 2147483647, %v900_v35  ;;  %v1215_v40 = vand.u32 2147483648, %v900_v35 }
 0x20f   :  { %v1213_v37 = vcvt.s32.f32 %v1212_v36  ;;  %vm1211_vm3 = vcmp.lt.f32.partialorder %v1210_v38, 8388608.0 }
 0x211   :  { %v1214_v39 = vand.u32 2147483647, %v1213_v37 }
 0x213   :  { %v1216_v57 = vor.u32 %v1215_v40, %v1214_v39 }
 0x215   :  { %v1217_v41 = vsel %vm1211_vm3, %v1216_v57, %v900_v35 }
 0x216   :  { %v902_v42 = vmax.f32 %v1217_v41, -32768.0 }
 0x218   :  { %v903_v43 = vmin.f32 %v902_v42, 32767.0 }
 0x21a   :  { %v904_v44 = vmul.f32 0.00390625, %v903_v43 }
 0x21c   :  { %906 = vst.msk [vmem:[#allocation2] sm:$0x3] %vm905_vm4, %v904_v44 }
 0x21d   :  { %1233 = shalt.err (!%p1230_p4)
}
 0x21e   :  { %916 = dma.vmem_to_hbm [thread:$0]  %s914_s17, 32, %s1973_s5, [#allocation3]  }
 0x21f   :  { %1242 = dma.done.wait [#allocation3], 32  }
 0x220   :  { %1243 = vsyncadd [#allocation3], 4294967264 }
 0x221   :  { %920 = vsyncpa [#allocation3], 1 }

</bundles_post_ra>
